<compile_context>
chip_gen: v7x
topology: tpu7x:2x2x1
jax: 0.10.0
libtpu: 0.0.40
codegen_flags: <defaults>
</compile_context>

<pallas_src>
import numpy as np
import jax
import jax.numpy as jnp
from jax.experimental import pallas as pl
from jax.experimental.pallas import tpu as pltpu


def _stft_loss_kernel(nvalid_ref,                              # scalar prefetch (SMEM)
                      xyf_ref, basis_ref, cmask_ref,           # inputs
                      acc_sd_ref, acc_sy_ref, acc_ad_ref):     # resident accumulators
    c = pl.program_id(0)
    i = pl.program_id(1)
    inner = pl.num_programs(1)

    two_tm = xyf_ref.shape[0]
    tm = two_tm // 2
    half = cmask_ref.shape[1]

    @pl.when(i == 0)
    def _():
        acc_sd_ref[...] = jnp.zeros_like(acc_sd_ref)
        acc_sy_ref[...] = jnp.zeros_like(acc_sy_ref)
        acc_ad_ref[...] = jnp.zeros_like(acc_ad_ref)

    nvalid = nvalid_ref[0]
    tile_start = (c * inner + i) * tm

    # Skip matmul + epilogue entirely on fully-padded tiles.
    @pl.when(tile_start < nvalid)
    def _():
        # One fused single-pass bf16 MXU dot:
        #   [x tile ; y tile] (2*tm, n_fft)  @  [win*cos | win*(-sin)] (n_fft, 2*half)
        z = jnp.dot(xyf_ref[...], basis_ref[...],
                    preferred_element_type=jnp.float32)
        xz = z[:tm]
        yz = z[tm:]

        cmask = cmask_ref[...]                    # (1, half): 1 for real freq bins
        x_re, x_im = xz[:, :half], xz[:, half:]
        y_re, y_im = yz[:, :half], yz[:, half:]

        # magnitude, clamped at 1e-7 (torch.clamp(abs(stft), min=1e-7));
        # padded frequency lanes masked to exactly 0 (they drop out of all sums,
        # including the spectral-convergence denominator).
        x_mag = jnp.sqrt(jnp.maximum(x_re * x_re + x_im * x_im, 1e-14)) * cmask
        y_mag = jnp.sqrt(jnp.maximum(y_re * y_re + y_im * y_im, 1e-14)) * cmask

        x_s = jnp.sqrt(x_mag)
        y_s = jnp.sqrt(y_mag)

        d_s = jnp.abs(y_s - x_s)
        d_m = jnp.abs(y_mag - x_mag)

        @pl.when(tile_start + tm <= nvalid)       # steady state: unmasked accumulate
        def _():
            acc_sd_ref[...] += d_s
            acc_sy_ref[...] += y_s
            acc_ad_ref[...] += d_m

        @pl.when(tile_start + tm > nvalid)        # boundary tile: mask padded rows
        def _():
            row = jax.lax.broadcasted_iota(jnp.int32, d_s.shape, 0) + tile_start
            rmask = (row < nvalid).astype(jnp.float32)
            acc_sd_ref[...] += d_s * rmask
            acc_sy_ref[...] += y_s * rmask
            acc_ad_ref[...] += d_m * rmask


def _make_frames(x, fft_size, hop):
    """torch.stft framing with center=True, pad_mode='reflect'."""
    B, T = x.shape
    pad = fft_size // 2
    xp = jnp.pad(x, ((0, 0), (pad, pad)), mode="reflect")
    n_frames = (T + 2 * pad - fft_size) // hop + 1
    idx = (jnp.arange(n_frames) * hop)[:, None] + jnp.arange(fft_size)[None, :]
    frames = xp[:, idx]                           # (B, n_frames, n_fft)
    return frames.reshape(B * n_frames, fft_size), n_frames


def stft_loss(x, y, fft_size=128, hop=32, win_length=96, tm=512, nparts=1):
    """Returns (sc_loss, mag_loss) exactly like STFTLoss.forward (hann window)."""
    n_freq = fft_size // 2 + 1
    half = ((n_freq + 127) // 128) * 128          # lane-padded width of re/im halves

    # hann window (periodic, like torch.hann_window), zero-padded centered to n_fft
    n = np.arange(win_length)
    win = 0.5 - 0.5 * np.cos(2.0 * np.pi * n / win_length)
    lpad = (fft_size - win_length) // 2
    win_full = np.zeros(fft_size, dtype=np.float64)
    win_full[lpad:lpad + win_length] = win

    # window-folded real/imag DFT bases packed into one lane-dense bf16 RHS:
    #   columns [0:n_freq)          = diag(win) @ cos
    #   columns [half:half+n_freq)  = diag(win) @ (-sin)
    kk = np.arange(n_freq)
    nn = np.arange(fft_size)
    ang = 2.0 * np.pi * nn[:, None] * kk[None, :] / fft_size
    basis_np = np.zeros((fft_size, 2 * half), dtype=np.float64)
    basis_np[:, :n_freq] = win_full[:, None] * np.cos(ang)
    basis_np[:, half:half + n_freq] = win_full[:, None] * (-np.sin(ang))
    basis = jnp.asarray(basis_np, dtype=jnp.bfloat16)

    cmask = jnp.asarray((np.arange(half) < n_freq).astype(np.float32)[None, :])  # (1, half)

    xf, _ = _make_frames(x, fft_size, hop)
    yf, _ = _make_frames(y, fft_size, hop)
    M = xf.shape[0]

    # bf16 frames: single-pass MXU + half the input HBM bytes.
    xf = xf.astype(jnp.bfloat16)
    yf = yf.astype(jnp.bfloat16)

    chunk = nparts * tm
    Mp = ((M + chunk - 1) // chunk) * chunk
    if Mp != M:
        xf = jnp.pad(xf, ((0, Mp - M), (0, 0)))
        yf = jnp.pad(yf, ((0, Mp - M), (0, 0)))
    inner = Mp // chunk
    nt = Mp // tm

    # Per-tile stacked LHS: rows [t*2tm, t*2tm+tm) = x tile t, next tm rows = y tile t.
    xyf = jnp.concatenate(
        [xf.reshape(nt, tm, fft_size), yf.reshape(nt, tm, fft_size)], axis=1
    ).reshape(2 * Mp, fft_size)

    nvalid = jnp.array([M], dtype=jnp.int32)

    grid_spec = pltpu.PrefetchScalarGridSpec(
        num_scalar_prefetch=1,
        grid=(nparts, inner),
        in_specs=[
            pl.BlockSpec((2 * tm, fft_size), lambda c, i, nv: (c * inner + i, 0)),  # x|y frames
            pl.BlockSpec((fft_size, 2 * half), lambda c, i, nv: (0, 0)),            # DFT basis
            pl.BlockSpec((1, half), lambda c, i, nv: (0, 0)),                       # freq mask
        ],
        out_specs=(
            pl.BlockSpec((tm, half), lambda c, i, nv: (c, 0)),
            pl.BlockSpec((tm, half), lambda c, i, nv: (c, 0)),
            pl.BlockSpec((tm, half), lambda c, i, nv: (c, 0)),
        ),
    )

    out_shape = tuple(
        jax.ShapeDtypeStruct((nparts * tm, half), jnp.float32) for _ in range(3)
    )

    # NOTE: on multi-TensorCore parts (v7x) call with nparts=<num cores> and use
    # pltpu.CORE_PARALLEL for axis 0 to genuinely shard the row reduction.
    acc_sd, acc_sy, acc_ad = pl.pallas_call(
        _stft_loss_kernel,
        out_shape=out_shape,
        grid_spec=grid_spec,
        compiler_params=pltpu.CompilerParams(
            dimension_semantics=("parallel", "arbitrary")),
    )(nvalid, xyf, basis, cmask)

    # final (tiny) reductions / divisions in plain JAX
    # SpectralConvergenceLoss: ||sqrt(y)-sqrt(x)||_1 / ||sqrt(y)||_1
    sc_loss = jnp.sum(acc_sd) / jnp.sum(acc_sy)
    # LogSTFTMagnitudeLoss (as written in the module): mean |y_mag - x_mag|
    mag_loss = jnp.sum(acc_ad) / jnp.float32(M * n_freq)
    return sc_loss, mag_loss


def _reference(x, y, fft_size, hop, win_length):
    """Pure-JAX f32 reference (rfft-based) mirroring torch.stft semantics."""
    n = np.arange(win_length)
    win = 0.5 - 0.5 * np.cos(2.0 * np.pi * n / win_length)
    lpad = (fft_size - win_length) // 2
    win_full = np.zeros(fft_size)
    win_full[lpad:lpad + win_length] = win
    win_full = jnp.asarray(win_full, dtype=jnp.float32)

    def mags(sig):
        fr, _ = _make_frames(sig, fft_size, hop)
        spec = jnp.fft.rfft(fr * win_full[None, :], axis=-1)
        return jnp.maximum(jnp.abs(spec), 1e-7)

    xm, ym = mags(x), mags(y)
    sc = jnp.sum(jnp.abs(jnp.sqrt(ym) - jnp.sqrt(xm))) / jnp.sum(jnp.sqrt(ym))
    mg = jnp.mean(jnp.abs(ym - xm))
    return sc, mg


if __name__ == "__main__":
    key = jax.random.PRNGKey(0)
    kx, ky = jax.random.split(key)
    B, T = 2, 256
    fft_size, hop, win_length = 128, 32, 96   # small, consistent with the module

    x = jax.random.normal(kx, (B, T), dtype=jnp.float32)
    y = jax.random.normal(ky, (B, T), dtype=jnp.float32)

    sc_loss, mag_loss = stft_loss(x, y, fft_size, hop, win_length)
    jax.block_until_ready((sc_loss, mag_loss))

    sc_ref, mag_ref = _reference(x, y, fft_size, hop, win_length)
    assert np.allclose(np.asarray(sc_loss), np.asarray(sc_ref), rtol=1e-2, atol=1e-4), \
        (sc_loss, sc_ref)
    assert np.allclose(np.asarray(mag_loss), np.asarray(mag_ref), rtol=1e-2, atol=1e-4), \
        (mag_loss, mag_ref)

    print("KERNEL_OK")
</pallas_src>

<mosaic_0001>
module attributes {stable_mosaic.version = 11 : i64} {
  func.func @_stft_loss_kernel(%arg0: i32, %arg1: i32, %arg2: memref<1xi32, #tpu.memory_space<smem>>, %arg3: memref<1024x128xbf16, #tpu.memory_space<vmem>>, %arg4: memref<128x256xbf16, #tpu.memory_space<vmem>>, %arg5: memref<1x128xf32, #tpu.memory_space<vmem>>, %arg6: memref<512x128xf32, #tpu.memory_space<vmem>>, %arg7: memref<512x128xf32, #tpu.memory_space<vmem>>, %arg8: memref<512x128xf32, #tpu.memory_space<vmem>>) attributes {dimension_semantics = [#tpu.dimension_semantics<parallel>, #tpu.dimension_semantics<arbitrary>], iteration_bounds = array<i64: 1, 1>, scalar_prefetch = 1 : i64, scratch_operands = 0 : i64, tpu.core_type = #tpu.core_type<tc>, window_params = [{transform_indices = @transform_0, window_bounds = array<i64: 1024, 128>}, {pipeline_mode = #tpu.pipeline_mode<synchronous>, transform_indices = @transform_1, window_bounds = array<i64: 128, 256>}, {pipeline_mode = #tpu.pipeline_mode<synchronous>, transform_indices = @transform_2, window_bounds = array<i64: 1, 128>}, {transform_indices = @transform_3, window_bounds = array<i64: 512, 128>}, {transform_indices = @transform_4, window_bounds = array<i64: 512, 128>}, {transform_indices = @transform_5, window_bounds = array<i64: 512, 128>}]} {
    %c0_i32 = arith.constant 0 : i32
    %0 = arith.cmpi eq, %arg1, %c0_i32 : i32
    %1 = arith.extui %0 : i1 to i32
    %c0_i32_0 = arith.constant 0 : i32
    %2 = arith.cmpi ne, %1, %c0_i32_0 : i32
    scf.if %2 {
      %cst = arith.constant 0.000000e+00 : f32
      %10 = vector.broadcast %cst : f32 to vector<512x128xf32>
      %c0_2 = arith.constant 0 : index
      %c0_3 = arith.constant 0 : index
      %11 = vector.load %arg6[%c0_2, %c0_3] : memref<512x128xf32, #tpu.memory_space<vmem>>, vector<512x128xf32>
      tpu.vector_store %arg6[%c0_2, %c0_3], %10 {strides = array<i32>} : memref<512x128xf32, #tpu.memory_space<vmem>>, vector<512x128xf32>,
      %cst_4 = arith.constant 0.000000e+00 : f32
      %12 = vector.broadcast %cst_4 : f32 to vector<512x128xf32>
      %c0_5 = arith.constant 0 : index
      %c0_6 = arith.constant 0 : index
      %13 = vector.load %arg7[%c0_5, %c0_6] : memref<512x128xf32, #tpu.memory_space<vmem>>, vector<512x128xf32>
      tpu.vector_store %arg7[%c0_5, %c0_6], %12 {strides = array<i32>} : memref<512x128xf32, #tpu.memory_space<vmem>>, vector<512x128xf32>,
      %cst_7 = arith.constant 0.000000e+00 : f32
      %14 = vector.broadcast %cst_7 : f32 to vector<512x128xf32>
      %c0_8 = arith.constant 0 : index
      %c0_9 = arith.constant 0 : index
      %15 = vector.load %arg8[%c0_8, %c0_9] : memref<512x128xf32, #tpu.memory_space<vmem>>, vector<512x128xf32>
      tpu.vector_store %arg8[%c0_8, %c0_9], %14 {strides = array<i32>} : memref<512x128xf32, #tpu.memory_space<vmem>>, vector<512x128xf32>,
    } else {
    }
    %c0 = arith.constant 0 : index
    %3 = memref.load %arg2[%c0] : memref<1xi32, #tpu.memory_space<smem>>
    %c1_i32 = arith.constant 1 : i32
    %4 = arith.muli %arg0, %c1_i32 : i32
    %5 = arith.addi %4, %arg1 : i32
    %c512_i32 = arith.constant 512 : i32
    %6 = arith.muli %5, %c512_i32 : i32
    %7 = arith.cmpi slt, %6, %3 : i32
    %8 = arith.extui %7 : i1 to i32
    %c0_i32_1 = arith.constant 0 : i32
    %9 = arith.cmpi ne, %8, %c0_i32_1 : i32
    scf.if %9 {
      %c0_2 = arith.constant 0 : index
      %c0_3 = arith.constant 0 : index
      %10 = vector.load %arg3[%c0_2, %c0_3] : memref<1024x128xbf16, #tpu.memory_space<vmem>>, vector<1024x128xbf16>
      %c0_4 = arith.constant 0 : index
      %c0_5 = arith.constant 0 : index
      %11 = vector.load %arg4[%c0_4, %c0_5] : memref<128x256xbf16, #tpu.memory_space<vmem>>, vector<128x256xbf16>
      %cst = arith.constant dense<0.000000e+00> : vector<1024x256xf32>
      %12 = tpu.matmul %10, %11, %cst {dimension_numbers = #tpu.dot_dimension_numbers<[1], [0], [0], [1], [0, 0, 1, 1], [], []>} : vector<1024x128xbf16>, vector<128x256xbf16>, vector<1024x256xf32> -> vector<1024x256xf32>
      %13 = vector.extract_strided_slice %12 {offsets = [0, 0], sizes = [512, 256], strides = [1, 1]} : vector<1024x256xf32> to vector<512x256xf32>
      %14 = vector.extract_strided_slice %12 {offsets = [512, 0], sizes = [512, 256], strides = [1, 1]} : vector<1024x256xf32> to vector<512x256xf32>
      %c0_6 = arith.constant 0 : index
      %c0_7 = arith.constant 0 : index
      %15 = vector.load %arg5[%c0_6, %c0_7] : memref<1x128xf32, #tpu.memory_space<vmem>>, vector<1x128xf32>
      %16 = vector.extract_strided_slice %13 {offsets = [0, 0], sizes = [512, 128], strides = [1, 1]} : vector<512x256xf32> to vector<512x128xf32>
      %17 = vector.extract_strided_slice %13 {offsets = [0, 128], sizes = [512, 128], strides = [1, 1]} : vector<512x256xf32> to vector<512x128xf32>
      %18 = vector.extract_strided_slice %14 {offsets = [0, 0], sizes = [512, 128], strides = [1, 1]} : vector<512x256xf32> to vector<512x128xf32>
      %19 = vector.extract_strided_slice %14 {offsets = [0, 128], sizes = [512, 128], strides = [1, 1]} : vector<512x256xf32> to vector<512x128xf32>
      %20 = arith.mulf %16, %16 : vector<512x128xf32>
      %21 = arith.mulf %17, %17 : vector<512x128xf32>
      %22 = arith.addf %20, %21 : vector<512x128xf32>
      %cst_8 = arith.constant 9.99999982E-15 : f32
      %23 = vector.broadcast %cst_8 : f32 to vector<512x128xf32>
      %24 = arith.maximumf %22, %23 : vector<512x128xf32>
      %25 = math.sqrt %24 : vector<512x128xf32>
      %26 = vector.broadcast %15 : vector<1x128xf32> to vector<512x128xf32>
      %27 = arith.mulf %25, %26 : vector<512x128xf32>
      %28 = arith.mulf %18, %18 : vector<512x128xf32>
      %29 = arith.mulf %19, %19 : vector<512x128xf32>
      %30 = arith.addf %28, %29 : vector<512x128xf32>
      %cst_9 = arith.constant 9.99999982E-15 : f32
      %31 = vector.broadcast %cst_9 : f32 to vector<512x128xf32>
      %32 = arith.maximumf %30, %31 : vector<512x128xf32>
      %33 = math.sqrt %32 : vector<512x128xf32>
      %34 = vector.broadcast %15 : vector<1x128xf32> to vector<512x128xf32>
      %35 = arith.mulf %33, %34 : vector<512x128xf32>
      %36 = math.sqrt %27 : vector<512x128xf32>
      %37 = math.sqrt %35 : vector<512x128xf32>
      %38 = arith.subf %37, %36 : vector<512x128xf32>
      %39 = math.absf %38 : vector<512x128xf32>
      %40 = arith.subf %35, %27 : vector<512x128xf32>
      %41 = math.absf %40 : vector<512x128xf32>
      %c512_i32_10 = arith.constant 512 : i32
      %42 = arith.addi %6, %c512_i32_10 : i32
      %43 = arith.cmpi sle, %42, %3 : i32
      %44 = arith.extui %43 : i1 to i32
      %c0_i32_11 = arith.constant 0 : i32
      %45 = arith.cmpi ne, %44, %c0_i32_11 : i32
      scf.if %45 {
        %c0_14 = arith.constant 0 : index
        %c0_15 = arith.constant 0 : index
        %50 = vector.load %arg6[%c0_14, %c0_15] : memref<512x128xf32, #tpu.memory_space<vmem>>, vector<512x128xf32>
        %51 = arith.addf %50, %39 : vector<512x128xf32>
        %c0_16 = arith.constant 0 : index
        %c0_17 = arith.constant 0 : index
        %52 = vector.load %arg6[%c0_16, %c0_17] : memref<512x128xf32, #tpu.memory_space<vmem>>, vector<512x128xf32>
        tpu.vector_store %arg6[%c0_16, %c0_17], %51 {strides = array<i32>} : memref<512x128xf32, #tpu.memory_space<vmem>>, vector<512x128xf32>,
        %c0_18 = arith.constant 0 : index
        %c0_19 = arith.constant 0 : index
        %53 = vector.load %arg7[%c0_18, %c0_19] : memref<512x128xf32, #tpu.memory_space<vmem>>, vector<512x128xf32>
        %54 = arith.addf %53, %37 : vector<512x128xf32>
        %c0_20 = arith.constant 0 : index
        %c0_21 = arith.constant 0 : index
        %55 = vector.load %arg7[%c0_20, %c0_21] : memref<512x128xf32, #tpu.memory_space<vmem>>, vector<512x128xf32>
        tpu.vector_store %arg7[%c0_20, %c0_21], %54 {strides = array<i32>} : memref<512x128xf32, #tpu.memory_space<vmem>>, vector<512x128xf32>,
        %c0_22 = arith.constant 0 : index
        %c0_23 = arith.constant 0 : index
        %56 = vector.load %arg8[%c0_22, %c0_23] : memref<512x128xf32, #tpu.memory_space<vmem>>, vector<512x128xf32>
        %57 = arith.addf %56, %41 : vector<512x128xf32>
        %c0_24 = arith.constant 0 : index
        %c0_25 = arith.constant 0 : index
        %58 = vector.load %arg8[%c0_24, %c0_25] : memref<512x128xf32, #tpu.memory_space<vmem>>, vector<512x128xf32>
        tpu.vector_store %arg8[%c0_24, %c0_25], %57 {strides = array<i32>} : memref<512x128xf32, #tpu.memory_space<vmem>>, vector<512x128xf32>,
      } else {
      }
      %c512_i32_12 = arith.constant 512 : i32
      %46 = arith.addi %6, %c512_i32_12 : i32
      %47 = arith.cmpi sgt, %46, %3 : i32
      %48 = arith.extui %47 : i1 to i32
      %c0_i32_13 = arith.constant 0 : i32
      %49 = arith.cmpi ne, %48, %c0_i32_13 : i32
      scf.if %49 {
        %50 = tpu.iota {dimensions = array<i32: 0>} : vector<512x128xi32>
        %51 = vector.broadcast %6 : i32 to vector<512x128xi32>
        %52 = arith.addi %50, %51 : vector<512x128xi32>
        %53 = vector.broadcast %3 : i32 to vector<512x128xi32>
        %54 = arith.cmpi slt, %52, %53 : vector<512x128xi32>
        %55 = arith.extui %54 : vector<512x128xi1> to vector<512x128xi32>
        %56 = arith.sitofp %55 : vector<512x128xi32> to vector<512x128xf32>
        %c0_14 = arith.constant 0 : index
        %c0_15 = arith.constant 0 : index
        %57 = vector.load %arg6[%c0_14, %c0_15] : memref<512x128xf32, #tpu.memory_space<vmem>>, vector<512x128xf32>
        %58 = arith.mulf %39, %56 : vector<512x128xf32>
        %59 = arith.addf %57, %58 : vector<512x128xf32>
        %c0_16 = arith.constant 0 : index
        %c0_17 = arith.constant 0 : index
        %60 = vector.load %arg6[%c0_16, %c0_17] : memref<512x128xf32, #tpu.memory_space<vmem>>, vector<512x128xf32>
        tpu.vector_store %arg6[%c0_16, %c0_17], %59 {strides = array<i32>} : memref<512x128xf32, #tpu.memory_space<vmem>>, vector<512x128xf32>,
        %c0_18 = arith.constant 0 : index
        %c0_19 = arith.constant 0 : index
        %61 = vector.load %arg7[%c0_18, %c0_19] : memref<512x128xf32, #tpu.memory_space<vmem>>, vector<512x128xf32>
        %62 = arith.mulf %37, %56 : vector<512x128xf32>
        %63 = arith.addf %61, %62 : vector<512x128xf32>
        %c0_20 = arith.constant 0 : index
        %c0_21 = arith.constant 0 : index
        %64 = vector.load %arg7[%c0_20, %c0_21] : memref<512x128xf32, #tpu.memory_space<vmem>>, vector<512x128xf32>
        tpu.vector_store %arg7[%c0_20, %c0_21], %63 {strides = array<i32>} : memref<512x128xf32, #tpu.memory_space<vmem>>, vector<512x128xf32>,
        %c0_22 = arith.constant 0 : index
        %c0_23 = arith.constant 0 : index
        %65 = vector.load %arg8[%c0_22, %c0_23] : memref<512x128xf32, #tpu.memory_space<vmem>>, vector<512x128xf32>
        %66 = arith.mulf %41, %56 : vector<512x128xf32>
        %67 = arith.addf %65, %66 : vector<512x128xf32>
        %c0_24 = arith.constant 0 : index
        %c0_25 = arith.constant 0 : index
        %68 = vector.load %arg8[%c0_24, %c0_25] : memref<512x128xf32, #tpu.memory_space<vmem>>, vector<512x128xf32>
        tpu.vector_store %arg8[%c0_24, %c0_25], %67 {strides = array<i32>} : memref<512x128xf32, #tpu.memory_space<vmem>>, vector<512x128xf32>,
      } else {
      }
    } else {
    }
    return
  }
  func.func @transform_0(%arg0: i32, %arg1: i32, %arg2: memref<1xi32, #tpu.memory_space<smem>>) -> (i32, i32) {
    %c1_i32 = arith.constant 1 : i32
    %0 = arith.muli %arg0, %c1_i32 : i32
    %1 = arith.addi %0, %arg1 : i32
    %c0_i32 = arith.constant 0 : i32
    %c0_i32_0 = arith.constant 0 : i32
    return %1, %c0_i32 : i32, i32
  }
  func.func @transform_1(%arg0: i32, %arg1: i32, %arg2: memref<1xi32, #tpu.memory_space<smem>>) -> (i32, i32) {
    %c0_i32 = arith.constant 0 : i32
    %c0_i32_0 = arith.constant 0 : i32
    %c0_i32_1 = arith.constant 0 : i32
    return %c0_i32, %c0_i32_0 : i32, i32
  }
  func.func @transform_2(%arg0: i32, %arg1: i32, %arg2: memref<1xi32, #tpu.memory_space<smem>>) -> (i32, i32) {
    %c0_i32 = arith.constant 0 : i32
    %c0_i32_0 = arith.constant 0 : i32
    %c0_i32_1 = arith.constant 0 : i32
    return %c0_i32, %c0_i32_0 : i32, i32
  }
  func.func @transform_3(%arg0: i32, %arg1: i32, %arg2: memref<1xi32, #tpu.memory_space<smem>>) -> (i32, i32) {
    %c0_i32 = arith.constant 0 : i32
    %c0_i32_0 = arith.constant 0 : i32
    return %arg0, %c0_i32 : i32, i32
  }
  func.func @transform_4(%arg0: i32, %arg1: i32, %arg2: memref<1xi32, #tpu.memory_space<smem>>) -> (i32, i32) {
    %c0_i32 = arith.constant 0 : i32
    %c0_i32_0 = arith.constant 0 : i32
    return %arg0, %c0_i32 : i32, i32
  }
  func.func @transform_5(%arg0: i32, %arg1: i32, %arg2: memref<1xi32, #tpu.memory_space<smem>>) -> (i32, i32) {
    %c0_i32 = arith.constant 0 : i32
    %c0_i32_0 = arith.constant 0 : i32
    return %arg0, %c0_i32 : i32, i32
  }
}

</mosaic_0001>

<bundles_post_ra>
// kernel: tpu_custom_call.1
= control target key start
LH: loop header
LB: loop body
LE: loop exit
PB: predicated region body
PF: predicated region fallthrough
CT: control target
= control target key end

     0   :  { %13 = vsyncpa [#allocation5], 0  ;;  %s12690_s0 = inlined_call_operand.<no memory space> [shape: s32[1], index: 0, kind: input, shape index: {}]   ;;  %s12691_s1 = inlined_call_operand.hbm [shape: bf16[1024,128], index: 1, kind: input, shape index: {}]   ;;  %s12692_s2 = inlined_call_operand.hbm [shape: bf16[128,256], index: 2, kind: input, shape index: {}]   ;;  %s12693_s3 = inlined_call_operand.vmem [shape: f32[1,128], index: 3, kind: input, shape index: {}]   ;;  %s12694_s4 = inlined_call_operand.hbm [shape: f32[512,128], index: 4, kind: output, shape index: {0}]   ;;  %s12695_s5 = inlined_call_operand.hbm [shape: f32[512,128], index: 5, kind: output, shape index: {1}]   ;;  %s12696_s6 = inlined_call_operand.hbm [shape: f32[512,128], index: 6, kind: output, shape index: {2}]  }
   0x1   :  { %14 = vsyncpa [#allocation8], 0 }
   0x2   :  { %15 = vsyncpa [#allocation6], 0 }
   0x3   :  { %16 = vsyncpa [#allocation11], 0  ;;  %s6862_s21 = smov [#allocation4]   ;;  %s6744_s25 = scalar_lea.hbm %s12691_s1, 8192 }
   0x4   :  { %s26_s22 = sshll.u32 %s6862_s21, 4  ;;  %p6745_p0 = scmp.ne.s32.totalorder %s12691_s1, %s6744_s25  ;;  %s27_s22 = int_to_ptr.vmem [resolvable:$true] %s26_s22 }
   0x5   :  { %p6748_p1 = scmp.lt.u32.totalorder %s6744_s25, %s12691_s1 }
   0x7   :  { %p6750_p2 = pnand %p6748_p1, %p6745_p0 }
   0x9   :  { %6753 = shalt.err (!%p6750_p2)
}
   0xa   :  { %s6754_s30 = scalar_lea.vmem %s27_s22, 8192  ;;  %p6759_p4 = scmp.lt.s32.totalorder %s27_s22, %s27_s22 }
   0xb   :  { %p6755_p3 = scmp.ne.s32.totalorder %s27_s22, %s6754_s30  ;;  %p6760_p5 = scmp.lt.s32.totalorder %s6754_s30, %s6754_s30 }
   0xd   :  { %p6761_p6 = por %p6760_p5, %p6759_p4 }
   0xf   :  { %p6762_p7 = pnand %p6761_p6, %p6755_p3 }
  0x11   :  { %6765 = shalt.err (!%p6762_p7)
}
  0x12   :  { %s6863_s7 = smov 64   ;;  %s6864_s8 = smov 4  }
  0x13   :  { %32 = dma.hbm_to_vmem [thread:$0]  %s12691_s1, 8192, %s27_s22, [#allocation5], %s6863_s7, %s6863_s7, %s6864_s8  }
  0x14   :  { %s6865_s11 = smov [#allocation7]   ;;  %s6766_s15 = scalar_lea.hbm %s12692_s2, 2048 }
  0x15   :  { %s38_s12 = sshll.u32 %s6865_s11, 4  ;;  %p6767_p8 = scmp.ne.s32.totalorder %s12692_s2, %s6766_s15  ;;  %s39_s12 = int_to_ptr.vmem [resolvable:$true] %s38_s12 }
  0x16   :  { %p6770_p9 = scmp.lt.u32.totalorder %s6766_s15, %s12692_s2 }
  0x18   :  { %p6772_p10 = pnand %p6770_p9, %p6767_p8 }
  0x1a   :  { %6775 = shalt.err (!%p6772_p10)
}
  0x1b   :  { %s6776_s20 = scalar_lea.vmem %s39_s12, 2048  ;;  %p6781_p12 = scmp.lt.s32.totalorder %s39_s12, %s39_s12 }
  0x1c   :  { %p6777_p11 = scmp.ne.s32.totalorder %s39_s12, %s6776_s20  ;;  %p6782_p13 = scmp.lt.s32.totalorder %s6776_s20, %s6776_s20 }
  0x1e   :  { %p6783_p0 = por %p6782_p13, %p6781_p12 }
  0x20   :  { %p6784_p1 = pnand %p6783_p0, %p6777_p11 }
  0x22   :  { %6787 = shalt.err (!%p6784_p1)
}
  0x23   :  { %s6866_s1 = smov 128   ;;  %s6867_s21 = smov 8  }
  0x24   :  { %44 = dma.hbm_to_vmem [thread:$0]  %s12692_s2, 2048, %s39_s12, [#allocation8], %s6866_s1, %s6866_s1, %s6867_s21  }
  0x25   :  { %6854 = dma.done.wait [#allocation5], 8192  }
  0x26   :  { %6855 = vsyncadd [#allocation5], 4294959104 }
  0x27   :  { %6856 = dma.done.wait [#allocation8], 2048  }
  0x28   :  { %6857 = vsyncadd [#allocation8], 4294965248  ;;  %v6868_v0 = vmov 0.0   ;;  %p5961_p2 = scmp.le.s32.totalorder %s12690_s0, 0 }
  0x29   :  { %60 = vst [vmem:[#allocation9] sm:$0xff] %v6868_v0  ;;  %61 = vst [vmem:[#allocation9 + $0x8] sm:$0xff] %v6868_v0 }
  0x2a   :  { %62 = vst [vmem:[#allocation9 + $0x10] sm:$0xff] %v6868_v0  ;;  %63 = vst [vmem:[#allocation9 + $0x18] sm:$0xff] %v6868_v0 }
  0x2b   :  { %64 = vst [vmem:[#allocation9 + $0x20] sm:$0xff] %v6868_v0  ;;  %65 = vst [vmem:[#allocation9 + $0x28] sm:$0xff] %v6868_v0 }
  0x2c   :  { %66 = vst [vmem:[#allocation9 + $0x30] sm:$0xff] %v6868_v0  ;;  %67 = vst [vmem:[#allocation9 + $0x38] sm:$0xff] %v6868_v0 }
  0x2d   :  { %68 = vst [vmem:[#allocation9 + $0x40] sm:$0xff] %v6868_v0  ;;  %69 = vst [vmem:[#allocation9 + $0x48] sm:$0xff] %v6868_v0 }
  0x2e   :  { %70 = vst [vmem:[#allocation9 + $0x50] sm:$0xff] %v6868_v0  ;;  %71 = vst [vmem:[#allocation9 + $0x58] sm:$0xff] %v6868_v0 }
  0x2f   :  { %72 = vst [vmem:[#allocation9 + $0x60] sm:$0xff] %v6868_v0  ;;  %73 = vst [vmem:[#allocation9 + $0x68] sm:$0xff] %v6868_v0 }
  0x30   :  { %74 = vst [vmem:[#allocation9 + $0x70] sm:$0xff] %v6868_v0  ;;  %75 = vst [vmem:[#allocation9 + $0x78] sm:$0xff] %v6868_v0 }
  0x31   :  { %76 = vst [vmem:[#allocation9 + $0x80] sm:$0xff] %v6868_v0  ;;  %77 = vst [vmem:[#allocation9 + $0x88] sm:$0xff] %v6868_v0 }
  0x32   :  { %78 = vst [vmem:[#allocation9 + $0x90] sm:$0xff] %v6868_v0  ;;  %79 = vst [vmem:[#allocation9 + $0x98] sm:$0xff] %v6868_v0 }
  0x33   :  { %80 = vst [vmem:[#allocation9 + $0xa0] sm:$0xff] %v6868_v0  ;;  %81 = vst [vmem:[#allocation9 + $0xa8] sm:$0xff] %v6868_v0 }
  0x34   :  { %82 = vst [vmem:[#allocation9 + $0xb0] sm:$0xff] %v6868_v0  ;;  %83 = vst [vmem:[#allocation9 + $0xb8] sm:$0xff] %v6868_v0 }
  0x35   :  { %84 = vst [vmem:[#allocation9 + $0xc0] sm:$0xff] %v6868_v0  ;;  %85 = vst [vmem:[#allocation9 + $0xc8] sm:$0xff] %v6868_v0 }
  0x36   :  { %86 = vst [vmem:[#allocation9 + $0xd0] sm:$0xff] %v6868_v0  ;;  %87 = vst [vmem:[#allocation9 + $0xd8] sm:$0xff] %v6868_v0 }
  0x37   :  { %88 = vst [vmem:[#allocation9 + $0xe0] sm:$0xff] %v6868_v0  ;;  %89 = vst [vmem:[#allocation9 + $0xe8] sm:$0xff] %v6868_v0 }
  0x38   :  { %90 = vst [vmem:[#allocation9 + $0xf0] sm:$0xff] %v6868_v0  ;;  %91 = vst [vmem:[#allocation9 + $0xf8] sm:$0xff] %v6868_v0 }
  0x39   :  { %92 = vst [vmem:[#allocation9 + $0x100] sm:$0xff] %v6868_v0  ;;  %93 = vst [vmem:[#allocation9 + $0x108] sm:$0xff] %v6868_v0 }
  0x3a   :  { %94 = vst [vmem:[#allocation9 + $0x110] sm:$0xff] %v6868_v0  ;;  %95 = vst [vmem:[#allocation9 + $0x118] sm:$0xff] %v6868_v0 }
  0x3b   :  { %96 = vst [vmem:[#allocation9 + $0x120] sm:$0xff] %v6868_v0  ;;  %97 = vst [vmem:[#allocation9 + $0x128] sm:$0xff] %v6868_v0 }
  0x3c   :  { %98 = vst [vmem:[#allocation9 + $0x130] sm:$0xff] %v6868_v0  ;;  %99 = vst [vmem:[#allocation9 + $0x138] sm:$0xff] %v6868_v0 }
  0x3d   :  { %100 = vst [vmem:[#allocation9 + $0x140] sm:$0xff] %v6868_v0  ;;  %101 = vst [vmem:[#allocation9 + $0x148] sm:$0xff] %v6868_v0 }
  0x3e   :  { %102 = vst [vmem:[#allocation9 + $0x150] sm:$0xff] %v6868_v0  ;;  %103 = vst [vmem:[#allocation9 + $0x158] sm:$0xff] %v6868_v0 }
  0x3f   :  { %104 = vst [vmem:[#allocation9 + $0x160] sm:$0xff] %v6868_v0  ;;  %105 = vst [vmem:[#allocation9 + $0x168] sm:$0xff] %v6868_v0 }
  0x40   :  { %106 = vst [vmem:[#allocation9 + $0x170] sm:$0xff] %v6868_v0  ;;  %107 = vst [vmem:[#allocation9 + $0x178] sm:$0xff] %v6868_v0 }
  0x41   :  { %108 = vst [vmem:[#allocation9 + $0x180] sm:$0xff] %v6868_v0  ;;  %109 = vst [vmem:[#allocation9 + $0x188] sm:$0xff] %v6868_v0 }
  0x42   :  { %110 = vst [vmem:[#allocation9 + $0x190] sm:$0xff] %v6868_v0  ;;  %111 = vst [vmem:[#allocation9 + $0x198] sm:$0xff] %v6868_v0 }
  0x43   :  { %112 = vst [vmem:[#allocation9 + $0x1a0] sm:$0xff] %v6868_v0  ;;  %113 = vst [vmem:[#allocation9 + $0x1a8] sm:$0xff] %v6868_v0 }
  0x44   :  { %114 = vst [vmem:[#allocation9 + $0x1b0] sm:$0xff] %v6868_v0  ;;  %115 = vst [vmem:[#allocation9 + $0x1b8] sm:$0xff] %v6868_v0 }
  0x45   :  { %116 = vst [vmem:[#allocation9 + $0x1c0] sm:$0xff] %v6868_v0  ;;  %117 = vst [vmem:[#allocation9 + $0x1c8] sm:$0xff] %v6868_v0 }
  0x46   :  { %118 = vst [vmem:[#allocation9 + $0x1d0] sm:$0xff] %v6868_v0  ;;  %119 = vst [vmem:[#allocation9 + $0x1d8] sm:$0xff] %v6868_v0 }
  0x47   :  { %120 = vst [vmem:[#allocation9 + $0x1e0] sm:$0xff] %v6868_v0  ;;  %121 = vst [vmem:[#allocation9 + $0x1e8] sm:$0xff] %v6868_v0 }
  0x48   :  { %122 = vst [vmem:[#allocation9 + $0x1f0] sm:$0xff] %v6868_v0  ;;  %123 = vst [vmem:[#allocation9 + $0x1f8] sm:$0xff] %v6868_v0 }
  0x49   :  { %124 = vst [vmem:[#allocation10] sm:$0xff] %v6868_v0  ;;  %125 = vst [vmem:[#allocation10 + $0x8] sm:$0xff] %v6868_v0 }
  0x4a   :  { %126 = vst [vmem:[#allocation10 + $0x10] sm:$0xff] %v6868_v0  ;;  %127 = vst [vmem:[#allocation10 + $0x18] sm:$0xff] %v6868_v0 }
  0x4b   :  { %128 = vst [vmem:[#allocation10 + $0x20] sm:$0xff] %v6868_v0  ;;  %129 = vst [vmem:[#allocation10 + $0x28] sm:$0xff] %v6868_v0 }
  0x4c   :  { %130 = vst [vmem:[#allocation10 + $0x30] sm:$0xff] %v6868_v0  ;;  %131 = vst [vmem:[#allocation10 + $0x38] sm:$0xff] %v6868_v0 }
  0x4d   :  { %132 = vst [vmem:[#allocation10 + $0x40] sm:$0xff] %v6868_v0  ;;  %133 = vst [vmem:[#allocation10 + $0x48] sm:$0xff] %v6868_v0 }
  0x4e   :  { %134 = vst [vmem:[#allocation10 + $0x50] sm:$0xff] %v6868_v0  ;;  %135 = vst [vmem:[#allocation10 + $0x58] sm:$0xff] %v6868_v0 }
  0x4f   :  { %136 = vst [vmem:[#allocation10 + $0x60] sm:$0xff] %v6868_v0  ;;  %137 = vst [vmem:[#allocation10 + $0x68] sm:$0xff] %v6868_v0 }
  0x50   :  { %138 = vst [vmem:[#allocation10 + $0x70] sm:$0xff] %v6868_v0  ;;  %139 = vst [vmem:[#allocation10 + $0x78] sm:$0xff] %v6868_v0 }
  0x51   :  { %140 = vst [vmem:[#allocation10 + $0x80] sm:$0xff] %v6868_v0  ;;  %141 = vst [vmem:[#allocation10 + $0x88] sm:$0xff] %v6868_v0 }
  0x52   :  { %142 = vst [vmem:[#allocation10 + $0x90] sm:$0xff] %v6868_v0  ;;  %143 = vst [vmem:[#allocation10 + $0x98] sm:$0xff] %v6868_v0 }
  0x53   :  { %144 = vst [vmem:[#allocation10 + $0xa0] sm:$0xff] %v6868_v0  ;;  %145 = vst [vmem:[#allocation10 + $0xa8] sm:$0xff] %v6868_v0 }
  0x54   :  { %146 = vst [vmem:[#allocation10 + $0xb0] sm:$0xff] %v6868_v0  ;;  %147 = vst [vmem:[#allocation10 + $0xb8] sm:$0xff] %v6868_v0 }
  0x55   :  { %148 = vst [vmem:[#allocation10 + $0xc0] sm:$0xff] %v6868_v0  ;;  %149 = vst [vmem:[#allocation10 + $0xc8] sm:$0xff] %v6868_v0 }
  0x56   :  { %150 = vst [vmem:[#allocation10 + $0xd0] sm:$0xff] %v6868_v0  ;;  %151 = vst [vmem:[#allocation10 + $0xd8] sm:$0xff] %v6868_v0 }
  0x57   :  { %152 = vst [vmem:[#allocation10 + $0xe0] sm:$0xff] %v6868_v0  ;;  %153 = vst [vmem:[#allocation10 + $0xe8] sm:$0xff] %v6868_v0 }
  0x58   :  { %154 = vst [vmem:[#allocation10 + $0xf0] sm:$0xff] %v6868_v0  ;;  %155 = vst [vmem:[#allocation10 + $0xf8] sm:$0xff] %v6868_v0 }
  0x59   :  { %156 = vst [vmem:[#allocation10 + $0x100] sm:$0xff] %v6868_v0  ;;  %157 = vst [vmem:[#allocation10 + $0x108] sm:$0xff] %v6868_v0 }
  0x5a   :  { %158 = vst [vmem:[#allocation10 + $0x110] sm:$0xff] %v6868_v0  ;;  %159 = vst [vmem:[#allocation10 + $0x118] sm:$0xff] %v6868_v0 }
  0x5b   :  { %160 = vst [vmem:[#allocation10 + $0x120] sm:$0xff] %v6868_v0  ;;  %161 = vst [vmem:[#allocation10 + $0x128] sm:$0xff] %v6868_v0 }
  0x5c   :  { %162 = vst [vmem:[#allocation10 + $0x130] sm:$0xff] %v6868_v0  ;;  %163 = vst [vmem:[#allocation10 + $0x138] sm:$0xff] %v6868_v0 }
  0x5d   :  { %164 = vst [vmem:[#allocation10 + $0x140] sm:$0xff] %v6868_v0  ;;  %165 = vst [vmem:[#allocation10 + $0x148] sm:$0xff] %v6868_v0 }
  0x5e   :  { %166 = vst [vmem:[#allocation10 + $0x150] sm:$0xff] %v6868_v0  ;;  %167 = vst [vmem:[#allocation10 + $0x158] sm:$0xff] %v6868_v0 }
  0x5f   :  { %168 = vst [vmem:[#allocation10 + $0x160] sm:$0xff] %v6868_v0  ;;  %169 = vst [vmem:[#allocation10 + $0x168] sm:$0xff] %v6868_v0 }
  0x60   :  { %170 = vst [vmem:[#allocation10 + $0x170] sm:$0xff] %v6868_v0  ;;  %171 = vst [vmem:[#allocation10 + $0x178] sm:$0xff] %v6868_v0 }
  0x61   :  { %172 = vst [vmem:[#allocation10 + $0x180] sm:$0xff] %v6868_v0  ;;  %173 = vst [vmem:[#allocation10 + $0x188] sm:$0xff] %v6868_v0 }
  0x62   :  { %174 = vst [vmem:[#allocation10 + $0x190] sm:$0xff] %v6868_v0  ;;  %175 = vst [vmem:[#allocation10 + $0x198] sm:$0xff] %v6868_v0 }
  0x63   :  { %176 = vst [vmem:[#allocation10 + $0x1a0] sm:$0xff] %v6868_v0  ;;  %177 = vst [vmem:[#allocation10 + $0x1a8] sm:$0xff] %v6868_v0 }
  0x64   :  { %178 = vst [vmem:[#allocation10 + $0x1b0] sm:$0xff] %v6868_v0  ;;  %179 = vst [vmem:[#allocation10 + $0x1b8] sm:$0xff] %v6868_v0 }
  0x65   :  { %180 = vst [vmem:[#allocation10 + $0x1c0] sm:$0xff] %v6868_v0  ;;  %181 = vst [vmem:[#allocation10 + $0x1c8] sm:$0xff] %v6868_v0 }
  0x66   :  { %182 = vst [vmem:[#allocation10 + $0x1d0] sm:$0xff] %v6868_v0  ;;  %183 = vst [vmem:[#allocation10 + $0x1d8] sm:$0xff] %v6868_v0 }
  0x67   :  { %184 = vst [vmem:[#allocation10 + $0x1e0] sm:$0xff] %v6868_v0  ;;  %185 = vst [vmem:[#allocation10 + $0x1e8] sm:$0xff] %v6868_v0 }
  0x68   :  { %186 = vst [vmem:[#allocation10 + $0x1f0] sm:$0xff] %v6868_v0  ;;  %187 = vst [vmem:[#allocation10 + $0x1f8] sm:$0xff] %v6868_v0 }
  0x69   :  { %188 = vst [vmem:[#allocation12] sm:$0xff] %v6868_v0  ;;  %189 = vst [vmem:[#allocation12 + $0x8] sm:$0xff] %v6868_v0 }
  0x6a   :  { %190 = vst [vmem:[#allocation12 + $0x10] sm:$0xff] %v6868_v0  ;;  %191 = vst [vmem:[#allocation12 + $0x18] sm:$0xff] %v6868_v0 }
  0x6b   :  { %192 = vst [vmem:[#allocation12 + $0x20] sm:$0xff] %v6868_v0  ;;  %193 = vst [vmem:[#allocation12 + $0x28] sm:$0xff] %v6868_v0 }
  0x6c   :  { %194 = vst [vmem:[#allocation12 + $0x30] sm:$0xff] %v6868_v0  ;;  %195 = vst [vmem:[#allocation12 + $0x38] sm:$0xff] %v6868_v0 }
  0x6d   :  { %196 = vst [vmem:[#allocation12 + $0x40] sm:$0xff] %v6868_v0  ;;  %197 = vst [vmem:[#allocation12 + $0x48] sm:$0xff] %v6868_v0 }
  0x6e   :  { %198 = vst [vmem:[#allocation12 + $0x50] sm:$0xff] %v6868_v0  ;;  %199 = vst [vmem:[#allocation12 + $0x58] sm:$0xff] %v6868_v0 }
  0x6f   :  { %200 = vst [vmem:[#allocation12 + $0x60] sm:$0xff] %v6868_v0  ;;  %201 = vst [vmem:[#allocation12 + $0x68] sm:$0xff] %v6868_v0 }
  0x70   :  { %202 = vst [vmem:[#allocation12 + $0x70] sm:$0xff] %v6868_v0  ;;  %203 = vst [vmem:[#allocation12 + $0x78] sm:$0xff] %v6868_v0 }
  0x71   :  { %204 = vst [vmem:[#allocation12 + $0x80] sm:$0xff] %v6868_v0  ;;  %205 = vst [vmem:[#allocation12 + $0x88] sm:$0xff] %v6868_v0 }
  0x72   :  { %206 = vst [vmem:[#allocation12 + $0x90] sm:$0xff] %v6868_v0  ;;  %207 = vst [vmem:[#allocation12 + $0x98] sm:$0xff] %v6868_v0 }
  0x73   :  { %208 = vst [vmem:[#allocation12 + $0xa0] sm:$0xff] %v6868_v0  ;;  %209 = vst [vmem:[#allocation12 + $0xa8] sm:$0xff] %v6868_v0 }
  0x74   :  { %210 = vst [vmem:[#allocation12 + $0xb0] sm:$0xff] %v6868_v0  ;;  %211 = vst [vmem:[#allocation12 + $0xb8] sm:$0xff] %v6868_v0 }
  0x75   :  { %212 = vst [vmem:[#allocation12 + $0xc0] sm:$0xff] %v6868_v0  ;;  %213 = vst [vmem:[#allocation12 + $0xc8] sm:$0xff] %v6868_v0 }
  0x76   :  { %214 = vst [vmem:[#allocation12 + $0xd0] sm:$0xff] %v6868_v0  ;;  %215 = vst [vmem:[#allocation12 + $0xd8] sm:$0xff] %v6868_v0 }
  0x77   :  { %216 = vst [vmem:[#allocation12 + $0xe0] sm:$0xff] %v6868_v0  ;;  %217 = vst [vmem:[#allocation12 + $0xe8] sm:$0xff] %v6868_v0 }
  0x78   :  { %218 = vst [vmem:[#allocation12 + $0xf0] sm:$0xff] %v6868_v0  ;;  %219 = vst [vmem:[#allocation12 + $0xf8] sm:$0xff] %v6868_v0 }
  0x79   :  { %220 = vst [vmem:[#allocation12 + $0x100] sm:$0xff] %v6868_v0  ;;  %221 = vst [vmem:[#allocation12 + $0x108] sm:$0xff] %v6868_v0 }
  0x7a   :  { %222 = vst [vmem:[#allocation12 + $0x110] sm:$0xff] %v6868_v0  ;;  %223 = vst [vmem:[#allocation12 + $0x118] sm:$0xff] %v6868_v0 }
  0x7b   :  { %224 = vst [vmem:[#allocation12 + $0x120] sm:$0xff] %v6868_v0  ;;  %225 = vst [vmem:[#allocation12 + $0x128] sm:$0xff] %v6868_v0 }
  0x7c   :  { %226 = vst [vmem:[#allocation12 + $0x130] sm:$0xff] %v6868_v0  ;;  %227 = vst [vmem:[#allocation12 + $0x138] sm:$0xff] %v6868_v0 }
  0x7d   :  { %228 = vst [vmem:[#allocation12 + $0x140] sm:$0xff] %v6868_v0  ;;  %229 = vst [vmem:[#allocation12 + $0x148] sm:$0xff] %v6868_v0 }
  0x7e   :  { %230 = vst [vmem:[#allocation12 + $0x150] sm:$0xff] %v6868_v0  ;;  %231 = vst [vmem:[#allocation12 + $0x158] sm:$0xff] %v6868_v0 }
  0x7f   :  { %232 = vst [vmem:[#allocation12 + $0x160] sm:$0xff] %v6868_v0  ;;  %233 = vst [vmem:[#allocation12 + $0x168] sm:$0xff] %v6868_v0 }
  0x80   :  { %234 = vst [vmem:[#allocation12 + $0x170] sm:$0xff] %v6868_v0  ;;  %235 = vst [vmem:[#allocation12 + $0x178] sm:$0xff] %v6868_v0 }
  0x81   :  { %236 = vst [vmem:[#allocation12 + $0x180] sm:$0xff] %v6868_v0  ;;  %237 = vst [vmem:[#allocation12 + $0x188] sm:$0xff] %v6868_v0 }
  0x82   :  { %238 = vst [vmem:[#allocation12 + $0x190] sm:$0xff] %v6868_v0  ;;  %239 = vst [vmem:[#allocation12 + $0x198] sm:$0xff] %v6868_v0  ;;  %258 = sbr.rel (%p5961_p2) target bundleno = 1408 (0x580), region = 29 }
  0x83   :  { %240 = vst [vmem:[#allocation12 + $0x1a0] sm:$0xff] %v6868_v0  ;;  %241 = vst [vmem:[#allocation12 + $0x1a8] sm:$0xff] %v6868_v0 }
  0x84   :  { %242 = vst [vmem:[#allocation12 + $0x1b0] sm:$0xff] %v6868_v0  ;;  %243 = vst [vmem:[#allocation12 + $0x1b8] sm:$0xff] %v6868_v0 }
  0x85   :  { %244 = vst [vmem:[#allocation12 + $0x1c0] sm:$0xff] %v6868_v0  ;;  %245 = vst [vmem:[#allocation12 + $0x1c8] sm:$0xff] %v6868_v0 }
  0x86   :  { %246 = vst [vmem:[#allocation12 + $0x1d0] sm:$0xff] %v6868_v0  ;;  %247 = vst [vmem:[#allocation12 + $0x1d8] sm:$0xff] %v6868_v0 }
  0x87   :  { %248 = vst [vmem:[#allocation12 + $0x1e0] sm:$0xff] %v6868_v0  ;;  %249 = vst [vmem:[#allocation12 + $0x1e8] sm:$0xff] %v6868_v0 }
  0x88   :  { %250 = vst [vmem:[#allocation12 + $0x1f0] sm:$0xff] %v6868_v0  ;;  %251 = vst [vmem:[#allocation12 + $0x1f8] sm:$0xff] %v6868_v0 }
  0x89   :  { %v6139_v1 = vld [vmem:[#allocation7 + $0x4] ss:$8 sps:$4 sm:$0xff]   ;;  %v6141_v2 = vld [vmem:[#allocation7] ss:$8 sps:$4 sm:$0xff]   ;;  %v6869_v3 = vmov 0   ;;  %v6167_v22 = vld [vmem:[#allocation4 + $0x10] sm:$0xff]  }
  0x8a   :  { %899 = vmatprep.mubr.bf16.mxu0 %v6869_v3  ;;  %1219 = vmatprep.mubr.bf16.mxu1 %v6869_v3  ;;  %v6142_v4 = vld [vmem:[#allocation7 + $0x14] ss:$8 sps:$4 sm:$0xff]   ;;  %v6144_v5 = vld [vmem:[#allocation7 + $0x10] ss:$8 sps:$4 sm:$0xff]   ;;  %v6145_v6 = vld [vmem:[#allocation7 + $0x24] ss:$8 sps:$4 sm:$0xff]  }
  0x8b   :  { %867 = vmatprep.subr.bf16.mxu0 %v6139_v1  ;;  %6111 = vmatprep.subr.bf16.mxu1 %v6139_v1  ;;  %v6147_v7 = vld [vmem:[#allocation7 + $0x20] ss:$8 sps:$4 sm:$0xff]   ;;  %v6148_v8 = vld [vmem:[#allocation7 + $0x34] ss:$8 sps:$4 sm:$0xff]   ;;  %v6150_v9 = vld [vmem:[#allocation7 + $0x30] ss:$8 sps:$4 sm:$0xff]  }
  0x8c   :  { %868 = vmatpush1.bf16.msra.mxu0 %v6141_v2  ;;  %6119 = vmatpush1.bf16.msra.mxu1 %v6141_v2  ;;  %v6151_v10 = vld [vmem:[#allocation7 + $0x44] ss:$8 sps:$4 sm:$0xff]   ;;  %v6153_v11 = vld [vmem:[#allocation7 + $0x40] ss:$8 sps:$4 sm:$0xff]   ;;  %v6154_v12 = vld [vmem:[#allocation7 + $0x54] ss:$8 sps:$4 sm:$0xff]  }
  0x8d   :  { %869 = vmatprep.subr.bf16.mxu0 %v6142_v4  ;;  %6112 = vmatprep.subr.bf16.mxu1 %v6142_v4  ;;  %v6156_v13 = vld [vmem:[#allocation7 + $0x50] ss:$8 sps:$4 sm:$0xff]   ;;  %v6157_v14 = vld [vmem:[#allocation7 + $0x64] ss:$8 sps:$4 sm:$0xff]   ;;  %v6159_v15 = vld [vmem:[#allocation7 + $0x60] ss:$8 sps:$4 sm:$0xff]  }
  0x8e   :  { %v6160_v16 = vld [vmem:[#allocation7 + $0x74] ss:$8 sps:$4 sm:$0xff]   ;;  %v6162_v17 = vld [vmem:[#allocation7 + $0x70] ss:$8 sps:$4 sm:$0xff]   ;;  %v6163_v18 = vld [vmem:[#allocation4] sm:$0xff]   ;;  %p6044_p3 = scmp.lt.s32.totalorder %s12690_s0, 512 }
  0x8f   :  { %v6164_v19 = vld [vmem:[#allocation4 + $0x100] sm:$0xff]   ;;  %v6165_v20 = vld [vmem:[#allocation4 + $0x8] sm:$0xff]   ;;  %v6168_v23 = vld [vmem:[#allocation4 + $0x110] sm:$0xff]  }
  0x90   :  { %870 = vmatpush1.bf16.msra.mxu0 %v6144_v5  ;;  %6120 = vmatpush1.bf16.msra.mxu1 %v6144_v5  ;;  %v6166_v21 = vld [vmem:[#allocation4 + $0x108] sm:$0xff]   ;;  %v6169_v24 = vld [vmem:[#allocation4 + $0x18] sm:$0xff]   ;;  %v6171_v26 = vld [vmem:[#allocation4 + $0x20] sm:$0xff]  }
  0x91   :  { %871 = vmatprep.subr.bf16.mxu0 %v6145_v6  ;;  %6113 = vmatprep.subr.bf16.mxu1 %v6145_v6  ;;  %v6170_v25 = vld [vmem:[#allocation4 + $0x118] sm:$0xff]   ;;  %v6172_v27 = vld [vmem:[#allocation4 + $0x120] sm:$0xff]   ;;  %v6173_v28 = vld [vmem:[#allocation4 + $0x28] sm:$0xff]  }
  0x92   :  { %v6174_v29 = vld [vmem:[#allocation4 + $0x128] sm:$0xff]   ;;  %v6175_v30 = vld [vmem:[#allocation4 + $0x30] sm:$0xff]   ;;  %v6177_v32 = vld [vmem:[#allocation4 + $0x38] sm:$0xff]  }
  0x93   :  { %v6176_v31 = vld [vmem:[#allocation4 + $0x130] sm:$0xff]   ;;  %v6178_v33 = vld [vmem:[#allocation4 + $0x138] sm:$0xff]   ;;  %v6179_v34 = vld [vmem:[#allocation4 + $0x40] sm:$0xff]  }
  0x94   :  { %872 = vmatpush1.bf16.msra.mxu0 %v6147_v7  ;;  %6121 = vmatpush1.bf16.msra.mxu1 %v6147_v7  ;;  %v6180_v35 = vld [vmem:[#allocation4 + $0x140] sm:$0xff]   ;;  %v6181_v36 = vld [vmem:[#allocation4 + $0x48] sm:$0xff]   ;;  %v6183_v38 = vld [vmem:[#allocation4 + $0x50] sm:$0xff]  }
  0x95   :  { %873 = vmatprep.subr.bf16.mxu0 %v6148_v8  ;;  %6114 = vmatprep.subr.bf16.mxu1 %v6148_v8  ;;  %v6182_v37 = vld [vmem:[#allocation4 + $0x148] sm:$0xff]   ;;  %v6184_v39 = vld [vmem:[#allocation4 + $0x150] sm:$0xff]   ;;  %v6185_v40 = vld [vmem:[#allocation4 + $0x58] sm:$0xff]  }
  0x96   :  { %v6186_v41 = vld [vmem:[#allocation4 + $0x158] sm:$0xff]   ;;  %v6187_v42 = vld [vmem:[#allocation4 + $0x60] sm:$0xff]   ;;  %v6189_v44 = vld [vmem:[#allocation4 + $0x68] sm:$0xff]  }
  0x97   :  { %v6188_v43 = vld [vmem:[#allocation4 + $0x160] sm:$0xff]   ;;  %v6190_v45 = vld [vmem:[#allocation4 + $0x168] sm:$0xff]   ;;  %v6191_v46 = vld [vmem:[#allocation4 + $0x70] sm:$0xff]  }
  0x98   :  { %874 = vmatpush1.bf16.msra.mxu0 %v6150_v9  ;;  %6122 = vmatpush1.bf16.msra.mxu1 %v6150_v9  ;;  %v6192_v47 = vld [vmem:[#allocation4 + $0x170] sm:$0xff]   ;;  %v6193_v48 = vld [vmem:[#allocation4 + $0x78] sm:$0xff]   ;;  %v6195_v50 = vld [vmem:[#allocation4 + $0x80] sm:$0xff]  }
  0x99   :  { %875 = vmatprep.subr.bf16.mxu0 %v6151_v10  ;;  %6115 = vmatprep.subr.bf16.mxu1 %v6151_v10  ;;  %v6194_v49 = vld [vmem:[#allocation4 + $0x178] sm:$0xff]   ;;  %v6196_v51 = vld [vmem:[#allocation4 + $0x180] sm:$0xff]   ;;  %v6197_v52 = vld [vmem:[#allocation4 + $0x88] sm:$0xff]  }
  0x9a   :  { %v6198_v53 = vld [vmem:[#allocation4 + $0x188] sm:$0xff]   ;;  %v6199_v54 = vld [vmem:[#allocation4 + $0x90] sm:$0xff]   ;;  %v6201_v56 = vld [vmem:[#allocation4 + $0x98] sm:$0xff]  }
  0x9b   :  { %v6200_v55 = vld [vmem:[#allocation4 + $0x190] sm:$0xff]   ;;  %v6202_v57 = vld [vmem:[#allocation4 + $0x198] sm:$0xff]   ;;  %v6203_v58 = vld [vmem:[#allocation4 + $0xa0] sm:$0xff]  }
  0x9c   :  { %876 = vmatpush1.bf16.msra.mxu0 %v6153_v11  ;;  %6123 = vmatpush1.bf16.msra.mxu1 %v6153_v11  ;;  %v6204_v59 = vld [vmem:[#allocation4 + $0x1a0] sm:$0xff]   ;;  %v6205_v60 = vld [vmem:[#allocation4 + $0xa8] sm:$0xff]   ;;  %v6207_v62 = vld [vmem:[#allocation4 + $0xb0] sm:$0xff]  }
  0x9d   :  { %877 = vmatprep.subr.bf16.mxu0 %v6154_v12  ;;  %6116 = vmatprep.subr.bf16.mxu1 %v6154_v12  ;;  %v6206_v61 = vld [vmem:[#allocation4 + $0x1a8] sm:$0xff]   ;;  %v6208_v63 = vld [vmem:[#allocation4 + $0x1b0] sm:$0xff]   ;;  %v6209_v0 = vld [vmem:[#allocation4 + $0xb8] sm:$0xff]  }
  0x9e   :  { %v6210_v1 = vld [vmem:[#allocation4 + $0x1b8] sm:$0xff]   ;;  %v6211_v2 = vld [vmem:[#allocation4 + $0xc0] sm:$0xff]   ;;  %v6213_v5 = vld [vmem:[#allocation4 + $0xc8] sm:$0xff]  }
  0x9f   :  { %v6212_v4 = vld [vmem:[#allocation4 + $0x1c0] sm:$0xff]   ;;  %v6214_v6 = vld [vmem:[#allocation4 + $0x1c8] sm:$0xff]   ;;  %v6215_v7 = vld [vmem:[#allocation4 + $0xd0] sm:$0xff]  }
  0xa0   :  { %878 = vmatpush1.bf16.msra.mxu0 %v6156_v13  ;;  %6124 = vmatpush1.bf16.msra.mxu1 %v6156_v13  ;;  %v6216_v8 = vld [vmem:[#allocation4 + $0x1d0] sm:$0xff]  }
  0xa1   :  { %879 = vmatprep.subr.bf16.mxu0 %v6157_v14  ;;  %6117 = vmatprep.subr.bf16.mxu1 %v6157_v14 }
  0xa4   :  { %880 = vmatpush1.bf16.msra.mxu0 %v6159_v15  ;;  %6125 = vmatpush1.bf16.msra.mxu1 %v6159_v15  ;;  %v6217_v15 = vld [vmem:[#allocation4 + $0xd8] sm:$0xff]  }
  0xa5   :  { %881 = vmatprep.subr.bf16.mxu0 %v6160_v16  ;;  %6118 = vmatprep.subr.bf16.mxu1 %v6160_v16  ;;  %v6218_v16 = vld [vmem:[#allocation4 + $0x1d8] sm:$0xff]  }
  0xa8   :  { %882 = vmatpush1.bf16.msra.mxu0 %v6162_v17  ;;  %6126 = vmatpush1.bf16.msra.mxu1 %v6162_v17 }
  0xab   :  { %900 = vmatmul.mubr.bf16.vlgmr.msra.gmra.mrb[0].mxu0 %v6163_v18  ;;  %1220 = vmatmul.mubr.bf16.vlgmr.msra.gmra.mrb[0].mxu1 %v6164_v19 }
  0xac   :  { %909 = vmatprep.mubr.bf16.mxu0 %v6869_v3  ;;  %1229 = vmatprep.mubr.bf16.mxu1 %v6869_v3 }
  0xb3   :  { %910 = vmatmul.mubr.bf16.gmra.mrb[4].mxu0 %v6165_v20  ;;  %1230 = vmatmul.mubr.bf16.gmra.mrb[4].mxu1 %v6166_v21 }
  0xb4   :  { %919 = vmatprep.mubr.bf16.mxu0 %v6869_v3  ;;  %1239 = vmatprep.mubr.bf16.mxu1 %v6869_v3 }
  0xbb   :  { %920 = vmatmul.mubr.bf16.gmra.mrb[8].mxu0 %v6167_v22  ;;  %1240 = vmatmul.mubr.bf16.gmra.mrb[8].mxu1 %v6168_v23 }
  0xbc   :  { %929 = vmatprep.mubr.bf16.mxu0 %v6869_v3  ;;  %1249 = vmatprep.mubr.bf16.mxu1 %v6869_v3 }
  0xc3   :  { %930 = vmatmul.mubr.bf16.gmra.mrb[12].mxu0 %v6169_v24  ;;  %1250 = vmatmul.mubr.bf16.gmra.mrb[12].mxu1 %v6170_v25 }
  0xc4   :  { %939 = vmatprep.mubr.bf16.mxu0 %v6869_v3  ;;  %1259 = vmatprep.mubr.bf16.mxu1 %v6869_v3 }
  0xcb   :  { %940 = vmatmul.mubr.bf16.gmra.mrb[16].mxu0 %v6171_v26  ;;  %1260 = vmatmul.mubr.bf16.gmra.mrb[16].mxu1 %v6172_v27 }
  0xcc   :  { %949 = vmatprep.mubr.bf16.mxu0 %v6869_v3  ;;  %1269 = vmatprep.mubr.bf16.mxu1 %v6869_v3 }
  0xd3   :  { %950 = vmatmul.mubr.bf16.gmra.mrb[20].mxu0 %v6173_v28  ;;  %1270 = vmatmul.mubr.bf16.gmra.mrb[20].mxu1 %v6174_v29 }
  0xd4   :  { %959 = vmatprep.mubr.bf16.mxu0 %v6869_v3  ;;  %1279 = vmatprep.mubr.bf16.mxu1 %v6869_v3 }
  0xdb   :  { %960 = vmatmul.mubr.bf16.gmra.mrb[24].mxu0 %v6175_v30  ;;  %1280 = vmatmul.mubr.bf16.gmra.mrb[24].mxu1 %v6176_v31 }
  0xdc   :  { %969 = vmatprep.mubr.bf16.mxu0 %v6869_v3  ;;  %1289 = vmatprep.mubr.bf16.mxu1 %v6869_v3 }
  0xe3   :  { %970 = vmatmul.mubr.bf16.gmra.mrb[28].mxu0 %v6177_v32  ;;  %1290 = vmatmul.mubr.bf16.gmra.mrb[28].mxu1 %v6178_v33 }
  0xe4   :  { %979 = vmatprep.mubr.bf16.mxu0 %v6869_v3  ;;  %1299 = vmatprep.mubr.bf16.mxu1 %v6869_v3 }
  0xeb   :  { %980 = vmatmul.mubr.bf16.gmra.mrb[32].mxu0 %v6179_v34  ;;  %1300 = vmatmul.mubr.bf16.gmra.mrb[32].mxu1 %v6180_v35 }
  0xec   :  { %989 = vmatprep.mubr.bf16.mxu0 %v6869_v3  ;;  %1309 = vmatprep.mubr.bf16.mxu1 %v6869_v3 }
  0xf3   :  { %990 = vmatmul.mubr.bf16.gmra.mrb[36].mxu0 %v6181_v36  ;;  %1310 = vmatmul.mubr.bf16.gmra.mrb[36].mxu1 %v6182_v37  ;;  %v6219_v37 = vld [vmem:[#allocation4 + $0xe0] sm:$0xff]  }
  0xf4   :  { %999 = vmatprep.mubr.bf16.mxu0 %v6869_v3  ;;  %1319 = vmatprep.mubr.bf16.mxu1 %v6869_v3 }
  0xfb   :  { %1000 = vmatmul.mubr.bf16.gmra.mrb[40].mxu0 %v6183_v38  ;;  %1320 = vmatmul.mubr.bf16.gmra.mrb[40].mxu1 %v6184_v39  ;;  %v6220_v38 = vld [vmem:[#allocation4 + $0x1e0] sm:$0xff]  }
  0xfc   :  { %1009 = vmatprep.mubr.bf16.mxu0 %v6869_v3  ;;  %1329 = vmatprep.mubr.bf16.mxu1 %v6869_v3 }
 0x103   :  { %1010 = vmatmul.mubr.bf16.gmra.mrb[44].mxu0 %v6185_v40  ;;  %1330 = vmatmul.mubr.bf16.gmra.mrb[44].mxu1 %v6186_v41 }
 0x104   :  { %1019 = vmatprep.mubr.bf16.mxu0 %v6869_v3  ;;  %1339 = vmatprep.mubr.bf16.mxu1 %v6869_v3 }
 0x10b   :  { %1020 = vmatmul.mubr.bf16.gmra.mrb[48].mxu0 %v6187_v42  ;;  %1340 = vmatmul.mubr.bf16.gmra.mrb[48].mxu1 %v6188_v43 }
 0x10c   :  { %1029 = vmatprep.mubr.bf16.mxu0 %v6869_v3  ;;  %1349 = vmatprep.mubr.bf16.mxu1 %v6869_v3 }
 0x113   :  { %1030 = vmatmul.mubr.bf16.gmra.mrb[52].mxu0 %v6189_v44  ;;  %1350 = vmatmul.mubr.bf16.gmra.mrb[52].mxu1 %v6190_v45 }
 0x114   :  { %1039 = vmatprep.mubr.bf16.mxu0 %v6869_v3  ;;  %1359 = vmatprep.mubr.bf16.mxu1 %v6869_v3 }
 0x11b   :  { %1040 = vmatmul.mubr.bf16.gmra.mrb[56].mxu0 %v6191_v46  ;;  %1360 = vmatmul.mubr.bf16.gmra.mrb[56].mxu1 %v6192_v47 }
 0x11c   :  { %1049 = vmatprep.mubr.bf16.mxu0 %v6869_v3  ;;  %1369 = vmatprep.mubr.bf16.mxu1 %v6869_v3 }
 0x123   :  { %1050 = vmatmul.mubr.bf16.gmra.mrb[60].mxu0 %v6193_v48  ;;  %1370 = vmatmul.mubr.bf16.gmra.mrb[60].mxu1 %v6194_v49 }
 0x124   :  { %1059 = vmatprep.mubr.bf16.mxu0 %v6869_v3  ;;  %1379 = vmatprep.mubr.bf16.mxu1 %v6869_v3 }
 0x12b   :  { %1060 = vmatmul.mubr.bf16.gmra.mrb[64].mxu0 %v6195_v50  ;;  %1380 = vmatmul.mubr.bf16.gmra.mrb[64].mxu1 %v6196_v51 }
 0x12c   :  { %1069 = vmatprep.mubr.bf16.mxu0 %v6869_v3  ;;  %1389 = vmatprep.mubr.bf16.mxu1 %v6869_v3 }
 0x133   :  { %1070 = vmatmul.mubr.bf16.gmra.mrb[68].mxu0 %v6197_v52  ;;  %1390 = vmatmul.mubr.bf16.gmra.mrb[68].mxu1 %v6198_v53 }
 0x134   :  { %1079 = vmatprep.mubr.bf16.mxu0 %v6869_v3  ;;  %1399 = vmatprep.mubr.bf16.mxu1 %v6869_v3 }
 0x13b   :  { %1080 = vmatmul.mubr.bf16.gmra.mrb[72].mxu0 %v6199_v54  ;;  %1400 = vmatmul.mubr.bf16.gmra.mrb[72].mxu1 %v6200_v55 }
 0x13c   :  { %1089 = vmatprep.mubr.bf16.mxu0 %v6869_v3  ;;  %1409 = vmatprep.mubr.bf16.mxu1 %v6869_v3 }
 0x143   :  { %1090 = vmatmul.mubr.bf16.gmra.mrb[76].mxu0 %v6201_v56  ;;  %1410 = vmatmul.mubr.bf16.gmra.mrb[76].mxu1 %v6202_v57 }
 0x144   :  { %1099 = vmatprep.mubr.bf16.mxu0 %v6869_v3  ;;  %1419 = vmatprep.mubr.bf16.mxu1 %v6869_v3 }
 0x14b   :  { %1100 = vmatmul.mubr.bf16.gmra.mrb[80].mxu0 %v6203_v58  ;;  %1420 = vmatmul.mubr.bf16.gmra.mrb[80].mxu1 %v6204_v59 }
 0x14c   :  { %1109 = vmatprep.mubr.bf16.mxu0 %v6869_v3  ;;  %1429 = vmatprep.mubr.bf16.mxu1 %v6869_v3 }
 0x153   :  { %1110 = vmatmul.mubr.bf16.gmra.mrb[84].mxu0 %v6205_v60  ;;  %1430 = vmatmul.mubr.bf16.gmra.mrb[84].mxu1 %v6206_v61 }
 0x154   :  { %1119 = vmatprep.mubr.bf16.mxu0 %v6869_v3  ;;  %1439 = vmatprep.mubr.bf16.mxu1 %v6869_v3 }
 0x15b   :  { %1120 = vmatmul.mubr.bf16.gmra.mrb[88].mxu0 %v6207_v62  ;;  %1440 = vmatmul.mubr.bf16.gmra.mrb[88].mxu1 %v6208_v63 }
 0x15c   :  { %1129 = vmatprep.mubr.bf16.mxu0 %v6869_v3  ;;  %1449 = vmatprep.mubr.bf16.mxu1 %v6869_v3 }
 0x163   :  { %1130 = vmatmul.mubr.bf16.gmra.mrb[92].mxu0 %v6209_v0  ;;  %1450 = vmatmul.mubr.bf16.gmra.mrb[92].mxu1 %v6210_v1  ;;  %v6221_v0 = vld [vmem:[#allocation4 + $0xe8] sm:$0xff]  }
 0x164   :  { %1139 = vmatprep.mubr.bf16.mxu0 %v6869_v3  ;;  %1459 = vmatprep.mubr.bf16.mxu1 %v6869_v3 }
 0x16b   :  { %1140 = vmatmul.mubr.bf16.gmra.mrb[96].mxu0 %v6211_v2  ;;  %1460 = vmatmul.mubr.bf16.gmra.mrb[96].mxu1 %v6212_v4 }
 0x16c   :  { %1149 = vmatprep.mubr.bf16.mxu0 %v6869_v3  ;;  %1469 = vmatprep.mubr.bf16.mxu1 %v6869_v3 }
 0x173   :  { %1150 = vmatmul.mubr.bf16.gmra.mrb[100].mxu0 %v6213_v5  ;;  %1470 = vmatmul.mubr.bf16.gmra.mrb[100].mxu1 %v6214_v6  ;;  %v6222_v6 = vld [vmem:[#allocation4 + $0x1e8] sm:$0xff]  }
 0x174   :  { %1159 = vmatprep.mubr.bf16.mxu0 %v6869_v3  ;;  %1479 = vmatprep.mubr.bf16.mxu1 %v6869_v3 }
 0x17b   :  { %1160 = vmatmul.mubr.bf16.gmra.mrb[104].mxu0 %v6215_v7  ;;  %1480 = vmatmul.mubr.bf16.gmra.mrb[104].mxu1 %v6216_v8  ;;  %v7219_v8 = vld [vmem:[%s12693_s3] ss:$0 sm:$0xff] }
 0x17c   :  { %1169 = vmatprep.mubr.bf16.mxu0 %v6869_v3  ;;  %1489 = vmatprep.mubr.bf16.mxu1 %v6869_v3 }
 0x17e   :  { %v901_v9 = vpop.f32.mrb[0].mxu0  ;;  %v1221_v10 = vpop.f32.mrb[0].mxu1 }
 0x17f   :  { %v1541_v11 = vmul.f32 %v901_v9, %v901_v9  ;;  %v2315_v12 = vmul.f32 %v1221_v10, %v1221_v10  ;;  %v903_v13 = vpop.f32.mrb[1].mxu0  ;;  %v1223_v14 = vpop.f32.mrb[1].mxu1 }
 0x180   :  { %v1605_v17 = vmul.f32 %v903_v13, %v903_v13  ;;  %v2379_v18 = vmul.f32 %v1223_v14, %v1223_v14  ;;  %v905_v19 = vpop.f32.mrb[2].mxu0  ;;  %v1225_v20 = vpop.f32.mrb[2].mxu1 }
 0x181   :  { %v1542_v21 = vmul.f32 %v905_v19, %v905_v19  ;;  %v2316_v22 = vmul.f32 %v1225_v20, %v1225_v20  ;;  %v907_v23 = vpop.f32.mrb[3].mxu0  ;;  %v1227_v24 = vpop.f32.mrb[3].mxu1 }
 0x182   :  { %v1669_v25 = vadd.f32 %v1605_v17, %v1541_v11  ;;  %v2443_v26 = vadd.f32 %v2379_v18, %v2315_v12  ;;  %v1606_v27 = vmul.f32 %v907_v23, %v907_v23  ;;  %v2380_v28 = vmul.f32 %v1227_v24, %v1227_v24 }
 0x183   :  { %1170 = vmatmul.mubr.bf16.gmra.mrb[108].mxu0 %v6217_v15  ;;  %1490 = vmatmul.mubr.bf16.gmra.mrb[108].mxu1 %v6218_v16 }
 0x184   :  { %v7187_v29 = vmax.f32 %v1669_v25, 1e-14  ;;  %v7189_v30 = vmax.f32 %v2443_v26, 1e-14  ;;  %v1670_v31 = vadd.f32 %v1606_v27, %v1542_v21  ;;  %v2444_v32 = vadd.f32 %v2380_v28, %v2316_v22  ;;  %1179 = vmatprep.mubr.bf16.mxu0 %v6869_v3  ;;  %1499 = vmatprep.mubr.bf16.mxu1 %v6869_v3 }
 0x186   :  { %6227 = vrsqrt.f32 %v7187_v29  ;;  %v911_v33 = vpop.f32.mrb[4].mxu0  ;;  %v1231_v34 = vpop.f32.mrb[4].mxu1  ;;  %v7195_v39 = vmax.f32 %v1670_v31, 1e-14  ;;  %v7197_v40 = vmax.f32 %v2444_v32, 1e-14 }
 0x187   :  { %6229 = vrsqrt.f32 %v7189_v30  ;;  %v913_v35 = vpop.f32.mrb[5].mxu0  ;;  %v1233_v36 = vpop.f32.mrb[5].mxu1  ;;  %v1543_v41 = vmul.f32 %v911_v33, %v911_v33  ;;  %v2317_v42 = vmul.f32 %v1231_v34, %v1231_v34  ;;  %vm1799_vm0 = vcmp.eq.f32.partialorder %v7187_v29, inf }
 0x188   :  { %v915_v43 = vpop.f32.mrb[6].mxu0  ;;  %v1235_v44 = vpop.f32.mrb[6].mxu1  ;;  %v1607_v45 = vmul.f32 %v913_v35, %v913_v35  ;;  %v2381_v46 = vmul.f32 %v1233_v36, %v1233_v36  ;;  %6231 = vrsqrt.f32 %v7195_v39  ;;  %vm1801_vm1 = vcmp.eq.f32.partialorder %v7187_v29, 0.0  ;;  %v6223_v35 = vld [vmem:[#allocation4 + $0xf0] sm:$0xff]  }
 0x189   :  { %v917_v47 = vpop.f32.mrb[7].mxu0  ;;  %v1237_v48 = vpop.f32.mrb[7].mxu1  ;;  %v1544_v49 = vmul.f32 %v915_v43, %v915_v43  ;;  %v2318_v50 = vmul.f32 %v1235_v44, %v1235_v44  ;;  %6233 = vrsqrt.f32 %v7197_v40  ;;  %v1802_v61 = vand.u32 2147483648, %v7187_v29  ;;  %v6224_v43 = vld [vmem:[#allocation4 + $0x1f0] sm:$0xff]  }
 0x18a   :  { %v1671_v51 = vadd.f32 %v1607_v45, %v1543_v41  ;;  %v2445_v52 = vadd.f32 %v2381_v46, %v2317_v42  ;;  %v1608_v53 = vmul.f32 %v917_v47, %v917_v47  ;;  %v2382_v54 = vmul.f32 %v1237_v48, %v1237_v48 }
 0x18b   :  { %1180 = vmatmul.mubr.bf16.gmra.mrb[112].mxu0 %v6219_v37  ;;  %1500 = vmatmul.mubr.bf16.gmra.mrb[112].mxu1 %v6220_v38  ;;  %vm2573_vm2 = vcmp.eq.f32.partialorder %v7189_v30, inf  ;;  %vm2575_vm3 = vcmp.eq.f32.partialorder %v7189_v30, 0.0  ;;  %v2576_v2 = vand.u32 2147483648, %v7189_v30  ;;  %vm1806_vm4 = vcmp.eq.f32.partialorder %v7195_v39, inf }
 0x18c   :  { %1189 = vmatprep.mubr.bf16.mxu0 %v6869_v3  ;;  %1509 = vmatprep.mubr.bf16.mxu1 %v6869_v3  ;;  %v7203_v55 = vmax.f32 %v1671_v51, 1e-14  ;;  %v7205_v56 = vmax.f32 %v2445_v52, 1e-14  ;;  %v1672_v57 = vadd.f32 %v1608_v53, %v1544_v49  ;;  %v2446_v58 = vadd.f32 %v2382_v54, %v2318_v50 }
 0x18d   :  { %vm1808_vm5 = vcmp.eq.f32.partialorder %v7195_v39, 0.0  ;;  %v1809_v13 = vand.u32 2147483648, %v7195_v39  ;;  %vm2580_vm6 = vcmp.eq.f32.partialorder %v7197_v40, inf  ;;  %vm2582_vm7 = vcmp.eq.f32.partialorder %v7197_v40, 0.0 }
 0x18e   :  { %v921_v59 = vpop.f32.mrb[8].mxu0  ;;  %v1241_v60 = vpop.f32.mrb[8].mxu1  ;;  %6235 = vrsqrt.f32 %v7203_v55  ;;  %v7231_v14 = vmax.f32 %v1672_v57, 1e-14  ;;  %v7233_v15 = vmax.f32 %v2446_v58, 1e-14 }
 0x18f   :  { %v923_v62 = vpop.f32.mrb[9].mxu0  ;;  %v1243_v63 = vpop.f32.mrb[9].mxu1  ;;  %6237 = vrsqrt.f32 %v7205_v56  ;;  %v2583_v17 = vand.u32 2147483648, %v7197_v40  ;;  %v1545_v21 = vmul.f32 %v921_v59, %v921_v59  ;;  %v2319_v26 = vmul.f32 %v1241_v60, %v1241_v60 }
 0x190   :  { %v6228_v1 = vpop.eup %6227  ;;  %v925_v4 = vpop.f32.mrb[10].mxu0  ;;  %6239 = vrsqrt.f32 %v7231_v14  ;;  %vm1813_vm8 = vcmp.eq.f32.partialorder %v7203_v55, inf  ;;  %vm1815_vm9 = vcmp.eq.f32.partialorder %v7203_v55, 0.0  ;;  %vm2587_vm10 = vcmp.eq.f32.partialorder %v7205_v56, inf }
 0x191   :  { %v7214_v5 = vpop.f32.mrb[10].mxu1  ;;  %v6230_v7 = vpop.eup %6229  ;;  %v1798_v9 = vmul.f32 %v6228_v1, %v7187_v29  ;;  %6241 = vrsqrt.f32 %v7233_v15  ;;  %vm2589_vm11 = vcmp.eq.f32.partialorder %v7205_v56, 0.0  ;;  %v2590_v32 = vand.u32 2147483648, %v7205_v56 }
 0x192   :  { %v7225_v10 = vpop.f32.mrb[11].mxu0  ;;  %v7227_v11 = vpop.f32.mrb[11].mxu1  ;;  %v2572_v12 = vmul.f32 %v6230_v7, %v7189_v30  ;;  %v1609_v36 = vmul.f32 %v923_v62, %v923_v62  ;;  %v2383_v37 = vmul.f32 %v1243_v63, %v1243_v63  ;;  %v7276_v38 = vmul.f32 %v925_v4, %v925_v4 }
 0x193   :  { %v1800_v16 = vsel %vm1799_vm0, %v7187_v29, %v1798_v9  ;;  %1190 = vmatmul.mubr.bf16.gmra.mrb[116].mxu0 %v6221_v0  ;;  %v6232_v18 = vpop.eup %6231  ;;  %1510 = vmatmul.mubr.bf16.gmra.mrb[116].mxu1 %v6222_v6  ;;  %v1816_v29 = vand.u32 2147483648, %v7203_v55  ;;  %vm1820_vm12 = vcmp.eq.f32.partialorder %v7231_v14, inf  ;;  %vm1822_vm13 = vcmp.eq.f32.partialorder %v7231_v14, 0.0 }
 0x194   :  { %v1803_v19 = vsel %vm1801_vm1, %v1802_v61, %v1800_v16  ;;  %v2574_v20 = vsel %vm2573_vm2, %v7189_v30, %v2572_v12  ;;  %1199 = vmatprep.mubr.bf16.mxu0 %v6869_v3  ;;  %v6234_v22 = vpop.eup %6233  ;;  %v1805_v25 = vmul.f32 %v6232_v18, %v7195_v39  ;;  %1519 = vmatprep.mubr.bf16.mxu1 %v6869_v3  ;;  %v1823_v52 = vand.u32 2147483648, %v7231_v14  ;;  %v6225_v12 = vld [vmem:[#allocation4 + $0xf8] sm:$0xff]  }
 0x195   :  { %v7249_v23 = vmul.f32 %v7219_v8, %v1803_v19  ;;  %v2577_v24 = vsel %vm2575_vm3, %v2576_v2, %v2574_v20  ;;  %v2579_v28 = vmul.f32 %v6234_v22, %v7197_v40  ;;  %v2447_v60 = vadd.f32 %v2383_v37, %v2319_v26 }
 0x196   :  { %v7256_v27 = vmul.f32 %v7219_v8, %v2577_v24  ;;  %v7262_v31 = vpop.f32.mrb[12].mxu0  ;;  %v7264_v30 = vpop.f32.mrb[12].mxu1  ;;  %v1807_v45 = vsel %vm1806_vm4, %v7195_v39, %v1805_v25  ;;  %vm2594_vm2 = vcmp.eq.f32.partialorder %v7233_v15, inf  ;;  %vm2596_vm3 = vcmp.eq.f32.partialorder %v7233_v15, 0.0 }
 0x197   :  { %6243 = vrsqrt.f32 %v7249_v23  ;;  %v7271_v33 = vpop.f32.mrb[13].mxu0  ;;  %v7273_v34 = vpop.f32.mrb[13].mxu1  ;;  %v2581_v46 = vsel %vm2580_vm6, %v7197_v40, %v2579_v28  ;;  %v1810_v50 = vsel %vm1808_vm5, %v1809_v13, %v1807_v45  ;;  %vm3085_vm14 = vcmp.eq.f32.partialorder %v7249_v23, inf }
 0x198   :  { %6245 = vrsqrt.f32 %v7256_v27  ;;  %v7278_v41 = vpop.f32.mrb[14].mxu0  ;;  %v7280_v42 = vpop.f32.mrb[14].mxu1  ;;  %v4107_v44 = vsub.f32 %v7256_v27, %v7249_v23  ;;  %v2584_v51 = vsel %vm2582_vm7, %v2583_v17, %v2581_v46  ;;  %v7304_v57 = vmul.f32 %v7219_v8, %v1810_v50 }
 0x199   :  { %v7291_v47 = vpop.f32.mrb[15].mxu0  ;;  %v7293_v48 = vpop.f32.mrb[15].mxu1  ;;  %v7307_v58 = vmul.f32 %v7219_v8, %v2584_v51  ;;  %v1673_v40 = vadd.f32 %v1609_v36, %v1545_v21  ;;  %vm3087_vm15 = vcmp.eq.f32.partialorder %v7249_v23, 0.0  ;;  %v3088_v61 = vand.u32 2147483648, %v7249_v23  ;;  %v6226_v21 = vld [vmem:[#allocation4 + $0x1f8] sm:$0xff]  }
 0x19a   :  { %v6236_v49 = vpop.eup %6235  ;;  %v7301_v54 = vand.u32 2147483647, %v4107_v44  ;;  %vm3533_vm0 = vcmp.eq.f32.partialorder %v7256_v27, inf  ;;  %6247 = vrsqrt.f32 %v7304_v57  ;;  %vm3535_vm1 = vcmp.eq.f32.partialorder %v7256_v27, 0.0 }
 0x19b   :  { %v6238_v53 = vpop.eup %6237  ;;  %v1812_v59 = vmul.f32 %v6236_v49, %v7203_v55  ;;  %1200 = vmatmul.mubr.bf16.gmra.mrb[120].mxu0 %v6223_v35  ;;  %1520 = vmatmul.mubr.bf16.gmra.mrb[120].mxu1 %v6224_v43  ;;  %v3536_v63 = vand.u32 2147483648, %v7256_v27  ;;  %6249 = vrsqrt.f32 %v7307_v58  ;;  %v4108_v2 = vsub.f32 %v7307_v58, %v7304_v57 }
 0x19c   :  { %12830 = vst [vmem:[#allocation17_spill] sm:$0xff] %v7301_v54  ;;  %v2586_v39 = vmul.f32 %v6238_v53, %v7205_v56  ;;  %1209 = vmatprep.mubr.bf16.mxu0 %v6869_v3  ;;  %1529 = vmatprep.mubr.bf16.mxu1 %v6869_v3  ;;  %v6240_v62 = vpop.eup %6239  ;;  %v7346_v18 = vmax.f32 %v1673_v40, 1e-14  ;;  %v2597_v36 = vand.u32 2147483648, %v7233_v15  ;;  %v7377_v44 = vmul.f32 %v7214_v5, %v7214_v5 }
 0x19d   :  { %v1814_v3 = vsel %vm1813_vm8, %v7203_v55, %v1812_v59  ;;  %v1819_v6 = vmul.f32 %v6240_v62, %v7231_v14  ;;  %v6242_v13 = vpop.eup %6241  ;;  %v7352_v24 = vand.u32 2147483647, %v4108_v2  ;;  %vm3092_vm4 = vcmp.eq.f32.partialorder %v7304_v57, inf }
 0x19e   :  { %v7322_v0 = vpop.f32.mrb[16].mxu0  ;;  %v7324_v1 = vpop.f32.mrb[16].mxu1  ;;  %v2588_v4 = vsel %vm2587_vm10, %v7205_v56, %v2586_v39  ;;  %v1817_v16 = vsel %vm1815_vm9, %v1816_v29, %v1814_v3  ;;  %v2593_v35 = vmul.f32 %v6242_v13, %v7233_v15  ;;  %6251 = vrsqrt.f32 %v7346_v18 }
 0x19f   :  { %v7335_v7 = vpop.f32.mrb[17].mxu0  ;;  %v7337_v9 = vpop.f32.mrb[17].mxu1  ;;  %v2591_v17 = vsel %vm2589_vm11, %v2590_v32, %v2588_v4  ;;  %12831 = vst [vmem:[#allocation18_spill] sm:$0xff] %v7352_v24  ;;  %v7355_v25 = vmul.f32 %v7219_v8, %v1817_v16  ;;  %v1821_v56 = vsel %vm1820_vm12, %v7231_v14, %v1819_v6  ;;  %vm3094_vm5 = vcmp.eq.f32.partialorder %v7304_v57, 0.0 }
 0x1a0   :  { %v7348_v19 = vpop.f32.mrb[18].mxu0  ;;  %v7350_v20 = vpop.f32.mrb[18].mxu1  ;;  %v7358_v55 = vmul.f32 %v7219_v8, %v2591_v17  ;;  %v1824_v43 = vsel %vm1822_vm13, %v1823_v52, %v1821_v56  ;;  %v3095_v46 = vand.u32 2147483648, %v7304_v57  ;;  %v7391_v49 = vmax.f32 %v2447_v60, 1e-14 }
 0x1a1   :  { %v6244_v22 = vpop.eup %6243  ;;  %v7363_v26 = vpop.f32.mrb[19].mxu0  ;;  %6253 = vrsqrt.f32 %v7355_v25  ;;  %v7400_v52 = vmul.f32 %v7219_v8, %v1824_v43  ;;  %vm3540_vm6 = vcmp.eq.f32.partialorder %v7307_v58, inf  ;;  %vm3542_vm7 = vcmp.eq.f32.partialorder %v7307_v58, 0.0 }
 0x1a2   :  { %v7365_v28 = vpop.f32.mrb[19].mxu1  ;;  %v6246_v29 = vpop.eup %6245  ;;  %v3084_v32 = vmul.f32 %v6244_v22, %v7249_v23  ;;  %6255 = vrsqrt.f32 %v7358_v55  ;;  %v4109_v51 = vsub.f32 %v7358_v55, %v7355_v25  ;;  %v3543_v2 = vand.u32 2147483648, %v7307_v58 }
 0x1a3   :  { %v3532_v37 = vmul.f32 %v6246_v29, %v7256_v27  ;;  %1210 = vmatmul.mubr.bf16.gmra.mrb[124].mxu0 %v6225_v12  ;;  %1530 = vmatmul.mubr.bf16.gmra.mrb[124].mxu1 %v6226_v21  ;;  %6257 = vrsqrt.f32 %v7400_v52  ;;  %vm3099_vm8 = vcmp.eq.f32.partialorder %v7355_v25, inf  ;;  %vm3101_vm9 = vcmp.eq.f32.partialorder %v7355_v25, 0.0 }
 0x1a4   :  { %v3086_v45 = vsel %vm3085_vm14, %v7249_v23, %v3084_v32  ;;  %v2595_v23 = vsel %vm2594_vm2, %v7233_v15, %v2593_v35  ;;  %v6248_v39 = vpop.eup %6247  ;;  %v7420_v3 = vand.u32 2147483647, %v4109_v51  ;;  %v3102_v21 = vand.u32 2147483648, %v7355_v25 }
 0x1a5   :  { %v3089_v14 = vsel %vm3087_vm15, %v3088_v61, %v3086_v45  ;;  %v3534_v5 = vsel %vm3533_vm0, %v7256_v27, %v3532_v37  ;;  %v2598_v27 = vsel %vm2596_vm3, %v2597_v36, %v2595_v23  ;;  %v6250_v62 = vpop.eup %6249  ;;  %6259 = vrsqrt.f32 %v7391_v49 }
 0x1a6   :  { %v7395_v50 = vsel %vm3535_vm1, %v3536_v63, %v3534_v5  ;;  %v7405_v53 = vpop.f32.mrb[20].mxu0  ;;  %v7407_v59 = vpop.f32.mrb[20].mxu1  ;;  %v3091_v63 = vmul.f32 %v6248_v39, %v7304_v57  ;;  %12833 = vst [vmem:[#allocation20_spill] sm:$0xff] %v7420_v3  ;;  %v3539_v15 = vmul.f32 %v6250_v62, %v7307_v58  ;;  %v7441_v22 = vmul.f32 %v7219_v8, %v2598_v27 }
 0x1a7   :  { %12832 = vst [vmem:[#allocation19_spill] sm:$0xff] %v7395_v50  ;;  %v3979_v40 = vsub.f32 %v7395_v50, %v3089_v14  ;;  %v7414_v60 = vpop.f32.mrb[21].mxu0  ;;  %v7416_v61 = vpop.f32.mrb[21].mxu1  ;;  %vm3547_vm10 = vcmp.eq.f32.partialorder %v7358_v55, inf  ;;  %vm3549_vm11 = vcmp.eq.f32.partialorder %v7358_v55, 0.0  ;;  %v3550_v36 = vand.u32 2147483648, %v7358_v55 }
 0x1a8   :  { %v7423_v4 = vpop.f32.mrb[22].mxu0  ;;  %v7425_v6 = vpop.f32.mrb[22].mxu1  ;;  %v3093_v17 = vsel %vm3092_vm4, %v7304_v57, %v3091_v63  ;;  %v3541_v29 = vsel %vm3540_vm6, %v7307_v58, %v3539_v15  ;;  %6261 = vrsqrt.f32 %v7441_v22  ;;  %vm1827_vm12 = vcmp.eq.f32.partialorder %v7346_v18, inf }
 0x1a9   :  { %v7427_v12 = vand.u32 2147483647, %v3979_v40  ;;  %v7432_v13 = vpop.f32.mrb[23].mxu0  ;;  %v7434_v16 = vpop.f32.mrb[23].mxu1  ;;  %v3096_v56 = vsel %vm3094_vm5, %v3095_v46, %v3093_v17  ;;  %v7453_v35 = vsel %vm3542_vm7, %v3543_v2, %v3541_v29  ;;  %v4110_v43 = vsub.f32 %v7441_v22, %v7400_v52 }
 0x1aa   :  { %v6252_v32 = vpop.eup %6251  ;;  %12835 = vst [vmem:[#allocation22_spill] sm:$0xff] %v7453_v35  ;;  %v3980_v37 = vsub.f32 %v7453_v35, %v3096_v56  ;;  %vm1829_vm13 = vcmp.eq.f32.partialorder %v7346_v18, 0.0  ;;  %v1830_v5 = vand.u32 2147483648, %v7346_v18  ;;  %v1610_v46 = vmul.f32 %v7225_v10, %v7225_v10 }
 0x1ab   :  { %12834 = vst [vmem:[#allocation21_spill] sm:$0xff] %v7427_v12  ;;  %v6254_v57 = vpop.eup %6253  ;;  %v1826_v45 = vmul.f32 %v6252_v32, %v7346_v18  ;;  %v2384_v51 = vmul.f32 %v7227_v11, %v7227_v11  ;;  %v7476_v62 = vand.u32 2147483647, %v4110_v43  ;;  %vm3106_vm14 = vcmp.eq.f32.partialorder %v7400_v52, inf }
 0x1ac   :  { %v6256_v14 = vpop.eup %6255  ;;  %v3098_v58 = vmul.f32 %v6254_v57, %v7355_v25  ;;  %v7473_v40 = vand.u32 2147483647, %v3980_v37  ;;  %v1674_v17 = vadd.f32 %v1610_v46, %v7276_v38  ;;  %vm3108_vm15 = vcmp.eq.f32.partialorder %v7400_v52, 0.0 }
 0x1ad   :  { %v3546_v27 = vmul.f32 %v6256_v14, %v7358_v55  ;;  %12837 = vst [vmem:[#allocation24_spill] sm:$0xff] %v7476_v62  ;;  %v1828_v63 = vsel %vm1827_vm12, %v7346_v18, %v1826_v45  ;;  %v2448_v56 = vadd.f32 %v2384_v51, %v7377_v44  ;;  %v6258_v44 = vpop.eup %6257  ;;  %vm3554_vm0 = vcmp.eq.f32.partialorder %v7441_v22, inf }
 0x1ae   :  { %v7469_v23 = vpop.f32.mrb[24].mxu0  ;;  %v7471_v39 = vpop.f32.mrb[24].mxu1  ;;  %12836 = vst [vmem:[#allocation23_spill] sm:$0xff] %v7473_v40  ;;  %v3100_v11 = vsel %vm3099_vm8, %v7355_v25, %v3098_v58  ;;  %v1831_v15 = vsel %vm1829_vm13, %v1830_v5, %v1828_v63  ;;  %v7512_v25 = vmax.f32 %v1674_v17, 1e-14  ;;  %v3105_v58 = vmul.f32 %v6258_v44, %v7400_v52 }
 0x1af   :  { %v7481_v2 = vpop.f32.mrb[25].mxu0  ;;  %v7483_v10 = vpop.f32.mrb[25].mxu1  ;;  %v3103_v18 = vsel %vm3101_vm9, %v3102_v21, %v3100_v11  ;;  %v3548_v57 = vsel %vm3547_vm10, %v7358_v55, %v3546_v27  ;;  %v7501_v37 = vmul.f32 %v7219_v8, %v1831_v15  ;;  %v7514_v21 = vmax.f32 %v2448_v56, 1e-14 }
 0x1b0   :  { %v7490_v29 = vpop.f32.mrb[26].mxu0  ;;  %v7492_v32 = vpop.f32.mrb[26].mxu1  ;;  %v7509_v45 = vsel %vm3549_vm11, %v3550_v36, %v3548_v57  ;;  %v3109_v5 = vand.u32 2147483648, %v7400_v52  ;;  %vm2601_vm1 = vcmp.eq.f32.partialorder %v7391_v49, inf  ;;  %vm2603_vm2 = vcmp.eq.f32.partialorder %v7391_v49, 0.0 }
 0x1b1   :  { %v7503_v43 = vpop.f32.mrb[27].mxu0  ;;  %v7505_v38 = vpop.f32.mrb[27].mxu1  ;;  %12838 = vst [vmem:[#allocation25_spill] sm:$0xff] %v7509_v45  ;;  %v3981_v14 = vsub.f32 %v7509_v45, %v3103_v18  ;;  %6263 = vrsqrt.f32 %v7501_v37  ;;  %v3107_v36 = vsel %vm3106_vm14, %v7400_v52, %v3105_v58  ;;  %vm3556_vm3 = vcmp.eq.f32.partialorder %v7441_v22, 0.0 }
 0x1b2   :  { %v6260_v46 = vpop.eup %6259  ;;  %6265 = vrsqrt.f32 %v7512_v25  ;;  %v2604_v63 = vand.u32 2147483648, %v7391_v49  ;;  %v1547_v11 = vmul.f32 %v7262_v31, %v7262_v31  ;;  %v2321_v15 = vmul.f32 %v7264_v30, %v7264_v30 }
 0x1b3   :  { %v7524_v55 = vand.u32 2147483647, %v3981_v14  ;;  %v2600_v51 = vmul.f32 %v6260_v46, %v7391_v49  ;;  %v6262_v27 = vpop.eup %6261  ;;  %6267 = vrsqrt.f32 %v7514_v21  ;;  %v3110_v18 = vsel %vm3108_vm15, %v3109_v5, %v3107_v36 }
 0x1b4   :  { %v3553_v57 = vmul.f32 %v6262_v27, %v7441_v22  ;;  %v3557_v44 = vand.u32 2147483648, %v7441_v22  ;;  %v1611_v46 = vmul.f32 %v7271_v33, %v7271_v33  ;;  %v2385_v52 = vmul.f32 %v7273_v34, %v7273_v34 }
 0x1b5   :  { %12839 = vst [vmem:[#allocation26_spill] sm:$0xff] %v7524_v55  ;;  %v2602_v14 = vsel %vm2601_vm1, %v7391_v49, %v2600_v51  ;;  %v1548_v5 = vmul.f32 %v7278_v41, %v7278_v41  ;;  %v2322_v33 = vmul.f32 %v7280_v42, %v7280_v42  ;;  %v1612_v34 = vmul.f32 %v7291_v47, %v7291_v47 }
 0x1b6   :  { %v7537_v17 = vpop.f32.mrb[28].mxu0  ;;  %v7539_v56 = vpop.f32.mrb[28].mxu1  ;;  %v2605_v30 = vsel %vm2603_vm2, %v2604_v63, %v2602_v14  ;;  %v3555_v51 = vsel %vm3554_vm0, %v7441_v22, %v3553_v57  ;;  %v1675_v62 = vadd.f32 %v1611_v46, %v1547_v11  ;;  %v2449_v3 = vadd.f32 %v2385_v52, %v2321_v15 }
 0x1b7   :  { %v7548_v58 = vpop.f32.mrb[29].mxu0  ;;  %v7550_v31 = vpop.f32.mrb[29].mxu1  ;;  %v7568_v49 = vmul.f32 %v7219_v8, %v2605_v30  ;;  %v7580_v14 = vsel %vm3556_vm3, %v3557_v44, %v3555_v51  ;;  %v2386_v57 = vmul.f32 %v7293_v48, %v7293_v48  ;;  %vm3113_vm4 = vcmp.eq.f32.partialorder %v7501_v37, inf }
 0x1b8   :  { %v7560_v36 = vpop.f32.mrb[30].mxu0  ;;  %v7562_v27 = vpop.f32.mrb[30].mxu1  ;;  %12840 = vst [vmem:[#allocation27_spill] sm:$0xff] %v7580_v14  ;;  %v3982_v30 = vsub.f32 %v7580_v14, %v3110_v18  ;;  %v7588_v47 = vmax.f32 %v1675_v62, 1e-14  ;;  %v1676_v11 = vadd.f32 %v1612_v34, %v1548_v5  ;;  %vm3115_vm5 = vcmp.eq.f32.partialorder %v7501_v37, 0.0 }
 0x1b9   :  { %v7574_v63 = vpop.f32.mrb[31].mxu0  ;;  %v7576_v41 = vpop.f32.mrb[31].mxu1  ;;  %6269 = vrsqrt.f32 %v7568_v49  ;;  %v4111_v42 = vsub.f32 %v7568_v49, %v7501_v37  ;;  %v7590_v24 = vmax.f32 %v2449_v3, 1e-14  ;;  %v2450_v15 = vadd.f32 %v2386_v57, %v2322_v33 }
 0x1ba   :  { %v7592_v22 = vand.u32 2147483647, %v3982_v30  ;;  %v3116_v48 = vand.u32 2147483648, %v7501_v37  ;;  %vm1834_vm6 = vcmp.eq.f32.partialorder %v7512_v25, inf  ;;  %6271 = vrsqrt.f32 %v7588_v47 }
 0x1bb   :  { %v6264_v54 = vpop.eup %6263  ;;  %v7597_v18 = vand.u32 2147483647, %v4111_v42  ;;  %vm1836_vm7 = vcmp.eq.f32.partialorder %v7512_v25, 0.0  ;;  %v1837_v52 = vand.u32 2147483648, %v7512_v25  ;;  %6273 = vrsqrt.f32 %v7590_v24 }
 0x1bc   :  { %12841 = vst [vmem:[#allocation28_spill] sm:$0xff] %v7592_v22  ;;  %v6266_v44 = vpop.eup %6265  ;;  %v3112_v34 = vmul.f32 %v6264_v54, %v7501_v37  ;;  %vm2608_vm8 = vcmp.eq.f32.partialorder %v7514_v21, inf  ;;  %vm2610_vm9 = vcmp.eq.f32.partialorder %v7514_v21, 0.0  ;;  %v2611_v57 = vand.u32 2147483648, %v7514_v21 }
 0x1bd   :  { %12842 = vst [vmem:[#allocation29_spill] sm:$0xff] %v7597_v18  ;;  %v1833_v46 = vmul.f32 %v6266_v44, %v7512_v25  ;;  %v6268_v33 = vpop.eup %6267  ;;  %vm3561_vm10 = vcmp.eq.f32.partialorder %v7568_v49, inf  ;;  %v7626_v14 = vmax.f32 %v1676_v11, 1e-14  ;;  %vm3563_vm11 = vcmp.eq.f32.partialorder %v7568_v49, 0.0 }
 0x1be   :  { %v7601_v3 = vpop.f32.mrb[32].mxu0  ;;  %v7603_v62 = vpop.f32.mrb[32].mxu1  ;;  %v2607_v18 = vmul.f32 %v6268_v33, %v7514_v21  ;;  %v7635_v50 = vmax.f32 %v2450_v15, 1e-14  ;;  %v1549_v22 = vmul.f32 %v7322_v0, %v7322_v0  ;;  %v1613_v33 = vmul.f32 %v7335_v7, %v7335_v7 }
 0x1bf   :  { %v7609_v5 = vpop.f32.mrb[33].mxu0  ;;  %v7611_v51 = vpop.f32.mrb[33].mxu1  ;;  %v1835_v44 = vsel %vm1834_vm6, %v7512_v25, %v1833_v46  ;;  %6275 = vrsqrt.f32 %v7626_v14  ;;  %v3114_v25 = vsel %vm3113_vm4, %v7501_v37, %v3112_v34  ;;  %v3564_v15 = vand.u32 2147483648, %v7568_v49 }
 0x1c0   :  { %v7617_v30 = vpop.f32.mrb[34].mxu0  ;;  %v7619_v42 = vpop.f32.mrb[34].mxu1  ;;  %v1838_v35 = vsel %vm1836_vm7, %v1837_v52, %v1835_v44  ;;  %v2609_v11 = vsel %vm2608_vm8, %v7514_v21, %v2607_v18  ;;  %6277 = vrsqrt.f32 %v7635_v50  ;;  %vm1841_vm12 = vcmp.eq.f32.partialorder %v7588_v47, inf }
 0x1c1   :  { %v7628_v54 = vpop.f32.mrb[35].mxu0  ;;  %v7630_v45 = vpop.f32.mrb[35].mxu1  ;;  %v7640_v46 = vmul.f32 %v7219_v8, %v1838_v35  ;;  %v2612_v0 = vsel %vm2610_vm9, %v2611_v57, %v2609_v11  ;;  %vm1843_vm13 = vcmp.eq.f32.partialorder %v7588_v47, 0.0  ;;  %v1844_v7 = vand.u32 2147483648, %v7588_v47 }
 0x1c2   :  { %v7661_v52 = vmul.f32 %v7219_v8, %v2612_v0  ;;  %vm2615_vm14 = vcmp.eq.f32.partialorder %v7590_v24, inf  ;;  %v2323_v21 = vmul.f32 %v7324_v1, %v7324_v1  ;;  %v3117_v44 = vsel %vm3115_vm5, %v3116_v48, %v3114_v25 }
 0x1c3   :  { %v6270_v35 = vpop.eup %6269  ;;  %6279 = vrsqrt.f32 %v7640_v46  ;;  %vm2617_vm15 = vcmp.eq.f32.partialorder %v7590_v24, 0.0  ;;  %v1677_v11 = vadd.f32 %v1613_v33, %v1549_v22  ;;  %v2618_v37 = vand.u32 2147483648, %v7590_v24 }
 0x1c4   :  { %v3560_v18 = vmul.f32 %v6270_v35, %v7568_v49  ;;  %v2387_v35 = vmul.f32 %v7337_v9, %v7337_v9  ;;  %v6272_v40 = vpop.eup %6271  ;;  %6281 = vrsqrt.f32 %v7661_v52  ;;  %vm1848_vm0 = vcmp.eq.f32.partialorder %v7626_v14, inf }
 0x1c5   :  { %v6274_v9 = vpop.eup %6273  ;;  %v4112_v25 = vsub.f32 %v7661_v52, %v7640_v46  ;;  %vm1850_vm1 = vcmp.eq.f32.partialorder %v7626_v14, 0.0  ;;  %v1851_v12 = vand.u32 2147483648, %v7626_v14  ;;  %vm3120_vm2 = vcmp.eq.f32.partialorder %v7640_v46, inf }
 0x1c6   :  { %v7666_v34 = vpop.f32.mrb[36].mxu0  ;;  %v7668_v57 = vpop.f32.mrb[36].mxu1  ;;  %v3562_v1 = vsel %vm3561_vm10, %v7568_v49, %v3560_v18  ;;  %v1840_v18 = vmul.f32 %v6272_v40, %v7588_v47  ;;  %v7704_v49 = vmax.f32 %v1677_v11, 1e-14  ;;  %vm3122_vm3 = vcmp.eq.f32.partialorder %v7640_v46, 0.0 }
 0x1c7   :  { %12843 = vst [vmem:[#allocation30_spill] sm:$0xff] %v7668_v57  ;;  %v7675_v0 = vpop.f32.mrb[37].mxu0  ;;  %v7677_v55 = vpop.f32.mrb[37].mxu1  ;;  %v7691_v33 = vsel %vm3563_vm11, %v3564_v15, %v3562_v1  ;;  %v2451_v15 = vadd.f32 %v2387_v35, %v2323_v21  ;;  %v7708_v40 = vand.u32 2147483647, %v4112_v25  ;;  %v3123_v35 = vand.u32 2147483648, %v7640_v46 }
 0x1c8   :  { %12844 = vst [vmem:[#allocation31_spill] sm:$0xff] %v7677_v55  ;;  %v7685_v48 = vpop.f32.mrb[38].mxu0  ;;  %v7687_v22 = vpop.f32.mrb[38].mxu1  ;;  %12847 = vst [vmem:[#allocation34_spill] sm:$0xff] %v7691_v33  ;;  %v1842_v1 = vsel %vm1841_vm12, %v7588_v47, %v1840_v18  ;;  %6283 = vrsqrt.f32 %v7704_v49  ;;  %vm2622_vm4 = vcmp.eq.f32.partialorder %v7635_v50, inf  ;;  %vm2624_vm5 = vcmp.eq.f32.partialorder %v7635_v50, 0.0 }
 0x1c9   :  { %12845 = vst [vmem:[#allocation32_spill] sm:$0xff] %v7685_v48  ;;  %12846 = vst [vmem:[#allocation33_spill] sm:$0xff] %v7687_v22  ;;  %v7698_v55 = vpop.f32.mrb[39].mxu0  ;;  %v7700_v57 = vpop.f32.mrb[39].mxu1  ;;  %v3983_v22 = vsub.f32 %v7691_v33, %v3117_v44  ;;  %v2614_v48 = vmul.f32 %v6274_v9, %v7590_v24  ;;  %v1845_v44 = vsel %vm1843_vm13, %v1844_v7, %v1842_v1  ;;  %vm3568_vm6 = vcmp.eq.f32.partialorder %v7661_v52, inf }
 0x1ca   :  { %12848 = vst [vmem:[#allocation35_spill] sm:$0xff] %v7698_v55  ;;  %12849 = vst [vmem:[#allocation36_spill] sm:$0xff] %v7708_v40  ;;  %v6276_v21 = vpop.eup %6275  ;;  %v7723_v9 = vmul.f32 %v7219_v8, %v1845_v44  ;;  %vm3570_vm7 = vcmp.eq.f32.partialorder %v7661_v52, 0.0  ;;  %v3571_v40 = vand.u32 2147483648, %v7661_v52  ;;  %vm1855_vm8 = vcmp.eq.f32.partialorder %v7704_v49, inf }
 0x1cb   :  { %v7713_v55 = vand.u32 2147483647, %v3983_v22  ;;  %v2616_v11 = vsel %vm2615_vm14, %v7590_v24, %v2614_v48  ;;  %v6278_v22 = vpop.eup %6277  ;;  %v1847_v7 = vmul.f32 %v6276_v21, %v7626_v14  ;;  %v7733_v48 = vmax.f32 %v2451_v15, 1e-14 }
 0x1cc   :  { %v2619_v25 = vsel %vm2617_vm15, %v2618_v37, %v2616_v11  ;;  %6285 = vrsqrt.f32 %v7723_v9  ;;  %v2625_v24 = vand.u32 2147483648, %v7635_v50  ;;  %v1550_v37 = vmul.f32 %v7348_v19, %v7348_v19 }
 0x1cd   :  { %12850 = vst [vmem:[#allocation37_spill] sm:$0xff] %v7713_v55  ;;  %v7729_v47 = vmul.f32 %v7219_v8, %v2619_v25  ;;  %v6280_v44 = vpop.eup %6279  ;;  %v1614_v25 = vmul.f32 %v7363_v26, %v7363_v26  ;;  %v1849_v19 = vsel %vm1848_vm0, %v7626_v14, %v1847_v7  ;;  %v2621_v55 = vmul.f32 %v6278_v22, %v7635_v50 }
 0x1ce   :  { %v7735_v18 = vpop.f32.mrb[40].mxu0  ;;  %v7737_v1 = vpop.f32.mrb[40].mxu1  ;;  %v3119_v15 = vmul.f32 %v6280_v44, %v7640_v46  ;;  %vm1857_vm9 = vcmp.eq.f32.partialorder %v7704_v49, 0.0  ;;  %vm3127_vm10 = vcmp.eq.f32.partialorder %v7723_v9, inf  ;;  %vm3129_vm11 = vcmp.eq.f32.partialorder %v7723_v9, 0.0 }
 0x1cf   :  { %12851 = vst [vmem:[#allocation38_spill] sm:$0xff] %v7735_v18  ;;  %12852 = vst [vmem:[#allocation39_spill] sm:$0xff] %v7737_v1  ;;  %v7744_v11 = vpop.f32.mrb[41].mxu0  ;;  %v7746_v21 = vpop.f32.mrb[41].mxu1  ;;  %6287 = vrsqrt.f32 %v7729_v47  ;;  %v4113_v33 = vsub.f32 %v7729_v47, %v7723_v9  ;;  %v1852_v1 = vsel %vm1850_vm1, %v1851_v12, %v1849_v19  ;;  %v2324_v18 = vmul.f32 %v7350_v20, %v7350_v20 }
 0x1d0   :  { %12853 = vst [vmem:[#allocation40_spill] sm:$0xff] %v7744_v11  ;;  %12854 = vst [vmem:[#allocation41_spill] sm:$0xff] %v7746_v21  ;;  %v7760_v21 = vpop.f32.mrb[42].mxu0  ;;  %v7762_v44 = vpop.f32.mrb[42].mxu1  ;;  %v3121_v26 = vsel %vm3120_vm2, %v7640_v46, %v3119_v15  ;;  %6289 = vrsqrt.f32 %v7733_v48  ;;  %v2623_v20 = vsel %vm2622_vm4, %v7635_v50, %v2621_v55  ;;  %v1678_v14 = vadd.f32 %v1614_v25, %v1550_v37 }
 0x1d1   :  { %12855 = vst [vmem:[#allocation42_spill] sm:$0xff] %v7760_v21  ;;  %12856 = vst [vmem:[#allocation43_spill] sm:$0xff] %v7762_v44  ;;  %v6282_v11 = vpop.eup %6281  ;;  %v7772_v7 = vpop.f32.mrb[43].mxu0  ;;  %v7775_v21 = vand.u32 2147483647, %v4113_v33  ;;  %v7778_v44 = vmul.f32 %v7219_v8, %v1852_v1  ;;  %v3124_v12 = vsel %vm3122_vm3, %v3123_v35, %v3121_v26  ;;  %v1858_v1 = vand.u32 2147483648, %v7704_v49 }
 0x1d2   :  { %v3567_v22 = vmul.f32 %v6282_v11, %v7661_v52  ;;  %v7781_v15 = vpop.f32.mrb[43].mxu1  ;;  %v6284_v11 = vpop.eup %6283  ;;  %v2626_v55 = vsel %vm2624_vm5, %v2625_v24, %v2623_v20  ;;  %v7802_v35 = vmax.f32 %v1678_v14, 1e-14  ;;  %v2388_v26 = vmul.f32 %v7365_v28, %v7365_v28 }
 0x1d3   :  { %12857 = vst [vmem:[#allocation44_spill] sm:$0xff] %v7775_v21  ;;  %6291 = vrsqrt.f32 %v7778_v44  ;;  %v7806_v25 = vmul.f32 %v7219_v8, %v2626_v55  ;;  %v1854_v19 = vmul.f32 %v6284_v11, %v7704_v49  ;;  %vm3575_vm12 = vcmp.eq.f32.partialorder %v7729_v47, inf }
 0x1d4   :  { %v3569_v33 = vsel %vm3568_vm6, %v7661_v52, %v3567_v22  ;;  %v3130_v52 = vand.u32 2147483648, %v7723_v9  ;;  %vm3577_vm13 = vcmp.eq.f32.partialorder %v7729_v47, 0.0  ;;  %6293 = vrsqrt.f32 %v7802_v35 }
 0x1d5   :  { %v7797_v46 = vsel %vm3570_vm7, %v3571_v40, %v3569_v33  ;;  %v3578_v24 = vand.u32 2147483648, %v7729_v47  ;;  %6295 = vrsqrt.f32 %v7806_v25  ;;  %vm2629_vm14 = vcmp.eq.f32.partialorder %v7733_v48, inf }
 0x1d6   :  { %12858 = vst [vmem:[#allocation45_spill] sm:$0xff] %v7797_v46  ;;  %v3984_v37 = vsub.f32 %v7797_v46, %v3124_v12  ;;  %v6286_v50 = vpop.eup %6285  ;;  %v4114_v12 = vsub.f32 %v7806_v25, %v7778_v44  ;;  %v1856_v20 = vsel %vm1855_vm8, %v7704_v49, %v1854_v19  ;;  %vm2631_vm15 = vcmp.eq.f32.partialorder %v7733_v48, 0.0  ;;  %v7840_v46 = vpop.f32.mrb[44].mxu0 }
 0x1d7   :  { %v3126_v28 = vmul.f32 %v6286_v50, %v7723_v9  ;;  %v1859_v33 = vsel %vm1857_vm9, %v1858_v1, %v1856_v20  ;;  %v2632_v11 = vand.u32 2147483648, %v7733_v48  ;;  %v2452_v55 = vadd.f32 %v2388_v26, %v2324_v18 }
 0x1d8   :  { %v7815_v40 = vand.u32 2147483647, %v3984_v37  ;;  %vm3134_vm0 = vcmp.eq.f32.partialorder %v7778_v44, inf  ;;  %v7835_v21 = vand.u32 2147483647, %v4114_v12  ;;  %v7838_v19 = vmul.f32 %v7219_v8, %v1859_v33 }
 0x1d9   :  { %v6288_v22 = vpop.eup %6287  ;;  %v3128_v50 = vsel %vm3127_vm10, %v7723_v9, %v3126_v28  ;;  %v7850_v26 = vmax.f32 %v2452_v55, 1e-14  ;;  %v7852_v28 = vpop.f32.mrb[45].mxu0  ;;  %vm3136_vm1 = vcmp.eq.f32.partialorder %v7778_v44, 0.0  ;;  %v3137_v9 = vand.u32 2147483648, %v7778_v44 }
 0x1da   :  { %12859 = vst [vmem:[#allocation46_spill] sm:$0xff] %v7815_v40  ;;  %v3574_v14 = vmul.f32 %v6288_v22, %v7729_v47  ;;  %v6290_v37 = vpop.eup %6289  ;;  %12860 = vst [vmem:[#allocation47_spill] sm:$0xff] %v7835_v21  ;;  %v7842_v22 = vpop.f32.mrb[44].mxu1  ;;  %v3131_v49 = vsel %vm3129_vm11, %v3130_v52, %v3128_v50  ;;  %6297 = vrsqrt.f32 %v7838_v19  ;;  %vm1862_vm2 = vcmp.eq.f32.partialorder %v7802_v35, inf }
 0x1db   :  { %v2628_v1 = vmul.f32 %v6290_v37, %v7733_v48  ;;  %v7854_v12 = vpop.f32.mrb[45].mxu1  ;;  %6299 = vrsqrt.f32 %v7850_v26  ;;  %vm1864_vm3 = vcmp.eq.f32.partialorder %v7802_v35, 0.0  ;;  %v1551_v55 = vmul.f32 %v7405_v53, %v7405_v53  ;;  %v7875_v37 = vpop.f32.mrb[46].mxu0 }
 0x1dc   :  { %v3576_v18 = vsel %vm3575_vm12, %v7729_v47, %v3574_v14  ;;  %12862 = vst [vmem:[#allocation49_spill] sm:$0xff] %v7875_v37  ;;  %v7877_v50 = vpop.f32.mrb[46].mxu1  ;;  %vm3582_vm4 = vcmp.eq.f32.partialorder %v7806_v25, inf  ;;  %v2326_v21 = vmul.f32 %v7425_v6, %v7425_v6  ;;  %vm3584_vm5 = vcmp.eq.f32.partialorder %v7806_v25, 0.0 }
 0x1dd   :  { %v7858_v20 = vsel %vm3577_vm13, %v3578_v24, %v3576_v18  ;;  %v6292_v52 = vpop.eup %6291  ;;  %v2630_v33 = vsel %vm2629_vm14, %v7733_v48, %v2628_v1  ;;  %12863 = vst [vmem:[#allocation50_spill] sm:$0xff] %v7877_v50  ;;  %v2325_v1 = vmul.f32 %v7407_v59, %v7407_v59  ;;  %v1615_v48 = vmul.f32 %v7414_v60, %v7414_v60  ;;  %v7913_v37 = vpop.f32.mrb[47].mxu1 }
 0x1de   :  { %12861 = vst [vmem:[#allocation48_spill] sm:$0xff] %v7858_v20  ;;  %v3985_v14 = vsub.f32 %v7858_v20, %v3131_v49  ;;  %v3133_v47 = vmul.f32 %v6292_v52, %v7778_v44  ;;  %v2633_v24 = vsel %vm2631_vm15, %v2632_v11, %v2630_v33  ;;  %v7888_v11 = vpop.f32.mrb[47].mxu0  ;;  %v6294_v52 = vpop.eup %6293  ;;  %v2389_v33 = vmul.f32 %v7416_v61, %v7416_v61 }
 0x1df   :  { %v7882_v18 = vmul.f32 %v7219_v8, %v2633_v24  ;;  %12865 = vst [vmem:[#allocation52_spill] sm:$0xff] %v7888_v11  ;;  %v6296_v24 = vpop.eup %6295  ;;  %v3585_v59 = vand.u32 2147483648, %v7806_v25  ;;  %v1552_v60 = vmul.f32 %v7423_v4, %v7423_v4  ;;  %v1861_v61 = vmul.f32 %v6294_v52, %v7802_v35 }
 0x1e0   :  { %v7879_v49 = vand.u32 2147483647, %v3985_v14  ;;  %v3135_v53 = vsel %vm3134_vm0, %v7778_v44, %v3133_v47  ;;  %v1865_v14 = vand.u32 2147483648, %v7802_v35  ;;  %v3581_v20 = vmul.f32 %v6296_v24, %v7806_v25 }
 0x1e1   :  { %6301 = vrsqrt.f32 %v7882_v18  ;;  %v3138_v47 = vsel %vm3136_vm1, %v3137_v9, %v3135_v53  ;;  %v1679_v40 = vadd.f32 %v1615_v48, %v1551_v55  ;;  %v2453_v50 = vadd.f32 %v2389_v33, %v2325_v1 }
 0x1e2   :  { %12864 = vst [vmem:[#allocation51_spill] sm:$0xff] %v7879_v49  ;;  %v4115_v49 = vsub.f32 %v7882_v18, %v7838_v19  ;;  %v1616_v11 = vmul.f32 %v7432_v13, %v7432_v13  ;;  %v2390_v4 = vmul.f32 %v7434_v16, %v7434_v16  ;;  %v3583_v6 = vsel %vm3582_vm4, %v7806_v25, %v3581_v20 }
 0x1e3   :  { %v1863_v9 = vsel %vm1862_vm2, %v7802_v35, %v1861_v61  ;;  %v7924_v55 = vsel %vm3584_vm5, %v3585_v59, %v3583_v6  ;;  %v7928_v16 = vmax.f32 %v1679_v40, 1e-14  ;;  %v7930_v1 = vmax.f32 %v2453_v50, 1e-14 }
 0x1e4   :  { %v7919_v44 = vand.u32 2147483647, %v4115_v49  ;;  %12867 = vst [vmem:[#allocation54_spill] sm:$0xff] %v7924_v55  ;;  %v1866_v13 = vsel %vm1864_vm3, %v1865_v14, %v1863_v9  ;;  %v6298_v48 = vpop.eup %6297  ;;  %v3986_v20 = vsub.f32 %v7924_v55, %v3138_v47  ;;  %v1680_v49 = vadd.f32 %v1616_v11, %v1552_v60 }
 0x1e5   :  { %v7934_v25 = vmul.f32 %v7219_v8, %v1866_v13  ;;  %v2454_v52 = vadd.f32 %v2390_v4, %v2326_v21  ;;  %v6300_v53 = vpop.eup %6299  ;;  %v3140_v33 = vmul.f32 %v6298_v48, %v7838_v19  ;;  %6303 = vrsqrt.f32 %v7928_v16 }
 0x1e6   :  { %12866 = vst [vmem:[#allocation53_spill] sm:$0xff] %v7919_v44  ;;  %v7938_v24 = vand.u32 2147483647, %v3986_v20  ;;  %vm3141_vm6 = vcmp.eq.f32.partialorder %v7838_v19, inf  ;;  %vm3143_vm7 = vcmp.eq.f32.partialorder %v7838_v19, 0.0  ;;  %v3144_v35 = vand.u32 2147483648, %v7838_v19 }
 0x1e7   :  { %6305 = vrsqrt.f32 %v7934_v25  ;;  %v2635_v40 = vmul.f32 %v6300_v53, %v7850_v26  ;;  %vm2636_vm8 = vcmp.eq.f32.partialorder %v7850_v26, inf  ;;  %vm2638_vm9 = vcmp.eq.f32.partialorder %v7850_v26, 0.0 }
 0x1e8   :  { %12868 = vst [vmem:[#allocation55_spill] sm:$0xff] %v7938_v24  ;;  %v3142_v21 = vsel %vm3141_vm6, %v7838_v19, %v3140_v33  ;;  %vm3589_vm10 = vcmp.eq.f32.partialorder %v7882_v18, inf  ;;  %v2639_v50 = vand.u32 2147483648, %v7850_v26  ;;  %6307 = vrsqrt.f32 %v7930_v1  ;;  %v7977_v19 = vpop.f32.mrb[48].mxu1 }
 0x1e9   :  { %vm3591_vm11 = vcmp.eq.f32.partialorder %v7882_v18, 0.0  ;;  %v2637_v14 = vsel %vm2636_vm8, %v7850_v26, %v2635_v40  ;;  %v7953_v59 = vmax.f32 %v1680_v49, 1e-14  ;;  %v7955_v60 = vmax.f32 %v2454_v52, 1e-14 }
 0x1ea   :  { %v3592_v61 = vand.u32 2147483648, %v7882_v18  ;;  %v2640_v4 = vsel %vm2638_vm9, %v2639_v50, %v2637_v14  ;;  %v1553_v6 = vmul.f32 %v7469_v23, %v7469_v23  ;;  %v3145_v9 = vsel %vm3143_vm7, %v3144_v35, %v3142_v21  ;;  %v7975_v23 = vpop.f32.mrb[48].mxu0  ;;  %v7999_v21 = vpop.f32.mrb[49].mxu1 }
 0x1eb   :  { %v6302_v11 = vpop.eup %6301  ;;  %v7964_v13 = vmul.f32 %v7219_v8, %v2640_v4  ;;  %6309 = vrsqrt.f32 %v7953_v59  ;;  %v1617_v26 = vmul.f32 %v7481_v2, %v7481_v2  ;;  %vm1869_vm12 = vcmp.eq.f32.partialorder %v7928_v16, inf  ;;  %v7988_v49 = vpop.f32.mrb[49].mxu0 }
 0x1ec   :  { %v3588_v47 = vmul.f32 %v6302_v11, %v7882_v18  ;;  %vm1871_vm13 = vcmp.eq.f32.partialorder %v7928_v16, 0.0  ;;  %6311 = vrsqrt.f32 %v7955_v60  ;;  %vm3148_vm14 = vcmp.eq.f32.partialorder %v7934_v25, inf }
 0x1ed   :  { %v3151_v2 = vand.u32 2147483648, %v7934_v25  ;;  %6313 = vrsqrt.f32 %v7964_v13  ;;  %v2327_v20 = vmul.f32 %v7471_v39, %v7471_v39  ;;  %v4116_v53 = vsub.f32 %v7964_v13, %v7934_v25 }
 0x1ee   :  { %v3590_v48 = vsel %vm3589_vm10, %v7882_v18, %v3588_v47  ;;  %v1872_v18 = vand.u32 2147483648, %v7928_v16  ;;  %vm2643_vm15 = vcmp.eq.f32.partialorder %v7930_v1, inf  ;;  %vm2645_vm0 = vcmp.eq.f32.partialorder %v7930_v1, 0.0 }
 0x1ef   :  { %v7981_v8 = vsel %vm3591_vm11, %v3592_v61, %v3590_v48  ;;  %v6304_v33 = vpop.eup %6303  ;;  %v2646_v35 = vand.u32 2147483648, %v7930_v1  ;;  %v1681_v40 = vadd.f32 %v1617_v26, %v1553_v6  ;;  %v2391_v39 = vmul.f32 %v7483_v10, %v7483_v10 }
 0x1f0   :  { %12869 = vst [vmem:[#allocation56_spill] sm:$0xff] %v7981_v8  ;;  %v3987_v52 = vsub.f32 %v7981_v8, %v3145_v9  ;;  %vm3150_vm1 = vcmp.eq.f32.partialorder %v7934_v25, 0.0  ;;  %v8004_v14 = vand.u32 2147483647, %v4116_v53  ;;  %v1868_v47 = vmul.f32 %v6304_v33, %v7928_v16  ;;  %v8038_v33 = vpop.f32.mrb[50].mxu1 }
 0x1f1   :  { %v6306_v50 = vpop.eup %6305  ;;  %vm1876_vm2 = vcmp.eq.f32.partialorder %v7953_v59, inf  ;;  %v8008_v61 = vmax.f32 %v1681_v40, 1e-14  ;;  %v2455_v4 = vadd.f32 %v2391_v39, %v2327_v20  ;;  %v1554_v6 = vmul.f32 %v7490_v29, %v7490_v29 }
 0x1f2   :  { %v8001_v11 = vand.u32 2147483647, %v3987_v52  ;;  %12871 = vst [vmem:[#allocation58_spill] sm:$0xff] %v8004_v14  ;;  %v1618_v10 = vmul.f32 %v7503_v43, %v7503_v43  ;;  %v6308_v9 = vpop.eup %6307  ;;  %v3147_v26 = vmul.f32 %v6306_v50, %v7934_v25  ;;  %v1870_v48 = vsel %vm1869_vm12, %v7928_v16, %v1868_v47  ;;  %v8031_v43 = vld [vmem:[%s12693_s3] ss:$0 sm:$0xff] }
 0x1f3   :  { %vm1878_vm3 = vcmp.eq.f32.partialorder %v7953_v59, 0.0  ;;  %v1879_v52 = vand.u32 2147483648, %v7953_v59  ;;  %v1873_v20 = vsel %vm1871_vm13, %v1872_v18, %v1870_v48  ;;  %v2642_v53 = vmul.f32 %v6308_v9, %v7930_v1  ;;  %v8036_v18 = vpop.f32.mrb[50].mxu0 }
 0x1f4   :  { %12870 = vst [vmem:[#allocation57_spill] sm:$0xff] %v8001_v11  ;;  %vm2650_vm4 = vcmp.eq.f32.partialorder %v7955_v60, inf  ;;  %6315 = vrsqrt.f32 %v8008_v61  ;;  %vm3596_vm5 = vcmp.eq.f32.partialorder %v7964_v13, inf  ;;  %vm3598_vm6 = vcmp.eq.f32.partialorder %v7964_v13, 0.0  ;;  %v8053_v44 = vpop.f32.mrb[51].mxu0 }
 0x1f5   :  { %v3599_v29 = vand.u32 2147483648, %v7964_v13  ;;  %v8034_v16 = vmul.f32 %v8031_v43, %v1873_v20  ;;  %v6310_v40 = vpop.eup %6309  ;;  %v2644_v39 = vsel %vm2643_vm15, %v7930_v1, %v2642_v53  ;;  %vm2652_vm7 = vcmp.eq.f32.partialorder %v7955_v60, 0.0 }
 0x1f6   :  { %v8044_v50 = vmax.f32 %v2455_v4, 1e-14  ;;  %v1682_v47 = vadd.f32 %v1618_v10, %v1554_v6  ;;  %v6312_v9 = vpop.eup %6311  ;;  %v3149_v48 = vsel %vm3148_vm14, %v7934_v25, %v3147_v26  ;;  %v2653_v20 = vand.u32 2147483648, %v7955_v60 }
 0x1f7   :  { %6317 = vrsqrt.f32 %v8034_v16  ;;  %v2328_v14 = vmul.f32 %v7492_v32, %v7492_v32  ;;  %v6314_v53 = vpop.eup %6313  ;;  %v2647_v4 = vsel %vm2645_vm0, %v2646_v35, %v2644_v39  ;;  %v1875_v6 = vmul.f32 %v6310_v40, %v7953_v59 }
 0x1f8   :  { %v2649_v10 = vmul.f32 %v6312_v9, %v7955_v60  ;;  %6319 = vrsqrt.f32 %v8044_v50  ;;  %v3595_v26 = vmul.f32 %v6314_v53, %v7964_v13  ;;  %v8062_v8 = vmul.f32 %v8031_v43, %v2647_v4 }
 0x1f9   :  { %v2392_v32 = vmul.f32 %v7505_v38, %v7505_v38  ;;  %v1555_v55 = vmul.f32 %v7537_v17, %v7537_v17  ;;  %v3152_v1 = vsel %vm3150_vm1, %v3151_v2, %v3149_v48  ;;  %v1877_v35 = vsel %vm1876_vm2, %v7953_v59, %v1875_v6 }
 0x1fa   :  { %v2651_v40 = vsel %vm2650_vm4, %v7955_v60, %v2649_v10  ;;  %v8076_v39 = vmax.f32 %v1682_v47, 1e-14  ;;  %v3597_v38 = vsel %vm3596_vm5, %v7964_v13, %v3595_v26  ;;  %6321 = vrsqrt.f32 %v8062_v8  ;;  %v8101_v13 = vpop.f32.mrb[51].mxu1 }
 0x1fb   :  { %vm1883_vm8 = vcmp.eq.f32.partialorder %v8008_v61, inf  ;;  %v2329_v17 = vmul.f32 %v7539_v56, %v7539_v56  ;;  %v8087_v25 = vsel %vm3598_vm6, %v3599_v29, %v3597_v38  ;;  %v4117_v2 = vsub.f32 %v8062_v8, %v8034_v16 }
 0x1fc   :  { %12872 = vst [vmem:[#allocation59_spill] sm:$0xff] %v8087_v25  ;;  %v1880_v47 = vsel %vm1878_vm3, %v1879_v52, %v1877_v35  ;;  %vm1885_vm9 = vcmp.eq.f32.partialorder %v8008_v61, 0.0  ;;  %v3988_v9 = vsub.f32 %v8087_v25, %v3152_v1  ;;  %v2654_v56 = vsel %vm2652_vm7, %v2653_v20, %v2651_v40 }
 0x1fd   :  { %v8096_v48 = vmul.f32 %v8031_v43, %v1880_v47  ;;  %6323 = vrsqrt.f32 %v8076_v39  ;;  %vm3155_vm10 = vcmp.eq.f32.partialorder %v8034_v16, inf  ;;  %v8104_v53 = vand.u32 2147483647, %v4117_v2 }
 0x1fe   :  { %v6316_v29 = vpop.eup %6315  ;;  %v8107_v59 = vmul.f32 %v8031_v43, %v2654_v56  ;;  %v1886_v52 = vand.u32 2147483648, %v8008_v61  ;;  %v8110_v4 = vand.u32 2147483647, %v3988_v9  ;;  %vm3157_vm11 = vcmp.eq.f32.partialorder %v8034_v16, 0.0 }
 0x1ff   :  { %12873 = vst [vmem:[#allocation60_spill] sm:$0xff] %v8104_v53  ;;  %v3158_v60 = vand.u32 2147483648, %v8034_v16  ;;  %6325 = vrsqrt.f32 %v8096_v48  ;;  %vm2657_vm12 = vcmp.eq.f32.partialorder %v8044_v50, inf  ;;  %vm2659_vm13 = vcmp.eq.f32.partialorder %v8044_v50, 0.0 }
 0x200   :  { %12874 = vst [vmem:[#allocation61_spill] sm:$0xff] %v8110_v4  ;;  %6327 = vrsqrt.f32 %v8107_v59  ;;  %v2660_v20 = vand.u32 2147483648, %v8044_v50  ;;  %vm3603_vm14 = vcmp.eq.f32.partialorder %v8062_v8, inf  ;;  %vm3605_vm15 = vcmp.eq.f32.partialorder %v8062_v8, 0.0 }
 0x201   :  { %v6318_v6 = vpop.eup %6317  ;;  %v4118_v10 = vsub.f32 %v8107_v59, %v8096_v48  ;;  %v1882_v26 = vmul.f32 %v6316_v29, %v8008_v61  ;;  %v2456_v40 = vadd.f32 %v2392_v32, %v2328_v14  ;;  %v1619_v38 = vmul.f32 %v7548_v58, %v7548_v58 }
 0x202   :  { %v6320_v1 = vpop.eup %6319  ;;  %v3154_v35 = vmul.f32 %v6318_v6, %v8034_v16  ;;  %v2393_v2 = vmul.f32 %v7550_v31, %v7550_v31  ;;  %v3606_v47 = vand.u32 2147483648, %v8062_v8  ;;  %vm1890_vm0 = vcmp.eq.f32.partialorder %v8076_v39, inf }
 0x203   :  { %v8130_v9 = vand.u32 2147483647, %v4118_v10  ;;  %v1884_v56 = vsel %vm1883_vm8, %v8008_v61, %v1882_v26  ;;  %v2656_v29 = vmul.f32 %v6320_v1, %v8044_v50  ;;  %v8141_v32 = vmax.f32 %v2456_v40, 1e-14 }
 0x204   :  { %v3156_v14 = vsel %vm3155_vm10, %v8034_v16, %v3154_v35  ;;  %v1887_v58 = vsel %vm1885_vm9, %v1886_v52, %v1884_v56  ;;  %v1683_v31 = vadd.f32 %v1619_v38, %v1555_v55  ;;  %v6322_v6 = vpop.eup %6321  ;;  %v2457_v1 = vadd.f32 %v2393_v2, %v2329_v17  ;;  %v8152_v35 = vpop.f32.mrb[52].mxu1 }
 0x205   :  { %12875 = vst [vmem:[#allocation62_spill] sm:$0xff] %v8130_v9  ;;  %v8144_v10 = vmul.f32 %v8031_v43, %v1887_v58  ;;  %v2658_v26 = vsel %vm2657_vm12, %v8044_v50, %v2656_v29  ;;  %v8150_v9 = vpop.f32.mrb[52].mxu0  ;;  %v3602_v61 = vmul.f32 %v6322_v6, %v8062_v8  ;;  %vm1892_vm1 = vcmp.eq.f32.partialorder %v8076_v39, 0.0  ;;  %v8161_v40 = vpop.f32.mrb[53].mxu1 }
 0x206   :  { %v2661_v55 = vsel %vm2659_vm13, %v2660_v20, %v2658_v26  ;;  %6329 = vrsqrt.f32 %v8141_v32  ;;  %v8159_v52 = vpop.f32.mrb[53].mxu0  ;;  %v3159_v17 = vsel %vm3157_vm11, %v3158_v60, %v3156_v14  ;;  %vm3162_vm2 = vcmp.eq.f32.partialorder %v8096_v48, inf  ;;  %v8170_v20 = vpop.f32.mrb[54].mxu1 }
 0x207   :  { %v6324_v38 = vpop.eup %6323  ;;  %vm3164_vm3 = vcmp.eq.f32.partialorder %v8096_v48, 0.0  ;;  %6331 = vrsqrt.f32 %v8144_v10  ;;  %v8168_v50 = vpop.f32.mrb[54].mxu0  ;;  %v3604_v2 = vsel %vm3603_vm14, %v8062_v8, %v3602_v61  ;;  %v3165_v56 = vand.u32 2147483648, %v8096_v48 }
 0x208   :  { %v8177_v29 = vmul.f32 %v8031_v43, %v2661_v55  ;;  %v1889_v16 = vmul.f32 %v6324_v38, %v8076_v39  ;;  %v8180_v60 = vpop.f32.mrb[55].mxu0  ;;  %v8184_v58 = vsel %vm3605_vm15, %v3606_v47, %v3604_v2  ;;  %vm3610_vm4 = vcmp.eq.f32.partialorder %v8107_v59, inf }
 0x209   :  { %v6326_v14 = vpop.eup %6325  ;;  %12876 = vst [vmem:[#allocation63_spill] sm:$0xff] %v8184_v58  ;;  %vm3612_vm5 = vcmp.eq.f32.partialorder %v8107_v59, 0.0  ;;  %v8188_v6 = vmax.f32 %v1683_v31, 1e-14  ;;  %v3989_v61 = vsub.f32 %v8184_v58, %v3159_v17  ;;  %v3613_v38 = vand.u32 2147483648, %v8107_v59 }
 0x20a   :  { %v6328_v26 = vpop.eup %6327  ;;  %v3161_v55 = vmul.f32 %v6326_v14, %v8096_v48  ;;  %6333 = vrsqrt.f32 %v8177_v29  ;;  %v4119_v8 = vsub.f32 %v8177_v29, %v8144_v10  ;;  %v1893_v47 = vand.u32 2147483648, %v8076_v39 }
 0x20b   :  { %v3609_v53 = vmul.f32 %v6328_v26, %v8107_v59  ;;  %v8198_v2 = vmax.f32 %v2457_v1, 1e-14  ;;  %v8200_v31 = vand.u32 2147483647, %v3989_v61  ;;  %v1891_v14 = vsel %vm1890_vm0, %v8076_v39, %v1889_v16  ;;  %v8231_v39 = vpop.f32.mrb[55].mxu1 }
 0x20c   :  { %v3163_v17 = vsel %vm3162_vm2, %v8096_v48, %v3161_v55  ;;  %6335 = vrsqrt.f32 %v8188_v6  ;;  %v8214_v58 = vand.u32 2147483647, %v4119_v8  ;;  %v1894_v61 = vsel %vm1892_vm1, %v1893_v47, %v1891_v14 }
 0x20d   :  { %12877 = vst [vmem:[#allocation64_spill] sm:$0xff] %v8200_v31  ;;  %v3166_v26 = vsel %vm3164_vm3, %v3165_v56, %v3163_v17  ;;  %v3611_v1 = vsel %vm3610_vm4, %v8107_v59, %v3609_v53  ;;  %v8223_v16 = vmul.f32 %v8031_v43, %v1894_v61  ;;  %v1556_v48 = vmul.f32 %v7560_v36, %v7560_v36 }
 0x20e   :  { %12878 = vst [vmem:[#allocation65_spill] sm:$0xff] %v8214_v58  ;;  %v8220_v55 = vsel %vm3612_vm5, %v3613_v38, %v3611_v1  ;;  %vm3169_vm6 = vcmp.eq.f32.partialorder %v8144_v10, inf  ;;  %vm2664_vm7 = vcmp.eq.f32.partialorder %v8141_v32, inf  ;;  %6337 = vrsqrt.f32 %v8198_v2 }
 0x20f   :  { %12879 = vst [vmem:[#allocation66_spill] sm:$0xff] %v8220_v55  ;;  %v3990_v56 = vsub.f32 %v8220_v55, %v3166_v26  ;;  %vm3171_vm8 = vcmp.eq.f32.partialorder %v8144_v10, 0.0  ;;  %v3172_v59 = vand.u32 2147483648, %v8144_v10  ;;  %6339 = vrsqrt.f32 %v8223_v16 }
 0x210   :  { %v6330_v53 = vpop.eup %6329  ;;  %vm2666_vm9 = vcmp.eq.f32.partialorder %v8141_v32, 0.0  ;;  %vm3617_vm10 = vcmp.eq.f32.partialorder %v8177_v29, inf  ;;  %v2667_v47 = vand.u32 2147483648, %v8141_v32  ;;  %v2330_v14 = vmul.f32 %v7562_v27, %v7562_v27 }
 0x211   :  { %v6332_v36 = vpop.eup %6331  ;;  %v8237_v38 = vand.u32 2147483647, %v3990_v56  ;;  %v2663_v8 = vmul.f32 %v6330_v53, %v8141_v32  ;;  %v1620_v26 = vmul.f32 %v7574_v63, %v7574_v63  ;;  %v2394_v1 = vmul.f32 %v7576_v41, %v7576_v41 }
 0x212   :  { %v3168_v17 = vmul.f32 %v6332_v36, %v8144_v10  ;;  %vm3619_vm11 = vcmp.eq.f32.partialorder %v8177_v29, 0.0  ;;  %v1557_v56 = vmul.f32 %v7601_v3, %v7601_v3  ;;  %v1621_v53 = vmul.f32 %v7609_v5, %v7609_v5 }
 0x213   :  { %12880 = vst [vmem:[#allocation67_spill] sm:$0xff] %v8237_v38  ;;  %v2665_v61 = vsel %vm2664_vm7, %v8141_v32, %v2663_v8  ;;  %v1684_v41 = vadd.f32 %v1620_v26, %v1556_v48  ;;  %v2458_v58 = vadd.f32 %v2394_v1, %v2330_v14  ;;  %v3620_v8 = vand.u32 2147483648, %v8177_v29 }
 0x214   :  { %v6334_v36 = vpop.eup %6333  ;;  %v3170_v27 = vsel %vm3169_vm6, %v8144_v10, %v3168_v17  ;;  %v2668_v63 = vsel %vm2666_vm9, %v2667_v47, %v2665_v61  ;;  %v1685_v3 = vadd.f32 %v1621_v53, %v1557_v56  ;;  %vm1897_vm12 = vcmp.eq.f32.partialorder %v8188_v6, inf }
 0x215   :  { %v3616_v55 = vmul.f32 %v6334_v36, %v8177_v29  ;;  %v8265_v25 = vmul.f32 %v8031_v43, %v2668_v63  ;;  %v3173_v5 = vsel %vm3171_vm8, %v3172_v59, %v3170_v27  ;;  %vm1899_vm13 = vcmp.eq.f32.partialorder %v8188_v6, 0.0  ;;  %v8305_v27 = vpop.f32.mrb[56].mxu0  ;;  %v8307_v63 = vpop.f32.mrb[56].mxu1 }
 0x216   :  { %v6336_v38 = vpop.eup %6335  ;;  %v8271_v32 = vmax.f32 %v1684_v41, 1e-14  ;;  %v1900_v47 = vand.u32 2147483648, %v8188_v6  ;;  %v8278_v17 = vmax.f32 %v2458_v58, 1e-14  ;;  %vm2671_vm14 = vcmp.eq.f32.partialorder %v8198_v2, inf }
 0x217   :  { %v3618_v48 = vsel %vm3617_vm10, %v8177_v29, %v3616_v55  ;;  %6341 = vrsqrt.f32 %v8265_v25  ;;  %v4120_v59 = vsub.f32 %v8265_v25, %v8223_v16  ;;  %v1896_v14 = vmul.f32 %v6336_v38, %v8188_v6 }
 0x218   :  { %v8282_v10 = vsel %vm3619_vm11, %v3620_v8, %v3618_v48  ;;  %v6338_v26 = vpop.eup %6337  ;;  %vm3176_vm15 = vcmp.eq.f32.partialorder %v8223_v16, inf  ;;  %vm2673_vm0 = vcmp.eq.f32.partialorder %v8198_v2, 0.0  ;;  %6343 = vrsqrt.f32 %v8271_v32  ;;  %v8319_v48 = vpop.f32.mrb[57].mxu0 }
 0x219   :  { %12881 = vst [vmem:[#allocation68_spill] sm:$0xff] %v8282_v10  ;;  %v3991_v55 = vsub.f32 %v8282_v10, %v3173_v5  ;;  %v6340_v58 = vpop.eup %6339  ;;  %v8292_v29 = vand.u32 2147483647, %v4120_v59  ;;  %v1898_v1 = vsel %vm1897_vm12, %v8188_v6, %v1896_v14  ;;  %v2670_v38 = vmul.f32 %v6338_v26, %v8198_v2 }
 0x21a   :  { %v2674_v61 = vand.u32 2147483648, %v8198_v2  ;;  %v3175_v53 = vmul.f32 %v6340_v58, %v8223_v16  ;;  %v1901_v36 = vsel %vm1899_vm13, %v1900_v47, %v1898_v1  ;;  %6345 = vrsqrt.f32 %v8278_v17  ;;  %v8321_v47 = vpop.f32.mrb[57].mxu1 }
 0x21b   :  { %12882 = vst [vmem:[#allocation69_spill] sm:$0xff] %v8292_v29  ;;  %v8299_v56 = vand.u32 2147483647, %v3991_v55  ;;  %v8310_v41 = vmul.f32 %v8031_v43, %v1901_v36  ;;  %v2672_v8 = vsel %vm2671_vm14, %v8198_v2, %v2670_v38  ;;  %v2331_v5 = vmul.f32 %v7603_v62, %v7603_v62  ;;  %v8329_v55 = vpop.f32.mrb[58].mxu0  ;;  %v8331_v58 = vpop.f32.mrb[58].mxu1 }
 0x21c   :  { %v2395_v6 = vmul.f32 %v7611_v51, %v7611_v51  ;;  %vm3178_vm1 = vcmp.eq.f32.partialorder %v8223_v16, 0.0  ;;  %v3179_v59 = vand.u32 2147483648, %v8223_v16  ;;  %v2675_v14 = vsel %vm2673_vm0, %v2674_v61, %v2672_v8  ;;  %v8340_v1 = vpop.f32.mrb[59].mxu0  ;;  %v8371_v29 = vpop.f32.mrb[59].mxu1 }
 0x21d   :  { %12883 = vst [vmem:[#allocation70_spill] sm:$0xff] %v8299_v56  ;;  %v8327_v26 = vmax.f32 %v1685_v3, 1e-14  ;;  %v3177_v62 = vsel %vm3176_vm15, %v8223_v16, %v3175_v53  ;;  %vm3624_vm2 = vcmp.eq.f32.partialorder %v8265_v25, inf  ;;  %6347 = vrsqrt.f32 %v8310_v41 }
 0x21e   :  { %v1558_v51 = vmul.f32 %v7617_v30, %v7617_v30  ;;  %vm3626_vm3 = vcmp.eq.f32.partialorder %v8265_v25, 0.0  ;;  %v3627_v2 = vand.u32 2147483648, %v8265_v25  ;;  %v8345_v3 = vmul.f32 %v8031_v43, %v2675_v14 }
 0x21f   :  { %6349 = vrsqrt.f32 %v8327_v26  ;;  %vm1904_vm4 = vcmp.eq.f32.partialorder %v8271_v32, inf  ;;  %vm1906_vm5 = vcmp.eq.f32.partialorder %v8271_v32, 0.0  ;;  %v1907_v38 = vand.u32 2147483648, %v8271_v32 }
 0x220   :  { %v2459_v61 = vadd.f32 %v2395_v6, %v2331_v5  ;;  %v3180_v30 = vsel %vm3178_vm1, %v3179_v59, %v3177_v62  ;;  %6351 = vrsqrt.f32 %v8345_v3  ;;  %vm2678_vm6 = vcmp.eq.f32.partialorder %v8278_v17, inf }
 0x221   :  { %v6342_v53 = vpop.eup %6341  ;;  %vm2680_vm7 = vcmp.eq.f32.partialorder %v8278_v17, 0.0  ;;  %v4121_v8 = vsub.f32 %v8345_v3, %v8310_v41  ;;  %v1622_v5 = vmul.f32 %v7628_v54, %v7628_v54  ;;  %v2332_v16 = vmul.f32 %v7619_v42, %v7619_v42 }
 0x222   :  { %v3623_v36 = vmul.f32 %v6342_v53, %v8265_v25  ;;  %v8359_v14 = vmax.f32 %v2459_v61, 1e-14  ;;  %v6344_v6 = vpop.eup %6343  ;;  %v2396_v59 = vmul.f32 %v7630_v45, %v7630_v45  ;;  %v1559_v62 = vmul.f32 %v7666_v34, %v7666_v34 }
 0x223   :  { %v1623_v53 = vmul.f32 %v7675_v0, %v7675_v0  ;;  %v8376_v54 = vand.u32 2147483647, %v4121_v8  ;;  %v1903_v10 = vmul.f32 %v6344_v6, %v8271_v32  ;;  %vm3183_vm8 = vcmp.eq.f32.partialorder %v8310_v41, inf }
 0x224   :  { %v3625_v61 = vsel %vm3624_vm2, %v8265_v25, %v3623_v36  ;;  %6353 = vrsqrt.f32 %v8359_v14  ;;  %v6346_v42 = vpop.eup %6345  ;;  %vm3185_vm9 = vcmp.eq.f32.partialorder %v8310_v41, 0.0  ;;  %v2681_v34 = vand.u32 2147483648, %v8278_v17 }
 0x225   :  { %12884 = vst [vmem:[#allocation71_spill] sm:$0xff] %v8376_v54  ;;  %v8382_v45 = vsel %vm3626_vm3, %v3627_v2, %v3625_v61  ;;  %v1905_v36 = vsel %vm1904_vm4, %v8271_v32, %v1903_v10  ;;  %v2677_v8 = vmul.f32 %v6346_v42, %v8278_v17  ;;  %v1686_v6 = vadd.f32 %v1622_v5, %v1558_v51  ;;  %v8425_v42 = vpop.f32.mrb[60].mxu1 }
 0x226   :  { %12885 = vst [vmem:[#allocation72_spill] sm:$0xff] %v8382_v45  ;;  %v3992_v0 = vsub.f32 %v8382_v45, %v3180_v30  ;;  %v3186_v54 = vand.u32 2147483648, %v8310_v41  ;;  %v1908_v25 = vsel %vm1906_vm5, %v1907_v38, %v1905_v36  ;;  %v2460_v2 = vadd.f32 %v2396_v59, %v2332_v16  ;;  %12887 = vst [vmem:[#allocation74_spill] sm:$0xff] %v8425_v42  ;;  %v12888_v36 = vld [vmem:[#allocation30_spill] sm:$0xff] }
 0x227   :  { %v1687_v61 = vadd.f32 %v1623_v53, %v1559_v62  ;;  %v6348_v56 = vpop.eup %6347  ;;  %v8398_v4 = vmul.f32 %v8031_v43, %v1908_v25  ;;  %v2679_v10 = vsel %vm2678_vm6, %v8278_v17, %v2677_v8  ;;  %v8403_v30 = vmax.f32 %v1686_v6, 1e-14  ;;  %v8423_v53 = vpop.f32.mrb[60].mxu0 }
 0x228   :  { %v8395_v31 = vand.u32 2147483647, %v3992_v0  ;;  %v3182_v5 = vmul.f32 %v6348_v56, %v8310_v41  ;;  %v2682_v32 = vsel %vm2680_vm7, %v2681_v34, %v2679_v10  ;;  %vm1911_vm10 = vcmp.eq.f32.partialorder %v8327_v26, inf  ;;  %v8432_v6 = vpop.f32.mrb[61].mxu0 }
 0x229   :  { %v6350_v51 = vpop.eup %6349  ;;  %vm1913_vm11 = vcmp.eq.f32.partialorder %v8327_v26, 0.0  ;;  %vm3631_vm12 = vcmp.eq.f32.partialorder %v8345_v3, inf  ;;  %6355 = vrsqrt.f32 %v8398_v4  ;;  %v1914_v38 = vand.u32 2147483648, %v8327_v26 }
 0x22a   :  { %12886 = vst [vmem:[#allocation73_spill] sm:$0xff] %v8395_v31  ;;  %v8413_v16 = vmax.f32 %v2460_v2, 1e-14  ;;  %v6352_v59 = vpop.eup %6351  ;;  %v3184_v56 = vsel %vm3183_vm8, %v8310_v41, %v3182_v5  ;;  %v8419_v17 = vmul.f32 %v8031_v43, %v2682_v32  ;;  %v1910_v62 = vmul.f32 %v6350_v51, %v8327_v26 }
 0x22b   :  { %6357 = vrsqrt.f32 %v8403_v30  ;;  %v3630_v34 = vmul.f32 %v6352_v59, %v8345_v3  ;;  %vm3633_vm13 = vcmp.eq.f32.partialorder %v8345_v3, 0.0  ;;  %v3634_v0 = vand.u32 2147483648, %v8345_v3  ;;  %v8455_v59 = vpop.f32.mrb[61].mxu1 }
 0x22c   :  { %v2333_v8 = vmul.f32 %v12888_v36, %v12888_v36  ;;  %v3187_v25 = vsel %vm3185_vm9, %v3186_v54, %v3184_v56  ;;  %6359 = vrsqrt.f32 %v8419_v17  ;;  %vm2685_vm14 = vcmp.eq.f32.partialorder %v8359_v14, inf  ;;  %12890 = vst [vmem:[#allocation75_spill] sm:$0xff] %v8455_v59 }
 0x22d   :  { %v8438_v2 = vmax.f32 %v1687_v61, 1e-14  ;;  %v3632_v51 = vsel %vm3631_vm12, %v8345_v3, %v3630_v34  ;;  %v4122_v5 = vsub.f32 %v8419_v17, %v8398_v4  ;;  %v1912_v32 = vsel %vm1911_vm10, %v8327_v26, %v1910_v62  ;;  %v12892_v62 = vld [vmem:[#allocation31_spill] sm:$0xff] }
 0x22e   :  { %v6354_v10 = vpop.eup %6353  ;;  %vm2687_vm15 = vcmp.eq.f32.partialorder %v8359_v14, 0.0  ;;  %v8449_v41 = vsel %vm3633_vm13, %v3634_v0, %v3632_v51  ;;  %v1915_v54 = vsel %vm1913_vm11, %v1914_v38, %v1912_v32  ;;  %6361 = vrsqrt.f32 %v8413_v16 }
 0x22f   :  { %12889 = vst [vmem:[#allocation30_spill] sm:$0xff] %v8449_v41  ;;  %v2684_v61 = vmul.f32 %v6354_v10, %v8359_v14  ;;  %v3993_v3 = vsub.f32 %v8449_v41, %v3187_v25  ;;  %v8458_v56 = vand.u32 2147483647, %v4122_v5  ;;  %v8461_v34 = vmul.f32 %v8031_v43, %v1915_v54  ;;  %v12894_v54 = vld [vmem:[#allocation32_spill] sm:$0xff] }
 0x230   :  { %v2397_v0 = vmul.f32 %v12892_v62, %v12892_v62  ;;  %vm3190_vm0 = vcmp.eq.f32.partialorder %v8398_v4, inf  ;;  %v2688_v38 = vand.u32 2147483648, %v8359_v14  ;;  %6363 = vrsqrt.f32 %v8438_v2 }
 0x231   :  { %12891 = vst [vmem:[#allocation76_spill] sm:$0xff] %v8458_v56  ;;  %v2686_v26 = vsel %vm2685_vm14, %v8359_v14, %v2684_v61  ;;  %v8471_v36 = vand.u32 2147483647, %v3993_v3  ;;  %vm3192_vm1 = vcmp.eq.f32.partialorder %v8398_v4, 0.0  ;;  %v3193_v25 = vand.u32 2147483648, %v8398_v4  ;;  %v12895_v56 = vld [vmem:[#allocation33_spill] sm:$0xff] }
 0x232   :  { %6365 = vrsqrt.f32 %v8461_v34  ;;  %vm3638_vm2 = vcmp.eq.f32.partialorder %v8419_v17, inf  ;;  %v2689_v10 = vsel %vm2687_vm15, %v2688_v38, %v2686_v26  ;;  %vm1918_vm3 = vcmp.eq.f32.partialorder %v8403_v30, inf  ;;  %v12896_v26 = vld [vmem:[#allocation35_spill] sm:$0xff] }
 0x233   :  { %12893 = vst [vmem:[#allocation31_spill] sm:$0xff] %v8471_v36  ;;  %vm1920_vm4 = vcmp.eq.f32.partialorder %v8403_v30, 0.0  ;;  %v6356_v51 = vpop.eup %6355  ;;  %vm3640_vm5 = vcmp.eq.f32.partialorder %v8419_v17, 0.0  ;;  %v8483_v5 = vmul.f32 %v8031_v43, %v2689_v10  ;;  %v2461_v32 = vadd.f32 %v2397_v0, %v2333_v8 }
 0x234   :  { %v1560_v61 = vmul.f32 %v12894_v54, %v12894_v54  ;;  %v3189_v62 = vmul.f32 %v6356_v51, %v8398_v4  ;;  %v2334_v14 = vmul.f32 %v12895_v56, %v12895_v56  ;;  %v1624_v38 = vmul.f32 %v12896_v26, %v12896_v26  ;;  %v8508_v26 = vpop.f32.mrb[62].mxu1 }
 0x235   :  { %v6358_v3 = vpop.eup %6357  ;;  %v2398_v41 = vmul.f32 %v7700_v57, %v7700_v57  ;;  %v3641_v45 = vand.u32 2147483648, %v8419_v17  ;;  %6367 = vrsqrt.f32 %v8483_v5  ;;  %v1921_v8 = vand.u32 2147483648, %v8403_v30  ;;  %v8506_v57 = vpop.f32.mrb[62].mxu0 }
 0x236   :  { %vm2692_vm6 = vcmp.eq.f32.partialorder %v8413_v16, inf  ;;  %v6360_v0 = vpop.eup %6359  ;;  %v3191_v10 = vsel %vm3190_vm0, %v8398_v4, %v3189_v62  ;;  %v4123_v56 = vsub.f32 %v8483_v5, %v8461_v34  ;;  %v1917_v51 = vmul.f32 %v6358_v3, %v8403_v30  ;;  %v8512_v24 = vpop.f32.mrb[63].mxu0 }
 0x237   :  { %v8504_v54 = vmax.f32 %v2461_v32, 1e-14  ;;  %v3637_v36 = vmul.f32 %v6360_v0, %v8419_v17  ;;  %vm2694_vm7 = vcmp.eq.f32.partialorder %v8413_v16, 0.0  ;;  %v1688_v31 = vadd.f32 %v1624_v38, %v1560_v61  ;;  %v8522_v3 = vpop.f32.mrb[63].mxu1 }
 0x238   :  { %v2462_v11 = vadd.f32 %v2398_v41, %v2334_v14  ;;  %v6362_v62 = vpop.eup %6361  ;;  %v3194_v59 = vsel %vm3192_vm1, %v3193_v25, %v3191_v10  ;;  %v8516_v42 = vand.u32 2147483647, %v4123_v56  ;;  %v1919_v32 = vsel %vm1918_vm3, %v8403_v30, %v1917_v51  ;;  %12898 = vst [vmem:[#allocation33_spill] sm:$0xff] %v8522_v3 }
 0x239   :  { %6369 = vrsqrt.f32 %v8504_v54  ;;  %v3639_v41 = vsel %vm3638_vm2, %v8419_v17, %v3637_v36  ;;  %v1922_v61 = vsel %vm1920_vm4, %v1921_v8, %v1919_v32  ;;  %v2691_v4 = vmul.f32 %v6362_v62, %v8413_v16 }
 0x23a   :  { %12897 = vst [vmem:[#allocation32_spill] sm:$0xff] %v8516_v42  ;;  %v2695_v25 = vand.u32 2147483648, %v8413_v16  ;;  %v6364_v14 = vpop.eup %6363  ;;  %v8533_v38 = vsel %vm3640_vm5, %v3641_v45, %v3639_v41  ;;  %vm3197_vm8 = vcmp.eq.f32.partialorder %v8461_v34, inf  ;;  %v8537_v0 = vmul.f32 %v8031_v43, %v1922_v61 }
 0x23b   :  { %12899 = vst [vmem:[#allocation35_spill] sm:$0xff] %v8533_v38  ;;  %v8539_v10 = vmax.f32 %v1688_v31, 1e-14  ;;  %v3994_v30 = vsub.f32 %v8533_v38, %v3194_v59  ;;  %vm3199_vm9 = vcmp.eq.f32.partialorder %v8461_v34, 0.0  ;;  %v2693_v8 = vsel %vm2692_vm6, %v8413_v16, %v2691_v4  ;;  %v12911_v38 = vld [vmem:[#allocation41_spill] sm:$0xff] }
 0x23c   :  { %v6366_v36 = vpop.eup %6365  ;;  %v1924_v17 = vmul.f32 %v6364_v14, %v8438_v2  ;;  %6371 = vrsqrt.f32 %v8537_v0  ;;  %vm1925_vm10 = vcmp.eq.f32.partialorder %v8438_v2, inf  ;;  %v1928_v31 = vand.u32 2147483648, %v8438_v2 }
 0x23d   :  { %v3196_v45 = vmul.f32 %v6366_v36, %v8461_v34  ;;  %v8551_v56 = vand.u32 2147483647, %v3994_v30  ;;  %v2696_v59 = vsel %vm2694_vm7, %v2695_v25, %v2693_v8  ;;  %vm1927_vm11 = vcmp.eq.f32.partialorder %v8438_v2, 0.0  ;;  %v8575_v36 = vpop.f32.mrb[64].mxu0  ;;  %v8577_v30 = vpop.f32.mrb[64].mxu1 }
 0x23e   :  { %v1926_v51 = vsel %vm1925_vm10, %v8438_v2, %v1924_v17  ;;  %v8561_v32 = vmul.f32 %v8031_v43, %v2696_v59  ;;  %6373 = vrsqrt.f32 %v8539_v10  ;;  %v3200_v4 = vand.u32 2147483648, %v8461_v34  ;;  %12901 = vst [vmem:[#allocation78_spill] sm:$0xff] %v8575_v36  ;;  %12902 = vst [vmem:[#allocation79_spill] sm:$0xff] %v8577_v30 }
 0x23f   :  { %12900 = vst [vmem:[#allocation77_spill] sm:$0xff] %v8551_v56  ;;  %v3198_v62 = vsel %vm3197_vm8, %v8461_v34, %v3196_v45  ;;  %v1929_v41 = vsel %vm1927_vm11, %v1928_v31, %v1926_v51  ;;  %v6368_v61 = vpop.eup %6367  ;;  %vm3645_vm12 = vcmp.eq.f32.partialorder %v8483_v5, inf  ;;  %v8569_v25 = vmax.f32 %v2462_v11, 1e-14  ;;  %v8585_v11 = vpop.f32.mrb[65].mxu0 }
 0x240   :  { %v8567_v16 = vmul.f32 %v8031_v43, %v1929_v41  ;;  %v3644_v2 = vmul.f32 %v6368_v61, %v8483_v5  ;;  %vm3647_vm13 = vcmp.eq.f32.partialorder %v8483_v5, 0.0  ;;  %v3648_v14 = vand.u32 2147483648, %v8483_v5  ;;  %12903 = vst [vmem:[#allocation80_spill] sm:$0xff] %v8585_v11  ;;  %v8591_v34 = vpop.f32.mrb[65].mxu1 }
 0x241   :  { %6375 = vrsqrt.f32 %v8561_v32  ;;  %v3201_v8 = vsel %vm3199_vm9, %v3200_v4, %v3198_v62  ;;  %v4124_v17 = vsub.f32 %v8561_v32, %v8537_v0  ;;  %vm2699_vm14 = vcmp.eq.f32.partialorder %v8504_v54, inf  ;;  %12904 = vst [vmem:[#allocation81_spill] sm:$0xff] %v8591_v34  ;;  %v12912_v34 = vld [vmem:[#allocation42_spill] sm:$0xff] }
 0x242   :  { %6377 = vrsqrt.f32 %v8567_v16  ;;  %v3646_v31 = vsel %vm3645_vm12, %v8483_v5, %v3644_v2  ;;  %vm3204_vm15 = vcmp.eq.f32.partialorder %v8537_v0, inf  ;;  %vm2701_vm0 = vcmp.eq.f32.partialorder %v8504_v54, 0.0  ;;  %v12907_v2 = vld [vmem:[#allocation38_spill] sm:$0xff] }
 0x243   :  { %v6370_v45 = vpop.eup %6369  ;;  %v2702_v59 = vand.u32 2147483648, %v8504_v54  ;;  %v8595_v51 = vsel %vm3647_vm13, %v3648_v14, %v3646_v31  ;;  %v8597_v62 = vand.u32 2147483647, %v4124_v17  ;;  %6379 = vrsqrt.f32 %v8569_v25  ;;  %v12908_v17 = vld [vmem:[#allocation39_spill] sm:$0xff]  ;;  %v12909_v31 = vld [vmem:[#allocation40_spill] sm:$0xff] }
 0x244   :  { %12905 = vst [vmem:[#allocation82_spill] sm:$0xff] %v8595_v51  ;;  %v2698_v41 = vmul.f32 %v6370_v45, %v8504_v54  ;;  %v3995_v61 = vsub.f32 %v8595_v51, %v3201_v8  ;;  %vm3206_vm1 = vcmp.eq.f32.partialorder %v8537_v0, 0.0  ;;  %v3207_v4 = vand.u32 2147483648, %v8537_v0 }
 0x245   :  { %12906 = vst [vmem:[#allocation83_spill] sm:$0xff] %v8597_v62  ;;  %vm1932_vm2 = vcmp.eq.f32.partialorder %v8539_v10, inf  ;;  %v1561_v14 = vmul.f32 %v12907_v2, %v12907_v2  ;;  %v2335_v45 = vmul.f32 %v12908_v17, %v12908_v17  ;;  %v1625_v62 = vmul.f32 %v12909_v31, %v12909_v31 }
 0x246   :  { %v2700_v5 = vsel %vm2699_vm14, %v8504_v54, %v2698_v41  ;;  %v6372_v8 = vpop.eup %6371  ;;  %v8614_v42 = vand.u32 2147483647, %v3995_v61  ;;  %vm1934_vm3 = vcmp.eq.f32.partialorder %v8539_v10, 0.0  ;;  %v2399_v41 = vmul.f32 %v12911_v38, %v12911_v38 }
 0x247   :  { %v2703_v51 = vsel %vm2701_vm0, %v2702_v59, %v2700_v5  ;;  %v3203_v56 = vmul.f32 %v6372_v8, %v8537_v0  ;;  %v1689_v17 = vadd.f32 %v1625_v62, %v1561_v14  ;;  %v1562_v31 = vmul.f32 %v12912_v34, %v12912_v34  ;;  %v8633_v5 = vpop.f32.mrb[66].mxu0  ;;  %v8635_v8 = vpop.f32.mrb[66].mxu1 }
 0x248   :  { %12910 = vst [vmem:[#allocation38_spill] sm:$0xff] %v8614_v42  ;;  %v8623_v2 = vmul.f32 %v8031_v43, %v2703_v51  ;;  %v6374_v11 = vpop.eup %6373  ;;  %v2463_v61 = vadd.f32 %v2399_v41, %v2335_v45  ;;  %v12913_v42 = vld [vmem:[#allocation43_spill] sm:$0xff]  ;;  %v1626_v59 = vmul.f32 %v7772_v7, %v7772_v7  ;;  %v2400_v38 = vmul.f32 %v7781_v15, %v7781_v15 }
 0x249   :  { %v2336_v54 = vmul.f32 %v12913_v42, %v12913_v42  ;;  %12914 = vst [vmem:[#allocation39_spill] sm:$0xff] %v8633_v5  ;;  %12915 = vst [vmem:[#allocation40_spill] sm:$0xff] %v8635_v8  ;;  %v3205_v51 = vsel %vm3204_vm15, %v8537_v0, %v3203_v56  ;;  %vm3652_vm4 = vcmp.eq.f32.partialorder %v8561_v32, inf  ;;  %vm3654_vm5 = vcmp.eq.f32.partialorder %v8561_v32, 0.0  ;;  %v8643_v42 = vpop.f32.mrb[67].mxu0 }
 0x24a   :  { %6381 = vrsqrt.f32 %v8623_v2  ;;  %12916 = vst [vmem:[#allocation41_spill] sm:$0xff] %v8643_v42  ;;  %v3655_v34 = vand.u32 2147483648, %v8561_v32  ;;  %v4125_v15 = vsub.f32 %v8623_v2, %v8567_v16  ;;  %v1931_v62 = vmul.f32 %v6374_v11, %v8539_v10 }
 0x24b   :  { %v6376_v7 = vpop.eup %6375  ;;  %v1935_v14 = vand.u32 2147483648, %v8539_v10  ;;  %v3208_v56 = vsel %vm3206_vm1, %v3207_v4, %v3205_v51  ;;  %v8653_v8 = vmax.f32 %v1689_v17, 1e-14  ;;  %v1690_v5 = vadd.f32 %v1626_v59, %v1562_v31  ;;  %v8669_v31 = vpop.f32.mrb[67].mxu1 }
 0x24c   :  { %v6378_v45 = vpop.eup %6377  ;;  %v3651_v41 = vmul.f32 %v6376_v7, %v8561_v32  ;;  %v8655_v42 = vand.u32 2147483647, %v4125_v15  ;;  %v1933_v30 = vsel %vm1932_vm2, %v8539_v10, %v1931_v62  ;;  %v8660_v36 = vmax.f32 %v2463_v61, 1e-14 }
 0x24d   :  { %v2464_v11 = vadd.f32 %v2400_v38, %v2336_v54  ;;  %v6380_v3 = vpop.eup %6379  ;;  %v3210_v4 = vmul.f32 %v6378_v45, %v8567_v16  ;;  %v1936_v17 = vsel %vm1934_vm3, %v1935_v14, %v1933_v30  ;;  %6383 = vrsqrt.f32 %v8653_v8 }
 0x24e   :  { %12917 = vst [vmem:[#allocation42_spill] sm:$0xff] %v8655_v42  ;;  %v3653_v0 = vsel %vm3652_vm4, %v8561_v32, %v3651_v41  ;;  %vm3211_vm6 = vcmp.eq.f32.partialorder %v8567_v16, inf  ;;  %v8677_v61 = vmul.f32 %v8031_v43, %v1936_v17  ;;  %v2705_v54 = vmul.f32 %v6380_v3, %v8569_v25  ;;  %v8711_v41 = vpop.f32.mrb[68].mxu0  ;;  %v12923_v42 = vld [vmem:[#allocation52_spill] sm:$0xff] }
 0x24f   :  { %v8673_v59 = vsel %vm3654_vm5, %v3655_v34, %v3653_v0  ;;  %vm3213_vm7 = vcmp.eq.f32.partialorder %v8567_v16, 0.0  ;;  %v3214_v10 = vand.u32 2147483648, %v8567_v16  ;;  %vm2706_vm8 = vcmp.eq.f32.partialorder %v8569_v25, inf  ;;  %v8713_v0 = vpop.f32.mrb[68].mxu1 }
 0x250   :  { %12918 = vst [vmem:[#allocation43_spill] sm:$0xff] %v8673_v59  ;;  %v3996_v38 = vsub.f32 %v8673_v59, %v3208_v56  ;;  %6385 = vrsqrt.f32 %v8677_v61  ;;  %vm2708_vm9 = vcmp.eq.f32.partialorder %v8569_v25, 0.0  ;;  %v2709_v32 = vand.u32 2147483648, %v8569_v25 }
 0x251   :  { %v1563_v30 = vmul.f32 %v7840_v46, %v7840_v46  ;;  %v3212_v3 = vsel %vm3211_vm6, %v8567_v16, %v3210_v4  ;;  %v2707_v7 = vsel %vm2706_vm8, %v8569_v25, %v2705_v54  ;;  %6387 = vrsqrt.f32 %v8660_v36  ;;  %v8728_v54 = vpop.f32.mrb[69].mxu1 }
 0x252   :  { %v8689_v51 = vand.u32 2147483647, %v3996_v38  ;;  %vm3659_vm10 = vcmp.eq.f32.partialorder %v8623_v2, inf  ;;  %vm3661_vm11 = vcmp.eq.f32.partialorder %v8623_v2, 0.0  ;;  %v2710_v34 = vsel %vm2708_vm9, %v2709_v32, %v2707_v7 }
 0x253   :  { %v8696_v15 = vmax.f32 %v1690_v5, 1e-14  ;;  %v3662_v14 = vand.u32 2147483648, %v8623_v2  ;;  %v8700_v46 = vmul.f32 %v8031_v43, %v2710_v34  ;;  %vm1939_vm12 = vcmp.eq.f32.partialorder %v8653_v8, inf }
 0x254   :  { %12919 = vst [vmem:[#allocation84_spill] sm:$0xff] %v8689_v51  ;;  %v6382_v62 = vpop.eup %6381  ;;  %v8703_v45 = vmax.f32 %v2464_v11, 1e-14  ;;  %v3215_v25 = vsel %vm3213_vm7, %v3214_v10, %v3212_v3  ;;  %v1627_v5 = vmul.f32 %v7852_v28, %v7852_v28  ;;  %vm3218_vm13 = vcmp.eq.f32.partialorder %v8677_v61, inf  ;;  %v8719_v11 = vpop.f32.mrb[69].mxu0 }
 0x255   :  { %v3658_v56 = vmul.f32 %v6382_v62, %v8623_v2  ;;  %6389 = vrsqrt.f32 %v8696_v15  ;;  %vm1941_vm14 = vcmp.eq.f32.partialorder %v8653_v8, 0.0  ;;  %v1942_v16 = vand.u32 2147483648, %v8653_v8 }
 0x256   :  { %6391 = vrsqrt.f32 %v8700_v46  ;;  %v3221_v28 = vand.u32 2147483648, %v8677_v61  ;;  %v4126_v17 = vsub.f32 %v8700_v46, %v8677_v61  ;;  %vm2713_vm15 = vcmp.eq.f32.partialorder %v8660_v36, inf }
 0x257   :  { %v3660_v4 = vsel %vm3659_vm10, %v8623_v2, %v3658_v56  ;;  %6393 = vrsqrt.f32 %v8703_v45  ;;  %v6384_v38 = vpop.eup %6383  ;;  %vm2715_vm0 = vcmp.eq.f32.partialorder %v8660_v36, 0.0  ;;  %v2337_v32 = vmul.f32 %v7842_v22, %v7842_v22  ;;  %v12922_v56 = vld [vmem:[#allocation49_spill] sm:$0xff] }
 0x258   :  { %v8732_v10 = vsel %vm3661_vm11, %v3662_v14, %v3660_v4  ;;  %vm3220_vm1 = vcmp.eq.f32.partialorder %v8677_v61, 0.0  ;;  %v8740_v7 = vand.u32 2147483647, %v4126_v17  ;;  %v1938_v34 = vmul.f32 %v6384_v38, %v8653_v8 }
 0x259   :  { %12920 = vst [vmem:[#allocation85_spill] sm:$0xff] %v8732_v10  ;;  %v3997_v3 = vsub.f32 %v8732_v10, %v3215_v25  ;;  %v1691_v62 = vadd.f32 %v1627_v5, %v1563_v30  ;;  %v2716_v2 = vand.u32 2147483648, %v8660_v36  ;;  %v2401_v14 = vmul.f32 %v7854_v12, %v7854_v12 }
 0x25a   :  { %12921 = vst [vmem:[#allocation86_spill] sm:$0xff] %v8740_v7  ;;  %v1564_v4 = vmul.f32 %v12922_v56, %v12922_v56  ;;  %v1628_v22 = vmul.f32 %v12923_v42, %v12923_v42  ;;  %v6386_v59 = vpop.eup %6385  ;;  %v1940_v17 = vsel %vm1939_vm12, %v8653_v8, %v1938_v34  ;;  %vm1946_vm2 = vcmp.eq.f32.partialorder %v8696_v15, inf  ;;  %v8761_v42 = vpop.f32.mrb[70].mxu0 }
 0x25b   :  { %v8750_v25 = vand.u32 2147483647, %v3997_v3  ;;  %v8756_v30 = vmax.f32 %v1691_v62, 1e-14  ;;  %v6388_v5 = vpop.eup %6387  ;;  %v3217_v12 = vmul.f32 %v6386_v59, %v8677_v61  ;;  %v1943_v38 = vsel %vm1941_vm14, %v1942_v16, %v1940_v17  ;;  %v8763_v3 = vpop.f32.mrb[70].mxu1 }
 0x25c   :  { %v2465_v56 = vadd.f32 %v2401_v14, %v2337_v32  ;;  %v1692_v7 = vadd.f32 %v1628_v22, %v1564_v4  ;;  %v8766_v10 = vmul.f32 %v8031_v43, %v1943_v38  ;;  %v2712_v34 = vmul.f32 %v6388_v5, %v8660_v36  ;;  %v8771_v62 = vpop.f32.mrb[71].mxu0  ;;  %v12925_v32 = vld [vmem:[#allocation50_spill] sm:$0xff] }
 0x25d   :  { %12924 = vst [vmem:[#allocation49_spill] sm:$0xff] %v8750_v25  ;;  %vm1948_vm3 = vcmp.eq.f32.partialorder %v8696_v15, 0.0  ;;  %6395 = vrsqrt.f32 %v8756_v30  ;;  %vm3666_vm4 = vcmp.eq.f32.partialorder %v8700_v46, inf  ;;  %vm3668_vm5 = vcmp.eq.f32.partialorder %v8700_v46, 0.0 }
 0x25e   :  { %v3669_v8 = vand.u32 2147483648, %v8700_v46  ;;  %v8776_v59 = vmax.f32 %v2465_v56, 1e-14  ;;  %v3219_v43 = vsel %vm3218_vm13, %v8677_v61, %v3217_v12  ;;  %6397 = vrsqrt.f32 %v8766_v10 }
 0x25f   :  { %v6390_v16 = vpop.eup %6389  ;;  %v2338_v14 = vmul.f32 %v12925_v32, %v12925_v32  ;;  %v2402_v4 = vmul.f32 %v7913_v37, %v7913_v37  ;;  %v2714_v17 = vsel %vm2713_vm15, %v8660_v36, %v2712_v34  ;;  %v1949_v38 = vand.u32 2147483648, %v8696_v15  ;;  %v8802_v34 = vld [vmem:[%s12693_s3] ss:$0 sm:$0xff] }
 0x260   :  { %v6392_v22 = vpop.eup %6391  ;;  %v1945_v5 = vmul.f32 %v6390_v16, %v8696_v15  ;;  %6399 = vrsqrt.f32 %v8776_v59  ;;  %v2717_v32 = vsel %vm2715_vm0, %v2716_v2, %v2714_v17  ;;  %vm2720_vm6 = vcmp.eq.f32.partialorder %v8703_v45, inf }
 0x261   :  { %v6394_v12 = vpop.eup %6393  ;;  %v3665_v56 = vmul.f32 %v6392_v22, %v8700_v46  ;;  %vm2722_vm7 = vcmp.eq.f32.partialorder %v8703_v45, 0.0  ;;  %v3222_v37 = vsel %vm3220_vm1, %v3221_v28, %v3219_v43  ;;  %v8805_v16 = vmul.f32 %v8802_v34, %v2717_v32  ;;  %v8811_v22 = vpop.f32.mrb[71].mxu1 }
 0x262   :  { %v1947_v36 = vsel %vm1946_vm2, %v8696_v15, %v1945_v5  ;;  %v2719_v2 = vmul.f32 %v6394_v12, %v8703_v45  ;;  %v8818_v43 = vmax.f32 %v1692_v7, 1e-14  ;;  %v2466_v17 = vadd.f32 %v2402_v4, %v2338_v14 }
 0x263   :  { %v3667_v61 = vsel %vm3666_vm4, %v8700_v46, %v3665_v56  ;;  %v1950_v28 = vsel %vm1948_vm3, %v1949_v38, %v1947_v36  ;;  %6401 = vrsqrt.f32 %v8805_v16  ;;  %v2723_v5 = vand.u32 2147483648, %v8703_v45 }
 0x264   :  { %v8822_v32 = vsel %vm3668_vm5, %v3669_v8, %v3667_v61  ;;  %vm1953_vm8 = vcmp.eq.f32.partialorder %v8756_v30, inf  ;;  %v4127_v56 = vsub.f32 %v8805_v16, %v8766_v10  ;;  %v8831_v15 = vmul.f32 %v8802_v34, %v1950_v28 }
 0x265   :  { %12926 = vst [vmem:[#allocation52_spill] sm:$0xff] %v8822_v32  ;;  %v3998_v12 = vsub.f32 %v8822_v32, %v3222_v37  ;;  %vm1955_vm9 = vcmp.eq.f32.partialorder %v8756_v30, 0.0  ;;  %vm3225_vm10 = vcmp.eq.f32.partialorder %v8766_v10, inf  ;;  %v2721_v46 = vsel %vm2720_vm6, %v8703_v45, %v2719_v2 }
 0x266   :  { %v1956_v7 = vand.u32 2147483648, %v8756_v30  ;;  %6403 = vrsqrt.f32 %v8818_v43  ;;  %vm3227_vm11 = vcmp.eq.f32.partialorder %v8766_v10, 0.0  ;;  %v8843_v4 = vand.u32 2147483647, %v4127_v56 }
 0x267   :  { %v6396_v8 = vpop.eup %6395  ;;  %v8840_v14 = vand.u32 2147483647, %v3998_v12  ;;  %6405 = vrsqrt.f32 %v8831_v15  ;;  %v3228_v38 = vand.u32 2147483648, %v8766_v10  ;;  %v2724_v37 = vsel %vm2722_vm7, %v2723_v5, %v2721_v46 }
 0x268   :  { %12928 = vst [vmem:[#allocation87_spill] sm:$0xff] %v8843_v4  ;;  %v1952_v36 = vmul.f32 %v6396_v8, %v8756_v30  ;;  %vm2727_vm12 = vcmp.eq.f32.partialorder %v8776_v59, inf  ;;  %v6398_v2 = vpop.eup %6397  ;;  %v8852_v61 = vmul.f32 %v8802_v34, %v2724_v37  ;;  %vm2729_vm13 = vcmp.eq.f32.partialorder %v8776_v59, 0.0 }
 0x269   :  { %12927 = vst [vmem:[#allocation50_spill] sm:$0xff] %v8840_v14  ;;  %v2730_v28 = vand.u32 2147483648, %v8776_v59  ;;  %v8856_v12 = vmax.f32 %v2466_v17, 1e-14  ;;  %v3224_v4 = vmul.f32 %v6398_v2, %v8766_v10  ;;  %vm3673_vm14 = vcmp.eq.f32.partialorder %v8805_v16, inf }
 0x26a   :  { %v6400_v56 = vpop.eup %6399  ;;  %vm3675_vm15 = vcmp.eq.f32.partialorder %v8805_v16, 0.0  ;;  %v1954_v45 = vsel %vm1953_vm8, %v8756_v30, %v1952_v36  ;;  %v3676_v5 = vand.u32 2147483648, %v8805_v16  ;;  %6407 = vrsqrt.f32 %v8852_v61  ;;  %v8885_v30 = vpop.f32.mrb[72].mxu0 }
 0x26b   :  { %vm1960_vm0 = vcmp.eq.f32.partialorder %v8818_v43, inf  ;;  %v1565_v17 = vmul.f32 %v7975_v23, %v7975_v23  ;;  %v4128_v46 = vsub.f32 %v8852_v61, %v8831_v15  ;;  %v1957_v8 = vsel %vm1955_vm9, %v1956_v7, %v1954_v45  ;;  %v8887_v7 = vpop.f32.mrb[72].mxu1 }
 0x26c   :  { %v2726_v37 = vmul.f32 %v6400_v56, %v8776_v59  ;;  %vm1962_vm1 = vcmp.eq.f32.partialorder %v8818_v43, 0.0  ;;  %v1629_v36 = vmul.f32 %v7988_v49, %v7988_v49  ;;  %v3226_v2 = vsel %vm3225_vm10, %v8766_v10, %v3224_v4  ;;  %12929 = vst [vmem:[#allocation88_spill] sm:$0xff] %v8887_v7  ;;  %v8903_v51 = vpop.f32.mrb[73].mxu1 }
 0x26d   :  { %vm3232_vm2 = vcmp.eq.f32.partialorder %v8831_v15, inf  ;;  %v8882_v23 = vmul.f32 %v8802_v34, %v1957_v8  ;;  %6409 = vrsqrt.f32 %v8856_v12  ;;  %v6402_v56 = vpop.eup %6401  ;;  %vm3234_vm3 = vcmp.eq.f32.partialorder %v8831_v15, 0.0  ;;  %v8897_v8 = vpop.f32.mrb[73].mxu0  ;;  %12932 = vst [vmem:[#allocation91_spill] sm:$0xff] %v8903_v51 }
 0x26e   :  { %v8890_v45 = vand.u32 2147483647, %v4128_v46  ;;  %v2728_v49 = vsel %vm2727_vm12, %v8776_v59, %v2726_v37  ;;  %v2339_v4 = vmul.f32 %v7977_v19, %v7977_v19  ;;  %12931 = vst [vmem:[#allocation90_spill] sm:$0xff] %v8897_v8  ;;  %v3672_v32 = vmul.f32 %v6402_v56, %v8805_v16 }
 0x26f   :  { %v3235_v14 = vand.u32 2147483648, %v8831_v15  ;;  %6411 = vrsqrt.f32 %v8882_v23  ;;  %v1963_v25 = vand.u32 2147483648, %v8818_v43  ;;  %v2731_v37 = vsel %vm2729_vm13, %v2730_v28, %v2728_v49 }
 0x270   :  { %12930 = vst [vmem:[#allocation89_spill] sm:$0xff] %v8890_v45  ;;  %v6404_v46 = vpop.eup %6403  ;;  %v3229_v45 = vsel %vm3227_vm11, %v3228_v38, %v3226_v2  ;;  %v1693_v19 = vadd.f32 %v1629_v36, %v1565_v17  ;;  %v2403_v7 = vmul.f32 %v7999_v21, %v7999_v21  ;;  %v3674_v8 = vsel %vm3673_vm14, %v8805_v16, %v3672_v32  ;;  %v8939_v2 = vpop.f32.mrb[74].mxu0 }
 0x271   :  { %v6406_v56 = vpop.eup %6405  ;;  %vm3680_vm4 = vcmp.eq.f32.partialorder %v8852_v61, inf  ;;  %v8916_v51 = vmul.f32 %v8802_v34, %v2731_v37  ;;  %v1959_v10 = vmul.f32 %v6404_v46, %v8818_v43  ;;  %v8921_v59 = vsel %vm3675_vm15, %v3676_v5, %v3674_v8  ;;  %v8949_v8 = vpop.f32.mrb[75].mxu0 }
 0x272   :  { %12933 = vst [vmem:[#allocation92_spill] sm:$0xff] %v8921_v59  ;;  %v3231_v38 = vmul.f32 %v6406_v56, %v8831_v15  ;;  %v8924_v28 = vmax.f32 %v1693_v19, 1e-14  ;;  %v2467_v21 = vadd.f32 %v2403_v7, %v2339_v4  ;;  %v3999_v17 = vsub.f32 %v8921_v59, %v3229_v45  ;;  %v8941_v7 = vpop.f32.mrb[74].mxu1 }
 0x273   :  { %vm3682_vm5 = vcmp.eq.f32.partialorder %v8852_v61, 0.0  ;;  %v3683_v32 = vand.u32 2147483648, %v8852_v61  ;;  %6413 = vrsqrt.f32 %v8916_v51  ;;  %v4129_v16 = vsub.f32 %v8916_v51, %v8882_v23 }
 0x274   :  { %v3233_v36 = vsel %vm3232_vm2, %v8831_v15, %v3231_v38  ;;  %v1961_v5 = vsel %vm1960_vm0, %v8818_v43, %v1959_v10  ;;  %vm2734_vm6 = vcmp.eq.f32.partialorder %v8856_v12, inf  ;;  %v6408_v45 = vpop.eup %6407  ;;  %v8943_v49 = vand.u32 2147483647, %v3999_v17 }
 0x275   :  { %v1964_v4 = vsel %vm1962_vm1, %v1963_v25, %v1961_v5  ;;  %vm2736_vm7 = vcmp.eq.f32.partialorder %v8856_v12, 0.0  ;;  %6415 = vrsqrt.f32 %v8924_v28  ;;  %v3679_v46 = vmul.f32 %v6408_v45, %v8852_v61  ;;  %v8971_v5 = vpop.f32.mrb[75].mxu1 }
 0x276   :  { %12934 = vst [vmem:[#allocation93_spill] sm:$0xff] %v8943_v49  ;;  %v8952_v37 = vand.u32 2147483647, %v4129_v16  ;;  %v8955_v19 = vmul.f32 %v8802_v34, %v1964_v4  ;;  %v2737_v56 = vand.u32 2147483648, %v8856_v12  ;;  %v3236_v43 = vsel %vm3234_vm3, %v3235_v14, %v3233_v36 }
 0x277   :  { %v6410_v10 = vpop.eup %6409  ;;  %vm3239_vm8 = vcmp.eq.f32.partialorder %v8882_v23, inf  ;;  %vm3241_vm9 = vcmp.eq.f32.partialorder %v8882_v23, 0.0  ;;  %v8962_v25 = vmax.f32 %v2467_v21, 1e-14  ;;  %v3681_v38 = vsel %vm3680_vm4, %v8852_v61, %v3679_v46 }
 0x278   :  { %12935 = vst [vmem:[#allocation94_spill] sm:$0xff] %v8952_v37  ;;  %v3242_v17 = vand.u32 2147483648, %v8882_v23  ;;  %6417 = vrsqrt.f32 %v8955_v19  ;;  %v1566_v16 = vmul.f32 %v8036_v18, %v8036_v18  ;;  %v8975_v14 = vsel %vm3682_vm5, %v3683_v32, %v3681_v38 }
 0x279   :  { %v6412_v15 = vpop.eup %6411  ;;  %12936 = vst [vmem:[#allocation95_spill] sm:$0xff] %v8975_v14  ;;  %v2733_v21 = vmul.f32 %v6410_v10, %v8856_v12  ;;  %6419 = vrsqrt.f32 %v8962_v25  ;;  %v2340_v36 = vmul.f32 %v8038_v33, %v8038_v33  ;;  %v4000_v45 = vsub.f32 %v8975_v14, %v3236_v43 }
 0x27a   :  { %v3238_v4 = vmul.f32 %v6412_v15, %v8882_v23  ;;  %vm3687_vm10 = vcmp.eq.f32.partialorder %v8916_v51, inf  ;;  %vm3689_vm11 = vcmp.eq.f32.partialorder %v8916_v51, 0.0  ;;  %v3690_v18 = vand.u32 2147483648, %v8916_v51 }
 0x27b   :  { %v2735_v61 = vsel %vm2734_vm6, %v8856_v12, %v2733_v21  ;;  %v1630_v32 = vmul.f32 %v8053_v44, %v8053_v44  ;;  %v2404_v33 = vmul.f32 %v8101_v13, %v8101_v13  ;;  %v8993_v46 = vand.u32 2147483647, %v4000_v45 }
 0x27c   :  { %v3240_v10 = vsel %vm3239_vm8, %v8882_v23, %v3238_v4  ;;  %v2738_v43 = vsel %vm2736_vm7, %v2737_v56, %v2735_v61  ;;  %vm1967_vm12 = vcmp.eq.f32.partialorder %v8924_v28, inf  ;;  %v1567_v13 = vmul.f32 %v8150_v9, %v8150_v9 }
 0x27d   :  { %12937 = vst [vmem:[#allocation96_spill] sm:$0xff] %v8993_v46  ;;  %v6414_v38 = vpop.eup %6413  ;;  %v9002_v15 = vmul.f32 %v8802_v34, %v2738_v43  ;;  %v1694_v21 = vadd.f32 %v1630_v32, %v1566_v16  ;;  %v2468_v44 = vadd.f32 %v2404_v33, %v2340_v36  ;;  %v2341_v37 = vmul.f32 %v8152_v35, %v8152_v35 }
 0x27e   :  { %v3686_v45 = vmul.f32 %v6414_v38, %v8916_v51  ;;  %v1631_v12 = vmul.f32 %v8159_v52, %v8159_v52  ;;  %v2405_v56 = vmul.f32 %v8161_v40, %v8161_v40  ;;  %v3243_v61 = vsel %vm3241_vm9, %v3242_v17, %v3240_v10 }
 0x27f   :  { %v6416_v4 = vpop.eup %6415  ;;  %6421 = vrsqrt.f32 %v9002_v15  ;;  %vm1969_vm13 = vcmp.eq.f32.partialorder %v8924_v28, 0.0  ;;  %v1970_v9 = vand.u32 2147483648, %v8924_v28  ;;  %v4130_v52 = vsub.f32 %v9002_v15, %v8955_v19 }
 0x280   :  { %v3688_v35 = vsel %vm3687_vm10, %v8916_v51, %v3686_v45  ;;  %v1966_v16 = vmul.f32 %v6416_v4, %v8924_v28  ;;  %v9024_v40 = vmax.f32 %v1694_v21, 1e-14  ;;  %v9030_v17 = vmax.f32 %v2468_v44, 1e-14  ;;  %v9039_v21 = vpop.f32.mrb[76].mxu0  ;;  %v9041_v51 = vpop.f32.mrb[76].mxu1 }
 0x281   :  { %v9028_v23 = vsel %vm3689_vm11, %v3690_v18, %v3688_v35  ;;  %v1695_v36 = vadd.f32 %v1631_v12, %v1567_v13  ;;  %v2469_v32 = vadd.f32 %v2405_v56, %v2341_v37  ;;  %v9033_v43 = vand.u32 2147483647, %v4130_v52  ;;  %v9045_v37 = vpop.f32.mrb[77].mxu0  ;;  %v9047_v13 = vpop.f32.mrb[77].mxu1 }
 0x282   :  { %12938 = vst [vmem:[#allocation97_spill] sm:$0xff] %v9028_v23  ;;  %v6418_v33 = vpop.eup %6417  ;;  %v4001_v10 = vsub.f32 %v9028_v23, %v3243_v61  ;;  %v1968_v38 = vsel %vm1967_vm12, %v8924_v28, %v1966_v16  ;;  %6423 = vrsqrt.f32 %v9024_v40  ;;  %v9056_v61 = vpop.f32.mrb[78].mxu0  ;;  %vm3246_vm14 = vcmp.eq.f32.partialorder %v8955_v19, inf }
 0x283   :  { %12939 = vst [vmem:[#allocation98_spill] sm:$0xff] %v9033_v43  ;;  %v6420_v18 = vpop.eup %6419  ;;  %v1971_v44 = vsel %vm1969_vm13, %v1970_v9, %v1968_v38  ;;  %v3245_v12 = vmul.f32 %v6418_v33, %v8955_v19  ;;  %v9058_v35 = vpop.f32.mrb[78].mxu1  ;;  %vm3248_vm15 = vcmp.eq.f32.partialorder %v8955_v19, 0.0  ;;  %v3249_v28 = vand.u32 2147483648, %v8955_v19 }
 0x284   :  { %v9049_v45 = vand.u32 2147483647, %v4001_v10  ;;  %v9053_v56 = vmul.f32 %v8802_v34, %v1971_v44  ;;  %v2740_v4 = vmul.f32 %v6420_v18, %v8962_v25  ;;  %6425 = vrsqrt.f32 %v9030_v17 }
 0x285   :  { %vm2741_vm0 = vcmp.eq.f32.partialorder %v8962_v25, inf  ;;  %vm2743_vm1 = vcmp.eq.f32.partialorder %v8962_v25, 0.0  ;;  %v2744_v9 = vand.u32 2147483648, %v8962_v25  ;;  %vm3694_vm2 = vcmp.eq.f32.partialorder %v9002_v15, inf }
 0x286   :  { %12940 = vst [vmem:[#allocation99_spill] sm:$0xff] %v9049_v45  ;;  %6427 = vrsqrt.f32 %v9053_v56  ;;  %vm3696_vm3 = vcmp.eq.f32.partialorder %v9002_v15, 0.0  ;;  %v2742_v52 = vsel %vm2741_vm0, %v8962_v25, %v2740_v4  ;;  %v9071_v16 = vmax.f32 %v1695_v36, 1e-14  ;;  %v9083_v25 = vpop.f32.mrb[79].mxu0 }
 0x287   :  { %v3247_v33 = vsel %vm3246_vm14, %v8955_v19, %v3245_v12  ;;  %v3697_v10 = vand.u32 2147483648, %v9002_v15  ;;  %v2745_v38 = vsel %vm2743_vm1, %v2744_v9, %v2742_v52  ;;  %v9075_v18 = vmax.f32 %v2469_v32, 1e-14  ;;  %v9097_v52 = vpop.f32.mrb[79].mxu1 }
 0x288   :  { %v9078_v43 = vmul.f32 %v8802_v34, %v2745_v38  ;;  %vm1974_vm4 = vcmp.eq.f32.partialorder %v9024_v40, inf  ;;  %vm1976_vm5 = vcmp.eq.f32.partialorder %v9024_v40, 0.0  ;;  %6429 = vrsqrt.f32 %v9071_v16 }
 0x289   :  { %v6422_v44 = vpop.eup %6421  ;;  %v1977_v12 = vand.u32 2147483648, %v9024_v40  ;;  %vm2748_vm6 = vcmp.eq.f32.partialorder %v9030_v17, inf  ;;  %6431 = vrsqrt.f32 %v9075_v18  ;;  %v3250_v32 = vsel %vm3248_vm15, %v3249_v28, %v3247_v33 }
 0x28a   :  { %v3693_v36 = vmul.f32 %v6422_v44, %v9002_v15  ;;  %6433 = vrsqrt.f32 %v9078_v43  ;;  %vm2750_vm7 = vcmp.eq.f32.partialorder %v9030_v17, 0.0  ;;  %v1568_v4 = vmul.f32 %v8168_v50, %v8168_v50 }
 0x28b   :  { %v2342_v9 = vmul.f32 %v8170_v20, %v8170_v20  ;;  %vm3253_vm8 = vcmp.eq.f32.partialorder %v9053_v56, inf  ;;  %v3256_v19 = vand.u32 2147483648, %v9053_v56  ;;  %v4131_v28 = vsub.f32 %v9078_v43, %v9053_v56 }
 0x28c   :  { %v6424_v38 = vpop.eup %6423  ;;  %v3695_v44 = vsel %vm3694_vm2, %v9002_v15, %v3693_v36  ;;  %v1632_v33 = vmul.f32 %v8180_v60, %v8180_v60  ;;  %v2406_v23 = vmul.f32 %v8231_v39, %v8231_v39  ;;  %vm3255_vm9 = vcmp.eq.f32.partialorder %v9053_v56, 0.0 }
 0x28d   :  { %v9108_v50 = vsel %vm3696_vm3, %v3697_v10, %v3695_v44  ;;  %v1973_v20 = vmul.f32 %v6424_v38, %v9024_v40  ;;  %v9117_v14 = vand.u32 2147483647, %v4131_v28  ;;  %v1569_v59 = vmul.f32 %v8305_v27, %v8305_v27 }
 0x28e   :  { %12941 = vst [vmem:[#allocation100_spill] sm:$0xff] %v9108_v50  ;;  %v4002_v36 = vsub.f32 %v9108_v50, %v3250_v32  ;;  %v2343_v15 = vmul.f32 %v8307_v63, %v8307_v63  ;;  %v6426_v10 = vpop.eup %6425  ;;  %v1696_v38 = vadd.f32 %v1632_v33, %v1568_v4  ;;  %v2470_v44 = vadd.f32 %v2406_v23, %v2342_v9 }
 0x28f   :  { %12942 = vst [vmem:[#allocation101_spill] sm:$0xff] %v9117_v14  ;;  %v1975_v60 = vsel %vm1974_vm4, %v9024_v40, %v1973_v20  ;;  %v1633_v39 = vmul.f32 %v8319_v48, %v8319_v48  ;;  %v2747_v27 = vmul.f32 %v6426_v10, %v9030_v17  ;;  %v2407_v63 = vmul.f32 %v8321_v47, %v8321_v47 }
 0x290   :  { %v6428_v32 = vpop.eup %6427  ;;  %v9128_v50 = vand.u32 2147483647, %v4002_v36  ;;  %v1978_v28 = vsel %vm1976_vm5, %v1977_v12, %v1975_v60  ;;  %v2751_v23 = vand.u32 2147483648, %v9030_v17  ;;  %v9140_v4 = vmax.f32 %v1696_v38, 1e-14 }
 0x291   :  { %v3252_v14 = vmul.f32 %v6428_v32, %v9053_v56  ;;  %v9137_v20 = vmul.f32 %v8802_v34, %v1978_v28  ;;  %v2749_v48 = vsel %vm2748_vm6, %v9030_v17, %v2747_v27  ;;  %vm1981_vm10 = vcmp.eq.f32.partialorder %v9071_v16, inf }
 0x292   :  { %12943 = vst [vmem:[#allocation102_spill] sm:$0xff] %v9128_v50  ;;  %v1697_v40 = vadd.f32 %v1633_v39, %v1569_v59  ;;  %v2471_v12 = vadd.f32 %v2407_v63, %v2343_v15  ;;  %v6430_v9 = vpop.eup %6429  ;;  %vm1983_vm11 = vcmp.eq.f32.partialorder %v9071_v16, 0.0  ;;  %v1984_v47 = vand.u32 2147483648, %v9071_v16 }
 0x293   :  { %6435 = vrsqrt.f32 %v9137_v20  ;;  %vm2755_vm12 = vcmp.eq.f32.partialorder %v9075_v18, inf  ;;  %v6432_v33 = vpop.eup %6431  ;;  %v3254_v36 = vsel %vm3253_vm8, %v9053_v56, %v3252_v14  ;;  %vm3701_vm13 = vcmp.eq.f32.partialorder %v9078_v43, inf }
 0x294   :  { %v2752_v59 = vsel %vm2750_vm7, %v2751_v23, %v2749_v48  ;;  %v1980_v15 = vmul.f32 %v6430_v9, %v9071_v16  ;;  %v6434_v10 = vpop.eup %6433  ;;  %v2754_v38 = vmul.f32 %v6432_v33, %v9075_v18  ;;  %6437 = vrsqrt.f32 %v9140_v4  ;;  %v9191_v33 = vpop.f32.mrb[80].mxu0 }
 0x295   :  { %v9158_v60 = vmul.f32 %v8802_v34, %v2752_v59  ;;  %v9162_v39 = vmax.f32 %v2470_v44, 1e-14  ;;  %v3700_v32 = vmul.f32 %v6434_v10, %v9078_v43  ;;  %vm3703_vm14 = vcmp.eq.f32.partialorder %v9078_v43, 0.0 }
 0x296   :  { %v3704_v14 = vand.u32 2147483648, %v9078_v43  ;;  %v1982_v17 = vsel %vm1981_vm10, %v9071_v16, %v1980_v15  ;;  %v3257_v28 = vsel %vm3255_vm9, %v3256_v19, %v3254_v36  ;;  %vm2757_vm15 = vcmp.eq.f32.partialorder %v9075_v18, 0.0 }
 0x297   :  { %6439 = vrsqrt.f32 %v9158_v60  ;;  %v2758_v44 = vand.u32 2147483648, %v9075_v18  ;;  %v3702_v27 = vsel %vm3701_vm13, %v9078_v43, %v3700_v32  ;;  %v4132_v63 = vsub.f32 %v9158_v60, %v9137_v20  ;;  %v9193_v43 = vpop.f32.mrb[80].mxu1 }
 0x298   :  { %v1985_v23 = vsel %vm1983_vm11, %v1984_v47, %v1982_v17  ;;  %v2756_v56 = vsel %vm2755_vm12, %v9075_v18, %v2754_v38  ;;  %v9185_v19 = vsel %vm3703_vm14, %v3704_v14, %v3702_v27  ;;  %6441 = vrsqrt.f32 %v9162_v39  ;;  %v9202_v47 = vpop.f32.mrb[81].mxu0  ;;  %v9204_v59 = vpop.f32.mrb[81].mxu1 }
 0x299   :  { %12944 = vst [vmem:[#allocation103_spill] sm:$0xff] %v9185_v19  ;;  %v9188_v48 = vmul.f32 %v8802_v34, %v1985_v23  ;;  %v2759_v9 = vsel %vm2757_vm15, %v2758_v44, %v2756_v56  ;;  %v4003_v36 = vsub.f32 %v9185_v19, %v3257_v28  ;;  %vm3260_vm0 = vcmp.eq.f32.partialorder %v9137_v20, inf  ;;  %v9228_v23 = vpop.f32.mrb[82].mxu0  ;;  %v9230_v56 = vpop.f32.mrb[82].mxu1 }
 0x29a   :  { %v9197_v16 = vand.u32 2147483647, %v4132_v63  ;;  %v9200_v18 = vmul.f32 %v8802_v34, %v2759_v9  ;;  %vm3262_vm1 = vcmp.eq.f32.partialorder %v9137_v20, 0.0  ;;  %v3263_v15 = vand.u32 2147483648, %v9137_v20  ;;  %v9262_v46 = vpop.f32.mrb[83].mxu1 }
 0x29b   :  { %6443 = vrsqrt.f32 %v9188_v48  ;;  %vm1988_vm2 = vcmp.eq.f32.partialorder %v9140_v4, inf  ;;  %v9210_v10 = vand.u32 2147483647, %v4003_v36  ;;  %vm1990_vm3 = vcmp.eq.f32.partialorder %v9140_v4, 0.0 }
 0x29c   :  { %12945 = vst [vmem:[#allocation104_spill] sm:$0xff] %v9197_v16  ;;  %6445 = vrsqrt.f32 %v9200_v18  ;;  %v1991_v38 = vand.u32 2147483648, %v9140_v4  ;;  %vm3708_vm4 = vcmp.eq.f32.partialorder %v9158_v60, inf  ;;  %vm3710_vm5 = vcmp.eq.f32.partialorder %v9158_v60, 0.0 }
 0x29d   :  { %12946 = vst [vmem:[#allocation105_spill] sm:$0xff] %v9210_v10  ;;  %v6436_v32 = vpop.eup %6435  ;;  %v3711_v14 = vand.u32 2147483648, %v9158_v60  ;;  %v4133_v17 = vsub.f32 %v9200_v18, %v9188_v48  ;;  %vm2762_vm6 = vcmp.eq.f32.partialorder %v9162_v39, inf  ;;  %v9222_v44 = vmax.f32 %v1697_v40, 1e-14 }
 0x29e   :  { %v3259_v28 = vmul.f32 %v6436_v32, %v9137_v20  ;;  %v9224_v27 = vmax.f32 %v2471_v12, 1e-14  ;;  %v1570_v63 = vmul.f32 %v8329_v55, %v8329_v55  ;;  %v6438_v9 = vpop.eup %6437  ;;  %v2344_v16 = vmul.f32 %v8331_v58, %v8331_v58  ;;  %v9240_v12 = vpop.f32.mrb[83].mxu0 }
 0x29f   :  { %v9232_v36 = vand.u32 2147483647, %v4133_v17  ;;  %v1634_v32 = vmul.f32 %v8340_v1, %v8340_v1  ;;  %v2408_v40 = vmul.f32 %v8371_v29, %v8371_v29  ;;  %vm3267_vm7 = vcmp.eq.f32.partialorder %v9188_v48, inf }
 0x2a0   :  { %v3261_v55 = vsel %vm3260_vm0, %v9137_v20, %v3259_v28  ;;  %v1987_v17 = vmul.f32 %v6438_v9, %v9140_v4  ;;  %6447 = vrsqrt.f32 %v9222_v44  ;;  %vm3269_vm8 = vcmp.eq.f32.partialorder %v9188_v48, 0.0 }
 0x2a1   :  { %12947 = vst [vmem:[#allocation106_spill] sm:$0xff] %v9232_v36  ;;  %v6440_v36 = vpop.eup %6439  ;;  %v3270_v58 = vand.u32 2147483648, %v9188_v48  ;;  %vm3715_vm9 = vcmp.eq.f32.partialorder %v9200_v18, inf  ;;  %6449 = vrsqrt.f32 %v9224_v27  ;;  %vm3717_vm10 = vcmp.eq.f32.partialorder %v9200_v18, 0.0 }
 0x2a2   :  { %v3707_v29 = vmul.f32 %v6440_v36, %v9158_v60  ;;  %v3718_v1 = vand.u32 2147483648, %v9200_v18  ;;  %v1989_v28 = vsel %vm1988_vm2, %v9140_v4, %v1987_v17  ;;  %v6442_v9 = vpop.eup %6441  ;;  %v3264_v19 = vsel %vm3262_vm1, %v3263_v15, %v3261_v55 }
 0x2a3   :  { %v1992_v10 = vsel %vm1990_vm3, %v1991_v38, %v1989_v28  ;;  %v1698_v50 = vadd.f32 %v1634_v32, %v1570_v63  ;;  %v2472_v45 = vadd.f32 %v2408_v40, %v2344_v16  ;;  %v2761_v17 = vmul.f32 %v6442_v9, %v9162_v39 }
 0x2a4   :  { %v3709_v36 = vsel %vm3708_vm4, %v9158_v60, %v3707_v29  ;;  %v9268_v49 = vmul.f32 %v8802_v34, %v1992_v10  ;;  %vm2764_vm11 = vcmp.eq.f32.partialorder %v9162_v39, 0.0  ;;  %v2765_v16 = vand.u32 2147483648, %v9162_v39 }
 0x2a5   :  { %v6444_v20 = vpop.eup %6443  ;;  %v9274_v4 = vsel %vm3710_vm5, %v3711_v14, %v3709_v36  ;;  %v9277_v15 = vmax.f32 %v1698_v50, 1e-14  ;;  %v1571_v38 = vmul.f32 %v8423_v53, %v8423_v53  ;;  %v9284_v40 = vmax.f32 %v2472_v45, 1e-14 }
 0x2a6   :  { %12948 = vst [vmem:[#allocation107_spill] sm:$0xff] %v9274_v4  ;;  %v6446_v63 = vpop.eup %6445  ;;  %v4004_v10 = vsub.f32 %v9274_v4, %v3264_v19  ;;  %v3266_v32 = vmul.f32 %v6444_v20, %v9188_v48  ;;  %6451 = vrsqrt.f32 %v9268_v49  ;;  %v2763_v14 = vsel %vm2762_vm6, %v9162_v39, %v2761_v17  ;;  %v12958_v4 = vld [vmem:[#allocation33_spill] sm:$0xff] }
 0x2a7   :  { %v3714_v60 = vmul.f32 %v6446_v63, %v9200_v18  ;;  %vm1995_vm12 = vcmp.eq.f32.partialorder %v9222_v44, inf  ;;  %vm1997_vm13 = vcmp.eq.f32.partialorder %v9222_v44, 0.0  ;;  %v2766_v45 = vsel %vm2764_vm11, %v2765_v16, %v2763_v14 }
 0x2a8   :  { %v9292_v53 = vand.u32 2147483647, %v4004_v10  ;;  %v3268_v50 = vsel %vm3267_vm7, %v9188_v48, %v3266_v32  ;;  %6453 = vrsqrt.f32 %v9277_v15  ;;  %v9306_v29 = vmul.f32 %v8802_v34, %v2766_v45  ;;  %v9317_v48 = vpop.f32.mrb[84].mxu0  ;;  %v12951_v10 = vld [vmem:[#allocation74_spill] sm:$0xff] }
 0x2a9   :  { %v3271_v19 = vsel %vm3269_vm8, %v3270_v58, %v3268_v50  ;;  %v3716_v55 = vsel %vm3715_vm9, %v9200_v18, %v3714_v60  ;;  %v1998_v28 = vand.u32 2147483648, %v9222_v44  ;;  %vm2769_vm14 = vcmp.eq.f32.partialorder %v9224_v27, inf  ;;  %v9319_v58 = vpop.f32.mrb[84].mxu1 }
 0x2aa   :  { %12949 = vst [vmem:[#allocation108_spill] sm:$0xff] %v9292_v53  ;;  %v6448_v9 = vpop.eup %6447  ;;  %v9311_v36 = vsel %vm3717_vm10, %v3718_v1, %v3716_v55  ;;  %6455 = vrsqrt.f32 %v9284_v40  ;;  %v1635_v39 = vmul.f32 %v8432_v6, %v8432_v6  ;;  %vm2771_vm15 = vcmp.eq.f32.partialorder %v9224_v27, 0.0  ;;  %v9325_v1 = vpop.f32.mrb[85].mxu0 }
 0x2ab   :  { %12950 = vst [vmem:[#allocation109_spill] sm:$0xff] %v9311_v36  ;;  %v6450_v17 = vpop.eup %6449  ;;  %v4005_v20 = vsub.f32 %v9311_v36, %v3271_v19  ;;  %6457 = vrsqrt.f32 %v9306_v29  ;;  %v2772_v18 = vand.u32 2147483648, %v9224_v27  ;;  %v4134_v16 = vsub.f32 %v9306_v29, %v9268_v49  ;;  %v9333_v60 = vpop.f32.mrb[85].mxu1 }
 0x2ac   :  { %v1994_v6 = vmul.f32 %v6448_v9, %v9222_v44  ;;  %v2768_v63 = vmul.f32 %v6450_v17, %v9224_v27  ;;  %v2345_v32 = vmul.f32 %v12951_v10, %v12951_v10  ;;  %vm3274_vm0 = vcmp.eq.f32.partialorder %v9268_v49, inf  ;;  %v12954_v10 = vld [vmem:[#allocation75_spill] sm:$0xff] }
 0x2ad   :  { %v9335_v14 = vand.u32 2147483647, %v4005_v20  ;;  %vm3276_vm1 = vcmp.eq.f32.partialorder %v9268_v49, 0.0  ;;  %v3277_v50 = vand.u32 2147483648, %v9268_v49  ;;  %v9340_v45 = vand.u32 2147483647, %v4134_v16 }
 0x2ae   :  { %v1996_v19 = vsel %vm1995_vm12, %v9222_v44, %v1994_v6  ;;  %v2770_v55 = vsel %vm2769_vm14, %v9224_v27, %v2768_v63  ;;  %v1699_v9 = vadd.f32 %v1635_v39, %v1571_v38  ;;  %vm2002_vm2 = vcmp.eq.f32.partialorder %v9277_v15, inf  ;;  %v9363_v38 = vpop.f32.mrb[86].mxu0  ;;  %v9365_v27 = vpop.f32.mrb[86].mxu1 }
 0x2af   :  { %12952 = vst [vmem:[#allocation74_spill] sm:$0xff] %v9335_v14  ;;  %12953 = vst [vmem:[#allocation110_spill] sm:$0xff] %v9340_v45  ;;  %v1999_v17 = vsel %vm1997_vm13, %v1998_v28, %v1996_v19  ;;  %v2773_v20 = vsel %vm2771_vm15, %v2772_v18, %v2770_v55  ;;  %v2409_v16 = vmul.f32 %v12954_v10, %v12954_v10  ;;  %vm2004_vm3 = vcmp.eq.f32.partialorder %v9277_v15, 0.0  ;;  %v9371_v63 = vpop.f32.mrb[87].mxu0  ;;  %v9392_v14 = vpop.f32.mrb[87].mxu1 }
 0x2b0   :  { %v6452_v45 = vpop.eup %6451  ;;  %v9356_v36 = vmul.f32 %v8802_v34, %v1999_v17  ;;  %v9359_v6 = vmul.f32 %v8802_v34, %v2773_v20  ;;  %v2005_v44 = vand.u32 2147483648, %v9277_v15  ;;  %12955 = vst [vmem:[#allocation75_spill] sm:$0xff] %v9363_v38  ;;  %12956 = vst [vmem:[#allocation111_spill] sm:$0xff] %v9365_v27  ;;  %vm3722_vm4 = vcmp.eq.f32.partialorder %v9306_v29, inf }
 0x2b1   :  { %v3273_v28 = vmul.f32 %v6452_v45, %v9268_v49  ;;  %v9369_v39 = vmax.f32 %v1699_v9, 1e-14  ;;  %v2473_v18 = vadd.f32 %v2409_v16, %v2345_v32  ;;  %12957 = vst [vmem:[#allocation112_spill] sm:$0xff] %v9371_v63  ;;  %vm3724_vm5 = vcmp.eq.f32.partialorder %v9306_v29, 0.0  ;;  %12959 = vst [vmem:[#allocation33_spill] sm:$0xff] %v9392_v14 }
 0x2b2   :  { %v6454_v19 = vpop.eup %6453  ;;  %v3725_v55 = vand.u32 2147483648, %v9306_v29  ;;  %6459 = vrsqrt.f32 %v9356_v36  ;;  %vm2776_vm6 = vcmp.eq.f32.partialorder %v9284_v40, inf  ;;  %v1572_v32 = vmul.f32 %v8506_v57, %v8506_v57 }
 0x2b3   :  { %v3275_v45 = vsel %vm3274_vm0, %v9268_v49, %v3273_v28  ;;  %6461 = vrsqrt.f32 %v9359_v6  ;;  %v1636_v9 = vmul.f32 %v8512_v24, %v8512_v24  ;;  %v4135_v20 = vsub.f32 %v9359_v6, %v9356_v36 }
 0x2b4   :  { %v6456_v17 = vpop.eup %6455  ;;  %v2001_v10 = vmul.f32 %v6454_v19, %v9277_v15  ;;  %v2346_v16 = vmul.f32 %v8508_v26, %v8508_v26  ;;  %v2410_v28 = vmul.f32 %v12958_v4, %v12958_v4  ;;  %vm2778_vm7 = vcmp.eq.f32.partialorder %v9284_v40, 0.0 }
 0x2b5   :  { %v6458_v53 = vpop.eup %6457  ;;  %v2775_v57 = vmul.f32 %v6456_v17, %v9284_v40  ;;  %v2779_v24 = vand.u32 2147483648, %v9284_v40  ;;  %6463 = vrsqrt.f32 %v9369_v39  ;;  %v3278_v19 = vsel %vm3276_vm1, %v3277_v50, %v3275_v45 }
 0x2b6   :  { %v3721_v27 = vmul.f32 %v6458_v53, %v9306_v29  ;;  %v9401_v26 = vand.u32 2147483647, %v4135_v20  ;;  %v2003_v4 = vsel %vm2002_vm2, %v9277_v15, %v2001_v10  ;;  %v9411_v63 = vmax.f32 %v2473_v18, 1e-14 }
 0x2b7   :  { %v2006_v17 = vsel %vm2004_vm3, %v2005_v44, %v2003_v4  ;;  %v2777_v14 = vsel %vm2776_vm6, %v9284_v40, %v2775_v57  ;;  %v1700_v38 = vadd.f32 %v1636_v9, %v1572_v32  ;;  %v2474_v45 = vadd.f32 %v2410_v28, %v2346_v16 }
 0x2b8   :  { %12960 = vst [vmem:[#allocation113_spill] sm:$0xff] %v9401_v26  ;;  %v3723_v49 = vsel %vm3722_vm4, %v9306_v29, %v3721_v27  ;;  %v9417_v53 = vmul.f32 %v8802_v34, %v2006_v17  ;;  %v2780_v50 = vsel %vm2778_vm7, %v2779_v24, %v2777_v14  ;;  %6465 = vrsqrt.f32 %v9411_v63  ;;  %v9451_v24 = vpop.f32.mrb[88].mxu0 }
 0x2b9   :  { %v9421_v15 = vsel %vm3724_vm5, %v3725_v55, %v3723_v49  ;;  %v9424_v44 = vmul.f32 %v8802_v34, %v2780_v50  ;;  %vm3281_vm8 = vcmp.eq.f32.partialorder %v9356_v36, inf  ;;  %vm3283_vm9 = vcmp.eq.f32.partialorder %v9356_v36, 0.0 }
 0x2ba   :  { %12961 = vst [vmem:[#allocation114_spill] sm:$0xff] %v9421_v15  ;;  %v4006_v40 = vsub.f32 %v9421_v15, %v3278_v19  ;;  %6467 = vrsqrt.f32 %v9417_v53  ;;  %v3284_v14 = vand.u32 2147483648, %v9356_v36  ;;  %vm3729_vm10 = vcmp.eq.f32.partialorder %v9359_v6, inf  ;;  %v9453_v19 = vpop.f32.mrb[88].mxu1 }
 0x2bb   :  { %6469 = vrsqrt.f32 %v9424_v44  ;;  %vm3731_vm11 = vcmp.eq.f32.partialorder %v9359_v6, 0.0  ;;  %v3732_v18 = vand.u32 2147483648, %v9359_v6  ;;  %v4136_v55 = vsub.f32 %v9424_v44, %v9417_v53 }
 0x2bc   :  { %v6460_v29 = vpop.eup %6459  ;;  %v9434_v27 = vand.u32 2147483647, %v4006_v40  ;;  %vm2009_vm12 = vcmp.eq.f32.partialorder %v9369_v39, inf  ;;  %v9442_v20 = vmax.f32 %v1700_v38, 1e-14  ;;  %vm2011_vm13 = vcmp.eq.f32.partialorder %v9369_v39, 0.0 }
 0x2bd   :  { %v6462_v32 = vpop.eup %6461  ;;  %v3280_v9 = vmul.f32 %v6460_v29, %v9356_v36  ;;  %v9444_v10 = vmax.f32 %v2474_v45, 1e-14  ;;  %v9447_v28 = vand.u32 2147483647, %v4136_v55  ;;  %v2012_v57 = vand.u32 2147483648, %v9369_v39  ;;  %v12964_v45 = vld [vmem:[#allocation78_spill] sm:$0xff] }
 0x2be   :  { %12962 = vst [vmem:[#allocation115_spill] sm:$0xff] %v9434_v27  ;;  %v3728_v16 = vmul.f32 %v6462_v32, %v9359_v6  ;;  %vm3288_vm14 = vcmp.eq.f32.partialorder %v9417_v53, inf  ;;  %vm2783_vm15 = vcmp.eq.f32.partialorder %v9411_v63, inf  ;;  %6471 = vrsqrt.f32 %v9442_v20  ;;  %v9469_v29 = vpop.f32.mrb[89].mxu0 }
 0x2bf   :  { %12963 = vst [vmem:[#allocation116_spill] sm:$0xff] %v9447_v28  ;;  %v6464_v4 = vpop.eup %6463  ;;  %v3282_v38 = vsel %vm3281_vm8, %v9356_v36, %v3280_v9  ;;  %v1573_v40 = vmul.f32 %v12964_v45, %v12964_v45  ;;  %vm3290_vm0 = vcmp.eq.f32.partialorder %v9417_v53, 0.0  ;;  %6473 = vrsqrt.f32 %v9444_v10  ;;  %v12966_v36 = vld [vmem:[#allocation79_spill] sm:$0xff]  ;;  %v9492_v45 = vpop.f32.mrb[89].mxu1 }
 0x2c0   :  { %v3285_v17 = vsel %vm3283_vm9, %v3284_v14, %v3282_v38  ;;  %v3730_v49 = vsel %vm3729_vm10, %v9359_v6, %v3728_v16  ;;  %v2008_v50 = vmul.f32 %v6464_v4, %v9369_v39  ;;  %v2347_v14 = vmul.f32 %v12966_v36, %v12966_v36  ;;  %v12967_v4 = vld [vmem:[#allocation80_spill] sm:$0xff] }
 0x2c1   :  { %v9473_v55 = vsel %vm3731_vm11, %v3732_v18, %v3730_v49  ;;  %v3291_v9 = vand.u32 2147483648, %v9417_v53  ;;  %v1637_v6 = vmul.f32 %v12967_v4, %v12967_v4  ;;  %vm3736_vm1 = vcmp.eq.f32.partialorder %v9424_v44, inf  ;;  %v12968_v49 = vld [vmem:[#allocation81_spill] sm:$0xff] }
 0x2c2   :  { %12965 = vst [vmem:[#allocation78_spill] sm:$0xff] %v9473_v55  ;;  %v4007_v32 = vsub.f32 %v9473_v55, %v3285_v17  ;;  %v2010_v16 = vsel %vm2009_vm12, %v9369_v39, %v2008_v50  ;;  %v6466_v18 = vpop.eup %6465  ;;  %vm3738_vm2 = vcmp.eq.f32.partialorder %v9424_v44, 0.0  ;;  %v2411_v17 = vmul.f32 %v12968_v49, %v12968_v49 }
 0x2c3   :  { %v2013_v38 = vsel %vm2011_vm13, %v2012_v57, %v2010_v16  ;;  %v2782_v4 = vmul.f32 %v6466_v18, %v9411_v63  ;;  %v1701_v26 = vadd.f32 %v1637_v6, %v1573_v40  ;;  %v3739_v39 = vand.u32 2147483648, %v9424_v44 }
 0x2c4   :  { %v6468_v36 = vpop.eup %6467  ;;  %v9494_v28 = vand.u32 2147483647, %v4007_v32  ;;  %v9497_v50 = vmul.f32 %v8802_v34, %v2013_v38  ;;  %vm2785_vm3 = vcmp.eq.f32.partialorder %v9411_v63, 0.0  ;;  %v2475_v57 = vadd.f32 %v2411_v17, %v2347_v14  ;;  %v9522_v17 = vpop.f32.mrb[90].mxu0 }
 0x2c5   :  { %v6470_v55 = vpop.eup %6469  ;;  %v3287_v15 = vmul.f32 %v6468_v36, %v9417_v53  ;;  %v2786_v32 = vand.u32 2147483648, %v9411_v63  ;;  %vm2016_vm4 = vcmp.eq.f32.partialorder %v9442_v20, inf  ;;  %v2784_v6 = vsel %vm2783_vm15, %v9411_v63, %v2782_v4 }
 0x2c6   :  { %12969 = vst [vmem:[#allocation79_spill] sm:$0xff] %v9494_v28  ;;  %v3735_v16 = vmul.f32 %v6470_v55, %v9424_v44  ;;  %6475 = vrsqrt.f32 %v9497_v50  ;;  %vm2018_vm5 = vcmp.eq.f32.partialorder %v9442_v20, 0.0  ;;  %v9514_v18 = vmax.f32 %v1701_v26, 1e-14 }
 0x2c7   :  { %v3289_v40 = vsel %vm3288_vm14, %v9417_v53, %v3287_v15  ;;  %v2787_v38 = vsel %vm2785_vm3, %v2786_v32, %v2784_v6  ;;  %v2019_v49 = vand.u32 2147483648, %v9442_v20  ;;  %v9524_v15 = vpop.f32.mrb[90].mxu1  ;;  %v9534_v53 = vmax.f32 %v2475_v57, 1e-14  ;;  %v12971_v32 = vld [vmem:[#allocation39_spill] sm:$0xff]  ;;  %v12973_v6 = vld [vmem:[#allocation41_spill] sm:$0xff] }
 0x2c8   :  { %v3292_v55 = vsel %vm3290_vm0, %v3291_v9, %v3289_v40  ;;  %v3737_v14 = vsel %vm3736_vm1, %v9424_v44, %v3735_v16  ;;  %v6472_v36 = vpop.eup %6471  ;;  %v9531_v26 = vmul.f32 %v8802_v34, %v2787_v38  ;;  %6477 = vrsqrt.f32 %v9514_v18  ;;  %v9536_v9 = vpop.f32.mrb[91].mxu0  ;;  %v12972_v34 = vld [vmem:[#allocation40_spill] sm:$0xff] }
 0x2c9   :  { %v9528_v63 = vsel %vm3738_vm2, %v3739_v39, %v3737_v14  ;;  %v2015_v16 = vmul.f32 %v6472_v36, %v9442_v20  ;;  %vm2790_vm6 = vcmp.eq.f32.partialorder %v9444_v10, inf  ;;  %v1574_v44 = vmul.f32 %v12971_v32, %v12971_v32  ;;  %v6474_v39 = vpop.eup %6473 }
 0x2ca   :  { %12970 = vst [vmem:[#allocation80_spill] sm:$0xff] %v9528_v63  ;;  %v4008_v4 = vsub.f32 %v9528_v63, %v3292_v55  ;;  %6479 = vrsqrt.f32 %v9531_v26  ;;  %v2348_v40 = vmul.f32 %v12972_v34, %v12972_v34  ;;  %v1638_v57 = vmul.f32 %v12973_v6, %v12973_v6 }
 0x2cb   :  { %v2412_v14 = vmul.f32 %v8669_v31, %v8669_v31  ;;  %v4137_v38 = vsub.f32 %v9531_v26, %v9497_v50  ;;  %v2017_v36 = vsel %vm2016_vm4, %v9442_v20, %v2015_v16  ;;  %v2789_v32 = vmul.f32 %v6474_v39, %v9444_v10  ;;  %v9563_v31 = vpop.f32.mrb[91].mxu1  ;;  %v9571_v16 = vld [vmem:[%s12693_s3] ss:$0 sm:$0xff] }
 0x2cc   :  { %v9550_v55 = vand.u32 2147483647, %v4008_v4  ;;  %v2020_v34 = vsel %vm2018_vm5, %v2019_v49, %v2017_v36  ;;  %vm2792_vm7 = vcmp.eq.f32.partialorder %v9444_v10, 0.0  ;;  %v2793_v6 = vand.u32 2147483648, %v9444_v10  ;;  %12975 = vst [vmem:[#allocation39_spill] sm:$0xff] %v9563_v31 }
 0x2cd   :  { %6481 = vrsqrt.f32 %v9534_v53  ;;  %vm3295_vm8 = vcmp.eq.f32.partialorder %v9497_v50, inf  ;;  %v9566_v4 = vand.u32 2147483647, %v4137_v38  ;;  %v9574_v20 = vmul.f32 %v9571_v16, %v2020_v34 }
 0x2ce   :  { %12974 = vst [vmem:[#allocation81_spill] sm:$0xff] %v9550_v55  ;;  %v2791_v49 = vsel %vm2790_vm6, %v9444_v10, %v2789_v32  ;;  %vm3297_vm9 = vcmp.eq.f32.partialorder %v9497_v50, 0.0  ;;  %v1702_v36 = vadd.f32 %v1638_v57, %v1574_v44  ;;  %v2476_v63 = vadd.f32 %v2412_v14, %v2348_v40 }
 0x2cf   :  { %12976 = vst [vmem:[#allocation40_spill] sm:$0xff] %v9566_v4  ;;  %v2794_v39 = vsel %vm2792_vm7, %v2793_v6, %v2791_v49  ;;  %v3298_v38 = vand.u32 2147483648, %v9497_v50  ;;  %6483 = vrsqrt.f32 %v9574_v20  ;;  %vm2023_vm10 = vcmp.eq.f32.partialorder %v9514_v18, inf }
 0x2d0   :  { %v6476_v55 = vpop.eup %6475  ;;  %vm2025_vm11 = vcmp.eq.f32.partialorder %v9514_v18, 0.0  ;;  %v9586_v4 = vmul.f32 %v9571_v16, %v2794_v39  ;;  %v2026_v10 = vand.u32 2147483648, %v9514_v18  ;;  %v9589_v32 = vmax.f32 %v1702_v36, 1e-14 }
 0x2d1   :  { %v3294_v34 = vmul.f32 %v6476_v55, %v9497_v50  ;;  %vm3743_vm12 = vcmp.eq.f32.partialorder %v9531_v26, inf  ;;  %vm3745_vm13 = vcmp.eq.f32.partialorder %v9531_v26, 0.0  ;;  %v3746_v44 = vand.u32 2147483648, %v9531_v26 }
 0x2d2   :  { %v9594_v40 = vmax.f32 %v2476_v63, 1e-14  ;;  %v6478_v57 = vpop.eup %6477  ;;  %6485 = vrsqrt.f32 %v9586_v4  ;;  %vm2797_vm14 = vcmp.eq.f32.partialorder %v9534_v53, inf  ;;  %vm2799_vm15 = vcmp.eq.f32.partialorder %v9534_v53, 0.0 }
 0x2d3   :  { %v1575_v14 = vmul.f32 %v8711_v41, %v8711_v41  ;;  %v3296_v55 = vsel %vm3295_vm8, %v9497_v50, %v3294_v34  ;;  %v4138_v6 = vsub.f32 %v9586_v4, %v9574_v20  ;;  %v2022_v63 = vmul.f32 %v6478_v57, %v9514_v18 }
 0x2d4   :  { %v1639_v49 = vmul.f32 %v8719_v11, %v8719_v11  ;;  %v6480_v39 = vpop.eup %6479  ;;  %v2800_v36 = vand.u32 2147483648, %v9534_v53  ;;  %6487 = vrsqrt.f32 %v9589_v32  ;;  %v2349_v41 = vmul.f32 %v8713_v0, %v8713_v0 }
 0x2d5   :  { %v2413_v28 = vmul.f32 %v8728_v54, %v8728_v54  ;;  %v3742_v34 = vmul.f32 %v6480_v39, %v9531_v26  ;;  %v9616_v27 = vand.u32 2147483647, %v4138_v6  ;;  %v2024_v57 = vsel %vm2023_vm10, %v9514_v18, %v2022_v63  ;;  %v9629_v6 = vpop.f32.mrb[92].mxu0  ;;  %v9631_v39 = vpop.f32.mrb[92].mxu1 }
 0x2d6   :  { %6489 = vrsqrt.f32 %v9594_v40  ;;  %v3299_v31 = vsel %vm3297_vm9, %v3298_v38, %v3296_v55  ;;  %vm3302_vm0 = vcmp.eq.f32.partialorder %v9574_v20, inf  ;;  %v2027_v0 = vsel %vm2025_vm11, %v2026_v10, %v2024_v57  ;;  %v9640_v55 = vpop.f32.mrb[93].mxu0  ;;  %v9642_v18 = vpop.f32.mrb[93].mxu1 }
 0x2d7   :  { %12977 = vst [vmem:[#allocation41_spill] sm:$0xff] %v9616_v27  ;;  %v6482_v11 = vpop.eup %6481  ;;  %v1576_v54 = vmul.f32 %v8761_v42, %v8761_v42  ;;  %v3744_v63 = vsel %vm3743_vm12, %v9531_v26, %v3742_v34  ;;  %v9637_v27 = vmul.f32 %v9571_v16, %v2027_v0  ;;  %v1703_v38 = vadd.f32 %v1639_v49, %v1575_v14  ;;  %v9655_v14 = vpop.f32.mrb[94].mxu0 }
 0x2d8   :  { %v2796_v50 = vmul.f32 %v6482_v11, %v9534_v53  ;;  %v9646_v42 = vsel %vm3745_vm13, %v3746_v44, %v3744_v63  ;;  %vm3304_vm1 = vcmp.eq.f32.partialorder %v9574_v20, 0.0  ;;  %v2477_v10 = vadd.f32 %v2413_v28, %v2349_v41  ;;  %12979 = vst [vmem:[#allocation118_spill] sm:$0xff] %v9655_v14  ;;  %v9657_v26 = vpop.f32.mrb[94].mxu1 }
 0x2d9   :  { %12978 = vst [vmem:[#allocation117_spill] sm:$0xff] %v9646_v42  ;;  %v1640_v34 = vmul.f32 %v8771_v62, %v8771_v62  ;;  %v6484_v57 = vpop.eup %6483  ;;  %v4009_v0 = vsub.f32 %v9646_v42, %v3299_v31  ;;  %v3305_v11 = vand.u32 2147483648, %v9574_v20  ;;  %vm3750_vm2 = vcmp.eq.f32.partialorder %v9586_v4, inf  ;;  %12980 = vst [vmem:[#allocation119_spill] sm:$0xff] %v9657_v26  ;;  %v9672_v42 = vpop.f32.mrb[95].mxu0 }
 0x2da   :  { %6491 = vrsqrt.f32 %v9637_v27  ;;  %v3301_v44 = vmul.f32 %v6484_v57, %v9574_v20  ;;  %vm3752_vm3 = vcmp.eq.f32.partialorder %v9586_v4, 0.0  ;;  %v2798_v62 = vsel %vm2797_vm14, %v9534_v53, %v2796_v50 }
 0x2db   :  { %v9664_v28 = vmax.f32 %v1703_v38, 1e-14  ;;  %v9666_v31 = vand.u32 2147483647, %v4009_v0  ;;  %v2801_v49 = vsel %vm2799_vm15, %v2800_v36, %v2798_v62  ;;  %v9670_v41 = vmax.f32 %v2477_v10, 1e-14 }
 0x2dc   :  { %v1704_v63 = vadd.f32 %v1640_v34, %v1576_v54  ;;  %v6486_v26 = vpop.eup %6485  ;;  %v3303_v57 = vsel %vm3302_vm0, %v9574_v20, %v3301_v44  ;;  %v3753_v14 = vand.u32 2147483648, %v9586_v4  ;;  %v9679_v50 = vmul.f32 %v9571_v16, %v2801_v49  ;;  %v9698_v20 = vpop.f32.mrb[95].mxu1 }
 0x2dd   :  { %12981 = vst [vmem:[#allocation120_spill] sm:$0xff] %v9666_v31  ;;  %6493 = vrsqrt.f32 %v9664_v28  ;;  %v3749_v53 = vmul.f32 %v6486_v26, %v9586_v4  ;;  %vm2030_vm4 = vcmp.eq.f32.partialorder %v9589_v32, inf  ;;  %vm2032_vm5 = vcmp.eq.f32.partialorder %v9589_v32, 0.0  ;;  %12982 = vst [vmem:[#allocation121_spill] sm:$0xff] %v9698_v20 }
 0x2de   :  { %v2033_v36 = vand.u32 2147483648, %v9589_v32  ;;  %v6488_v54 = vpop.eup %6487  ;;  %v3306_v38 = vsel %vm3304_vm1, %v3305_v11, %v3303_v57  ;;  %6495 = vrsqrt.f32 %v9679_v50  ;;  %vm2804_vm6 = vcmp.eq.f32.partialorder %v9594_v40, inf }
 0x2df   :  { %vm2806_vm7 = vcmp.eq.f32.partialorder %v9594_v40, 0.0  ;;  %v3751_v34 = vsel %vm3750_vm2, %v9586_v4, %v3749_v53  ;;  %v4139_v0 = vsub.f32 %v9679_v50, %v9637_v27  ;;  %v2029_v26 = vmul.f32 %v6488_v54, %v9589_v32 }
 0x2e0   :  { %v6490_v10 = vpop.eup %6489  ;;  %6497 = vrsqrt.f32 %v9670_v41  ;;  %v9702_v11 = vsel %vm3752_vm3, %v3753_v14, %v3751_v34  ;;  %v2807_v62 = vand.u32 2147483648, %v9594_v40  ;;  %v2350_v49 = vmul.f32 %v8763_v3, %v8763_v3 }
 0x2e1   :  { %12983 = vst [vmem:[#allocation122_spill] sm:$0xff] %v9702_v11  ;;  %v2803_v44 = vmul.f32 %v6490_v10, %v9594_v40  ;;  %v4010_v57 = vsub.f32 %v9702_v11, %v3306_v38  ;;  %vm3309_vm8 = vcmp.eq.f32.partialorder %v9637_v27, inf  ;;  %v9710_v53 = vand.u32 2147483647, %v4139_v0 }
 0x2e2   :  { %v2031_v54 = vsel %vm2030_vm4, %v9589_v32, %v2029_v26  ;;  %vm3311_vm9 = vcmp.eq.f32.partialorder %v9637_v27, 0.0  ;;  %v9721_v3 = vmax.f32 %v1704_v63, 1e-14  ;;  %v3312_v34 = vand.u32 2147483648, %v9637_v27 }
 0x2e3   :  { %12984 = vst [vmem:[#allocation123_spill] sm:$0xff] %v9710_v53  ;;  %v2034_v4 = vsel %vm2032_vm5, %v2033_v36, %v2031_v54  ;;  %v2805_v14 = vsel %vm2804_vm6, %v9594_v40, %v2803_v44  ;;  %v9723_v10 = vand.u32 2147483647, %v4010_v57  ;;  %v2414_v63 = vmul.f32 %v8811_v22, %v8811_v22 }
 0x2e4   :  { %v6492_v38 = vpop.eup %6491  ;;  %v9727_v0 = vmul.f32 %v9571_v16, %v2034_v4  ;;  %v2808_v26 = vsel %vm2806_vm7, %v2807_v62, %v2805_v14  ;;  %6499 = vrsqrt.f32 %v9721_v3  ;;  %vm2037_vm10 = vcmp.eq.f32.partialorder %v9664_v28, inf }
 0x2e5   :  { %12985 = vst [vmem:[#allocation124_spill] sm:$0xff] %v9723_v10  ;;  %v3308_v32 = vmul.f32 %v6492_v38, %v9637_v27  ;;  %v9733_v36 = vmul.f32 %v9571_v16, %v2808_v26  ;;  %vm2039_vm11 = vcmp.eq.f32.partialorder %v9664_v28, 0.0  ;;  %v2040_v44 = vand.u32 2147483648, %v9664_v28  ;;  %v12987_v10 = vld [vmem:[#allocation90_spill] sm:$0xff] }
 0x2e6   :  { %6501 = vrsqrt.f32 %v9727_v0  ;;  %vm3757_vm12 = vcmp.eq.f32.partialorder %v9679_v50, inf  ;;  %vm3759_vm13 = vcmp.eq.f32.partialorder %v9679_v50, 0.0  ;;  %v3760_v62 = vand.u32 2147483648, %v9679_v50 }
 0x2e7   :  { %v6494_v40 = vpop.eup %6493  ;;  %6503 = vrsqrt.f32 %v9733_v36  ;;  %v3310_v22 = vsel %vm3309_vm8, %v9637_v27, %v3308_v32  ;;  %v4140_v57 = vsub.f32 %v9733_v36, %v9727_v0  ;;  %v1577_v4 = vmul.f32 %v8885_v30, %v8885_v30  ;;  %v12988_v27 = vld [vmem:[#allocation88_spill] sm:$0xff] }
 0x2e8   :  { %v2036_v54 = vmul.f32 %v6494_v40, %v9664_v28  ;;  %v6496_v14 = vpop.eup %6495  ;;  %vm2811_vm14 = vcmp.eq.f32.partialorder %v9670_v41, inf  ;;  %vm2813_vm15 = vcmp.eq.f32.partialorder %v9670_v41, 0.0  ;;  %v2814_v38 = vand.u32 2147483648, %v9670_v41 }
 0x2e9   :  { %v2478_v26 = vadd.f32 %v2414_v63, %v2350_v49  ;;  %v3756_v11 = vmul.f32 %v6496_v14, %v9679_v50  ;;  %v9758_v32 = vand.u32 2147483647, %v4140_v57  ;;  %v1641_v30 = vmul.f32 %v12987_v10, %v12987_v10  ;;  %v9772_v14 = vpop.f32.mrb[96].mxu0  ;;  %v9774_v57 = vpop.f32.mrb[96].mxu1 }
 0x2ea   :  { %v6498_v53 = vpop.eup %6497  ;;  %v2038_v40 = vsel %vm2037_vm10, %v9664_v28, %v2036_v54  ;;  %v3313_v31 = vsel %vm3311_vm9, %v3312_v34, %v3310_v22  ;;  %v2351_v34 = vmul.f32 %v12988_v27, %v12988_v27  ;;  %vm3316_vm0 = vcmp.eq.f32.partialorder %v9727_v0, inf }
 0x2eb   :  { %12986 = vst [vmem:[#allocation125_spill] sm:$0xff] %v9758_v32  ;;  %v2041_v20 = vsel %vm2039_vm11, %v2040_v44, %v2038_v40  ;;  %v2810_v49 = vmul.f32 %v6498_v53, %v9670_v41  ;;  %v9770_v63 = vmax.f32 %v2478_v26, 1e-14  ;;  %v3758_v54 = vsel %vm3757_vm12, %v9679_v50, %v3756_v11  ;;  %v9784_v44 = vpop.f32.mrb[97].mxu0  ;;  %v12990_v11 = vld [vmem:[#allocation91_spill] sm:$0xff]  ;;  %v9800_v50 = vpop.f32.mrb[97].mxu1 }
 0x2ec   :  { %v9780_v10 = vmul.f32 %v9571_v16, %v2041_v20  ;;  %v1705_v28 = vadd.f32 %v1641_v30, %v1577_v4  ;;  %v9788_v53 = vsel %vm3759_vm13, %v3760_v62, %v3758_v54  ;;  %v2415_v20 = vmul.f32 %v12990_v11, %v12990_v11  ;;  %12991 = vst [vmem:[#allocation88_spill] sm:$0xff] %v9800_v50 }
 0x2ed   :  { %12989 = vst [vmem:[#allocation90_spill] sm:$0xff] %v9788_v53  ;;  %v2812_v22 = vsel %vm2811_vm14, %v9670_v41, %v2810_v49  ;;  %6505 = vrsqrt.f32 %v9770_v63  ;;  %v4011_v26 = vsub.f32 %v9788_v53, %v3313_v31  ;;  %vm2044_vm1 = vcmp.eq.f32.partialorder %v9721_v3, inf }
 0x2ee   :  { %6507 = vrsqrt.f32 %v9780_v10  ;;  %v6500_v62 = vpop.eup %6499  ;;  %vm3318_vm2 = vcmp.eq.f32.partialorder %v9727_v0, 0.0  ;;  %v3319_v4 = vand.u32 2147483648, %v9727_v0  ;;  %vm3764_vm3 = vcmp.eq.f32.partialorder %v9733_v36, inf }
 0x2ef   :  { %v2815_v40 = vsel %vm2813_vm15, %v2814_v38, %v2812_v22  ;;  %v9807_v31 = vand.u32 2147483647, %v4011_v26  ;;  %v2043_v54 = vmul.f32 %v6500_v62, %v9721_v3  ;;  %v9813_v27 = vmax.f32 %v1705_v28, 1e-14  ;;  %v9834_v62 = vpop.f32.mrb[98].mxu1 }
 0x2f0   :  { %v6502_v30 = vpop.eup %6501  ;;  %v9810_v49 = vmul.f32 %v9571_v16, %v2815_v40  ;;  %vm3766_vm4 = vcmp.eq.f32.partialorder %v9733_v36, 0.0  ;;  %v3767_v53 = vand.u32 2147483648, %v9733_v36  ;;  %v2479_v50 = vadd.f32 %v2415_v20, %v2351_v34  ;;  %v9832_v20 = vpop.f32.mrb[98].mxu0 }
 0x2f1   :  { %12992 = vst [vmem:[#allocation91_spill] sm:$0xff] %v9807_v31  ;;  %v6504_v11 = vpop.eup %6503  ;;  %v3315_v32 = vmul.f32 %v6502_v30, %v9727_v0  ;;  %vm2046_vm5 = vcmp.eq.f32.partialorder %v9721_v3, 0.0  ;;  %v2047_v38 = vand.u32 2147483648, %v9721_v3  ;;  %v2045_v26 = vsel %vm2044_vm1, %v9721_v3, %v2043_v54 }
 0x2f2   :  { %v3763_v41 = vmul.f32 %v6504_v11, %v9733_v36  ;;  %6509 = vrsqrt.f32 %v9810_v49  ;;  %v4141_v22 = vsub.f32 %v9810_v49, %v9780_v10  ;;  %v1578_v34 = vmul.f32 %v8939_v2, %v8939_v2  ;;  %v9842_v11 = vpop.f32.mrb[99].mxu0 }
 0x2f3   :  { %v3317_v28 = vsel %vm3316_vm0, %v9727_v0, %v3315_v32  ;;  %v2048_v30 = vsel %vm2046_vm5, %v2047_v38, %v2045_v26  ;;  %6511 = vrsqrt.f32 %v9813_v27  ;;  %v1642_v0 = vmul.f32 %v8949_v8, %v8949_v8 }
 0x2f4   :  { %v3320_v40 = vsel %vm3318_vm2, %v3319_v4, %v3317_v28  ;;  %v3765_v32 = vsel %vm3764_vm3, %v9733_v36, %v3763_v41  ;;  %v9848_v2 = vand.u32 2147483647, %v4141_v22  ;;  %v9851_v54 = vmul.f32 %v9571_v16, %v2048_v30  ;;  %v9855_v4 = vpop.f32.mrb[99].mxu1 }
 0x2f5   :  { %v9846_v3 = vsel %vm3766_vm4, %v3767_v53, %v3765_v32  ;;  %vm2818_vm6 = vcmp.eq.f32.partialorder %v9770_v63, inf  ;;  %v9859_v38 = vmax.f32 %v2479_v50, 1e-14  ;;  %vm3323_vm7 = vcmp.eq.f32.partialorder %v9780_v10, inf }
 0x2f6   :  { %12993 = vst [vmem:[#allocation126_spill] sm:$0xff] %v9846_v3  ;;  %12994 = vst [vmem:[#allocation127_spill] sm:$0xff] %v9848_v2  ;;  %v4012_v41 = vsub.f32 %v9846_v3, %v3320_v40  ;;  %vm3325_vm8 = vcmp.eq.f32.partialorder %v9780_v10, 0.0  ;;  %v3326_v36 = vand.u32 2147483648, %v9780_v10  ;;  %6513 = vrsqrt.f32 %v9851_v54 }
 0x2f7   :  { %v6506_v28 = vpop.eup %6505  ;;  %6515 = vrsqrt.f32 %v9859_v38  ;;  %v2352_v50 = vmul.f32 %v8941_v7, %v8941_v7  ;;  %vm2820_vm9 = vcmp.eq.f32.partialorder %v9770_v63, 0.0  ;;  %v2821_v40 = vand.u32 2147483648, %v9770_v63 }
 0x2f8   :  { %v6508_v53 = vpop.eup %6507  ;;  %v9865_v22 = vand.u32 2147483647, %v4012_v41  ;;  %v2817_v8 = vmul.f32 %v6506_v28, %v9770_v63  ;;  %v1706_v32 = vadd.f32 %v1642_v0, %v1578_v34  ;;  %vm3771_vm10 = vcmp.eq.f32.partialorder %v9810_v49, inf }
 0x2f9   :  { %v3322_v26 = vmul.f32 %v6508_v53, %v9780_v10  ;;  %v2416_v41 = vmul.f32 %v8971_v5, %v8971_v5  ;;  %v1579_v28 = vmul.f32 %v9039_v21, %v9039_v21  ;;  %v2353_v34 = vmul.f32 %v9041_v51, %v9041_v51 }
 0x2fa   :  { %12995 = vst [vmem:[#allocation128_spill] sm:$0xff] %v9865_v22  ;;  %v2819_v30 = vsel %vm2818_vm6, %v9770_v63, %v2817_v8  ;;  %v9885_v2 = vmax.f32 %v1706_v32, 1e-14  ;;  %v1643_v5 = vmul.f32 %v9045_v37, %v9045_v37  ;;  %v2417_v21 = vmul.f32 %v9047_v13, %v9047_v13 }
 0x2fb   :  { %v3324_v7 = vsel %vm3323_vm7, %v9780_v10, %v3322_v26  ;;  %v2822_v53 = vsel %vm2820_vm9, %v2821_v40, %v2819_v30  ;;  %v2480_v63 = vadd.f32 %v2416_v41, %v2352_v50  ;;  %vm3773_vm11 = vcmp.eq.f32.partialorder %v9810_v49, 0.0  ;;  %v9912_v30 = vpop.f32.mrb[100].mxu0  ;;  %v9914_v10 = vpop.f32.mrb[100].mxu1 }
 0x2fc   :  { %v6510_v0 = vpop.eup %6509  ;;  %v9890_v3 = vmul.f32 %v9571_v16, %v2822_v53  ;;  %v3774_v26 = vand.u32 2147483648, %v9810_v49  ;;  %6517 = vrsqrt.f32 %v9885_v2  ;;  %v3327_v40 = vsel %vm3325_vm8, %v3326_v36, %v3324_v7 }
 0x2fd   :  { %v3770_v8 = vmul.f32 %v6510_v0, %v9810_v49  ;;  %v6512_v51 = vpop.eup %6511  ;;  %vm2051_vm12 = vcmp.eq.f32.partialorder %v9813_v27, inf  ;;  %vm2053_vm13 = vcmp.eq.f32.partialorder %v9813_v27, 0.0  ;;  %v2054_v32 = vand.u32 2147483648, %v9813_v27  ;;  %v9920_v0 = vpop.f32.mrb[101].mxu0 }
 0x2fe   :  { %6519 = vrsqrt.f32 %v9890_v3  ;;  %v4142_v13 = vsub.f32 %v9890_v3, %v9851_v54  ;;  %v2050_v50 = vmul.f32 %v6512_v51, %v9813_v27  ;;  %v9918_v41 = vmax.f32 %v2480_v63, 1e-14 }
 0x2ff   :  { %v3772_v37 = vsel %vm3771_vm10, %v9810_v49, %v3770_v8  ;;  %v1707_v7 = vadd.f32 %v1643_v5, %v1579_v28  ;;  %v2481_v53 = vadd.f32 %v2417_v21, %v2353_v34  ;;  %v9922_v49 = vpop.f32.mrb[101].mxu1  ;;  %vm3330_vm14 = vcmp.eq.f32.partialorder %v9851_v54, inf }
 0x300   :  { %v9916_v36 = vsel %vm3773_vm11, %v3774_v26, %v3772_v37  ;;  %v6514_v8 = vpop.eup %6513  ;;  %v9926_v51 = vand.u32 2147483647, %v4142_v13  ;;  %v2052_v26 = vsel %vm2051_vm12, %v9813_v27, %v2050_v50  ;;  %vm3332_vm15 = vcmp.eq.f32.partialorder %v9851_v54, 0.0 }
 0x301   :  { %12996 = vst [vmem:[#allocation129_spill] sm:$0xff] %v9916_v36  ;;  %v4013_v22 = vsub.f32 %v9916_v36, %v3327_v40  ;;  %v6516_v37 = vpop.eup %6515  ;;  %v3333_v28 = vand.u32 2147483648, %v9851_v54  ;;  %v2055_v34 = vsel %vm2053_vm13, %v2054_v32, %v2052_v26  ;;  %6521 = vrsqrt.f32 %v9918_v41  ;;  %v9955_v32 = vpop.f32.mrb[102].mxu1 }
 0x302   :  { %12997 = vst [vmem:[#allocation130_spill] sm:$0xff] %v9926_v51  ;;  %v3329_v5 = vmul.f32 %v6514_v8, %v9851_v54  ;;  %v9940_v21 = vmul.f32 %v9571_v16, %v2055_v34  ;;  %v2824_v40 = vmul.f32 %v6516_v37, %v9859_v38  ;;  %vm2825_vm0 = vcmp.eq.f32.partialorder %v9859_v38, inf  ;;  %12999 = vst [vmem:[#allocation132_spill] sm:$0xff] %v9955_v32 }
 0x303   :  { %v9936_v63 = vand.u32 2147483647, %v4013_v22  ;;  %vm2827_vm1 = vcmp.eq.f32.partialorder %v9859_v38, 0.0  ;;  %v9945_v13 = vmax.f32 %v1707_v7, 1e-14  ;;  %v2828_v27 = vand.u32 2147483648, %v9859_v38 }
 0x304   :  { %v9947_v50 = vmax.f32 %v2481_v53, 1e-14  ;;  %6523 = vrsqrt.f32 %v9940_v21  ;;  %vm2058_vm2 = vcmp.eq.f32.partialorder %v9885_v2, inf  ;;  %vm2060_vm3 = vcmp.eq.f32.partialorder %v9885_v2, 0.0  ;;  %v9953_v22 = vpop.f32.mrb[102].mxu0 }
 0x305   :  { %12998 = vst [vmem:[#allocation131_spill] sm:$0xff] %v9936_v63  ;;  %vm3778_vm4 = vcmp.eq.f32.partialorder %v9890_v3, inf  ;;  %vm3780_vm5 = vcmp.eq.f32.partialorder %v9890_v3, 0.0  ;;  %v2826_v7 = vsel %vm2825_vm0, %v9859_v38, %v2824_v40  ;;  %6525 = vrsqrt.f32 %v9945_v13  ;;  %v9961_v53 = vpop.f32.mrb[103].mxu0 }
 0x306   :  { %v6518_v8 = vpop.eup %6517  ;;  %v3331_v26 = vsel %vm3330_vm14, %v9851_v54, %v3329_v5  ;;  %v2829_v37 = vsel %vm2827_vm1, %v2828_v27, %v2826_v7  ;;  %6527 = vrsqrt.f32 %v9947_v50  ;;  %v1580_v34 = vmul.f32 %v9056_v61, %v9056_v61  ;;  %v9982_v61 = vpop.f32.mrb[103].mxu1 }
 0x307   :  { %v3781_v40 = vand.u32 2147483648, %v9890_v3  ;;  %v9973_v36 = vmul.f32 %v9571_v16, %v2829_v37  ;;  %v2057_v63 = vmul.f32 %v6518_v8, %v9885_v2  ;;  %v2061_v31 = vand.u32 2147483648, %v9885_v2  ;;  %13000 = vst [vmem:[#allocation133_spill] sm:$0xff] %v9982_v61 }
 0x308   :  { %v6520_v51 = vpop.eup %6519  ;;  %vm2832_vm6 = vcmp.eq.f32.partialorder %v9918_v41, inf  ;;  %vm2834_vm7 = vcmp.eq.f32.partialorder %v9918_v41, 0.0  ;;  %v1644_v38 = vmul.f32 %v9083_v25, %v9083_v25  ;;  %v3334_v27 = vsel %vm3332_vm15, %v3333_v28, %v3331_v26 }
 0x309   :  { %v3777_v5 = vmul.f32 %v6520_v51, %v9890_v3  ;;  %6529 = vrsqrt.f32 %v9973_v36  ;;  %v2835_v7 = vand.u32 2147483648, %v9918_v41  ;;  %v2354_v8 = vmul.f32 %v9058_v35, %v9058_v35 }
 0x30a   :  { %v4143_v37 = vsub.f32 %v9973_v36, %v9940_v21  ;;  %v2059_v25 = vsel %vm2058_vm2, %v9885_v2, %v2057_v63  ;;  %v1708_v54 = vadd.f32 %v1644_v38, %v1580_v34  ;;  %vm3337_vm8 = vcmp.eq.f32.partialorder %v9940_v21, inf }
 0x30b   :  { %v3779_v51 = vsel %vm3778_vm4, %v9890_v3, %v3777_v5  ;;  %v6522_v28 = vpop.eup %6521  ;;  %v2062_v35 = vsel %vm2060_vm3, %v2061_v31, %v2059_v25  ;;  %v2418_v5 = vmul.f32 %v9097_v52, %v9097_v52  ;;  %vm3339_vm9 = vcmp.eq.f32.partialorder %v9940_v21, 0.0 }
 0x30c   :  { %v10000_v26 = vsel %vm3780_vm5, %v3781_v40, %v3779_v51  ;;  %v10009_v32 = vand.u32 2147483647, %v4143_v37  ;;  %v10012_v63 = vmul.f32 %v9571_v16, %v2062_v35  ;;  %v2831_v3 = vmul.f32 %v6522_v28, %v9918_v41 }
 0x30d   :  { %13001 = vst [vmem:[#allocation134_spill] sm:$0xff] %v10000_v26  ;;  %v4014_v61 = vsub.f32 %v10000_v26, %v3334_v27  ;;  %v3340_v34 = vand.u32 2147483648, %v9940_v21  ;;  %vm2065_vm10 = vcmp.eq.f32.partialorder %v9945_v13, inf  ;;  %v10017_v2 = vmax.f32 %v1708_v54, 1e-14 }
 0x30e   :  { %13002 = vst [vmem:[#allocation135_spill] sm:$0xff] %v10009_v32  ;;  %v2482_v31 = vadd.f32 %v2418_v5, %v2354_v8  ;;  %v6524_v40 = vpop.eup %6523  ;;  %6531 = vrsqrt.f32 %v10012_v63  ;;  %v1581_v38 = vmul.f32 %v9191_v33, %v9191_v33  ;;  %v1645_v27 = vmul.f32 %v9202_v47, %v9202_v47 }
 0x30f   :  { %v10019_v52 = vand.u32 2147483647, %v4014_v61  ;;  %v6526_v51 = vpop.eup %6525  ;;  %v3336_v37 = vmul.f32 %v6524_v40, %v9940_v21  ;;  %v2833_v25 = vsel %vm2832_vm6, %v9918_v41, %v2831_v3  ;;  %vm2067_vm11 = vcmp.eq.f32.partialorder %v9945_v13, 0.0  ;;  %v10051_v40 = vpop.f32.mrb[104].mxu0 }
 0x310   :  { %6533 = vrsqrt.f32 %v10017_v2  ;;  %v6528_v61 = vpop.eup %6527  ;;  %v2836_v8 = vsel %vm2834_vm7, %v2835_v7, %v2833_v25  ;;  %v2064_v33 = vmul.f32 %v6526_v51, %v9945_v13  ;;  %v2068_v54 = vand.u32 2147483648, %v9945_v13  ;;  %v10053_v51 = vpop.f32.mrb[104].mxu1 }
 0x311   :  { %13003 = vst [vmem:[#allocation136_spill] sm:$0xff] %v10019_v52  ;;  %vm2839_vm12 = vcmp.eq.f32.partialorder %v9947_v50, inf  ;;  %v10038_v47 = vmul.f32 %v9571_v16, %v2836_v8  ;;  %v2838_v28 = vmul.f32 %v6528_v61, %v9947_v50  ;;  %vm2841_vm13 = vcmp.eq.f32.partialorder %v9947_v50, 0.0 }
 0x312   :  { %v2842_v35 = vand.u32 2147483648, %v9947_v50  ;;  %v3338_v41 = vsel %vm3337_vm8, %v9940_v21, %v3336_v37  ;;  %v2066_v7 = vsel %vm2065_vm10, %v9945_v13, %v2064_v33  ;;  %v10049_v5 = vmax.f32 %v2482_v31, 1e-14  ;;  %v10059_v37 = vpop.f32.mrb[105].mxu0 }
 0x313   :  { %v1709_v3 = vadd.f32 %v1645_v27, %v1581_v38  ;;  %v6530_v25 = vpop.eup %6529  ;;  %vm3785_vm14 = vcmp.eq.f32.partialorder %v9973_v36, inf  ;;  %vm3787_vm15 = vcmp.eq.f32.partialorder %v9973_v36, 0.0  ;;  %v3788_v61 = vand.u32 2147483648, %v9973_v36 }
 0x314   :  { %6535 = vrsqrt.f32 %v10038_v47  ;;  %v3784_v8 = vmul.f32 %v6530_v25, %v9973_v36  ;;  %v4144_v31 = vsub.f32 %v10038_v47, %v10012_v63  ;;  %v2069_v38 = vsel %vm2067_vm11, %v2068_v54, %v2066_v7  ;;  %v10077_v25 = vpop.f32.mrb[105].mxu1 }
 0x315   :  { %v2840_v27 = vsel %vm2839_vm12, %v9947_v50, %v2838_v28  ;;  %v3341_v33 = vsel %vm3339_vm9, %v3340_v34, %v3338_v41  ;;  %v10072_v32 = vmul.f32 %v9571_v16, %v2069_v38  ;;  %6537 = vrsqrt.f32 %v10049_v5 }
 0x316   :  { %v2843_v26 = vsel %vm2841_vm13, %v2842_v35, %v2840_v27  ;;  %v3786_v13 = vsel %vm3785_vm14, %v9973_v36, %v3784_v8  ;;  %v10080_v54 = vand.u32 2147483647, %v4144_v31  ;;  %v2355_v21 = vmul.f32 %v9193_v43, %v9193_v43  ;;  %v10098_v43 = vpop.f32.mrb[106].mxu0  ;;  %v10100_v36 = vpop.f32.mrb[106].mxu1 }
 0x317   :  { %v10083_v7 = vmul.f32 %v9571_v16, %v2843_v26  ;;  %v10089_v34 = vsel %vm3787_vm15, %v3788_v61, %v3786_v13  ;;  %vm3344_vm0 = vcmp.eq.f32.partialorder %v10012_v63, inf  ;;  %vm3346_vm1 = vcmp.eq.f32.partialorder %v10012_v63, 0.0  ;;  %v10107_v31 = vpop.f32.mrb[107].mxu0 }
 0x318   :  { %13004 = vst [vmem:[#allocation137_spill] sm:$0xff] %v10080_v54  ;;  %13005 = vst [vmem:[#allocation138_spill] sm:$0xff] %v10089_v34  ;;  %6539 = vrsqrt.f32 %v10072_v32  ;;  %v6532_v50 = vpop.eup %6531  ;;  %v4015_v28 = vsub.f32 %v10089_v34, %v3341_v33  ;;  %v3347_v35 = vand.u32 2147483648, %v10012_v63  ;;  %vm2072_vm2 = vcmp.eq.f32.partialorder %v10017_v2, inf }
 0x319   :  { %6541 = vrsqrt.f32 %v10083_v7  ;;  %v3343_v41 = vmul.f32 %v6532_v50, %v10012_v63  ;;  %v4145_v61 = vsub.f32 %v10083_v7, %v10072_v32  ;;  %vm2074_vm3 = vcmp.eq.f32.partialorder %v10017_v2, 0.0 }
 0x31a   :  { %v6534_v26 = vpop.eup %6533  ;;  %v2075_v8 = vand.u32 2147483648, %v10017_v2  ;;  %v10109_v38 = vand.u32 2147483647, %v4015_v28  ;;  %vm3792_vm4 = vcmp.eq.f32.partialorder %v10038_v47, inf  ;;  %v10113_v33 = vmax.f32 %v1709_v3, 1e-14 }
 0x31b   :  { %v2071_v27 = vmul.f32 %v6534_v26, %v10017_v2  ;;  %vm3794_vm5 = vcmp.eq.f32.partialorder %v10038_v47, 0.0  ;;  %v3795_v13 = vand.u32 2147483648, %v10038_v47  ;;  %v10117_v50 = vand.u32 2147483647, %v4145_v61 }
 0x31c   :  { %13006 = vst [vmem:[#allocation139_spill] sm:$0xff] %v10109_v38  ;;  %v2419_v54 = vmul.f32 %v9204_v59, %v9204_v59  ;;  %v3345_v28 = vsel %vm3344_vm0, %v10012_v63, %v3343_v41  ;;  %vm2846_vm6 = vcmp.eq.f32.partialorder %v10049_v5, inf  ;;  %6543 = vrsqrt.f32 %v10113_v33 }
 0x31d   :  { %13007 = vst [vmem:[#allocation140_spill] sm:$0xff] %v10117_v50  ;;  %v2073_v34 = vsel %vm2072_vm2, %v10017_v2, %v2071_v27  ;;  %vm3351_vm7 = vcmp.eq.f32.partialorder %v10072_v32, inf  ;;  %vm2848_vm8 = vcmp.eq.f32.partialorder %v10049_v5, 0.0  ;;  %vm3353_vm9 = vcmp.eq.f32.partialorder %v10072_v32, 0.0 }
 0x31e   :  { %v6536_v3 = vpop.eup %6535  ;;  %v2076_v26 = vsel %vm2074_vm3, %v2075_v8, %v2073_v34  ;;  %v2483_v59 = vadd.f32 %v2419_v54, %v2355_v21  ;;  %v3354_v41 = vand.u32 2147483648, %v10072_v32  ;;  %v3348_v38 = vsel %vm3346_vm1, %v3347_v35, %v3345_v28  ;;  %v10147_v21 = vpop.f32.mrb[107].mxu1 }
 0x31f   :  { %v3791_v61 = vmul.f32 %v6536_v3, %v10038_v47  ;;  %v10137_v27 = vmul.f32 %v9571_v16, %v2076_v26  ;;  %v6538_v50 = vpop.eup %6537  ;;  %v1582_v2 = vmul.f32 %v9228_v23, %v9228_v23  ;;  %v1646_v54 = vmul.f32 %v9240_v12, %v9240_v12 }
 0x320   :  { %v10141_v52 = vmax.f32 %v2483_v59, 1e-14  ;;  %v2356_v63 = vmul.f32 %v9230_v56, %v9230_v56  ;;  %v2420_v35 = vmul.f32 %v9262_v46, %v9262_v46  ;;  %vm3799_vm10 = vcmp.eq.f32.partialorder %v10083_v7, inf }
 0x321   :  { %v3793_v34 = vsel %vm3792_vm4, %v10038_v47, %v3791_v61  ;;  %6545 = vrsqrt.f32 %v10137_v27  ;;  %v2845_v12 = vmul.f32 %v6538_v50, %v10049_v5  ;;  %vm3801_vm11 = vcmp.eq.f32.partialorder %v10083_v7, 0.0 }
 0x322   :  { %v6540_v8 = vpop.eup %6539  ;;  %v10159_v23 = vsel %vm3794_vm5, %v3795_v13, %v3793_v34  ;;  %6547 = vrsqrt.f32 %v10141_v52  ;;  %v2849_v46 = vand.u32 2147483648, %v10049_v5  ;;  %v3802_v47 = vand.u32 2147483648, %v10083_v7 }
 0x323   :  { %13008 = vst [vmem:[#allocation141_spill] sm:$0xff] %v10159_v23  ;;  %v6542_v28 = vpop.eup %6541  ;;  %v4016_v3 = vsub.f32 %v10159_v23, %v3348_v38  ;;  %v3350_v26 = vmul.f32 %v6540_v8, %v10072_v32  ;;  %v2847_v13 = vsel %vm2846_vm6, %v10049_v5, %v2845_v12  ;;  %v1710_v50 = vadd.f32 %v1646_v54, %v1582_v2 }
 0x324   :  { %v3798_v56 = vmul.f32 %v6542_v28, %v10083_v7  ;;  %v2850_v61 = vsel %vm2848_vm8, %v2849_v46, %v2847_v13  ;;  %v2484_v34 = vadd.f32 %v2420_v35, %v2356_v63  ;;  %v1583_v5 = vmul.f32 %v9317_v48, %v9317_v48 }
 0x325   :  { %v10173_v59 = vand.u32 2147483647, %v4016_v3  ;;  %v3352_v38 = vsel %vm3351_vm7, %v10072_v32, %v3350_v26  ;;  %v10186_v12 = vmul.f32 %v9571_v16, %v2850_v61  ;;  %v10188_v2 = vmax.f32 %v1710_v50, 1e-14  ;;  %v10221_v61 = vpop.f32.mrb[108].mxu0 }
 0x326   :  { %v3355_v8 = vsel %vm3353_vm9, %v3354_v41, %v3352_v38  ;;  %v3800_v28 = vsel %vm3799_vm10, %v10083_v7, %v3798_v56  ;;  %v6544_v54 = vpop.eup %6543  ;;  %v10192_v26 = vmax.f32 %v2484_v34, 1e-14  ;;  %v2357_v7 = vmul.f32 %v9319_v58, %v9319_v58  ;;  %v10223_v34 = vpop.f32.mrb[108].mxu1 }
 0x327   :  { %13009 = vst [vmem:[#allocation142_spill] sm:$0xff] %v10173_v59  ;;  %v10190_v3 = vsel %vm3801_vm11, %v3802_v47, %v3800_v28  ;;  %6549 = vrsqrt.f32 %v10186_v12  ;;  %v1647_v41 = vmul.f32 %v9325_v1, %v9325_v1  ;;  %v4146_v63 = vsub.f32 %v10186_v12, %v10137_v27 }
 0x328   :  { %13010 = vst [vmem:[#allocation143_spill] sm:$0xff] %v10190_v3  ;;  %v4017_v32 = vsub.f32 %v10190_v3, %v3355_v8  ;;  %v2078_v35 = vmul.f32 %v6544_v54, %v10113_v33  ;;  %6551 = vrsqrt.f32 %v10188_v2  ;;  %v2421_v48 = vmul.f32 %v9333_v60, %v9333_v60 }
 0x329   :  { %vm2079_vm12 = vcmp.eq.f32.partialorder %v10113_v33, inf  ;;  %vm2081_vm13 = vcmp.eq.f32.partialorder %v10113_v33, 0.0  ;;  %v2082_v58 = vand.u32 2147483648, %v10113_v33  ;;  %vm3358_vm14 = vcmp.eq.f32.partialorder %v10137_v27, inf }
 0x32a   :  { %v10208_v46 = vand.u32 2147483647, %v4017_v32  ;;  %v10214_v1 = vand.u32 2147483647, %v4146_v63  ;;  %v2080_v47 = vsel %vm2079_vm12, %v10113_v33, %v2078_v35  ;;  %6553 = vrsqrt.f32 %v10192_v26  ;;  %v10229_v32 = vpop.f32.mrb[109].mxu0  ;;  %v10231_v63 = vpop.f32.mrb[109].mxu1 }
 0x32b   :  { %v6546_v56 = vpop.eup %6545  ;;  %vm3360_vm15 = vcmp.eq.f32.partialorder %v10137_v27, 0.0  ;;  %v3361_v50 = vand.u32 2147483648, %v10137_v27  ;;  %v2083_v38 = vsel %vm2081_vm13, %v2082_v58, %v2080_v47  ;;  %v1711_v33 = vadd.f32 %v1647_v41, %v1583_v5  ;;  %v13013_v35 = vld [vmem:[#allocation75_spill] sm:$0xff] }
 0x32c   :  { %13011 = vst [vmem:[#allocation144_spill] sm:$0xff] %v10208_v46  ;;  %13012 = vst [vmem:[#allocation145_spill] sm:$0xff] %v10214_v1  ;;  %v6548_v13 = vpop.eup %6547  ;;  %v3357_v60 = vmul.f32 %v6546_v56, %v10137_v27  ;;  %v10226_v8 = vmul.f32 %v9571_v16, %v2083_v38  ;;  %v2485_v54 = vadd.f32 %v2421_v48, %v2357_v7  ;;  %vm2853_vm0 = vcmp.eq.f32.partialorder %v10141_v52, inf  ;;  %v13014_v56 = vld [vmem:[#allocation112_spill] sm:$0xff]  ;;  %v10239_v38 = vpop.f32.mrb[110].mxu0 }
 0x32d   :  { %v2852_v28 = vmul.f32 %v6548_v13, %v10141_v52  ;;  %vm2855_vm1 = vcmp.eq.f32.partialorder %v10141_v52, 0.0  ;;  %v1584_v58 = vmul.f32 %v13013_v35, %v13013_v35  ;;  %v1648_v47 = vmul.f32 %v13014_v56, %v13014_v56  ;;  %v10241_v1 = vpop.f32.mrb[110].mxu1 }
 0x32e   :  { %13015 = vst [vmem:[#allocation75_spill] sm:$0xff] %v10241_v1  ;;  %vm3806_vm2 = vcmp.eq.f32.partialorder %v10186_v12, inf  ;;  %vm3808_vm3 = vcmp.eq.f32.partialorder %v10186_v12, 0.0  ;;  %6555 = vrsqrt.f32 %v10226_v8  ;;  %v2856_v5 = vand.u32 2147483648, %v10141_v52 }
 0x32f   :  { %v3809_v7 = vand.u32 2147483648, %v10186_v12  ;;  %v2854_v41 = vsel %vm2853_vm0, %v10141_v52, %v2852_v28  ;;  %v10249_v48 = vmax.f32 %v1711_v33, 1e-14  ;;  %v10251_v13 = vmax.f32 %v2485_v54, 1e-14 }
 0x330   :  { %v3359_v35 = vsel %vm3358_vm14, %v10137_v27, %v3357_v60  ;;  %v2857_v56 = vsel %vm2855_vm1, %v2856_v5, %v2854_v41  ;;  %vm2086_vm4 = vcmp.eq.f32.partialorder %v10188_v2, inf  ;;  %v1712_v3 = vadd.f32 %v1648_v47, %v1584_v58  ;;  %v13016_v60 = vld [vmem:[#allocation111_spill] sm:$0xff]  ;;  %v13017_v5 = vld [vmem:[#allocation33_spill] sm:$0xff]  ;;  %v10269_v47 = vpop.f32.mrb[111].mxu0 }
 0x331   :  { %v6550_v23 = vpop.eup %6549  ;;  %v10258_v46 = vmul.f32 %v9571_v16, %v2857_v56  ;;  %vm2088_vm5 = vcmp.eq.f32.partialorder %v10188_v2, 0.0  ;;  %v2089_v52 = vand.u32 2147483648, %v10188_v2  ;;  %6557 = vrsqrt.f32 %v10249_v48  ;;  %13018 = vst [vmem:[#allocation112_spill] sm:$0xff] %v10269_v47 }
 0x332   :  { %v6552_v28 = vpop.eup %6551  ;;  %v3805_v33 = vmul.f32 %v6550_v23, %v10186_v12  ;;  %6559 = vrsqrt.f32 %v10251_v13  ;;  %v2358_v54 = vmul.f32 %v13016_v60, %v13016_v60  ;;  %v2422_v58 = vmul.f32 %v13017_v5, %v13017_v5  ;;  %v10276_v23 = vpop.f32.mrb[111].mxu1 }
 0x333   :  { %v3362_v41 = vsel %vm3360_vm15, %v3361_v50, %v3359_v35  ;;  %6561 = vrsqrt.f32 %v10258_v46  ;;  %vm2860_vm6 = vcmp.eq.f32.partialorder %v10192_v26, inf  ;;  %vm2862_vm7 = vcmp.eq.f32.partialorder %v10192_v26, 0.0  ;;  %13019 = vst [vmem:[#allocation111_spill] sm:$0xff] %v10276_v23 }
 0x334   :  { %v6554_v56 = vpop.eup %6553  ;;  %v3807_v60 = vsel %vm3806_vm2, %v10186_v12, %v3805_v33  ;;  %v4147_v5 = vsub.f32 %v10258_v46, %v10226_v8  ;;  %v2085_v59 = vmul.f32 %v6552_v28, %v10188_v2  ;;  %v2863_v27 = vand.u32 2147483648, %v10192_v26 }
 0x335   :  { %v10287_v50 = vsel %vm3808_vm3, %v3809_v7, %v3807_v60  ;;  %vm3365_vm8 = vcmp.eq.f32.partialorder %v10226_v8, inf  ;;  %v2859_v35 = vmul.f32 %v6554_v56, %v10192_v26  ;;  %v10291_v23 = vmax.f32 %v1712_v3, 1e-14 }
 0x336   :  { %13020 = vst [vmem:[#allocation33_spill] sm:$0xff] %v10287_v50  ;;  %v4018_v47 = vsub.f32 %v10287_v50, %v3362_v41  ;;  %v10294_v33 = vand.u32 2147483647, %v4147_v5  ;;  %v2087_v28 = vsel %vm2086_vm4, %v10188_v2, %v2085_v59  ;;  %v2486_v1 = vadd.f32 %v2422_v58, %v2358_v54 }
 0x337   :  { %vm3367_vm9 = vcmp.eq.f32.partialorder %v10226_v8, 0.0  ;;  %v2090_v12 = vsel %vm2088_vm5, %v2089_v52, %v2087_v28  ;;  %v2861_v7 = vsel %vm2860_vm6, %v10192_v26, %v2859_v35  ;;  %6563 = vrsqrt.f32 %v10291_v23 }
 0x338   :  { %13021 = vst [vmem:[#allocation146_spill] sm:$0xff] %v10294_v33  ;;  %v6556_v3 = vpop.eup %6555  ;;  %v10306_v41 = vand.u32 2147483647, %v4018_v47  ;;  %v3368_v56 = vand.u32 2147483648, %v10226_v8  ;;  %v10310_v60 = vmul.f32 %v9571_v16, %v2090_v12  ;;  %v2864_v59 = vsel %vm2862_vm7, %v2863_v27, %v2861_v7 }
 0x339   :  { %v3364_v2 = vmul.f32 %v6556_v3, %v10226_v8  ;;  %v10316_v52 = vmul.f32 %v9571_v16, %v2864_v59  ;;  %v10318_v54 = vmax.f32 %v2486_v1, 1e-14  ;;  %v1585_v58 = vmul.f32 %v9451_v24, %v9451_v24 }
 0x33a   :  { %13022 = vst [vmem:[#allocation147_spill] sm:$0xff] %v10306_v41  ;;  %6565 = vrsqrt.f32 %v10310_v60  ;;  %vm2093_vm10 = vcmp.eq.f32.partialorder %v10249_v48, inf  ;;  %vm2095_vm11 = vcmp.eq.f32.partialorder %v10249_v48, 0.0  ;;  %v2096_v47 = vand.u32 2147483648, %v10249_v48 }
 0x33b   :  { %v6558_v26 = vpop.eup %6557  ;;  %vm3813_vm12 = vcmp.eq.f32.partialorder %v10258_v46, inf  ;;  %vm3815_vm13 = vcmp.eq.f32.partialorder %v10258_v46, 0.0  ;;  %6567 = vrsqrt.f32 %v10316_v52  ;;  %vm2867_vm14 = vcmp.eq.f32.partialorder %v10251_v13, inf }
 0x33c   :  { %v6560_v16 = vpop.eup %6559  ;;  %v3366_v24 = vsel %vm3365_vm8, %v10226_v8, %v3364_v2  ;;  %v3816_v1 = vand.u32 2147483648, %v10258_v46  ;;  %v4148_v5 = vsub.f32 %v10316_v52, %v10310_v60  ;;  %v2092_v27 = vmul.f32 %v6558_v26, %v10249_v48  ;;  %v10348_v2 = vpop.f32.mrb[112].mxu0  ;;  %v10371_v8 = vld [vmem:[%s12693_s3] ss:$0 sm:$0xff] }
 0x33d   :  { %v6562_v35 = vpop.eup %6561  ;;  %v2866_v28 = vmul.f32 %v6560_v16, %v10251_v13  ;;  %vm2869_vm15 = vcmp.eq.f32.partialorder %v10251_v13, 0.0  ;;  %v2870_v12 = vand.u32 2147483648, %v10251_v13  ;;  %6569 = vrsqrt.f32 %v10318_v54  ;;  %v10350_v26 = vpop.f32.mrb[112].mxu1 }
 0x33e   :  { %v3812_v7 = vmul.f32 %v6562_v35, %v10258_v46  ;;  %v10342_v3 = vand.u32 2147483647, %v4148_v5  ;;  %v2094_v59 = vsel %vm2093_vm10, %v10249_v48, %v2092_v27  ;;  %vm2100_vm0 = vcmp.eq.f32.partialorder %v10291_v23, inf  ;;  %v10361_v27 = vpop.f32.mrb[113].mxu0 }
 0x33f   :  { %v3369_v16 = vsel %vm3367_vm9, %v3368_v56, %v3366_v24  ;;  %v2097_v33 = vsel %vm2095_vm11, %v2096_v47, %v2094_v59  ;;  %v2868_v5 = vsel %vm2867_vm14, %v10251_v13, %v2866_v28  ;;  %v1649_v35 = vmul.f32 %v9469_v29, %v9469_v29  ;;  %v10393_v13 = vpop.f32.mrb[114].mxu0 }
 0x340   :  { %13023 = vst [vmem:[#allocation148_spill] sm:$0xff] %v10342_v3  ;;  %v10363_v3 = vpop.f32.mrb[113].mxu1  ;;  %v3814_v50 = vsel %vm3813_vm12, %v10258_v46, %v3812_v7  ;;  %v10374_v48 = vmul.f32 %v10371_v8, %v2097_v33  ;;  %v2871_v56 = vsel %vm2869_vm15, %v2870_v12, %v2868_v5  ;;  %v2359_v29 = vmul.f32 %v9453_v19, %v9453_v19 }
 0x341   :  { %v6564_v47 = vpop.eup %6563  ;;  %v10382_v24 = vsel %vm3815_vm13, %v3816_v1, %v3814_v50  ;;  %v10385_v28 = vmul.f32 %v10371_v8, %v2871_v56  ;;  %v1713_v7 = vadd.f32 %v1649_v35, %v1585_v58  ;;  %v2423_v59 = vmul.f32 %v9492_v45, %v9492_v45  ;;  %v10405_v12 = vpop.f32.mrb[114].mxu1 }
 0x342   :  { %13024 = vst [vmem:[#allocation149_spill] sm:$0xff] %v10382_v24  ;;  %v4019_v33 = vsub.f32 %v10382_v24, %v3369_v16  ;;  %6571 = vrsqrt.f32 %v10374_v48  ;;  %vm2102_vm1 = vcmp.eq.f32.partialorder %v10291_v23, 0.0  ;;  %v2103_v19 = vand.u32 2147483648, %v10291_v23 }
 0x343   :  { %vm3372_vm2 = vcmp.eq.f32.partialorder %v10310_v60, inf  ;;  %vm3374_vm3 = vcmp.eq.f32.partialorder %v10310_v60, 0.0  ;;  %v3375_v46 = vand.u32 2147483648, %v10310_v60  ;;  %6573 = vrsqrt.f32 %v10385_v28 }
 0x344   :  { %v6566_v50 = vpop.eup %6565  ;;  %v10399_v45 = vand.u32 2147483647, %v4019_v33  ;;  %vm3820_vm4 = vcmp.eq.f32.partialorder %v10316_v52, inf  ;;  %v4149_v58 = vsub.f32 %v10385_v28, %v10374_v48  ;;  %v2099_v1 = vmul.f32 %v6564_v47, %v10291_v23 }
 0x345   :  { %v6568_v16 = vpop.eup %6567  ;;  %v3371_v5 = vmul.f32 %v6566_v50, %v10310_v60  ;;  %vm3822_vm5 = vcmp.eq.f32.partialorder %v10316_v52, 0.0  ;;  %v10409_v35 = vmax.f32 %v1713_v7, 1e-14  ;;  %v2487_v56 = vadd.f32 %v2423_v59, %v2359_v29  ;;  %v10425_v29 = vpop.f32.mrb[115].mxu0 }
 0x346   :  { %13025 = vst [vmem:[#allocation150_spill] sm:$0xff] %v10399_v45  ;;  %v3819_v33 = vmul.f32 %v6568_v16, %v10316_v52  ;;  %v3823_v24 = vand.u32 2147483648, %v10316_v52  ;;  %v10413_v45 = vand.u32 2147483647, %v4149_v58  ;;  %v2101_v47 = vsel %vm2100_vm0, %v10291_v23, %v2099_v1 }
 0x347   :  { %v6570_v41 = vpop.eup %6569  ;;  %v3373_v50 = vsel %vm3372_vm2, %v10310_v60, %v3371_v5  ;;  %v2104_v7 = vsel %vm2102_vm1, %v2103_v19, %v2101_v47  ;;  %vm2874_vm6 = vcmp.eq.f32.partialorder %v10318_v54, inf  ;;  %6575 = vrsqrt.f32 %v10409_v35  ;;  %v10461_v47 = vpop.f32.mrb[115].mxu1 }
 0x348   :  { %13026 = vst [vmem:[#allocation151_spill] sm:$0xff] %v10413_v45  ;;  %v3376_v59 = vsel %vm3374_vm3, %v3375_v46, %v3373_v50  ;;  %v3821_v58 = vsel %vm3820_vm4, %v10316_v52, %v3819_v33  ;;  %v10433_v1 = vmul.f32 %v10371_v8, %v2104_v7  ;;  %v2873_v16 = vmul.f32 %v6570_v41, %v10318_v54 }
 0x349   :  { %v10438_v23 = vsel %vm3822_vm5, %v3823_v24, %v3821_v58  ;;  %v10440_v19 = vmax.f32 %v2487_v56, 1e-14  ;;  %v1586_v5 = vmul.f32 %v9522_v17, %v9522_v17  ;;  %v1650_v60 = vmul.f32 %v9536_v9, %v9536_v9  ;;  %v13029_v58 = vld [vmem:[#allocation39_spill] sm:$0xff] }
 0x34a   :  { %13027 = vst [vmem:[#allocation152_spill] sm:$0xff] %v10438_v23  ;;  %v4020_v46 = vsub.f32 %v10438_v23, %v3376_v59  ;;  %6577 = vrsqrt.f32 %v10433_v1  ;;  %vm2876_vm7 = vcmp.eq.f32.partialorder %v10318_v54, 0.0  ;;  %v2877_v41 = vand.u32 2147483648, %v10318_v54 }
 0x34b   :  { %vm3379_vm8 = vcmp.eq.f32.partialorder %v10374_v48, inf  ;;  %vm3381_vm9 = vcmp.eq.f32.partialorder %v10374_v48, 0.0  ;;  %v2875_v52 = vsel %vm2874_vm6, %v10318_v54, %v2873_v16  ;;  %6579 = vrsqrt.f32 %v10440_v19 }
 0x34c   :  { %v6572_v17 = vpop.eup %6571  ;;  %v10456_v9 = vand.u32 2147483647, %v4020_v46  ;;  %v3382_v24 = vand.u32 2147483648, %v10374_v48  ;;  %v2878_v56 = vsel %vm2876_vm7, %v2877_v41, %v2875_v52  ;;  %v2360_v33 = vmul.f32 %v9524_v15, %v9524_v15 }
 0x34d   :  { %v6574_v50 = vpop.eup %6573  ;;  %v3378_v7 = vmul.f32 %v6572_v17, %v10374_v48  ;;  %v10465_v59 = vmul.f32 %v10371_v8, %v2878_v56  ;;  %v1714_v54 = vadd.f32 %v1650_v60, %v1586_v5  ;;  %v2424_v16 = vmul.f32 %v13029_v58, %v13029_v58 }
 0x34e   :  { %13028 = vst [vmem:[#allocation153_spill] sm:$0xff] %v10456_v9  ;;  %v3826_v46 = vmul.f32 %v6574_v50, %v10385_v28  ;;  %vm3827_vm10 = vcmp.eq.f32.partialorder %v10385_v28, inf  ;;  %v1587_v41 = vmul.f32 %v9629_v6, %v9629_v6  ;;  %v1651_v15 = vmul.f32 %v9640_v55, %v9640_v55 }
 0x34f   :  { %v3380_v52 = vsel %vm3379_vm8, %v10374_v48, %v3378_v7  ;;  %vm3829_vm11 = vcmp.eq.f32.partialorder %v10385_v28, 0.0  ;;  %v3830_v5 = vand.u32 2147483648, %v10385_v28  ;;  %6581 = vrsqrt.f32 %v10465_v59 }
 0x350   :  { %v3383_v60 = vsel %vm3381_vm9, %v3382_v24, %v3380_v52  ;;  %v3828_v17 = vsel %vm3827_vm10, %v10385_v28, %v3826_v46  ;;  %v4150_v6 = vsub.f32 %v10465_v59, %v10433_v1  ;;  %v2361_v55 = vmul.f32 %v9631_v39, %v9631_v39 }
 0x351   :  { %v6576_v56 = vpop.eup %6575  ;;  %v10488_v50 = vsel %vm3829_vm11, %v3830_v5, %v3828_v17  ;;  %v10490_v7 = vmax.f32 %v1714_v54, 1e-14  ;;  %v2488_v58 = vadd.f32 %v2424_v16, %v2360_v33  ;;  %v1715_v45 = vadd.f32 %v1651_v15, %v1587_v41  ;;  %v10511_v5 = vpop.f32.mrb[116].mxu0 }
 0x352   :  { %13030 = vst [vmem:[#allocation39_spill] sm:$0xff] %v10488_v50  ;;  %v4021_v23 = vsub.f32 %v10488_v50, %v3383_v60  ;;  %v10493_v9 = vand.u32 2147483647, %v4150_v6  ;;  %v2106_v48 = vmul.f32 %v6576_v56, %v10409_v35  ;;  %v2425_v28 = vmul.f32 %v9642_v18, %v9642_v18  ;;  %v10513_v60 = vpop.f32.mrb[116].mxu1 }
 0x353   :  { %vm2107_vm12 = vcmp.eq.f32.partialorder %v10409_v35, inf  ;;  %vm2109_vm13 = vcmp.eq.f32.partialorder %v10409_v35, 0.0  ;;  %v2110_v39 = vand.u32 2147483648, %v10409_v35  ;;  %6583 = vrsqrt.f32 %v10490_v7  ;;  %v10523_v17 = vpop.f32.mrb[117].mxu1 }
 0x354   :  { %13031 = vst [vmem:[#allocation154_spill] sm:$0xff] %v10493_v9  ;;  %v6578_v24 = vpop.eup %6577  ;;  %v10502_v33 = vand.u32 2147483647, %v4021_v23  ;;  %v2108_v54 = vsel %vm2107_vm12, %v10409_v35, %v2106_v48  ;;  %v10505_v16 = vmax.f32 %v2488_v58, 1e-14  ;;  %vm3386_vm14 = vcmp.eq.f32.partialorder %v10433_v1, inf }
 0x355   :  { %v10507_v46 = vmax.f32 %v1715_v45, 1e-14  ;;  %v6580_v41 = vpop.eup %6579  ;;  %v3385_v18 = vmul.f32 %v6578_v24, %v10433_v1  ;;  %v2111_v15 = vsel %vm2109_vm13, %v2110_v39, %v2108_v54  ;;  %v2489_v52 = vadd.f32 %v2425_v28, %v2361_v55  ;;  %v10521_v45 = vpop.f32.mrb[117].mxu0  ;;  %13033 = vst [vmem:[#allocation156_spill] sm:$0xff] %v10523_v17  ;;  %v13034_v39 = vld [vmem:[#allocation118_spill] sm:$0xff] }
 0x356   :  { %13032 = vst [vmem:[#allocation155_spill] sm:$0xff] %v10502_v33  ;;  %vm3388_vm15 = vcmp.eq.f32.partialorder %v10433_v1, 0.0  ;;  %v10517_v23 = vmul.f32 %v10371_v8, %v2111_v15  ;;  %v2880_v35 = vmul.f32 %v6580_v41, %v10440_v19  ;;  %6585 = vrsqrt.f32 %v10505_v16  ;;  %v10538_v54 = vpop.f32.mrb[118].mxu0  ;;  %v10540_v41 = vpop.f32.mrb[118].mxu1 }
 0x357   :  { %v3387_v6 = vsel %vm3386_vm14, %v10433_v1, %v3385_v18  ;;  %v3389_v55 = vand.u32 2147483648, %v10433_v1  ;;  %vm2881_vm0 = vcmp.eq.f32.partialorder %v10440_v19, inf  ;;  %6587 = vrsqrt.f32 %v10507_v46  ;;  %13035 = vst [vmem:[#allocation118_spill] sm:$0xff] %v10540_v41  ;;  %v10547_v33 = vpop.f32.mrb[119].mxu0  ;;  %v13037_v41 = vld [vmem:[#allocation121_spill] sm:$0xff] }
 0x358   :  { %vm3834_vm1 = vcmp.eq.f32.partialorder %v10465_v59, inf  ;;  %6589 = vrsqrt.f32 %v10517_v23  ;;  %vm2883_vm2 = vcmp.eq.f32.partialorder %v10440_v19, 0.0  ;;  %v2884_v56 = vand.u32 2147483648, %v10440_v19 }
 0x359   :  { %v6582_v58 = vpop.eup %6581  ;;  %vm3836_vm3 = vcmp.eq.f32.partialorder %v10465_v59, 0.0  ;;  %v3837_v48 = vand.u32 2147483648, %v10465_v59  ;;  %v2882_v28 = vsel %vm2881_vm0, %v10440_v19, %v2880_v35  ;;  %v1588_v24 = vmul.f32 %v13034_v39, %v13034_v39  ;;  %v13036_v19 = vld [vmem:[#allocation119_spill] sm:$0xff] }
 0x35a   :  { %v3390_v18 = vsel %vm3388_vm15, %v3389_v55, %v3387_v6  ;;  %v3833_v15 = vmul.f32 %v6582_v58, %v10465_v59  ;;  %v2885_v9 = vsel %vm2883_vm2, %v2884_v56, %v2882_v28  ;;  %v10545_v50 = vmax.f32 %v2489_v52, 1e-14  ;;  %v10571_v55 = vpop.f32.mrb[119].mxu1 }
 0x35b   :  { %v10550_v17 = vmul.f32 %v10371_v8, %v2885_v9  ;;  %v2362_v35 = vmul.f32 %v13036_v19, %v13036_v19  ;;  %v1652_v39 = vmul.f32 %v9672_v42, %v9672_v42  ;;  %v2426_v1 = vmul.f32 %v13037_v41, %v13037_v41  ;;  %13039 = vst [vmem:[#allocation121_spill] sm:$0xff] %v10571_v55 }
 0x35c   :  { %v3835_v6 = vsel %vm3834_vm1, %v10465_v59, %v3833_v15  ;;  %vm2114_vm4 = vcmp.eq.f32.partialorder %v10490_v7, inf  ;;  %vm2116_vm5 = vcmp.eq.f32.partialorder %v10490_v7, 0.0  ;;  %6591 = vrsqrt.f32 %v10545_v50 }
 0x35d   :  { %v6584_v9 = vpop.eup %6583  ;;  %v10566_v52 = vsel %vm3836_vm3, %v3837_v48, %v3835_v6  ;;  %6593 = vrsqrt.f32 %v10550_v17  ;;  %v2117_v42 = vand.u32 2147483648, %v10490_v7  ;;  %vm2888_vm6 = vcmp.eq.f32.partialorder %v10505_v16, inf }
 0x35e   :  { %13038 = vst [vmem:[#allocation119_spill] sm:$0xff] %v10566_v52  ;;  %v4022_v56 = vsub.f32 %v10566_v52, %v3390_v18  ;;  %v4151_v58 = vsub.f32 %v10550_v17, %v10517_v23  ;;  %v2113_v28 = vmul.f32 %v6584_v9, %v10490_v7  ;;  %vm2890_vm7 = vcmp.eq.f32.partialorder %v10505_v16, 0.0 }
 0x35f   :  { %vm3393_vm8 = vcmp.eq.f32.partialorder %v10517_v23, inf  ;;  %v2891_v59 = vand.u32 2147483648, %v10505_v16  ;;  %v1716_v48 = vadd.f32 %v1652_v39, %v1588_v24  ;;  %v2490_v41 = vadd.f32 %v2426_v1, %v2362_v35 }
 0x360   :  { %v6586_v15 = vpop.eup %6585  ;;  %v10580_v19 = vand.u32 2147483647, %v4022_v56  ;;  %vm3395_vm9 = vcmp.eq.f32.partialorder %v10517_v23, 0.0  ;;  %v3396_v18 = vand.u32 2147483648, %v10517_v23  ;;  %v10584_v6 = vand.u32 2147483647, %v4151_v58 }
 0x361   :  { %v2115_v9 = vsel %vm2114_vm4, %v10490_v7, %v2113_v28  ;;  %v6588_v52 = vpop.eup %6587  ;;  %v2887_v24 = vmul.f32 %v6586_v15, %v10505_v16  ;;  %vm2121_vm10 = vcmp.eq.f32.partialorder %v10507_v46, inf  ;;  %v10593_v35 = vmax.f32 %v1716_v48, 1e-14 }
 0x362   :  { %13040 = vst [vmem:[#allocation157_spill] sm:$0xff] %v10580_v19  ;;  %13041 = vst [vmem:[#allocation158_spill] sm:$0xff] %v10584_v6  ;;  %v2118_v55 = vsel %vm2116_vm5, %v2117_v42, %v2115_v9  ;;  %v6590_v39 = vpop.eup %6589  ;;  %v2120_v56 = vmul.f32 %v6588_v52, %v10507_v46  ;;  %vm2123_vm11 = vcmp.eq.f32.partialorder %v10507_v46, 0.0  ;;  %v2124_v58 = vand.u32 2147483648, %v10507_v46  ;;  %v10612_v52 = vpop.f32.mrb[120].mxu0 }
 0x363   :  { %v10596_v1 = vmul.f32 %v10371_v8, %v2118_v55  ;;  %v3392_v28 = vmul.f32 %v6590_v39, %v10517_v23  ;;  %v2889_v7 = vsel %vm2888_vm6, %v10505_v16, %v2887_v24  ;;  %6595 = vrsqrt.f32 %v10593_v35  ;;  %v10614_v55 = vpop.f32.mrb[120].mxu1  ;;  %v10623_v9 = vpop.f32.mrb[121].mxu0 }
 0x364   :  { %v10606_v42 = vmax.f32 %v2490_v41, 1e-14  ;;  %vm3841_vm12 = vcmp.eq.f32.partialorder %v10550_v17, inf  ;;  %vm2895_vm13 = vcmp.eq.f32.partialorder %v10545_v50, inf  ;;  %vm2897_vm14 = vcmp.eq.f32.partialorder %v10545_v50, 0.0  ;;  %13042 = vst [vmem:[#allocation159_spill] sm:$0xff] %v10623_v9 }
 0x365   :  { %6597 = vrsqrt.f32 %v10596_v1  ;;  %vm3843_vm15 = vcmp.eq.f32.partialorder %v10550_v17, 0.0  ;;  %v3844_v48 = vand.u32 2147483648, %v10550_v17  ;;  %v2892_v41 = vsel %vm2890_vm7, %v2891_v59, %v2889_v7 }
 0x366   :  { %v2122_v15 = vsel %vm2121_vm10, %v10507_v46, %v2120_v56  ;;  %v6592_v24 = vpop.eup %6591  ;;  %v3394_v39 = vsel %vm3393_vm8, %v10517_v23, %v3392_v28  ;;  %v10629_v6 = vmul.f32 %v10371_v8, %v2892_v41  ;;  %v2898_v16 = vand.u32 2147483648, %v10545_v50 }
 0x367   :  { %v2125_v19 = vsel %vm2123_vm11, %v2124_v58, %v2122_v15  ;;  %v6594_v59 = vpop.eup %6593  ;;  %v2894_v56 = vmul.f32 %v6592_v24, %v10545_v50  ;;  %6599 = vrsqrt.f32 %v10606_v42  ;;  %v1589_v9 = vmul.f32 %v9772_v14, %v9772_v14  ;;  %v13043_v15 = vld [vmem:[#allocation88_spill] sm:$0xff]  ;;  %v10654_v24 = vpop.f32.mrb[121].mxu1 }
 0x368   :  { %v10635_v7 = vmul.f32 %v10371_v8, %v2125_v19  ;;  %v3840_v28 = vmul.f32 %v6594_v59, %v10550_v17  ;;  %6601 = vrsqrt.f32 %v10629_v6  ;;  %v2363_v46 = vmul.f32 %v9774_v57, %v9774_v57  ;;  %13044 = vst [vmem:[#allocation88_spill] sm:$0xff] %v10654_v24 }
 0x369   :  { %v1653_v58 = vmul.f32 %v9784_v44, %v9784_v44  ;;  %v3397_v19 = vsel %vm3395_vm9, %v3396_v18, %v3394_v39  ;;  %v4152_v41 = vsub.f32 %v10629_v6, %v10596_v1  ;;  %v2427_v14 = vmul.f32 %v13043_v15, %v13043_v15 }
 0x36a   :  { %6603 = vrsqrt.f32 %v10635_v7  ;;  %v3842_v57 = vsel %vm3841_vm12, %v10550_v17, %v3840_v28  ;;  %vm3400_vm0 = vcmp.eq.f32.partialorder %v10596_v1, inf  ;;  %v2896_v44 = vsel %vm2895_vm13, %v10545_v50, %v2894_v56  ;;  %v10683_v50 = vpop.f32.mrb[122].mxu0 }
 0x36b   :  { %vm2128_vm1 = vcmp.eq.f32.partialorder %v10593_v35, inf  ;;  %v10666_v23 = vsel %vm3843_vm15, %v3844_v48, %v3842_v57  ;;  %vm3402_vm2 = vcmp.eq.f32.partialorder %v10596_v1, 0.0  ;;  %v10669_v18 = vand.u32 2147483647, %v4152_v41 }
 0x36c   :  { %13045 = vst [vmem:[#allocation160_spill] sm:$0xff] %v10666_v23  ;;  %v2899_v39 = vsel %vm2897_vm14, %v2898_v16, %v2896_v44  ;;  %v4023_v59 = vsub.f32 %v10666_v23, %v3397_v19  ;;  %v3403_v28 = vand.u32 2147483648, %v10596_v1  ;;  %v1717_v56 = vadd.f32 %v1653_v58, %v1589_v9  ;;  %v10685_v16 = vpop.f32.mrb[122].mxu1 }
 0x36d   :  { %13046 = vst [vmem:[#allocation161_spill] sm:$0xff] %v10669_v18  ;;  %v10676_v15 = vmul.f32 %v10371_v8, %v2899_v39  ;;  %v6596_v24 = vpop.eup %6595  ;;  %vm2130_vm3 = vcmp.eq.f32.partialorder %v10593_v35, 0.0  ;;  %v2491_v17 = vadd.f32 %v2427_v14, %v2363_v46  ;;  %v1590_v48 = vmul.f32 %v9832_v20, %v9832_v20  ;;  %v10692_v46 = vpop.f32.mrb[123].mxu0 }
 0x36e   :  { %v1654_v41 = vmul.f32 %v9842_v11, %v9842_v11  ;;  %v10687_v57 = vand.u32 2147483647, %v4023_v59  ;;  %v2131_v9 = vand.u32 2147483648, %v10593_v35  ;;  %vm2902_vm4 = vcmp.eq.f32.partialorder %v10606_v42, inf }
 0x36f   :  { %v6598_v19 = vpop.eup %6597  ;;  %6605 = vrsqrt.f32 %v10676_v15  ;;  %vm3848_vm5 = vcmp.eq.f32.partialorder %v10629_v6, inf  ;;  %v4153_v11 = vsub.f32 %v10676_v15, %v10635_v7  ;;  %v2127_v58 = vmul.f32 %v6596_v24, %v10593_v35 }
 0x370   :  { %13047 = vst [vmem:[#allocation162_spill] sm:$0xff] %v10687_v57  ;;  %v3399_v20 = vmul.f32 %v6598_v19, %v10596_v1  ;;  %vm3850_vm6 = vcmp.eq.f32.partialorder %v10629_v6, 0.0  ;;  %v10700_v14 = vmax.f32 %v1717_v56, 1e-14  ;;  %v10702_v44 = vmax.f32 %v2491_v17, 1e-14 }
 0x371   :  { %v1718_v39 = vadd.f32 %v1654_v41, %v1590_v48  ;;  %v6600_v59 = vpop.eup %6599  ;;  %v3851_v19 = vand.u32 2147483648, %v10629_v6  ;;  %v10708_v23 = vand.u32 2147483647, %v4153_v11  ;;  %v2129_v24 = vsel %vm2128_vm1, %v10593_v35, %v2127_v58  ;;  %v10713_v57 = vpop.f32.mrb[123].mxu1 }
 0x372   :  { %v3401_v18 = vsel %vm3400_vm0, %v10596_v1, %v3399_v20  ;;  %13049 = vst [vmem:[#allocation164_spill] sm:$0xff] %v10713_v57  ;;  %v6602_v56 = vpop.eup %6601  ;;  %v2132_v17 = vsel %vm2130_vm3, %v2131_v9, %v2129_v24  ;;  %v2901_v48 = vmul.f32 %v6600_v59, %v10606_v42  ;;  %v2905_v41 = vand.u32 2147483648, %v10606_v42 }
 0x373   :  { %13048 = vst [vmem:[#allocation163_spill] sm:$0xff] %v10708_v23  ;;  %6607 = vrsqrt.f32 %v10700_v14  ;;  %v3847_v11 = vmul.f32 %v6602_v56, %v10629_v6  ;;  %v10722_v23 = vmul.f32 %v10371_v8, %v2132_v17  ;;  %v2364_v58 = vmul.f32 %v9834_v62, %v9834_v62 }
 0x374   :  { %v6604_v20 = vpop.eup %6603  ;;  %v2428_v57 = vmul.f32 %v9855_v4, %v9855_v4  ;;  %v3404_v35 = vsel %vm3402_vm2, %v3403_v28, %v3401_v18  ;;  %v2903_v59 = vsel %vm2902_vm4, %v10606_v42, %v2901_v48  ;;  %6609 = vrsqrt.f32 %v10702_v44 }
 0x375   :  { %v3406_v9 = vmul.f32 %v6604_v20, %v10635_v7  ;;  %v3849_v24 = vsel %vm3848_vm5, %v10629_v6, %v3847_v11  ;;  %vm3407_vm7 = vcmp.eq.f32.partialorder %v10635_v7, inf  ;;  %6611 = vrsqrt.f32 %v10722_v23 }
 0x376   :  { %vm2904_vm8 = vcmp.eq.f32.partialorder %v10606_v42, 0.0  ;;  %v10743_v62 = vsel %vm3850_vm6, %v3851_v19, %v3849_v24  ;;  %vm3409_vm9 = vcmp.eq.f32.partialorder %v10635_v7, 0.0  ;;  %v3410_v4 = vand.u32 2147483648, %v10635_v7  ;;  %v10784_v24 = vpop.f32.mrb[124].mxu0 }
 0x377   :  { %13050 = vst [vmem:[#allocation165_spill] sm:$0xff] %v10743_v62  ;;  %v2906_v1 = vsel %vm2904_vm8, %v2905_v41, %v2903_v59  ;;  %v4024_v18 = vsub.f32 %v10743_v62, %v3404_v35  ;;  %v3408_v28 = vsel %vm3407_vm7, %v10635_v7, %v3406_v9  ;;  %vm3855_vm10 = vcmp.eq.f32.partialorder %v10676_v15, inf }
 0x378   :  { %v10751_v56 = vmul.f32 %v10371_v8, %v2906_v1  ;;  %vm3857_vm11 = vcmp.eq.f32.partialorder %v10676_v15, 0.0  ;;  %v3858_v6 = vand.u32 2147483648, %v10676_v15  ;;  %v10755_v42 = vmax.f32 %v1718_v39, 1e-14 }
 0x379   :  { %v6606_v17 = vpop.eup %6605  ;;  %v2492_v19 = vadd.f32 %v2428_v57, %v2364_v58  ;;  %v10757_v48 = vand.u32 2147483647, %v4024_v18  ;;  %v1591_v20 = vmul.f32 %v9912_v30, %v9912_v30  ;;  %v3411_v11 = vsel %vm3409_vm9, %v3410_v4, %v3408_v28  ;;  %v10786_v4 = vpop.f32.mrb[124].mxu1 }
 0x37a   :  { %v3854_v41 = vmul.f32 %v6606_v17, %v10676_v15  ;;  %6613 = vrsqrt.f32 %v10751_v56  ;;  %v4154_v35 = vsub.f32 %v10751_v56, %v10722_v23  ;;  %vm2135_vm12 = vcmp.eq.f32.partialorder %v10700_v14, inf  ;;  %v10794_v17 = vpop.f32.mrb[125].mxu0 }
 0x37b   :  { %6615 = vrsqrt.f32 %v10755_v42  ;;  %vm3414_vm13 = vcmp.eq.f32.partialorder %v10722_v23, inf  ;;  %vm2137_vm14 = vcmp.eq.f32.partialorder %v10700_v14, 0.0  ;;  %v2138_v39 = vand.u32 2147483648, %v10700_v14 }
 0x37c   :  { %v3856_v57 = vsel %vm3855_vm10, %v10676_v15, %v3854_v41  ;;  %vm3416_vm15 = vcmp.eq.f32.partialorder %v10722_v23, 0.0  ;;  %v10778_v7 = vand.u32 2147483647, %v4154_v35  ;;  %v10780_v9 = vmax.f32 %v2492_v19, 1e-14  ;;  %v10806_v35 = vpop.f32.mrb[125].mxu1 }
 0x37d   :  { %v6608_v58 = vpop.eup %6607  ;;  %v10775_v30 = vsel %vm3857_vm11, %v3858_v6, %v3856_v57  ;;  %v2365_v59 = vmul.f32 %v9914_v10, %v9914_v10  ;;  %v1655_v15 = vmul.f32 %v9920_v0, %v9920_v0  ;;  %v2429_v28 = vmul.f32 %v9922_v49, %v9922_v49 }
 0x37e   :  { %13051 = vst [vmem:[#allocation166_spill] sm:$0xff] %v10775_v30  ;;  %13052 = vst [vmem:[#allocation167_spill] sm:$0xff] %v10778_v7  ;;  %v4025_v1 = vsub.f32 %v10775_v30, %v3411_v11  ;;  %v2134_v18 = vmul.f32 %v6608_v58, %v10700_v14  ;;  %v6610_v6 = vpop.eup %6609  ;;  %v3417_v19 = vand.u32 2147483648, %v10722_v23  ;;  %vm2909_vm0 = vcmp.eq.f32.partialorder %v10702_v44, inf }
 0x37f   :  { %vm2911_vm1 = vcmp.eq.f32.partialorder %v10702_v44, 0.0  ;;  %6617 = vrsqrt.f32 %v10780_v9  ;;  %v6612_v10 = vpop.eup %6611  ;;  %v2908_v49 = vmul.f32 %v6610_v6, %v10702_v44  ;;  %v1719_v11 = vadd.f32 %v1655_v15, %v1591_v20 }
 0x380   :  { %v10800_v41 = vand.u32 2147483647, %v4025_v1  ;;  %v2136_v0 = vsel %vm2135_vm12, %v10700_v14, %v2134_v18  ;;  %v3413_v57 = vmul.f32 %v6612_v10, %v10722_v23  ;;  %v2912_v7 = vand.u32 2147483648, %v10702_v44 }
 0x381   :  { %v2139_v58 = vsel %vm2137_vm14, %v2138_v39, %v2136_v0  ;;  %v2493_v30 = vadd.f32 %v2429_v28, %v2365_v59  ;;  %vm3862_vm2 = vcmp.eq.f32.partialorder %v10751_v56, inf  ;;  %v2910_v18 = vsel %vm2909_vm0, %v10702_v44, %v2908_v49  ;;  %v10842_v49 = vpop.f32.mrb[126].mxu0 }
 0x382   :  { %13053 = vst [vmem:[#allocation168_spill] sm:$0xff] %v10800_v41  ;;  %v10814_v1 = vmul.f32 %v10371_v8, %v2139_v58  ;;  %v10817_v62 = vmax.f32 %v1719_v11, 1e-14  ;;  %v3415_v20 = vsel %vm3414_vm13, %v10722_v23, %v3413_v57  ;;  %vm3864_vm3 = vcmp.eq.f32.partialorder %v10751_v56, 0.0  ;;  %v10844_v11 = vpop.f32.mrb[126].mxu1 }
 0x383   :  { %v3865_v14 = vand.u32 2147483648, %v10751_v56  ;;  %v2913_v39 = vsel %vm2911_vm1, %v2912_v7, %v2910_v18  ;;  %vm2142_vm4 = vcmp.eq.f32.partialorder %v10755_v42, inf  ;;  %vm2144_vm5 = vcmp.eq.f32.partialorder %v10755_v42, 0.0 }
 0x384   :  { %v6614_v59 = vpop.eup %6613  ;;  %6619 = vrsqrt.f32 %v10814_v1  ;;  %v2145_v15 = vand.u32 2147483648, %v10755_v42  ;;  %v10832_v10 = vmul.f32 %v10371_v8, %v2913_v39  ;;  %v10835_v0 = vmax.f32 %v2493_v30, 1e-14 }
 0x385   :  { %v6616_v28 = vpop.eup %6615  ;;  %v3861_v6 = vmul.f32 %v6614_v59, %v10751_v56  ;;  %6621 = vrsqrt.f32 %v10817_v62  ;;  %v3418_v44 = vsel %vm3416_vm15, %v3417_v19, %v3415_v20  ;;  %vm2916_vm6 = vcmp.eq.f32.partialorder %v10780_v9, inf  ;;  %v10854_v19 = vpop.f32.mrb[127].mxu0 }
 0x386   :  { %v2141_v7 = vmul.f32 %v6616_v28, %v10755_v42  ;;  %vm2918_vm7 = vcmp.eq.f32.partialorder %v10780_v9, 0.0  ;;  %6623 = vrsqrt.f32 %v10832_v10  ;;  %v1592_v23 = vmul.f32 %v9953_v22, %v9953_v22  ;;  %v10866_v59 = vpop.f32.mrb[127].mxu1 }
 0x387   :  { %v3863_v57 = vsel %vm3862_vm2, %v10751_v56, %v3861_v6  ;;  %v1656_v30 = vmul.f32 %v9961_v53, %v9961_v53  ;;  %v4155_v18 = vsub.f32 %v10832_v10, %v10814_v1  ;;  %v2919_v39 = vand.u32 2147483648, %v10780_v9  ;;  %v13055_v56 = vld [vmem:[#allocation132_spill] sm:$0xff] }
 0x388   :  { %v10858_v58 = vsel %vm3864_vm3, %v3865_v14, %v3863_v57  ;;  %v2143_v20 = vsel %vm2142_vm4, %v10755_v42, %v2141_v7  ;;  %6625 = vrsqrt.f32 %v10835_v0  ;;  %v2366_v14 = vmul.f32 %v13055_v56, %v13055_v56 }
 0x389   :  { %13054 = vst [vmem:[#allocation169_spill] sm:$0xff] %v10858_v58  ;;  %v6618_v22 = vpop.eup %6617  ;;  %v4026_v53 = vsub.f32 %v10858_v58, %v3418_v44  ;;  %v2146_v28 = vsel %vm2144_vm5, %v2145_v15, %v2143_v20  ;;  %vm3421_vm8 = vcmp.eq.f32.partialorder %v10814_v1, inf  ;;  %v10875_v6 = vand.u32 2147483647, %v4155_v18  ;;  %v13058_v15 = vld [vmem:[#allocation133_spill] sm:$0xff] }
 0x38a   :  { %v10878_v7 = vmul.f32 %v10371_v8, %v2146_v28  ;;  %v2915_v57 = vmul.f32 %v6618_v22, %v10780_v9  ;;  %vm3423_vm9 = vcmp.eq.f32.partialorder %v10814_v1, 0.0  ;;  %v1720_v42 = vadd.f32 %v1656_v30, %v1592_v23 }
 0x38b   :  { %13056 = vst [vmem:[#allocation132_spill] sm:$0xff] %v10875_v6  ;;  %v10881_v41 = vand.u32 2147483647, %v4026_v53  ;;  %v2430_v44 = vmul.f32 %v13058_v15, %v13058_v15  ;;  %v3424_v20 = vand.u32 2147483648, %v10814_v1  ;;  %vm2149_vm10 = vcmp.eq.f32.partialorder %v10817_v62, inf }
 0x38c   :  { %6627 = vrsqrt.f32 %v10878_v7  ;;  %vm2151_vm11 = vcmp.eq.f32.partialorder %v10817_v62, 0.0  ;;  %v2917_v18 = vsel %vm2916_vm6, %v10780_v9, %v2915_v57  ;;  %v2152_v22 = vand.u32 2147483648, %v10817_v62 }
 0x38d   :  { %13057 = vst [vmem:[#allocation170_spill] sm:$0xff] %v10881_v41  ;;  %v10894_v53 = vmax.f32 %v1720_v42, 1e-14  ;;  %v2494_v23 = vadd.f32 %v2430_v44, %v2366_v14  ;;  %vm3869_vm12 = vcmp.eq.f32.partialorder %v10832_v10, inf  ;;  %vm3871_vm13 = vcmp.eq.f32.partialorder %v10832_v10, 0.0 }
 0x38e   :  { %v6620_v30 = vpop.eup %6619  ;;  %v3872_v28 = vand.u32 2147483648, %v10832_v10  ;;  %v2920_v56 = vsel %vm2918_vm7, %v2919_v39, %v2917_v18  ;;  %vm2923_vm14 = vcmp.eq.f32.partialorder %v10835_v0, inf  ;;  %vm2925_vm15 = vcmp.eq.f32.partialorder %v10835_v0, 0.0 }
 0x38f   :  { %v6622_v15 = vpop.eup %6621  ;;  %v3420_v6 = vmul.f32 %v6620_v30, %v10814_v1  ;;  %v10903_v57 = vmul.f32 %v10371_v8, %v2920_v56  ;;  %6629 = vrsqrt.f32 %v10894_v53  ;;  %v2926_v42 = vand.u32 2147483648, %v10835_v0 }
 0x390   :  { %v2148_v14 = vmul.f32 %v6622_v15, %v10817_v62  ;;  %v10910_v44 = vmax.f32 %v2494_v23, 1e-14  ;;  %v6624_v9 = vpop.eup %6623  ;;  %v1593_v18 = vmul.f32 %v10051_v40, %v10051_v40  ;;  %v1657_v30 = vmul.f32 %v10059_v37, %v10059_v37 }
 0x391   :  { %v3422_v39 = vsel %vm3421_vm8, %v10814_v1, %v3420_v6  ;;  %6631 = vrsqrt.f32 %v10903_v57  ;;  %v3868_v56 = vmul.f32 %v6624_v9, %v10832_v10  ;;  %v4156_v15 = vsub.f32 %v10903_v57, %v10878_v7 }
 0x392   :  { %v2367_v23 = vmul.f32 %v10053_v51, %v10053_v51  ;;  %v2431_v58 = vmul.f32 %v10077_v25, %v10077_v25  ;;  %v6626_v6 = vpop.eup %6625  ;;  %v3425_v41 = vsel %vm3423_vm9, %v3424_v20, %v3422_v39  ;;  %vm3428_vm0 = vcmp.eq.f32.partialorder %v10878_v7, inf }
 0x393   :  { %v2150_v40 = vsel %vm2149_vm10, %v10817_v62, %v2148_v14  ;;  %6633 = vrsqrt.f32 %v10910_v44  ;;  %v3870_v37 = vsel %vm3869_vm12, %v10832_v10, %v3868_v56  ;;  %v10937_v51 = vand.u32 2147483647, %v4156_v15 }
 0x394   :  { %v2153_v25 = vsel %vm2151_vm11, %v2152_v22, %v2150_v40  ;;  %v2922_v1 = vmul.f32 %v6626_v6, %v10835_v0  ;;  %v10944_v20 = vsel %vm3871_vm13, %v3872_v28, %v3870_v37  ;;  %vm3430_vm1 = vcmp.eq.f32.partialorder %v10878_v7, 0.0 }
 0x395   :  { %13059 = vst [vmem:[#allocation133_spill] sm:$0xff] %v10937_v51  ;;  %13060 = vst [vmem:[#allocation171_spill] sm:$0xff] %v10944_v20  ;;  %v10948_v14 = vmul.f32 %v10371_v8, %v2153_v25  ;;  %v1721_v9 = vadd.f32 %v1657_v30, %v1593_v18  ;;  %v4027_v56 = vsub.f32 %v10944_v20, %v3425_v41  ;;  %v3431_v15 = vand.u32 2147483648, %v10878_v7 }
 0x396   :  { %v6628_v39 = vpop.eup %6627  ;;  %v2924_v62 = vsel %vm2923_vm14, %v10835_v0, %v2922_v1  ;;  %v2495_v22 = vadd.f32 %v2431_v58, %v2367_v23  ;;  %vm2156_vm2 = vcmp.eq.f32.partialorder %v10894_v53, inf  ;;  %vm2158_vm3 = vcmp.eq.f32.partialorder %v10894_v53, 0.0 }
 0x397   :  { %v3427_v10 = vmul.f32 %v6628_v39, %v10878_v7  ;;  %6635 = vrsqrt.f32 %v10948_v14  ;;  %v10959_v28 = vand.u32 2147483647, %v4027_v56  ;;  %v2927_v41 = vsel %vm2925_vm15, %v2926_v42, %v2924_v62 }
 0x398   :  { %v2159_v18 = vand.u32 2147483648, %v10894_v53  ;;  %v10964_v30 = vmax.f32 %v1721_v9, 1e-14  ;;  %vm3876_vm4 = vcmp.eq.f32.partialorder %v10903_v57, inf  ;;  %vm3878_vm5 = vcmp.eq.f32.partialorder %v10903_v57, 0.0 }
 0x399   :  { %v6630_v6 = vpop.eup %6629  ;;  %v10969_v58 = vmul.f32 %v10371_v8, %v2927_v41  ;;  %v10971_v23 = vmax.f32 %v2495_v22, 1e-14  ;;  %v3429_v40 = vsel %vm3428_vm0, %v10878_v7, %v3427_v10  ;;  %v3879_v0 = vand.u32 2147483648, %v10903_v57 }
 0x39a   :  { %v2155_v42 = vmul.f32 %v6630_v6, %v10894_v53  ;;  %6637 = vrsqrt.f32 %v10964_v30  ;;  %vm2930_vm6 = vcmp.eq.f32.partialorder %v10910_v44, inf  ;;  %vm2932_vm7 = vcmp.eq.f32.partialorder %v10910_v44, 0.0 }
 0x39b   :  { %v6632_v37 = vpop.eup %6631  ;;  %6639 = vrsqrt.f32 %v10969_v58  ;;  %v2933_v25 = vand.u32 2147483648, %v10910_v44  ;;  %v4157_v9 = vsub.f32 %v10969_v58, %v10948_v14  ;;  %v1594_v56 = vmul.f32 %v10098_v43, %v10098_v43 }
 0x39c   :  { %v3875_v1 = vmul.f32 %v6632_v37, %v10903_v57  ;;  %v2157_v39 = vsel %vm2156_vm2, %v10894_v53, %v2155_v42  ;;  %v3432_v22 = vsel %vm3430_vm1, %v3431_v15, %v3429_v40  ;;  %vm3435_vm8 = vcmp.eq.f32.partialorder %v10948_v14, inf }
 0x39d   :  { %v6634_v62 = vpop.eup %6633  ;;  %v2160_v10 = vsel %vm2158_vm3, %v2159_v18, %v2157_v39  ;;  %6641 = vrsqrt.f32 %v10971_v23  ;;  %v11000_v6 = vand.u32 2147483647, %v4157_v9  ;;  %vm3437_vm9 = vcmp.eq.f32.partialorder %v10948_v14, 0.0 }
 0x39e   :  { %v3877_v41 = vsel %vm3876_vm4, %v10903_v57, %v3875_v1  ;;  %v11003_v42 = vmul.f32 %v10371_v8, %v2160_v10  ;;  %v2929_v43 = vmul.f32 %v6634_v62, %v10910_v44  ;;  %v2368_v53 = vmul.f32 %v10100_v36, %v10100_v36 }
 0x39f   :  { %13061 = vst [vmem:[#allocation172_spill] sm:$0xff] %v11000_v6  ;;  %v11008_v7 = vsel %vm3878_vm5, %v3879_v0, %v3877_v41  ;;  %v1658_v15 = vmul.f32 %v10107_v31, %v10107_v31  ;;  %v3438_v40 = vand.u32 2147483648, %v10948_v14  ;;  %vm2163_vm10 = vcmp.eq.f32.partialorder %v10964_v30, inf }
 0x3a0   :  { %13062 = vst [vmem:[#allocation173_spill] sm:$0xff] %v11008_v7  ;;  %v4028_v18 = vsub.f32 %v11008_v7, %v3432_v22  ;;  %6643 = vrsqrt.f32 %v11003_v42  ;;  %vm3883_vm11 = vcmp.eq.f32.partialorder %v10969_v58, inf  ;;  %v2931_v57 = vsel %vm2930_vm6, %v10910_v44, %v2929_v43 }
 0x3a1   :  { %v6636_v37 = vpop.eup %6635  ;;  %v1722_v0 = vadd.f32 %v1658_v15, %v1594_v56  ;;  %v2432_v36 = vmul.f32 %v10147_v21, %v10147_v21  ;;  %vm3885_vm12 = vcmp.eq.f32.partialorder %v10969_v58, 0.0  ;;  %v2934_v9 = vsel %vm2932_vm7, %v2933_v25, %v2931_v57 }
 0x3a2   :  { %v11025_v31 = vand.u32 2147483647, %v4028_v18  ;;  %v3434_v1 = vmul.f32 %v6636_v37, %v10948_v14  ;;  %v3886_v39 = vand.u32 2147483648, %v10969_v58  ;;  %v11033_v62 = vmul.f32 %v10371_v8, %v2934_v9 }
 0x3a3   :  { %v11035_v22 = vmax.f32 %v1722_v0, 1e-14  ;;  %v2496_v56 = vadd.f32 %v2432_v36, %v2368_v53  ;;  %vm2165_vm13 = vcmp.eq.f32.partialorder %v10964_v30, 0.0  ;;  %v2166_v41 = vand.u32 2147483648, %v10964_v30 }
 0x3a4   :  { %v6638_v10 = vpop.eup %6637  ;;  %v3436_v21 = vsel %vm3435_vm8, %v10948_v14, %v3434_v1  ;;  %vm2937_vm14 = vcmp.eq.f32.partialorder %v10971_v23, inf  ;;  %6645 = vrsqrt.f32 %v11033_v62  ;;  %v1595_v25 = vmul.f32 %v10221_v61, %v10221_v61 }
 0x3a5   :  { %v6640_v44 = vpop.eup %6639  ;;  %v2369_v43 = vmul.f32 %v10223_v34, %v10223_v34  ;;  %v1659_v53 = vmul.f32 %v10229_v32, %v10229_v32  ;;  %v4158_v18 = vsub.f32 %v11033_v62, %v11003_v42  ;;  %v2162_v37 = vmul.f32 %v6638_v10, %v10964_v30 }
 0x3a6   :  { %v3882_v15 = vmul.f32 %v6640_v44, %v10969_v58  ;;  %v2433_v57 = vmul.f32 %v10231_v63, %v10231_v63  ;;  %v3439_v61 = vsel %vm3437_vm9, %v3438_v40, %v3436_v21  ;;  %vm2939_vm15 = vcmp.eq.f32.partialorder %v10971_v23, 0.0 }
 0x3a7   :  { %v6642_v0 = vpop.eup %6641  ;;  %v2940_v34 = vand.u32 2147483648, %v10971_v23  ;;  %6647 = vrsqrt.f32 %v11035_v22  ;;  %v11064_v36 = vand.u32 2147483647, %v4158_v18  ;;  %v2164_v63 = vsel %vm2163_vm10, %v10964_v30, %v2162_v37 }
 0x3a8   :  { %v3884_v32 = vsel %vm3883_vm11, %v10969_v58, %v3882_v15  ;;  %v2936_v1 = vmul.f32 %v6642_v0, %v10971_v23  ;;  %v2167_v40 = vsel %vm2165_vm13, %v2166_v41, %v2164_v63  ;;  %v11076_v9 = vmax.f32 %v2496_v56, 1e-14 }
 0x3a9   :  { %13063 = vst [vmem:[#allocation174_spill] sm:$0xff] %v11064_v36  ;;  %v11072_v14 = vsel %vm3885_vm12, %v3886_v39, %v3884_v32  ;;  %v1723_v10 = vadd.f32 %v1659_v53, %v1595_v25  ;;  %v11080_v15 = vmul.f32 %v10371_v8, %v2167_v40  ;;  %v2497_v37 = vadd.f32 %v2433_v57, %v2369_v43 }
 0x3aa   :  { %13064 = vst [vmem:[#allocation175_spill] sm:$0xff] %v11072_v14  ;;  %v6644_v21 = vpop.eup %6643  ;;  %v4029_v44 = vsub.f32 %v11072_v14, %v3439_v61  ;;  %v2938_v18 = vsel %vm2937_vm14, %v10971_v23, %v2936_v1  ;;  %6649 = vrsqrt.f32 %v11076_v9  ;;  %vm3442_vm0 = vcmp.eq.f32.partialorder %v11003_v42, inf }
 0x3ab   :  { %v3441_v58 = vmul.f32 %v6644_v21, %v11003_v42  ;;  %v2941_v30 = vsel %vm2939_vm15, %v2940_v34, %v2938_v18  ;;  %vm3444_vm1 = vcmp.eq.f32.partialorder %v11003_v42, 0.0  ;;  %6651 = vrsqrt.f32 %v11080_v15  ;;  %v13067_v21 = vld [vmem:[#allocation75_spill] sm:$0xff]  ;;  %v13068_v18 = vld [vmem:[#allocation112_spill] sm:$0xff] }
 0x3ac   :  { %v11089_v39 = vand.u32 2147483647, %v4029_v44  ;;  %v3445_v56 = vand.u32 2147483648, %v11003_v42  ;;  %vm3890_vm2 = vcmp.eq.f32.partialorder %v11033_v62, inf  ;;  %v11097_v41 = vmul.f32 %v10371_v8, %v2941_v30 }
 0x3ad   :  { %v1596_v23 = vmul.f32 %v10239_v38, %v10239_v38  ;;  %v3443_v25 = vsel %vm3442_vm0, %v11003_v42, %v3441_v58  ;;  %vm3892_vm3 = vcmp.eq.f32.partialorder %v11033_v62, 0.0  ;;  %v11103_v43 = vmax.f32 %v1723_v10, 1e-14 }
 0x3ae   :  { %v11105_v53 = vmax.f32 %v2497_v37, 1e-14  ;;  %v6646_v57 = vpop.eup %6645  ;;  %v3893_v0 = vand.u32 2147483648, %v11033_v62  ;;  %6653 = vrsqrt.f32 %v11097_v41  ;;  %vm2170_vm4 = vcmp.eq.f32.partialorder %v11035_v22, inf }
 0x3af   :  { %vm2172_vm5 = vcmp.eq.f32.partialorder %v11035_v22, 0.0  ;;  %v3889_v8 = vmul.f32 %v6646_v57, %v11033_v62  ;;  %v4159_v38 = vsub.f32 %v11097_v41, %v11080_v15  ;;  %v2173_v61 = vand.u32 2147483648, %v11035_v22 }
 0x3b0   :  { %6655 = vrsqrt.f32 %v11103_v43  ;;  %v3446_v32 = vsel %vm3444_vm1, %v3445_v56, %v3443_v25  ;;  %vm3449_vm6 = vcmp.eq.f32.partialorder %v11080_v15, inf  ;;  %vm2944_vm7 = vcmp.eq.f32.partialorder %v11076_v9, inf  ;;  %v13069_v56 = vld [vmem:[#allocation111_spill] sm:$0xff] }
 0x3b1   :  { %v6648_v34 = vpop.eup %6647  ;;  %6657 = vrsqrt.f32 %v11105_v53  ;;  %v3891_v63 = vsel %vm3890_vm2, %v11033_v62, %v3889_v8  ;;  %vm3451_vm8 = vcmp.eq.f32.partialorder %v11080_v15, 0.0  ;;  %v3452_v1 = vand.u32 2147483648, %v11080_v15 }
 0x3b2   :  { %v11126_v40 = vand.u32 2147483647, %v4159_v38  ;;  %v2169_v10 = vmul.f32 %v6648_v34, %v11035_v22  ;;  %v11131_v42 = vsel %vm3892_vm3, %v3893_v0, %v3891_v63  ;;  %vm2946_vm9 = vcmp.eq.f32.partialorder %v11076_v9, 0.0 }
 0x3b3   :  { %13066 = vst [vmem:[#allocation177_spill] sm:$0xff] %v11131_v42  ;;  %v2370_v44 = vmul.f32 %v13067_v21, %v13067_v21  ;;  %v1660_v37 = vmul.f32 %v13068_v18, %v13068_v18  ;;  %v4030_v58 = vsub.f32 %v11131_v42, %v3446_v32  ;;  %v2434_v25 = vmul.f32 %v13069_v56, %v13069_v56 }
 0x3b4   :  { %13065 = vst [vmem:[#allocation176_spill] sm:$0xff] %v11126_v40  ;;  %v2171_v30 = vsel %vm2170_vm4, %v11035_v22, %v2169_v10  ;;  %v1597_v62 = vmul.f32 %v10348_v2, %v10348_v2  ;;  %v6650_v57 = vpop.eup %6649  ;;  %v2947_v8 = vand.u32 2147483648, %v11076_v9  ;;  %v1661_v34 = vmul.f32 %v10361_v27, %v10361_v27  ;;  %v11156_v10 = vld [vmem:[%s12693_s3] ss:$0 sm:$0xff] }
 0x3b5   :  { %v2174_v0 = vsel %vm2172_vm5, %v2173_v61, %v2171_v30  ;;  %v1724_v38 = vadd.f32 %v1660_v37, %v1596_v23  ;;  %v6652_v32 = vpop.eup %6651  ;;  %v11151_v63 = vand.u32 2147483647, %v4030_v58  ;;  %v2943_v22 = vmul.f32 %v6650_v57, %v11076_v9 }
 0x3b6   :  { %v11159_v2 = vmul.f32 %v11156_v10, %v2174_v0  ;;  %v2498_v61 = vadd.f32 %v2434_v25, %v2370_v44  ;;  %v3448_v21 = vmul.f32 %v6652_v32, %v11080_v15  ;;  %vm3897_vm10 = vcmp.eq.f32.partialorder %v11097_v41, inf }
 0x3b7   :  { %v11164_v23 = vmax.f32 %v1724_v38, 1e-14  ;;  %v1725_v27 = vadd.f32 %v1661_v34, %v1597_v62  ;;  %vm3899_vm11 = vcmp.eq.f32.partialorder %v11097_v41, 0.0  ;;  %v2371_v18 = vmul.f32 %v10350_v26, %v10350_v26 }
 0x3b8   :  { %6659 = vrsqrt.f32 %v11159_v2  ;;  %v2435_v37 = vmul.f32 %v10363_v3, %v10363_v3  ;;  %v6654_v58 = vpop.eup %6653  ;;  %v3450_v44 = vsel %vm3449_vm6, %v11080_v15, %v3448_v21  ;;  %v3900_v30 = vand.u32 2147483648, %v11097_v41 }
 0x3b9   :  { %v2945_v56 = vsel %vm2944_vm7, %v11076_v9, %v2943_v22  ;;  %6661 = vrsqrt.f32 %v11164_v23  ;;  %v3896_v62 = vmul.f32 %v6654_v58, %v11097_v41  ;;  %vm2177_vm12 = vcmp.eq.f32.partialorder %v11103_v43, inf }
 0x3ba   :  { %v6656_v25 = vpop.eup %6655  ;;  %v2948_v26 = vsel %vm2946_vm9, %v2947_v8, %v2945_v56  ;;  %vm2179_vm13 = vcmp.eq.f32.partialorder %v11103_v43, 0.0  ;;  %v3453_v57 = vsel %vm3451_vm8, %v3452_v1, %v3450_v44  ;;  %v11191_v34 = vmax.f32 %v2498_v61, 1e-14 }
 0x3bb   :  { %v6658_v3 = vpop.eup %6657  ;;  %v11188_v0 = vmul.f32 %v11156_v10, %v2948_v26  ;;  %v2176_v38 = vmul.f32 %v6656_v25, %v11103_v43  ;;  %v3898_v9 = vsel %vm3897_vm10, %v11097_v41, %v3896_v62  ;;  %v2180_v8 = vand.u32 2147483648, %v11103_v43 }
 0x3bc   :  { %v2950_v32 = vmul.f32 %v6658_v3, %v11105_v53  ;;  %v2499_v22 = vadd.f32 %v2435_v37, %v2371_v18  ;;  %v11200_v15 = vsel %vm3899_vm11, %v3900_v30, %v3898_v9  ;;  %vm2951_vm14 = vcmp.eq.f32.partialorder %v11105_v53, inf }
 0x3bd   :  { %13070 = vst [vmem:[#allocation75_spill] sm:$0xff] %v11200_v15  ;;  %6663 = vrsqrt.f32 %v11188_v0  ;;  %v11204_v1 = vmax.f32 %v1725_v27, 1e-14  ;;  %v4031_v61 = vsub.f32 %v11200_v15, %v3453_v57  ;;  %v4160_v21 = vsub.f32 %v11188_v0, %v11159_v2 }
 0x3be   :  { %v2178_v58 = vsel %vm2177_vm12, %v11103_v43, %v2176_v38  ;;  %v2954_v18 = vand.u32 2147483648, %v11105_v53  ;;  %v2952_v37 = vsel %vm2951_vm14, %v11105_v53, %v2950_v32  ;;  %vm2953_vm15 = vcmp.eq.f32.partialorder %v11105_v53, 0.0 }
 0x3bf   :  { %v2181_v41 = vsel %vm2179_vm13, %v2180_v8, %v2178_v58  ;;  %6665 = vrsqrt.f32 %v11191_v34  ;;  %v11218_v27 = vand.u32 2147483647, %v4031_v61  ;;  %v11220_v44 = vand.u32 2147483647, %v4160_v21 }
 0x3c0   :  { %v11223_v30 = vmul.f32 %v11156_v10, %v2181_v41  ;;  %v2955_v56 = vsel %vm2953_vm15, %v2954_v18, %v2952_v37  ;;  %vm3456_vm0 = vcmp.eq.f32.partialorder %v11159_v2, inf  ;;  %vm3458_vm1 = vcmp.eq.f32.partialorder %v11159_v2, 0.0 }
 0x3c1   :  { %13071 = vst [vmem:[#allocation112_spill] sm:$0xff] %v11220_v44  ;;  %v11228_v43 = vmul.f32 %v11156_v10, %v2955_v56  ;;  %6667 = vrsqrt.f32 %v11204_v1  ;;  %v3459_v25 = vand.u32 2147483648, %v11159_v2  ;;  %vm2184_vm2 = vcmp.eq.f32.partialorder %v11164_v23, inf }
 0x3c2   :  { %v6660_v53 = vpop.eup %6659  ;;  %6669 = vrsqrt.f32 %v11223_v30  ;;  %vm2186_vm3 = vcmp.eq.f32.partialorder %v11164_v23, 0.0  ;;  %vm3904_vm4 = vcmp.eq.f32.partialorder %v11188_v0, inf  ;;  %v2187_v3 = vand.u32 2147483648, %v11164_v23 }
 0x3c3   :  { %v6662_v62 = vpop.eup %6661  ;;  %v3455_v26 = vmul.f32 %v6660_v53, %v11159_v2  ;;  %6671 = vrsqrt.f32 %v11228_v43  ;;  %vm3906_vm5 = vcmp.eq.f32.partialorder %v11188_v0, 0.0  ;;  %v3907_v57 = vand.u32 2147483648, %v11188_v0 }
 0x3c4   :  { %v4161_v38 = vsub.f32 %v11228_v43, %v11223_v30  ;;  %v2183_v9 = vmul.f32 %v6662_v62, %v11164_v23  ;;  %vm2958_vm6 = vcmp.eq.f32.partialorder %v11191_v34, inf  ;;  %vm2960_vm7 = vcmp.eq.f32.partialorder %v11191_v34, 0.0 }
 0x3c5   :  { %v2961_v8 = vand.u32 2147483648, %v11191_v34  ;;  %v11247_v32 = vmax.f32 %v2499_v22, 1e-14  ;;  %v3457_v61 = vsel %vm3456_vm0, %v11159_v2, %v3455_v26  ;;  %vm3463_vm8 = vcmp.eq.f32.partialorder %v11223_v30, inf }
 0x3c6   :  { %v11253_v21 = vand.u32 2147483647, %v4161_v38  ;;  %v2185_v58 = vsel %vm2184_vm2, %v11164_v23, %v2183_v9  ;;  %vm3465_vm9 = vcmp.eq.f32.partialorder %v11223_v30, 0.0  ;;  %v1598_v22 = vmul.f32 %v10393_v13, %v10393_v13 }
 0x3c7   :  { %v6664_v18 = vpop.eup %6663  ;;  %v2188_v41 = vsel %vm2186_vm3, %v2187_v3, %v2185_v58  ;;  %6673 = vrsqrt.f32 %v11247_v32  ;;  %v3466_v56 = vand.u32 2147483648, %v11223_v30  ;;  %v2372_v62 = vmul.f32 %v10405_v12, %v10405_v12 }
 0x3c8   :  { %13072 = vst [vmem:[#allocation111_spill] sm:$0xff] %v11253_v21  ;;  %v3903_v37 = vmul.f32 %v6664_v18, %v11188_v0  ;;  %v11267_v53 = vmul.f32 %v11156_v10, %v2188_v41  ;;  %v3460_v23 = vsel %vm3458_vm1, %v3459_v25, %v3457_v61  ;;  %vm3911_vm10 = vcmp.eq.f32.partialorder %v11228_v43, inf }
 0x3c9   :  { %v6666_v26 = vpop.eup %6665  ;;  %v1662_v3 = vmul.f32 %v10425_v29, %v10425_v29  ;;  %v2436_v13 = vmul.f32 %v10461_v47, %v10461_v47  ;;  %vm3913_vm11 = vcmp.eq.f32.partialorder %v11228_v43, 0.0  ;;  %v3914_v12 = vand.u32 2147483648, %v11228_v43 }
 0x3ca   :  { %v3905_v38 = vsel %vm3904_vm4, %v11188_v0, %v3903_v37  ;;  %6675 = vrsqrt.f32 %v11267_v53  ;;  %v2957_v29 = vmul.f32 %v6666_v26, %v11191_v34  ;;  %vm2191_vm12 = vcmp.eq.f32.partialorder %v11204_v1, inf }
 0x3cb   :  { %v6668_v2 = vpop.eup %6667  ;;  %v11286_v25 = vsel %vm3906_vm5, %v3907_v57, %v3905_v38  ;;  %v1726_v47 = vadd.f32 %v1662_v3, %v1598_v22  ;;  %vm2193_vm13 = vcmp.eq.f32.partialorder %v11204_v1, 0.0  ;;  %v2500_v18 = vadd.f32 %v2436_v13, %v2372_v62 }
 0x3cc   :  { %13073 = vst [vmem:[#allocation178_spill] sm:$0xff] %v11286_v25  ;;  %v6670_v9 = vpop.eup %6669  ;;  %v4032_v61 = vsub.f32 %v11286_v25, %v3460_v23  ;;  %v2190_v58 = vmul.f32 %v6668_v2, %v11204_v1  ;;  %v2959_v0 = vsel %vm2958_vm6, %v11191_v34, %v2957_v29  ;;  %v2194_v57 = vand.u32 2147483648, %v11204_v1 }
 0x3cd   :  { %v6672_v41 = vpop.eup %6671  ;;  %v3462_v37 = vmul.f32 %v6670_v9, %v11223_v30  ;;  %v11298_v26 = vmax.f32 %v1726_v47, 1e-14  ;;  %v2962_v3 = vsel %vm2960_vm7, %v2961_v8, %v2959_v0  ;;  %vm2965_vm14 = vcmp.eq.f32.partialorder %v11247_v32, inf }
 0x3ce   :  { %v11300_v22 = vand.u32 2147483647, %v4032_v61  ;;  %v3910_v23 = vmul.f32 %v6672_v41, %v11228_v43  ;;  %v2192_v62 = vsel %vm2191_vm12, %v11204_v1, %v2190_v58  ;;  %v11310_v38 = vmul.f32 %v11156_v10, %v2962_v3 }
 0x3cf   :  { %v3464_v13 = vsel %vm3463_vm8, %v11223_v30, %v3462_v37  ;;  %v2195_v2 = vsel %vm2193_vm13, %v2194_v57, %v2192_v62  ;;  %6677 = vrsqrt.f32 %v11298_v26  ;;  %v1599_v1 = vmul.f32 %v10511_v5, %v10511_v5  ;;  %v13075_v5 = vld [vmem:[#allocation156_spill] sm:$0xff] }
 0x3d0   :  { %v3467_v29 = vsel %vm3465_vm9, %v3466_v56, %v3464_v13  ;;  %v3912_v34 = vsel %vm3911_vm10, %v11228_v43, %v3910_v23  ;;  %v11319_v8 = vmul.f32 %v11156_v10, %v2195_v2  ;;  %6679 = vrsqrt.f32 %v11310_v38 }
 0x3d1   :  { %v6674_v47 = vpop.eup %6673  ;;  %v11325_v9 = vsel %vm3913_vm11, %v3914_v12, %v3912_v34  ;;  %v2373_v30 = vmul.f32 %v10513_v60, %v10513_v60  ;;  %v1663_v56 = vmul.f32 %v10521_v45, %v10521_v45  ;;  %v4162_v58 = vsub.f32 %v11310_v38, %v11267_v53 }
 0x3d2   :  { %13074 = vst [vmem:[#allocation179_spill] sm:$0xff] %v11325_v9  ;;  %v4033_v61 = vsub.f32 %v11325_v9, %v3467_v29  ;;  %6681 = vrsqrt.f32 %v11319_v8  ;;  %v2437_v43 = vmul.f32 %v13075_v5, %v13075_v5  ;;  %v2964_v12 = vmul.f32 %v6674_v47, %v11247_v32 }
 0x3d3   :  { %v11342_v60 = vand.u32 2147483647, %v4162_v58  ;;  %vm2967_vm15 = vcmp.eq.f32.partialorder %v11247_v32, 0.0  ;;  %v2968_v45 = vand.u32 2147483648, %v11247_v32  ;;  %vm3470_vm0 = vcmp.eq.f32.partialorder %v11267_v53, inf }
 0x3d4   :  { %v6676_v41 = vpop.eup %6675  ;;  %v11340_v37 = vand.u32 2147483647, %v4033_v61  ;;  %v2966_v0 = vsel %vm2965_vm14, %v11247_v32, %v2964_v12  ;;  %v11348_v57 = vmax.f32 %v2500_v18, 1e-14  ;;  %v1727_v23 = vadd.f32 %v1663_v56, %v1599_v1 }
 0x3d5   :  { %13076 = vst [vmem:[#allocation156_spill] sm:$0xff] %v11342_v60  ;;  %v3469_v3 = vmul.f32 %v6676_v41, %v11267_v53  ;;  %vm3472_vm1 = vcmp.eq.f32.partialorder %v11267_v53, 0.0  ;;  %v2969_v62 = vsel %vm2967_vm15, %v2968_v45, %v2966_v0  ;;  %v2501_v13 = vadd.f32 %v2437_v43, %v2373_v30  ;;  %v13077_v43 = vld [vmem:[#allocation118_spill] sm:$0xff] }
 0x3d6   :  { %v3473_v2 = vand.u32 2147483648, %v11267_v53  ;;  %v11354_v29 = vmul.f32 %v11156_v10, %v2969_v62  ;;  %vm2198_vm2 = vcmp.eq.f32.partialorder %v11298_v26, inf  ;;  %6683 = vrsqrt.f32 %v11348_v57  ;;  %v13079_v62 = vld [vmem:[#allocation121_spill] sm:$0xff] }
 0x3d7   :  { %vm3918_vm3 = vcmp.eq.f32.partialorder %v11310_v38, inf  ;;  %vm3920_vm4 = vcmp.eq.f32.partialorder %v11310_v38, 0.0  ;;  %v3921_v32 = vand.u32 2147483648, %v11310_v38  ;;  %v11361_v18 = vmax.f32 %v1727_v23, 1e-14 }
 0x3d8   :  { %vm3477_vm5 = vcmp.eq.f32.partialorder %v11319_v8, inf  ;;  %6685 = vrsqrt.f32 %v11354_v29  ;;  %vm2200_vm6 = vcmp.eq.f32.partialorder %v11298_v26, 0.0  ;;  %v2201_v1 = vand.u32 2147483648, %v11298_v26 }
 0x3d9   :  { %v6678_v34 = vpop.eup %6677  ;;  %v3471_v47 = vsel %vm3470_vm0, %v11267_v53, %v3469_v3  ;;  %v4163_v30 = vsub.f32 %v11354_v29, %v11319_v8  ;;  %6687 = vrsqrt.f32 %v11361_v18  ;;  %vm3479_vm7 = vcmp.eq.f32.partialorder %v11319_v8, 0.0 }
 0x3da   :  { %v2197_v56 = vmul.f32 %v6678_v34, %v11298_v26  ;;  %v6680_v61 = vpop.eup %6679  ;;  %v11375_v58 = vmax.f32 %v2501_v13, 1e-14  ;;  %v1600_v5 = vmul.f32 %v10538_v54, %v10538_v54  ;;  %v2374_v12 = vmul.f32 %v13077_v43, %v13077_v43 }
 0x3db   :  { %v1664_v41 = vmul.f32 %v10547_v33, %v10547_v33  ;;  %v3917_v0 = vmul.f32 %v6680_v61, %v11310_v38  ;;  %v11384_v23 = vand.u32 2147483647, %v4163_v30  ;;  %v2438_v13 = vmul.f32 %v13079_v62, %v13079_v62 }
 0x3dc   :  { %v6682_v45 = vpop.eup %6681  ;;  %v2199_v3 = vsel %vm2198_vm2, %v11298_v26, %v2197_v56  ;;  %v3474_v54 = vsel %vm3472_vm1, %v3473_v2, %v3471_v47  ;;  %6689 = vrsqrt.f32 %v11375_v58  ;;  %v3480_v61 = vand.u32 2147483648, %v11319_v8 }
 0x3dd   :  { %13078 = vst [vmem:[#allocation118_spill] sm:$0xff] %v11384_v23  ;;  %v3476_v34 = vmul.f32 %v6682_v45, %v11319_v8  ;;  %v2202_v33 = vsel %vm2200_vm6, %v2201_v1, %v2199_v3  ;;  %v3919_v30 = vsel %vm3918_vm3, %v11310_v38, %v3917_v0  ;;  %vm2972_vm8 = vcmp.eq.f32.partialorder %v11348_v57, inf  ;;  %v4251_v23 = vld [vmem:[#allocation9 + $0x58] sm:$0xff] (!%p6044_p3) }
 0x3de   :  { %v11402_v56 = vmul.f32 %v11156_v10, %v2202_v33  ;;  %v11407_v53 = vsel %vm3920_vm4, %v3921_v32, %v3919_v30  ;;  %vm2974_vm9 = vcmp.eq.f32.partialorder %v11348_v57, 0.0  ;;  %v1728_v26 = vadd.f32 %v1664_v41, %v1600_v5 }
 0x3df   :  { %13080 = vst [vmem:[#allocation121_spill] sm:$0xff] %v11407_v53  ;;  %v2502_v2 = vadd.f32 %v2438_v13, %v2374_v12  ;;  %v4034_v1 = vsub.f32 %v11407_v53, %v3474_v54  ;;  %vm3925_vm10 = vcmp.eq.f32.partialorder %v11354_v29, inf  ;;  %v2975_v47 = vand.u32 2147483648, %v11348_v57 }
 0x3e0   :  { %6691 = vrsqrt.f32 %v11402_v56  ;;  %v6684_v43 = vpop.eup %6683  ;;  %v3478_v45 = vsel %vm3477_vm5, %v11319_v8, %v3476_v34  ;;  %vm3927_vm11 = vcmp.eq.f32.partialorder %v11354_v29, 0.0  ;;  %v11418_v38 = vmax.f32 %v1728_v26, 1e-14 }
 0x3e1   :  { %v11420_v32 = vmax.f32 %v2502_v2, 1e-14  ;;  %v11422_v5 = vand.u32 2147483647, %v4034_v1  ;;  %v3928_v12 = vand.u32 2147483648, %v11354_v29  ;;  %v2971_v41 = vmul.f32 %v6684_v43, %v11348_v57  ;;  %v13081_v1 = vld [vmem:[#allocation159_spill] sm:$0xff] }
 0x3e2   :  { %vm2205_vm12 = vcmp.eq.f32.partialorder %v11361_v18, inf  ;;  %v6686_v0 = vpop.eup %6685  ;;  %vm2207_vm13 = vcmp.eq.f32.partialorder %v11361_v18, 0.0  ;;  %v2208_v3 = vand.u32 2147483648, %v11361_v18  ;;  %vm2979_vm14 = vcmp.eq.f32.partialorder %v11375_v58, inf }
 0x3e3   :  { %6693 = vrsqrt.f32 %v11418_v38  ;;  %v6688_v62 = vpop.eup %6687  ;;  %v3481_v13 = vsel %vm3479_vm7, %v3480_v61, %v3478_v45  ;;  %v3924_v54 = vmul.f32 %v6686_v0, %v11354_v29  ;;  %v2973_v34 = vsel %vm2972_vm8, %v11348_v57, %v2971_v41  ;;  %v13082_v57 = vld [vmem:[#allocation88_spill] sm:$0xff] }
 0x3e4   :  { %6695 = vrsqrt.f32 %v11420_v32  ;;  %v2976_v33 = vsel %vm2974_vm9, %v2975_v47, %v2973_v34  ;;  %v2204_v30 = vmul.f32 %v6688_v62, %v11361_v18  ;;  %v1601_v26 = vmul.f32 %v10612_v52, %v10612_v52 }
 0x3e5   :  { %v2375_v8 = vmul.f32 %v10614_v55, %v10614_v55  ;;  %v3926_v61 = vsel %vm3925_vm10, %v11354_v29, %v3924_v54  ;;  %v11449_v2 = vmul.f32 %v11156_v10, %v2976_v33  ;;  %v1665_v43 = vmul.f32 %v13081_v1, %v13081_v1 }
 0x3e6   :  { %v2439_v47 = vmul.f32 %v13082_v57, %v13082_v57  ;;  %v6690_v45 = vpop.eup %6689  ;;  %v11457_v52 = vsel %vm3927_vm11, %v3928_v12, %v3926_v61  ;;  %v2206_v55 = vsel %vm2205_vm12, %v11361_v18, %v2204_v30  ;;  %vm2981_vm15 = vcmp.eq.f32.partialorder %v11375_v58, 0.0 }
 0x3e7   :  { %13083 = vst [vmem:[#allocation159_spill] sm:$0xff] %v11457_v52  ;;  %v2982_v41 = vand.u32 2147483648, %v11375_v58  ;;  %v4035_v0 = vsub.f32 %v11457_v52, %v3481_v13  ;;  %vm3484_vm0 = vcmp.eq.f32.partialorder %v11402_v56, inf  ;;  %v3487_v62 = vand.u32 2147483648, %v11402_v56 }
 0x3e8   :  { %6697 = vrsqrt.f32 %v11449_v2  ;;  %v4164_v29 = vsub.f32 %v11449_v2, %v11402_v56  ;;  %v2209_v12 = vsel %vm2207_vm13, %v2208_v3, %v2206_v55  ;;  %v2978_v54 = vmul.f32 %v6690_v45, %v11375_v58 }
 0x3e9   :  { %v1602_v34 = vmul.f32 %v10683_v50, %v10683_v50  ;;  %v11475_v30 = vand.u32 2147483647, %v4035_v0  ;;  %v11478_v13 = vmul.f32 %v11156_v10, %v2209_v12  ;;  %v1729_v61 = vadd.f32 %v1665_v43, %v1601_v26 }
 0x3ea   :  { %v6692_v33 = vpop.eup %6691  ;;  %v2503_v1 = vadd.f32 %v2439_v47, %v2375_v8  ;;  %vm3486_vm1 = vcmp.eq.f32.partialorder %v11402_v56, 0.0  ;;  %v11481_v57 = vand.u32 2147483647, %v4164_v29  ;;  %v2980_v18 = vsel %vm2979_vm14, %v11375_v58, %v2978_v54 }
 0x3eb   :  { %vm2212_vm2 = vcmp.eq.f32.partialorder %v11418_v38, inf  ;;  %v1666_v50 = vmul.f32 %v10692_v46, %v10692_v46  ;;  %6699 = vrsqrt.f32 %v11478_v13  ;;  %vm2214_vm3 = vcmp.eq.f32.partialorder %v11418_v38, 0.0 }
 0x3ec   :  { %13084 = vst [vmem:[#allocation88_spill] sm:$0xff] %v11481_v57  ;;  %v2215_v3 = vand.u32 2147483648, %v11418_v38  ;;  %vm2986_vm4 = vcmp.eq.f32.partialorder %v11420_v32, inf  ;;  %v3483_v8 = vmul.f32 %v6692_v33, %v11402_v56  ;;  %v2983_v43 = vsel %vm2981_vm15, %v2982_v41, %v2980_v18  ;;  %v4250_v57 = vld [vmem:[#allocation9 + $0x50] sm:$0xff] (!%p6044_p3) }
 0x3ed   :  { %v6694_v26 = vpop.eup %6693  ;;  %vm2988_vm5 = vcmp.eq.f32.partialorder %v11420_v32, 0.0  ;;  %v11497_v47 = vmax.f32 %v1729_v61, 1e-14  ;;  %v11500_v46 = vmul.f32 %v11156_v10, %v2983_v43  ;;  %v11503_v0 = vmax.f32 %v2503_v1, 1e-14 }
 0x3ee   :  { %v6696_v45 = vpop.eup %6695  ;;  %v2211_v55 = vmul.f32 %v6694_v26, %v11418_v38  ;;  %v1730_v29 = vadd.f32 %v1666_v50, %v1602_v34  ;;  %v2989_v54 = vand.u32 2147483648, %v11420_v32  ;;  %v2376_v58 = vmul.f32 %v10685_v16, %v10685_v16 }
 0x3ef   :  { %v2985_v12 = vmul.f32 %v6696_v45, %v11420_v32  ;;  %6701 = vrsqrt.f32 %v11497_v47  ;;  %vm3932_vm6 = vcmp.eq.f32.partialorder %v11449_v2, inf  ;;  %vm3934_vm7 = vcmp.eq.f32.partialorder %v11449_v2, 0.0 }
 0x3f0   :  { %v3935_v41 = vand.u32 2147483648, %v11449_v2  ;;  %6703 = vrsqrt.f32 %v11500_v46  ;;  %v3485_v34 = vsel %vm3484_vm0, %v11402_v56, %v3483_v8  ;;  %v4165_v33 = vsub.f32 %v11500_v46, %v11478_v13 }
 0x3f1   :  { %v2213_v61 = vsel %vm2212_vm2, %v11418_v38, %v2211_v55  ;;  %v2987_v16 = vsel %vm2986_vm4, %v11420_v32, %v2985_v12  ;;  %vm3491_vm8 = vcmp.eq.f32.partialorder %v11478_v13, inf  ;;  %6705 = vrsqrt.f32 %v11503_v0  ;;  %v13086_v12 = vld [vmem:[#allocation164_spill] sm:$0xff] }
 0x3f2   :  { %v6698_v1 = vpop.eup %6697  ;;  %v2216_v18 = vsel %vm2214_vm3, %v2215_v3, %v2213_v61  ;;  %v2990_v50 = vsel %vm2988_vm5, %v2989_v54, %v2987_v16  ;;  %v11532_v8 = vand.u32 2147483647, %v4165_v33  ;;  %v3488_v55 = vsel %vm3486_vm1, %v3487_v62, %v3485_v34 }
 0x3f3   :  { %v3931_v26 = vmul.f32 %v6698_v1, %v11449_v2  ;;  %v11535_v43 = vmul.f32 %v11156_v10, %v2216_v18  ;;  %v11538_v45 = vmul.f32 %v11156_v10, %v2990_v50  ;;  %vm3493_vm9 = vcmp.eq.f32.partialorder %v11478_v13, 0.0 }
 0x3f4   :  { %13085 = vst [vmem:[#allocation180_spill] sm:$0xff] %v11532_v8  ;;  %v3494_v38 = vand.u32 2147483648, %v11478_v13  ;;  %v11544_v32 = vmax.f32 %v1730_v29, 1e-14  ;;  %vm2219_vm10 = vcmp.eq.f32.partialorder %v11497_v47, inf  ;;  %v2440_v54 = vmul.f32 %v13086_v12, %v13086_v12  ;;  %v4249_v8 = vld [vmem:[#allocation9 + $0x48] sm:$0xff] (!%p6044_p3) }
 0x3f5   :  { %v3933_v3 = vsel %vm3932_vm6, %v11449_v2, %v3931_v26  ;;  %6707 = vrsqrt.f32 %v11535_v43  ;;  %v6700_v33 = vpop.eup %6699  ;;  %vm3939_vm11 = vcmp.eq.f32.partialorder %v11500_v46, inf  ;;  %vm2221_vm12 = vcmp.eq.f32.partialorder %v11497_v47, 0.0 }
 0x3f6   :  { %v11555_v56 = vsel %vm3934_vm7, %v3935_v41, %v3933_v3  ;;  %6709 = vrsqrt.f32 %v11538_v45  ;;  %v3490_v29 = vmul.f32 %v6700_v33, %v11478_v13  ;;  %vm3941_vm13 = vcmp.eq.f32.partialorder %v11500_v46, 0.0 }
 0x3f7   :  { %13087 = vst [vmem:[#allocation164_spill] sm:$0xff] %v11555_v56  ;;  %v4036_v62 = vsub.f32 %v11555_v56, %v3488_v55  ;;  %v3942_v34 = vand.u32 2147483648, %v11500_v46  ;;  %v4166_v61 = vsub.f32 %v11538_v45, %v11535_v43  ;;  %v2222_v2 = vand.u32 2147483648, %v11497_v47 }
 0x3f8   :  { %vm2993_vm14 = vcmp.eq.f32.partialorder %v11503_v0, inf  ;;  %6711 = vrsqrt.f32 %v11544_v32  ;;  %v3492_v1 = vsel %vm3491_vm8, %v11478_v13, %v3490_v29  ;;  %vm2995_vm15 = vcmp.eq.f32.partialorder %v11503_v0, 0.0 }
 0x3f9   :  { %v6702_v41 = vpop.eup %6701  ;;  %v11569_v16 = vand.u32 2147483647, %v4036_v62  ;;  %v2504_v18 = vadd.f32 %v2440_v54, %v2376_v58  ;;  %vm3498_vm0 = vcmp.eq.f32.partialorder %v11535_v43, inf  ;;  %v11576_v26 = vand.u32 2147483647, %v4166_v61 }
 0x3fa   :  { %v6704_v50 = vpop.eup %6703  ;;  %v2218_v55 = vmul.f32 %v6702_v41, %v11497_v47  ;;  %v2996_v3 = vand.u32 2147483648, %v11503_v0  ;;  %v1603_v62 = vmul.f32 %v10784_v24, %v10784_v24  ;;  %v1667_v29 = vmul.f32 %v10794_v17, %v10794_v17 }
 0x3fb   :  { %13088 = vst [vmem:[#allocation181_spill] sm:$0xff] %v11576_v26  ;;  %v3938_v12 = vmul.f32 %v6704_v50, %v11500_v46  ;;  %v11581_v33 = vmax.f32 %v2504_v18, 1e-14  ;;  %v6706_v58 = vpop.eup %6705  ;;  %v3495_v54 = vsel %vm3493_vm9, %v3494_v38, %v3492_v1  ;;  %vm3500_vm1 = vcmp.eq.f32.partialorder %v11535_v43, 0.0  ;;  %v4248_v26 = vld [vmem:[#allocation9 + $0x40] sm:$0xff] (!%p6044_p3) }
 0x3fc   :  { %v3501_v61 = vand.u32 2147483648, %v11535_v43  ;;  %v2220_v41 = vsel %vm2219_vm10, %v11497_v47, %v2218_v55  ;;  %v2992_v17 = vmul.f32 %v6706_v58, %v11503_v0  ;;  %v2377_v1 = vmul.f32 %v10786_v4, %v10786_v4 }
 0x3fd   :  { %v3940_v18 = vsel %vm3939_vm11, %v11500_v46, %v3938_v12  ;;  %v2223_v24 = vsel %vm2221_vm12, %v2222_v2, %v2220_v41  ;;  %6713 = vrsqrt.f32 %v11581_v33  ;;  %v2441_v50 = vmul.f32 %v10806_v35, %v10806_v35 }
 0x3fe   :  { %v11603_v13 = vsel %vm3941_vm13, %v3942_v34, %v3940_v18  ;;  %v11606_v38 = vmul.f32 %v11156_v10, %v2223_v24  ;;  %vm3946_vm2 = vcmp.eq.f32.partialorder %v11538_v45, inf  ;;  %v2994_v46 = vsel %vm2993_vm14, %v11503_v0, %v2992_v17 }
 0x3ff   :  { %13089 = vst [vmem:[#allocation182_spill] sm:$0xff] %v11603_v13  ;;  %v6708_v55 = vpop.eup %6707  ;;  %v4037_v47 = vsub.f32 %v11603_v13, %v3495_v54  ;;  %v1731_v34 = vadd.f32 %v1667_v29, %v1603_v62  ;;  %vm3948_vm3 = vcmp.eq.f32.partialorder %v11538_v45, 0.0  ;;  %v3949_v4 = vand.u32 2147483648, %v11538_v45 }
 0x400   :  { %v6710_v2 = vpop.eup %6709  ;;  %v3497_v12 = vmul.f32 %v6708_v55, %v11535_v43  ;;  %6715 = vrsqrt.f32 %v11606_v38  ;;  %v2997_v54 = vsel %vm2995_vm15, %v2996_v3, %v2994_v46  ;;  %vm2226_vm4 = vcmp.eq.f32.partialorder %v11544_v32, inf }
 0x401   :  { %v11621_v35 = vand.u32 2147483647, %v4037_v47  ;;  %v3945_v58 = vmul.f32 %v6710_v2, %v11538_v45  ;;  %v3079_v29 = vmul.f32 %v11156_v10, %v2997_v54  ;;  %v11631_v18 = vmax.f32 %v1731_v34, 1e-14 }
 0x402   :  { %v6712_v41 = vpop.eup %6711  ;;  %v3499_v62 = vsel %vm3498_vm0, %v11535_v43, %v3497_v12  ;;  %v2505_v24 = vadd.f32 %v2441_v50, %v2377_v1  ;;  %v2229_v55 = vand.u32 2147483648, %v11544_v32  ;;  %v1604_v46 = vmul.f32 %v10842_v49, %v10842_v49 }
 0x403   :  { %v3502_v17 = vsel %vm3500_vm1, %v3501_v61, %v3499_v62  ;;  %v3947_v0 = vsel %vm3946_vm2, %v11538_v45, %v3945_v58  ;;  %v2225_v3 = vmul.f32 %v6712_v41, %v11544_v32  ;;  %6717 = vrsqrt.f32 %v3079_v29 }
 0x404   :  { %v11642_v47 = vsel %vm3948_vm3, %v3949_v4, %v3947_v0  ;;  %v1668_v43 = vmul.f32 %v10854_v19, %v10854_v19  ;;  %v4167_v1 = vsub.f32 %v3079_v29, %v11606_v38  ;;  %vm2228_vm5 = vcmp.eq.f32.partialorder %v11544_v32, 0.0 }
 0x405   :  { %13090 = vst [vmem:[#allocation183_spill] sm:$0xff] %v11642_v47  ;;  %v4038_v61 = vsub.f32 %v11642_v47, %v3502_v17  ;;  %v2227_v50 = vsel %vm2226_vm4, %v11544_v32, %v2225_v3  ;;  %6719 = vrsqrt.f32 %v11631_v18  ;;  %v2378_v12 = vmul.f32 %v10844_v11, %v10844_v11 }
 0x406   :  { %v2230_v45 = vsel %vm2228_vm5, %v2229_v55, %v2227_v50  ;;  %v11657_v49 = vand.u32 2147483647, %v4167_v1  ;;  %v11665_v58 = vmax.f32 %v2505_v24, 1e-14  ;;  %v1732_v54 = vadd.f32 %v1668_v43, %v1604_v46 }
 0x407   :  { %v6714_v34 = vpop.eup %6713  ;;  %v11655_v2 = vand.u32 2147483647, %v4038_v61  ;;  %v11660_v19 = vmul.f32 %v11156_v10, %v2230_v45  ;;  %v2442_v32 = vmul.f32 %v10866_v59, %v10866_v59  ;;  %vm3000_vm6 = vcmp.eq.f32.partialorder %v11581_v33, inf }
 0x408   :  { %13091 = vst [vmem:[#allocation184_spill] sm:$0xff] %v11657_v49  ;;  %v2999_v4 = vmul.f32 %v6714_v34, %v11581_v33  ;;  %v3003_v41 = vand.u32 2147483648, %v11581_v33  ;;  %vm3002_vm7 = vcmp.eq.f32.partialorder %v11581_v33, 0.0  ;;  %v1796_v0 = vmax.f32 %v1732_v54, 1e-14 }
 0x409   :  { %6721 = vrsqrt.f32 %v11660_v19  ;;  %vm3505_vm8 = vcmp.eq.f32.partialorder %v11606_v38, inf  ;;  %v2506_v3 = vadd.f32 %v2442_v32, %v2378_v12  ;;  %v3508_v43 = vand.u32 2147483648, %v11606_v38 }
 0x40a   :  { %v6716_v62 = vpop.eup %6715  ;;  %v3001_v17 = vsel %vm3000_vm6, %v11581_v33, %v2999_v4  ;;  %6723 = vrsqrt.f32 %v11665_v58  ;;  %vm3507_vm9 = vcmp.eq.f32.partialorder %v11606_v38, 0.0  ;;  %vm3953_vm10 = vcmp.eq.f32.partialorder %v3079_v29, inf }
 0x40b   :  { %v3504_v11 = vmul.f32 %v6716_v62, %v11606_v38  ;;  %v3004_v24 = vsel %vm3002_vm7, %v3003_v41, %v3001_v17  ;;  %6725 = vrsqrt.f32 %v1796_v0  ;;  %v3956_v45 = vand.u32 2147483648, %v3079_v29 }
 0x40c   :  { %v3080_v59 = vmul.f32 %v11156_v10, %v3004_v24  ;;  %v2570_v34 = vmax.f32 %v2506_v3, 1e-14  ;;  %vm3955_vm11 = vcmp.eq.f32.partialorder %v3079_v29, 0.0  ;;  %vm2233_vm12 = vcmp.eq.f32.partialorder %v11631_v18, inf }
 0x40d   :  { %v3506_v55 = vsel %vm3505_vm8, %v11606_v38, %v3504_v11  ;;  %v6718_v46 = vpop.eup %6717  ;;  %v2236_v38 = vand.u32 2147483648, %v11631_v18  ;;  %vm2235_vm13 = vcmp.eq.f32.partialorder %v11631_v18, 0.0  ;;  %vm3512_vm14 = vcmp.eq.f32.partialorder %v11660_v19, inf }
 0x40e   :  { %6727 = vrsqrt.f32 %v3080_v59  ;;  %v3952_v33 = vmul.f32 %v6718_v46, %v3079_v29  ;;  %v4168_v61 = vsub.f32 %v3080_v59, %v11660_v19  ;;  %v3509_v50 = vsel %vm3507_vm9, %v3508_v43, %v3506_v55 }
 0x40f   :  { %v6720_v1 = vpop.eup %6719  ;;  %6729 = vrsqrt.f32 %v2570_v34  ;;  %vm3514_vm15 = vcmp.eq.f32.partialorder %v11660_v19, 0.0  ;;  %v3515_v43 = vand.u32 2147483648, %v11660_v19  ;;  %vm3007_vm0 = vcmp.eq.f32.partialorder %v11665_v58, inf }
 0x410   :  { %v3954_v4 = vsel %vm3953_vm10, %v3079_v29, %v3952_v33  ;;  %v11682_v12 = vand.u32 2147483647, %v4168_v61  ;;  %v2232_v54 = vmul.f32 %v6720_v1, %v11631_v18  ;;  %vm3009_vm1 = vcmp.eq.f32.partialorder %v11665_v58, 0.0 }
 0x411   :  { %v11685_v32 = vsel %vm3955_vm11, %v3956_v45, %v3954_v4  ;;  %v3010_v61 = vand.u32 2147483648, %v11665_v58  ;;  %vm2240_vm2 = vcmp.eq.f32.partialorder %v1796_v0, inf  ;;  %vm2242_vm3 = vcmp.eq.f32.partialorder %v1796_v0, 0.0 }
 0x412   :  { %13092 = vst [vmem:[#allocation185_spill] sm:$0xff] %v11682_v12  ;;  %13093 = vst [vmem:[#allocation186_spill] sm:$0xff] %v11685_v32  ;;  %v4039_v62 = vsub.f32 %v11685_v32, %v3509_v50  ;;  %v2234_v17 = vsel %vm2233_vm12, %v11631_v18, %v2232_v54  ;;  %vm3960_vm4 = vcmp.eq.f32.partialorder %v3080_v59, inf  ;;  %vm3962_vm5 = vcmp.eq.f32.partialorder %v3080_v59, 0.0 }
 0x413   :  { %v6722_v41 = vpop.eup %6721  ;;  %v2237_v24 = vsel %vm2235_vm13, %v2236_v38, %v2234_v17  ;;  %v2243_v38 = vand.u32 2147483648, %v1796_v0  ;;  %vm3014_vm6 = vcmp.eq.f32.partialorder %v2570_v34, inf  ;;  %vm3016_vm7 = vcmp.eq.f32.partialorder %v2570_v34, 0.0 }
 0x414   :  { %v6724_v11 = vpop.eup %6723  ;;  %v3511_v29 = vmul.f32 %v6722_v41, %v11660_v19  ;;  %v11693_v3 = vand.u32 2147483647, %v4039_v62  ;;  %v2313_v55 = vmul.f32 %v11156_v10, %v2237_v24  ;;  %v3963_v62 = vand.u32 2147483648, %v3080_v59 }
 0x415   :  { %v3006_v46 = vmul.f32 %v6724_v11, %v11665_v58  ;;  %v6726_v33 = vpop.eup %6725 }
 0x416   :  { %v3513_v18 = vsel %vm3512_vm14, %v11660_v19, %v3511_v29  ;;  %6731 = vrsqrt.f32 %v2313_v55  ;;  %v2239_v45 = vmul.f32 %v6726_v33, %v1796_v0  ;;  %vm3519_vm8 = vcmp.eq.f32.partialorder %v2313_v55, inf }
 0x417   :  { %v3008_v50 = vsel %vm3007_vm0, %v11665_v58, %v3006_v46  ;;  %v3516_v41 = vsel %vm3514_vm15, %v3515_v43, %v3513_v18  ;;  %vm3521_vm9 = vcmp.eq.f32.partialorder %v2313_v55, 0.0 }
 0x418   :  { %v6728_v1 = vpop.eup %6727  ;;  %v3011_v54 = vsel %vm3009_vm1, %v3010_v61, %v3008_v50  ;;  %v2241_v11 = vsel %vm2240_vm2, %v1796_v0, %v2239_v45  ;;  %v3017_v0 = vand.u32 2147483648, %v2570_v34 }
 0x419   :  { %v3959_v4 = vmul.f32 %v6728_v1, %v3080_v59  ;;  %v3081_v17 = vmul.f32 %v11156_v10, %v3011_v54  ;;  %v2244_v24 = vsel %vm2242_vm3, %v2243_v38, %v2241_v11  ;;  %v6730_v12 = vpop.eup %6729 }
 0x41a   :  { %v2314_v33 = vmul.f32 %v11156_v10, %v2244_v24  ;;  %v3013_v61 = vmul.f32 %v6730_v12, %v2570_v34  ;;  %v3522_v12 = vand.u32 2147483648, %v2313_v55 }
 0x41b   :  { %v3961_v29 = vsel %vm3960_vm4, %v3080_v59, %v3959_v4  ;;  %6733 = vrsqrt.f32 %v3081_v17  ;;  %v4169_v46 = vsub.f32 %v3081_v17, %v2313_v55  ;;  %vm3967_vm10 = vcmp.eq.f32.partialorder %v3081_v17, inf }
 0x41c   :  { %v11708_v49 = vsel %vm3962_vm5, %v3963_v62, %v3961_v29  ;;  %6735 = vrsqrt.f32 %v2314_v33  ;;  %v3015_v18 = vsel %vm3014_vm6, %v2570_v34, %v3013_v61  ;;  %v3970_v29 = vand.u32 2147483648, %v3081_v17 }
 0x41d   :  { %13094 = vst [vmem:[#allocation187_spill] sm:$0xff] %v11708_v49  ;;  %v4040_v58 = vsub.f32 %v11708_v49, %v3516_v41  ;;  %v11714_v43 = vand.u32 2147483647, %v4169_v46  ;;  %v3018_v1 = vsel %vm3016_vm7, %v3017_v0, %v3015_v18  ;;  %vm3969_vm11 = vcmp.eq.f32.partialorder %v3081_v17, 0.0 }
 0x41e   :  { %v3082_v45 = vmul.f32 %v11156_v10, %v3018_v1  ;;  %vm3526_vm12 = vcmp.eq.f32.partialorder %v2314_v33, inf  ;;  %vm3528_vm13 = vcmp.eq.f32.partialorder %v2314_v33, 0.0 }
 0x41f   :  { %v11712_v19 = vand.u32 2147483647, %v4040_v58  ;;  %13095 = vst [vmem:[#allocation188_spill] sm:$0xff] %v11714_v43  ;;  %v4247_v43 = vld [vmem:[#allocation9 + $0x38] sm:$0xff] (!%p6044_p3) }
 0x420   :  { %v6732_v59 = vpop.eup %6731  ;;  %6737 = vrsqrt.f32 %v3082_v45  ;;  %v4170_v54 = vsub.f32 %v3082_v45, %v2314_v33  ;;  %vm3974_vm14 = vcmp.eq.f32.partialorder %v3082_v45, inf  ;;  %vm3976_vm15 = vcmp.eq.f32.partialorder %v3082_v45, 0.0 }
 0x421   :  { %v3518_v50 = vmul.f32 %v6732_v59, %v2313_v55 }
 0x422   :  { %v11717_v62 = vand.u32 2147483647, %v4170_v54 }
 0x423   :  { %v3520_v4 = vsel %vm3519_vm8, %v2313_v55, %v3518_v50  ;;  %v3529_v55 = vand.u32 2147483648, %v2314_v33  ;;  %v3977_v50 = vand.u32 2147483648, %v3082_v45 }
 0x424   :  { %13096 = vst [vmem:[#allocation189_spill] sm:$0xff] %v11717_v62  ;;  %v3523_v11 = vsel %vm3521_vm9, %v3522_v12, %v3520_v4  ;;  %v4240_v12 = vld [vmem:[#allocation9] sm:$0xff] (!%p6044_p3)  ;;  %v4246_v62 = vld [vmem:[#allocation9 + $0x30] sm:$0xff] (!%p6044_p3) }
 0x425   :  { %v6734_v38 = vpop.eup %6733 }
 0x426   :  { %v3966_v41 = vmul.f32 %v6734_v38, %v3081_v17  ;;  %v6736_v24 = vpop.eup %6735 }
 0x427   :  { %v3525_v46 = vmul.f32 %v6736_v24, %v2314_v33  ;;  %v13100_v24 = vld [vmem:[#allocation23_spill] sm:$0xff] (!%p6044_p3) }
 0x428   :  { %v3968_v34 = vsel %vm3967_vm10, %v3081_v17, %v3966_v41  ;;  %v4241_v41 = vld [vmem:[#allocation9 + $0x8] sm:$0xff] (!%p6044_p3) }
 0x429   :  { %v11719_v58 = vsel %vm3969_vm11, %v3970_v29, %v3968_v34  ;;  %v3527_v0 = vsel %vm3526_vm12, %v2314_v33, %v3525_v46  ;;  %v4242_v33 = vld [vmem:[#allocation9 + $0x10] sm:$0xff] (!%p6044_p3)  ;;  %v4305_v34 = vadd.f32 (!%p6044_p3), %v4241_v41, %v13100_v24  ;;  %v13101_v46 = vld [vmem:[#allocation26_spill] sm:$0xff] (!%p6044_p3) }
 0x42a   :  { %13097 = vst [vmem:[#allocation190_spill] sm:$0xff] %v11719_v58  ;;  %v4041_v10 = vsub.f32 %v11719_v58, %v3523_v11  ;;  %v6738_v18 = vpop.eup %6737  ;;  %v3530_v1 = vsel %vm3528_vm13, %v3529_v55, %v3527_v0  ;;  %v13099_v11 = vld [vmem:[#allocation21_spill] sm:$0xff] (!%p6044_p3)  ;;  %v13102_v55 = vld [vmem:[#allocation28_spill] sm:$0xff] (!%p6044_p3)  ;;  %v13106_v41 = vld [vmem:[#allocation55_spill] sm:$0xff] (!%p6044_p3) }
 0x42b   :  { %v3973_v59 = vmul.f32 %v6738_v18, %v3082_v45  ;;  %4239 = sbr.rel (%p6044_p3) target bundleno = 1201 (0x4b1), region = 33  ;;  %v4304_v29 = vadd.f32 (!%p6044_p3), %v4240_v12, %v13099_v11  ;;  %v4244_v0 = vld [vmem:[#allocation9 + $0x20] sm:$0xff] (!%p6044_p3)  ;;  %v4245_v18 = vld [vmem:[#allocation9 + $0x28] sm:$0xff] (!%p6044_p3)  ;;  %4369 = vst [vmem:[#allocation9 + $0x8] sm:$0xff] (!%p6044_p3), %v4305_v34  ;;  %v13105_v12 = vld [vmem:[#allocation51_spill] sm:$0xff] (!%p6044_p3)  ;;  %v4311_v24 = vadd.f32 (!%p6044_p3), %v4247_v43, %v13106_v41 }
 0x42c   :  { %v11722_v61 = vand.u32 2147483647, %v4041_v10  ;;  %v4243_v10 = vld [vmem:[#allocation9 + $0x18] sm:$0xff] (!%p6044_p3)  ;;  %v4310_v11 = vadd.f32 (!%p6044_p3), %v4246_v62, %v13105_v12  ;;  %v4252_v34 = vld [vmem:[#allocation9 + $0x60] sm:$0xff] (!%p6044_p3)  ;;  %v13111_v43 = vld [vmem:[#allocation70_spill] sm:$0xff] (!%p6044_p3) }
 0x42d   :  { %v3975_v4 = vsel %vm3974_vm14, %v3082_v45, %v3973_v59  ;;  %v4306_v45 = vadd.f32 (!%p6044_p3), %v4242_v33, %v13101_v46  ;;  %v4307_v59 = vadd.f32 (!%p6044_p3), %v4243_v10, %v13102_v55  ;;  %4368 = vst [vmem:[#allocation9] sm:$0xff] (!%p6044_p3), %v4304_v29  ;;  %v13107_v33 = vld [vmem:[#allocation57_spill] sm:$0xff] (!%p6044_p3)  ;;  %4375 = vst [vmem:[#allocation9 + $0x38] sm:$0xff] (!%p6044_p3), %v4311_v24  ;;  %v13113_v41 = vld [vmem:[#allocation31_spill] sm:$0xff] (!%p6044_p3) }
 0x42e   :  { %v11724_v54 = vsel %vm3976_vm15, %v3977_v50, %v3975_v4  ;;  %v13104_v4 = vld [vmem:[#allocation46_spill] sm:$0xff] (!%p6044_p3)  ;;  %v4312_v46 = vadd.f32 (!%p6044_p3), %v4248_v26, %v13107_v33  ;;  %v13108_v10 = vld [vmem:[#allocation61_spill] sm:$0xff] (!%p6044_p3)  ;;  %4374 = vst [vmem:[#allocation9 + $0x30] sm:$0xff] (!%p6044_p3), %v4310_v11  ;;  %v4316_v26 = vadd.f32 (!%p6044_p3), %v4252_v34, %v13111_v43  ;;  %v4258_v24 = vld [vmem:[#allocation9 + $0x90] sm:$0xff] (!%p6044_p3) }
 0x42f   :  { %13098 = vst [vmem:[#allocation191_spill] sm:$0xff] %v11724_v54  ;;  %v4042_v17 = vsub.f32 %v11724_v54, %v3530_v1  ;;  %v13103_v1 = vld [vmem:[#allocation37_spill] sm:$0xff] (!%p6044_p3)  ;;  %4370 = vst [vmem:[#allocation9 + $0x10] sm:$0xff] (!%p6044_p3), %v4306_v45  ;;  %v4253_v45 = vld [vmem:[#allocation9 + $0x68] sm:$0xff] (!%p6044_p3) }
 0x430   :  { %v4308_v50 = vadd.f32 (!%p6044_p3), %v4244_v0, %v13103_v1  ;;  %4371 = vst [vmem:[#allocation9 + $0x18] sm:$0xff] (!%p6044_p3), %v4307_v59  ;;  %v4313_v0 = vadd.f32 (!%p6044_p3), %v4249_v8, %v13108_v10  ;;  %v13110_v1 = vld [vmem:[#allocation67_spill] sm:$0xff] (!%p6044_p3)  ;;  %4376 = vst [vmem:[#allocation9 + $0x40] sm:$0xff] (!%p6044_p3), %v4312_v46  ;;  %v13112_v62 = vld [vmem:[#allocation73_spill] sm:$0xff] (!%p6044_p3) }
 0x431   :  { %v11727_v38 = vand.u32 2147483647, %v4042_v17  ;;  %v4309_v17 = vadd.f32 (!%p6044_p3), %v4245_v18, %v13104_v4  ;;  %v13109_v18 = vld [vmem:[#allocation64_spill] sm:$0xff] (!%p6044_p3)  ;;  %v4315_v29 = vadd.f32 (!%p6044_p3), %v4251_v23, %v13110_v1  ;;  %v4254_v4 = vld [vmem:[#allocation9 + $0x70] sm:$0xff] (!%p6044_p3)  ;;  %v4317_v12 = vadd.f32 (!%p6044_p3), %v4253_v45, %v13112_v62  ;;  %v4257_v33 = vld [vmem:[#allocation9 + $0x88] sm:$0xff] (!%p6044_p3)  ;;  %4380 = vst [vmem:[#allocation9 + $0x60] sm:$0xff] (!%p6044_p3), %v4316_v26 }
 0x432   :  { %4372 = vst [vmem:[#allocation9 + $0x20] sm:$0xff] %v4308_v50  ;;  %v4314_v55 = vadd.f32 %v4250_v57, %v13109_v18  ;;  %v4318_v59 = vadd.f32 %v4254_v4, %v13113_v41  ;;  %v4255_v50 = vld [vmem:[#allocation9 + $0x78] sm:$0xff]  ;;  %4377 = vst [vmem:[#allocation9 + $0x48] sm:$0xff] %v4313_v0  ;;  %v13114_v57 = vld [vmem:[#allocation77_spill] sm:$0xff] }
 0x433   :  { %4373 = vst [vmem:[#allocation9 + $0x28] sm:$0xff] %v4309_v17  ;;  %v4256_v17 = vld [vmem:[#allocation9 + $0x80] sm:$0xff]  ;;  %4379 = vst [vmem:[#allocation9 + $0x58] sm:$0xff] %v4315_v29  ;;  %v4319_v23 = vadd.f32 %v4255_v50, %v13114_v57  ;;  %v13115_v8 = vld [vmem:[#allocation38_spill] sm:$0xff] }
 0x434   :  { %4378 = vst [vmem:[#allocation9 + $0x50] sm:$0xff] %v4314_v55  ;;  %v4320_v10 = vadd.f32 %v4256_v17, %v13115_v8  ;;  %v13116_v18 = vld [vmem:[#allocation84_spill] sm:$0xff]  ;;  %v4260_v1 = vld [vmem:[#allocation9 + $0xa0] sm:$0xff]  ;;  %4381 = vst [vmem:[#allocation9 + $0x68] sm:$0xff] %v4317_v12 }
 0x435   :  { %v4321_v11 = vadd.f32 %v4257_v33, %v13116_v18  ;;  %v4259_v46 = vld [vmem:[#allocation9 + $0x98] sm:$0xff]  ;;  %4382 = vst [vmem:[#allocation9 + $0x70] sm:$0xff] %v4318_v59  ;;  %v13117_v34 = vld [vmem:[#allocation49_spill] sm:$0xff]  ;;  %v13118_v4 = vld [vmem:[#allocation50_spill] sm:$0xff] }
 0x436   :  { %v4322_v45 = vadd.f32 %v4258_v24, %v13117_v34  ;;  %v4323_v43 = vadd.f32 %v4259_v46, %v13118_v4  ;;  %v13119_v62 = vld [vmem:[#allocation93_spill] sm:$0xff]  ;;  %v4261_v55 = vld [vmem:[#allocation9 + $0xa8] sm:$0xff]  ;;  %v4262_v29 = vld [vmem:[#allocation9 + $0xb0] sm:$0xff]  ;;  %4383 = vst [vmem:[#allocation9 + $0x78] sm:$0xff] %v4319_v23 }
 0x437   :  { %v4324_v0 = vadd.f32 %v4260_v1, %v13119_v62  ;;  %v4263_v41 = vld [vmem:[#allocation9 + $0xb8] sm:$0xff]  ;;  %4384 = vst [vmem:[#allocation9 + $0x80] sm:$0xff] %v4320_v10  ;;  %4385 = vst [vmem:[#allocation9 + $0x88] sm:$0xff] %v4321_v11  ;;  %v13121_v33 = vld [vmem:[#allocation99_spill] sm:$0xff] }
 0x438   :  { %v13120_v50 = vld [vmem:[#allocation96_spill] sm:$0xff]  ;;  %v4326_v57 = vadd.f32 %v4262_v29, %v13121_v33  ;;  %v13122_v8 = vld [vmem:[#allocation102_spill] sm:$0xff]  ;;  %v4264_v12 = vld [vmem:[#allocation9 + $0xc0] sm:$0xff]  ;;  %4386 = vst [vmem:[#allocation9 + $0x90] sm:$0xff] %v4322_v45 }
 0x439   :  { %v4325_v17 = vadd.f32 %v4261_v55, %v13120_v50  ;;  %v4327_v26 = vadd.f32 %v4263_v41, %v13122_v8  ;;  %v4265_v59 = vld [vmem:[#allocation9 + $0xc8] sm:$0xff]  ;;  %v4266_v18 = vld [vmem:[#allocation9 + $0xd0] sm:$0xff]  ;;  %4387 = vst [vmem:[#allocation9 + $0x98] sm:$0xff] %v4323_v43  ;;  %4388 = vst [vmem:[#allocation9 + $0xa0] sm:$0xff] %v4324_v0 }
 0x43a   :  { %v13123_v24 = vld [vmem:[#allocation105_spill] sm:$0xff]  ;;  %v13124_v1 = vld [vmem:[#allocation108_spill] sm:$0xff]  ;;  %v13125_v4 = vld [vmem:[#allocation74_spill] sm:$0xff]  ;;  %4390 = vst [vmem:[#allocation9 + $0xb0] sm:$0xff] %v4326_v57 }
 0x43b   :  { %v4328_v46 = vadd.f32 %v4264_v12, %v13123_v24  ;;  %v4329_v34 = vadd.f32 %v4265_v59, %v13124_v1  ;;  %v4330_v23 = vadd.f32 %v4266_v18, %v13125_v4  ;;  %v4267_v10 = vld [vmem:[#allocation9 + $0xd8] sm:$0xff]  ;;  %v4268_v11 = vld [vmem:[#allocation9 + $0xe0] sm:$0xff]  ;;  %v4269_v62 = vld [vmem:[#allocation9 + $0xe8] sm:$0xff]  ;;  %4389 = vst [vmem:[#allocation9 + $0xa8] sm:$0xff] %v4325_v17 }
 0x43c   :  { %4391 = vst [vmem:[#allocation9 + $0xb8] sm:$0xff] %v4327_v26  ;;  %v13126_v55 = vld [vmem:[#allocation115_spill] sm:$0xff]  ;;  %v13128_v33 = vld [vmem:[#allocation81_spill] sm:$0xff]  ;;  %v4271_v0 = vld [vmem:[#allocation9 + $0xf8] sm:$0xff] }
 0x43d   :  { %v4331_v29 = vadd.f32 %v4267_v10, %v13126_v55  ;;  %v13127_v41 = vld [vmem:[#allocation79_spill] sm:$0xff]  ;;  %v4333_v45 = vadd.f32 %v4269_v62, %v13128_v33  ;;  %v4272_v8 = vld [vmem:[#allocation9 + $0x100] sm:$0xff]  ;;  %4392 = vst [vmem:[#allocation9 + $0xc0] sm:$0xff] %v4328_v46  ;;  %4393 = vst [vmem:[#allocation9 + $0xc8] sm:$0xff] %v4329_v34 }
 0x43e   :  { %v4332_v50 = vadd.f32 %v4268_v11, %v13127_v41  ;;  %v4270_v43 = vld [vmem:[#allocation9 + $0xf0] sm:$0xff]  ;;  %4394 = vst [vmem:[#allocation9 + $0xd0] sm:$0xff] %v4330_v23  ;;  %v13129_v12 = vld [vmem:[#allocation120_spill] sm:$0xff]  ;;  %v4273_v57 = vld [vmem:[#allocation9 + $0x108] sm:$0xff] }
 0x43f   :  { %v4334_v59 = vadd.f32 %v4270_v43, %v13129_v12  ;;  %v13130_v18 = vld [vmem:[#allocation124_spill] sm:$0xff]  ;;  %v13131_v1 = vld [vmem:[#allocation91_spill] sm:$0xff]  ;;  %4395 = vst [vmem:[#allocation9 + $0xd8] sm:$0xff] %v4331_v29  ;;  %4397 = vst [vmem:[#allocation9 + $0xe8] sm:$0xff] %v4333_v45 }
 0x440   :  { %v4335_v24 = vadd.f32 %v4271_v0, %v13130_v18  ;;  %v4336_v17 = vadd.f32 %v4272_v8, %v13131_v1  ;;  %v4274_v26 = vld [vmem:[#allocation9 + $0x110] sm:$0xff]  ;;  %v4275_v4 = vld [vmem:[#allocation9 + $0x118] sm:$0xff]  ;;  %4396 = vst [vmem:[#allocation9 + $0xe0] sm:$0xff] %v4332_v50  ;;  %v4276_v34 = vld [vmem:[#allocation9 + $0x120] sm:$0xff] }
 0x441   :  { %v13132_v10 = vld [vmem:[#allocation128_spill] sm:$0xff]  ;;  %v13133_v62 = vld [vmem:[#allocation131_spill] sm:$0xff]  ;;  %v4277_v23 = vld [vmem:[#allocation9 + $0x128] sm:$0xff]  ;;  %4398 = vst [vmem:[#allocation9 + $0xf0] sm:$0xff] %v4334_v59 }
 0x442   :  { %v4337_v11 = vadd.f32 %v4273_v57, %v13132_v10  ;;  %v4338_v55 = vadd.f32 %v4274_v26, %v13133_v62  ;;  %v13134_v41 = vld [vmem:[#allocation136_spill] sm:$0xff]  ;;  %v4278_v33 = vld [vmem:[#allocation9 + $0x130] sm:$0xff]  ;;  %4399 = vst [vmem:[#allocation9 + $0xf8] sm:$0xff] %v4335_v24  ;;  %4400 = vst [vmem:[#allocation9 + $0x100] sm:$0xff] %v4336_v17 }
 0x443   :  { %v4339_v46 = vadd.f32 %v4275_v4, %v13134_v41  ;;  %v13135_v43 = vld [vmem:[#allocation139_spill] sm:$0xff]  ;;  %v13136_v8 = vld [vmem:[#allocation142_spill] sm:$0xff]  ;;  %v13137_v18 = vld [vmem:[#allocation144_spill] sm:$0xff] }
 0x444   :  { %v4340_v0 = vadd.f32 %v4276_v34, %v13135_v43  ;;  %v4341_v12 = vadd.f32 %v4277_v23, %v13136_v8  ;;  %v4342_v29 = vadd.f32 %v4278_v33, %v13137_v18  ;;  %v4279_v50 = vld [vmem:[#allocation9 + $0x138] sm:$0xff]  ;;  %v4280_v45 = vld [vmem:[#allocation9 + $0x140] sm:$0xff]  ;;  %v4281_v1 = vld [vmem:[#allocation9 + $0x148] sm:$0xff]  ;;  %4401 = vst [vmem:[#allocation9 + $0x108] sm:$0xff] %v4337_v11 }
 0x445   :  { %4402 = vst [vmem:[#allocation9 + $0x110] sm:$0xff] %v4338_v55  ;;  %4403 = vst [vmem:[#allocation9 + $0x118] sm:$0xff] %v4339_v46  ;;  %v13138_v57 = vld [vmem:[#allocation147_spill] sm:$0xff]  ;;  %v13139_v4 = vld [vmem:[#allocation150_spill] sm:$0xff] }
 0x446   :  { %v4343_v26 = vadd.f32 %v4279_v50, %v13138_v57  ;;  %v4344_v10 = vadd.f32 %v4280_v45, %v13139_v4  ;;  %v13140_v62 = vld [vmem:[#allocation153_spill] sm:$0xff]  ;;  %v4282_v24 = vld [vmem:[#allocation9 + $0x150] sm:$0xff]  ;;  %v4283_v17 = vld [vmem:[#allocation9 + $0x158] sm:$0xff]  ;;  %4404 = vst [vmem:[#allocation9 + $0x120] sm:$0xff] %v4340_v0 }
 0x447   :  { %v4345_v59 = vadd.f32 %v4281_v1, %v13140_v62  ;;  %v4284_v41 = vld [vmem:[#allocation9 + $0x160] sm:$0xff]  ;;  %4405 = vst [vmem:[#allocation9 + $0x128] sm:$0xff] %v4341_v12  ;;  %4406 = vst [vmem:[#allocation9 + $0x130] sm:$0xff] %v4342_v29  ;;  %v13141_v34 = vld [vmem:[#allocation155_spill] sm:$0xff] }
 0x448   :  { %v4346_v23 = vadd.f32 %v4282_v24, %v13141_v34  ;;  %v13142_v33 = vld [vmem:[#allocation157_spill] sm:$0xff]  ;;  %v13143_v8 = vld [vmem:[#allocation162_spill] sm:$0xff]  ;;  %v4286_v46 = vld [vmem:[#allocation9 + $0x170] sm:$0xff]  ;;  %4407 = vst [vmem:[#allocation9 + $0x138] sm:$0xff] %v4343_v26 }
 0x449   :  { %v4347_v43 = vadd.f32 %v4283_v17, %v13142_v33  ;;  %v4348_v11 = vadd.f32 %v4284_v41, %v13143_v8  ;;  %v4285_v55 = vld [vmem:[#allocation9 + $0x168] sm:$0xff]  ;;  %v4287_v18 = vld [vmem:[#allocation9 + $0x178] sm:$0xff]  ;;  %4408 = vst [vmem:[#allocation9 + $0x140] sm:$0xff] %v4344_v10  ;;  %4409 = vst [vmem:[#allocation9 + $0x148] sm:$0xff] %v4345_v59 }
 0x44a   :  { %v4349_v50 = vadd.f32 %v4285_v55, %v10757_v48  ;;  %v13144_v45 = vld [vmem:[#allocation168_spill] sm:$0xff]  ;;  %v13145_v57 = vld [vmem:[#allocation170_spill] sm:$0xff]  ;;  %v4288_v12 = vld [vmem:[#allocation9 + $0x180] sm:$0xff]  ;;  %4410 = vst [vmem:[#allocation9 + $0x150] sm:$0xff] %v4346_v23 }
 0x44b   :  { %v4350_v1 = vadd.f32 %v4286_v46, %v13144_v45  ;;  %v4351_v0 = vadd.f32 %v4287_v18, %v13145_v57  ;;  %v4289_v29 = vld [vmem:[#allocation9 + $0x188] sm:$0xff]  ;;  %v4290_v4 = vld [vmem:[#allocation9 + $0x190] sm:$0xff]  ;;  %4411 = vst [vmem:[#allocation9 + $0x158] sm:$0xff] %v4347_v43  ;;  %4412 = vst [vmem:[#allocation9 + $0x160] sm:$0xff] %v4348_v11  ;;  %v4352_v62 = vadd.f32 %v4288_v12, %v10959_v28 }
 0x44c   :  { %v4353_v24 = vadd.f32 %v4289_v29, %v11025_v31  ;;  %v4354_v26 = vadd.f32 %v4290_v4, %v11089_v39  ;;  %v4291_v10 = vld [vmem:[#allocation9 + $0x198] sm:$0xff]  ;;  %v4292_v59 = vld [vmem:[#allocation9 + $0x1a0] sm:$0xff]  ;;  %v4293_v17 = vld [vmem:[#allocation9 + $0x1a8] sm:$0xff]  ;;  %4413 = vst [vmem:[#allocation9 + $0x168] sm:$0xff] %v4349_v50 }
 0x44d   :  { %4414 = vst [vmem:[#allocation9 + $0x170] sm:$0xff] %v4350_v1  ;;  %4415 = vst [vmem:[#allocation9 + $0x178] sm:$0xff] %v4351_v0  ;;  %v4355_v41 = vadd.f32 %v4291_v10, %v11151_v63  ;;  %v4356_v34 = vadd.f32 %v4292_v59, %v11218_v27  ;;  %v4357_v23 = vadd.f32 %v4293_v17, %v11300_v22  ;;  %v4294_v33 = vld [vmem:[#allocation9 + $0x1b0] sm:$0xff]  ;;  %v4295_v43 = vld [vmem:[#allocation9 + $0x1b8] sm:$0xff] }
 0x44e   :  { %v4296_v8 = vld [vmem:[#allocation9 + $0x1c0] sm:$0xff]  ;;  %4416 = vst [vmem:[#allocation9 + $0x180] sm:$0xff] %v4352_v62  ;;  %4417 = vst [vmem:[#allocation9 + $0x188] sm:$0xff] %v4353_v24  ;;  %v4358_v11 = vadd.f32 %v4294_v33, %v11340_v37  ;;  %v4359_v55 = vadd.f32 %v4295_v43, %v11422_v5  ;;  %v4297_v18 = vld [vmem:[#allocation9 + $0x1c8] sm:$0xff] }
 0x44f   :  { %4418 = vst [vmem:[#allocation9 + $0x190] sm:$0xff] %v4354_v26  ;;  %v4360_v46 = vadd.f32 %v4296_v8, %v11475_v30  ;;  %v4298_v50 = vld [vmem:[#allocation9 + $0x1d0] sm:$0xff]  ;;  %v4299_v45 = vld [vmem:[#allocation9 + $0x1d8] sm:$0xff]  ;;  %4419 = vst [vmem:[#allocation9 + $0x198] sm:$0xff] %v4355_v41  ;;  %v4361_v1 = vadd.f32 %v4297_v18, %v11569_v16 }
 0x450   :  { %4420 = vst [vmem:[#allocation9 + $0x1a0] sm:$0xff] %v4356_v34  ;;  %4421 = vst [vmem:[#allocation9 + $0x1a8] sm:$0xff] %v4357_v23  ;;  %v4362_v57 = vadd.f32 %v4298_v50, %v11621_v35  ;;  %v4363_v0 = vadd.f32 %v4299_v45, %v11655_v2  ;;  %v4300_v12 = vld [vmem:[#allocation9 + $0x1e0] sm:$0xff]  ;;  %v4301_v29 = vld [vmem:[#allocation9 + $0x1e8] sm:$0xff] }
 0x451   :  { %v4302_v4 = vld [vmem:[#allocation9 + $0x1f0] sm:$0xff]  ;;  %4422 = vst [vmem:[#allocation9 + $0x1b0] sm:$0xff] %v4358_v11  ;;  %4423 = vst [vmem:[#allocation9 + $0x1b8] sm:$0xff] %v4359_v55  ;;  %v4364_v62 = vadd.f32 %v4300_v12, %v11693_v3  ;;  %v4365_v24 = vadd.f32 %v4301_v29, %v11712_v19  ;;  %v4303_v10 = vld [vmem:[#allocation9 + $0x1f8] sm:$0xff] }
 0x452   :  { %4424 = vst [vmem:[#allocation9 + $0x1c0] sm:$0xff] %v4360_v46  ;;  %v4366_v26 = vadd.f32 %v4302_v4, %v11722_v61  ;;  %v4432_v59 = vld [vmem:[#allocation10] sm:$0xff]  ;;  %v4433_v17 = vld [vmem:[#allocation10 + $0x8] sm:$0xff]  ;;  %4425 = vst [vmem:[#allocation9 + $0x1c8] sm:$0xff] %v4361_v1  ;;  %v4367_v41 = vadd.f32 %v4303_v10, %v11727_v38 }
 0x453   :  { %4426 = vst [vmem:[#allocation9 + $0x1d0] sm:$0xff] %v4362_v57  ;;  %4427 = vst [vmem:[#allocation9 + $0x1d8] sm:$0xff] %v4363_v0  ;;  %v13146_v34 = vld [vmem:[#allocation19_spill] sm:$0xff]  ;;  %v13147_v33 = vld [vmem:[#allocation22_spill] sm:$0xff] }
 0x454   :  { %v4496_v23 = vadd.f32 %v4432_v59, %v13146_v34  ;;  %v4497_v43 = vadd.f32 %v4433_v17, %v13147_v33  ;;  %v4434_v8 = vld [vmem:[#allocation10 + $0x10] sm:$0xff]  ;;  %v4435_v11 = vld [vmem:[#allocation10 + $0x18] sm:$0xff]  ;;  %v4436_v55 = vld [vmem:[#allocation10 + $0x20] sm:$0xff]  ;;  %4428 = vst [vmem:[#allocation9 + $0x1e0] sm:$0xff] %v4364_v62 }
 0x455   :  { %4429 = vst [vmem:[#allocation9 + $0x1e8] sm:$0xff] %v4365_v24  ;;  %4430 = vst [vmem:[#allocation9 + $0x1f0] sm:$0xff] %v4366_v26  ;;  %v13148_v46 = vld [vmem:[#allocation25_spill] sm:$0xff]  ;;  %v13149_v50 = vld [vmem:[#allocation27_spill] sm:$0xff] }
 0x456   :  { %v4498_v18 = vadd.f32 %v4434_v8, %v13148_v46  ;;  %v4499_v45 = vadd.f32 %v4435_v11, %v13149_v50  ;;  %v13150_v12 = vld [vmem:[#allocation34_spill] sm:$0xff]  ;;  %v4438_v0 = vld [vmem:[#allocation10 + $0x30] sm:$0xff]  ;;  %v4439_v29 = vld [vmem:[#allocation10 + $0x38] sm:$0xff]  ;;  %4431 = vst [vmem:[#allocation9 + $0x1f8] sm:$0xff] %v4367_v41 }
 0x457   :  { %v4500_v1 = vadd.f32 %v4436_v55, %v13150_v12  ;;  %v4437_v57 = vld [vmem:[#allocation10 + $0x28] sm:$0xff]  ;;  %4560 = vst [vmem:[#allocation10] sm:$0xff] %v4496_v23  ;;  %4561 = vst [vmem:[#allocation10 + $0x8] sm:$0xff] %v4497_v43  ;;  %v13151_v4 = vld [vmem:[#allocation45_spill] sm:$0xff] }
 0x458   :  { %v4501_v10 = vadd.f32 %v4437_v57, %v13151_v4  ;;  %v13152_v59 = vld [vmem:[#allocation48_spill] sm:$0xff]  ;;  %v13153_v34 = vld [vmem:[#allocation54_spill] sm:$0xff]  ;;  %v4440_v24 = vld [vmem:[#allocation10 + $0x40] sm:$0xff]  ;;  %4562 = vst [vmem:[#allocation10 + $0x10] sm:$0xff] %v4498_v18 }
 0x459   :  { %v4502_v17 = vadd.f32 %v4438_v0, %v13152_v59  ;;  %v4503_v62 = vadd.f32 %v4439_v29, %v13153_v34  ;;  %v4441_v26 = vld [vmem:[#allocation10 + $0x48] sm:$0xff]  ;;  %v4442_v33 = vld [vmem:[#allocation10 + $0x50] sm:$0xff]  ;;  %4563 = vst [vmem:[#allocation10 + $0x18] sm:$0xff] %v4499_v45  ;;  %4564 = vst [vmem:[#allocation10 + $0x20] sm:$0xff] %v4500_v1 }
 0x45a   :  { %v13154_v8 = vld [vmem:[#allocation56_spill] sm:$0xff]  ;;  %v13155_v55 = vld [vmem:[#allocation59_spill] sm:$0xff]  ;;  %v4444_v43 = vld [vmem:[#allocation10 + $0x60] sm:$0xff]  ;;  %4565 = vst [vmem:[#allocation10 + $0x28] sm:$0xff] %v4501_v10 }
 0x45b   :  { %v4504_v11 = vadd.f32 %v4440_v24, %v13154_v8  ;;  %v4505_v46 = vadd.f32 %v4441_v26, %v13155_v55  ;;  %v13156_v50 = vld [vmem:[#allocation63_spill] sm:$0xff]  ;;  %v4443_v23 = vld [vmem:[#allocation10 + $0x58] sm:$0xff]  ;;  %v4445_v12 = vld [vmem:[#allocation10 + $0x68] sm:$0xff]  ;;  %4566 = vst [vmem:[#allocation10 + $0x30] sm:$0xff] %v4502_v17 }
 0x45c   :  { %v4506_v41 = vadd.f32 %v4442_v33, %v13156_v50  ;;  %4567 = vst [vmem:[#allocation10 + $0x38] sm:$0xff] %v4503_v62  ;;  %v13157_v57 = vld [vmem:[#allocation66_spill] sm:$0xff]  ;;  %v13158_v29 = vld [vmem:[#allocation68_spill] sm:$0xff]  ;;  %v4446_v45 = vld [vmem:[#allocation10 + $0x70] sm:$0xff] }
 0x45d   :  { %v4507_v0 = vadd.f32 %v4443_v23, %v13157_v57  ;;  %v4508_v4 = vadd.f32 %v4444_v43, %v13158_v29  ;;  %v13159_v59 = vld [vmem:[#allocation72_spill] sm:$0xff]  ;;  %v4448_v34 = vld [vmem:[#allocation10 + $0x80] sm:$0xff]  ;;  %4568 = vst [vmem:[#allocation10 + $0x40] sm:$0xff] %v4504_v11  ;;  %4569 = vst [vmem:[#allocation10 + $0x48] sm:$0xff] %v4505_v46 }
 0x45e   :  { %v4509_v18 = vadd.f32 %v4445_v12, %v13159_v59  ;;  %v4447_v1 = vld [vmem:[#allocation10 + $0x78] sm:$0xff]  ;;  %4570 = vst [vmem:[#allocation10 + $0x50] sm:$0xff] %v4506_v41  ;;  %v13160_v24 = vld [vmem:[#allocation30_spill] sm:$0xff]  ;;  %v13161_v33 = vld [vmem:[#allocation35_spill] sm:$0xff] }
 0x45f   :  { %v4510_v26 = vadd.f32 %v4446_v45, %v13160_v24  ;;  %v4511_v8 = vadd.f32 %v4447_v1, %v13161_v33  ;;  %v13162_v55 = vld [vmem:[#allocation82_spill] sm:$0xff]  ;;  %v4450_v62 = vld [vmem:[#allocation10 + $0x90] sm:$0xff]  ;;  %v4451_v50 = vld [vmem:[#allocation10 + $0x98] sm:$0xff]  ;;  %4571 = vst [vmem:[#allocation10 + $0x58] sm:$0xff] %v4507_v0 }
 0x460   :  { %v4512_v10 = vadd.f32 %v4448_v34, %v13162_v55  ;;  %v4449_v17 = vld [vmem:[#allocation10 + $0x88] sm:$0xff]  ;;  %4572 = vst [vmem:[#allocation10 + $0x60] sm:$0xff] %v4508_v4  ;;  %4573 = vst [vmem:[#allocation10 + $0x68] sm:$0xff] %v4509_v18  ;;  %v13163_v23 = vld [vmem:[#allocation43_spill] sm:$0xff] }
 0x461   :  { %v4513_v43 = vadd.f32 %v4449_v17, %v13163_v23  ;;  %v13164_v12 = vld [vmem:[#allocation85_spill] sm:$0xff]  ;;  %v13165_v29 = vld [vmem:[#allocation52_spill] sm:$0xff]  ;;  %v4453_v41 = vld [vmem:[#allocation10 + $0xa8] sm:$0xff]  ;;  %4574 = vst [vmem:[#allocation10 + $0x70] sm:$0xff] %v4510_v26 }
 0x462   :  { %v4514_v57 = vadd.f32 %v4450_v62, %v13164_v12  ;;  %v4515_v11 = vadd.f32 %v4451_v50, %v13165_v29  ;;  %v4452_v46 = vld [vmem:[#allocation10 + $0xa0] sm:$0xff]  ;;  %v4454_v59 = vld [vmem:[#allocation10 + $0xb0] sm:$0xff]  ;;  %4575 = vst [vmem:[#allocation10 + $0x78] sm:$0xff] %v4511_v8  ;;  %4576 = vst [vmem:[#allocation10 + $0x80] sm:$0xff] %v4512_v10 }
 0x463   :  { %v13166_v45 = vld [vmem:[#allocation92_spill] sm:$0xff]  ;;  %v13167_v34 = vld [vmem:[#allocation95_spill] sm:$0xff]  ;;  %v13168_v33 = vld [vmem:[#allocation97_spill] sm:$0xff]  ;;  %4577 = vst [vmem:[#allocation10 + $0x88] sm:$0xff] %v4513_v43 }
 0x464   :  { %v4516_v1 = vadd.f32 %v4452_v46, %v13166_v45  ;;  %v4517_v24 = vadd.f32 %v4453_v41, %v13167_v34  ;;  %v4518_v0 = vadd.f32 %v4454_v59, %v13168_v33  ;;  %v4455_v4 = vld [vmem:[#allocation10 + $0xb8] sm:$0xff]  ;;  %v4456_v18 = vld [vmem:[#allocation10 + $0xc0] sm:$0xff]  ;;  %v4457_v55 = vld [vmem:[#allocation10 + $0xc8] sm:$0xff]  ;;  %4578 = vst [vmem:[#allocation10 + $0x90] sm:$0xff] %v4514_v57 }
 0x465   :  { %4579 = vst [vmem:[#allocation10 + $0x98] sm:$0xff] %v4515_v11  ;;  %v13169_v17 = vld [vmem:[#allocation100_spill] sm:$0xff]  ;;  %v13170_v50 = vld [vmem:[#allocation103_spill] sm:$0xff]  ;;  %v4460_v29 = vld [vmem:[#allocation10 + $0xe0] sm:$0xff] }
 0x466   :  { %v4519_v62 = vadd.f32 %v4455_v4, %v13169_v17  ;;  %v4520_v23 = vadd.f32 %v4456_v18, %v13170_v50  ;;  %v13171_v12 = vld [vmem:[#allocation107_spill] sm:$0xff]  ;;  %v4459_v10 = vld [vmem:[#allocation10 + $0xd8] sm:$0xff]  ;;  %4580 = vst [vmem:[#allocation10 + $0xa0] sm:$0xff] %v4516_v1  ;;  %4581 = vst [vmem:[#allocation10 + $0xa8] sm:$0xff] %v4517_v24 }
 0x467   :  { %v4521_v26 = vadd.f32 %v4457_v55, %v13171_v12  ;;  %v4458_v8 = vld [vmem:[#allocation10 + $0xd0] sm:$0xff]  ;;  %4582 = vst [vmem:[#allocation10 + $0xb0] sm:$0xff] %v4518_v0  ;;  %v13172_v46 = vld [vmem:[#allocation109_spill] sm:$0xff]  ;;  %v13173_v59 = vld [vmem:[#allocation114_spill] sm:$0xff] }
 0x468   :  { %v4522_v41 = vadd.f32 %v4458_v8, %v13172_v46  ;;  %v4523_v45 = vadd.f32 %v4459_v10, %v13173_v59  ;;  %v13174_v34 = vld [vmem:[#allocation78_spill] sm:$0xff]  ;;  %v4462_v11 = vld [vmem:[#allocation10 + $0xf0] sm:$0xff]  ;;  %v4463_v33 = vld [vmem:[#allocation10 + $0xf8] sm:$0xff]  ;;  %4583 = vst [vmem:[#allocation10 + $0xb8] sm:$0xff] %v4519_v62 }
 0x469   :  { %v4524_v43 = vadd.f32 %v4460_v29, %v13174_v34  ;;  %v4461_v57 = vld [vmem:[#allocation10 + $0xe8] sm:$0xff]  ;;  %4584 = vst [vmem:[#allocation10 + $0xc0] sm:$0xff] %v4520_v23  ;;  %4585 = vst [vmem:[#allocation10 + $0xc8] sm:$0xff] %v4521_v26  ;;  %v13175_v4 = vld [vmem:[#allocation80_spill] sm:$0xff] }
 0x46a   :  { %v4525_v18 = vadd.f32 %v4461_v57, %v13175_v4  ;;  %v13176_v55 = vld [vmem:[#allocation117_spill] sm:$0xff]  ;;  %v13177_v50 = vld [vmem:[#allocation122_spill] sm:$0xff]  ;;  %v4466_v12 = vld [vmem:[#allocation10 + $0x110] sm:$0xff]  ;;  %4586 = vst [vmem:[#allocation10 + $0xd0] sm:$0xff] %v4522_v41 }
 0x46b   :  { %v4526_v17 = vadd.f32 %v4462_v11, %v13176_v55  ;;  %v4527_v1 = vadd.f32 %v4463_v33, %v13177_v50  ;;  %v4464_v24 = vld [vmem:[#allocation10 + $0x100] sm:$0xff]  ;;  %v4465_v0 = vld [vmem:[#allocation10 + $0x108] sm:$0xff]  ;;  %4587 = vst [vmem:[#allocation10 + $0xd8] sm:$0xff] %v4523_v45  ;;  %4588 = vst [vmem:[#allocation10 + $0xe0] sm:$0xff] %v4524_v43 }
 0x46c   :  { %v13178_v8 = vld [vmem:[#allocation90_spill] sm:$0xff]  ;;  %v13180_v59 = vld [vmem:[#allocation129_spill] sm:$0xff]  ;;  %v4467_v23 = vld [vmem:[#allocation10 + $0x118] sm:$0xff]  ;;  %4589 = vst [vmem:[#allocation10 + $0xe8] sm:$0xff] %v4525_v18 }
 0x46d   :  { %v4528_v10 = vadd.f32 %v4464_v24, %v13178_v8  ;;  %v13179_v29 = vld [vmem:[#allocation126_spill] sm:$0xff]  ;;  %v4530_v62 = vadd.f32 %v4466_v12, %v13180_v59  ;;  %v4468_v26 = vld [vmem:[#allocation10 + $0x120] sm:$0xff]  ;;  %4590 = vst [vmem:[#allocation10 + $0xf0] sm:$0xff] %v4526_v17  ;;  %4591 = vst [vmem:[#allocation10 + $0xf8] sm:$0xff] %v4527_v1 }
 0x46e   :  { %v4529_v46 = vadd.f32 %v4465_v0, %v13179_v29  ;;  %v4469_v34 = vld [vmem:[#allocation10 + $0x128] sm:$0xff]  ;;  %v13183_v55 = vld [vmem:[#allocation141_spill] sm:$0xff]  ;;  %v4470_v45 = vld [vmem:[#allocation10 + $0x130] sm:$0xff] }
 0x46f   :  { %v13181_v57 = vld [vmem:[#allocation134_spill] sm:$0xff]  ;;  %v4533_v41 = vadd.f32 %v4469_v34, %v13183_v55  ;;  %v4471_v43 = vld [vmem:[#allocation10 + $0x138] sm:$0xff]  ;;  %v4472_v50 = vld [vmem:[#allocation10 + $0x140] sm:$0xff]  ;;  %4592 = vst [vmem:[#allocation10 + $0x100] sm:$0xff] %v4528_v10 }
 0x470   :  { %v4531_v11 = vadd.f32 %v4467_v23, %v13181_v57  ;;  %v13182_v33 = vld [vmem:[#allocation138_spill] sm:$0xff]  ;;  %4593 = vst [vmem:[#allocation10 + $0x108] sm:$0xff] %v4529_v46  ;;  %4594 = vst [vmem:[#allocation10 + $0x110] sm:$0xff] %v4530_v62  ;;  %v13184_v24 = vld [vmem:[#allocation143_spill] sm:$0xff] }
 0x471   :  { %v4532_v4 = vadd.f32 %v4468_v26, %v13182_v33  ;;  %v4534_v0 = vadd.f32 %v4470_v45, %v13184_v24  ;;  %v13185_v12 = vld [vmem:[#allocation33_spill] sm:$0xff]  ;;  %v4473_v17 = vld [vmem:[#allocation10 + $0x148] sm:$0xff]  ;;  %v4474_v1 = vld [vmem:[#allocation10 + $0x150] sm:$0xff]  ;;  %4597 = vst [vmem:[#allocation10 + $0x128] sm:$0xff] %v4533_v41 }
 0x472   :  { %v4535_v8 = vadd.f32 %v4471_v43, %v13185_v12  ;;  %v13186_v29 = vld [vmem:[#allocation149_spill] sm:$0xff]  ;;  %v4475_v59 = vld [vmem:[#allocation10 + $0x158] sm:$0xff]  ;;  %4595 = vst [vmem:[#allocation10 + $0x118] sm:$0xff] %v4531_v11  ;;  %v13188_v34 = vld [vmem:[#allocation39_spill] sm:$0xff] }
 0x473   :  { %v4536_v18 = vadd.f32 %v4472_v50, %v13186_v29  ;;  %4596 = vst [vmem:[#allocation10 + $0x120] sm:$0xff] %v4532_v4  ;;  %v13187_v23 = vld [vmem:[#allocation152_spill] sm:$0xff]  ;;  %v4538_v57 = vadd.f32 %v4474_v1, %v13188_v34  ;;  %v13189_v33 = vld [vmem:[#allocation119_spill] sm:$0xff]  ;;  %v4476_v46 = vld [vmem:[#allocation10 + $0x160] sm:$0xff] }
 0x474   :  { %v4537_v26 = vadd.f32 %v4473_v17, %v13187_v23  ;;  %v4539_v10 = vadd.f32 %v4475_v59, %v13189_v33  ;;  %v4477_v62 = vld [vmem:[#allocation10 + $0x168] sm:$0xff]  ;;  %v4478_v55 = vld [vmem:[#allocation10 + $0x170] sm:$0xff]  ;;  %4598 = vst [vmem:[#allocation10 + $0x130] sm:$0xff] %v4534_v0  ;;  %4599 = vst [vmem:[#allocation10 + $0x138] sm:$0xff] %v4535_v8 }
 0x475   :  { %4600 = vst [vmem:[#allocation10 + $0x140] sm:$0xff] %v4536_v18  ;;  %v13190_v45 = vld [vmem:[#allocation160_spill] sm:$0xff]  ;;  %v13191_v50 = vld [vmem:[#allocation165_spill] sm:$0xff]  ;;  %v13192_v12 = vld [vmem:[#allocation166_spill] sm:$0xff] }
 0x476   :  { %v4540_v43 = vadd.f32 %v4476_v46, %v13190_v45  ;;  %v4541_v24 = vadd.f32 %v4477_v62, %v13191_v50  ;;  %v4542_v11 = vadd.f32 %v4478_v55, %v13192_v12  ;;  %v4479_v4 = vld [vmem:[#allocation10 + $0x178] sm:$0xff]  ;;  %v4480_v41 = vld [vmem:[#allocation10 + $0x180] sm:$0xff]  ;;  %v4481_v29 = vld [vmem:[#allocation10 + $0x188] sm:$0xff]  ;;  %4601 = vst [vmem:[#allocation10 + $0x148] sm:$0xff] %v4537_v26 }
 0x477   :  { %4602 = vst [vmem:[#allocation10 + $0x150] sm:$0xff] %v4538_v57  ;;  %4603 = vst [vmem:[#allocation10 + $0x158] sm:$0xff] %v4539_v10  ;;  %v13193_v17 = vld [vmem:[#allocation169_spill] sm:$0xff]  ;;  %v4544_v59 = vadd.f32 %v4480_v41, %v10944_v20  ;;  %v4545_v0 = vadd.f32 %v4481_v29, %v11008_v7  ;;  %v4482_v8 = vld [vmem:[#allocation10 + $0x190] sm:$0xff] }
 0x478   :  { %v4543_v1 = vadd.f32 %v4479_v4, %v13193_v17  ;;  %v4483_v18 = vld [vmem:[#allocation10 + $0x198] sm:$0xff]  ;;  %v4484_v23 = vld [vmem:[#allocation10 + $0x1a0] sm:$0xff]  ;;  %4604 = vst [vmem:[#allocation10 + $0x160] sm:$0xff] %v4540_v43  ;;  %4605 = vst [vmem:[#allocation10 + $0x168] sm:$0xff] %v4541_v24  ;;  %v4546_v34 = vadd.f32 %v4482_v8, %v11072_v14 }
 0x479   :  { %4606 = vst [vmem:[#allocation10 + $0x170] sm:$0xff] %v4542_v11  ;;  %v4547_v33 = vadd.f32 %v4483_v18, %v11131_v42  ;;  %v4548_v26 = vadd.f32 %v4484_v23, %v11200_v15  ;;  %v4485_v57 = vld [vmem:[#allocation10 + $0x1a8] sm:$0xff]  ;;  %v4486_v10 = vld [vmem:[#allocation10 + $0x1b0] sm:$0xff]  ;;  %v4487_v46 = vld [vmem:[#allocation10 + $0x1b8] sm:$0xff] }
 0x47a   :  { %4607 = vst [vmem:[#allocation10 + $0x178] sm:$0xff] %v4543_v1  ;;  %4608 = vst [vmem:[#allocation10 + $0x180] sm:$0xff] %v4544_v59  ;;  %v4549_v62 = vadd.f32 %v4485_v57, %v11286_v25  ;;  %v4550_v55 = vadd.f32 %v4486_v10, %v11325_v9  ;;  %v4551_v45 = vadd.f32 %v4487_v46, %v11407_v53  ;;  %v4488_v43 = vld [vmem:[#allocation10 + $0x1c0] sm:$0xff]  ;;  %v4489_v50 = vld [vmem:[#allocation10 + $0x1c8] sm:$0xff] }
 0x47b   :  { %4609 = vst [vmem:[#allocation10 + $0x188] sm:$0xff] %v4545_v0  ;;  %v4490_v24 = vld [vmem:[#allocation10 + $0x1d0] sm:$0xff]  ;;  %4610 = vst [vmem:[#allocation10 + $0x190] sm:$0xff] %v4546_v34  ;;  %v4552_v12 = vadd.f32 %v4488_v43, %v11457_v52  ;;  %v4553_v11 = vadd.f32 %v4489_v50, %v11555_v56  ;;  %v4491_v41 = vld [vmem:[#allocation10 + $0x1d8] sm:$0xff] }
 0x47c   :  { %4611 = vst [vmem:[#allocation10 + $0x198] sm:$0xff] %v4547_v33  ;;  %4612 = vst [vmem:[#allocation10 + $0x1a0] sm:$0xff] %v4548_v26  ;;  %v4554_v4 = vadd.f32 %v4490_v24, %v11603_v13  ;;  %v4492_v29 = vld [vmem:[#allocation10 + $0x1e0] sm:$0xff]  ;;  %v4493_v17 = vld [vmem:[#allocation10 + $0x1e8] sm:$0xff]  ;;  %v4555_v1 = vadd.f32 %v4491_v41, %v11642_v47 }
 0x47d   :  { %4613 = vst [vmem:[#allocation10 + $0x1a8] sm:$0xff] %v4549_v62  ;;  %4614 = vst [vmem:[#allocation10 + $0x1b0] sm:$0xff] %v4550_v55  ;;  %v4556_v59 = vadd.f32 %v4492_v29, %v11685_v32  ;;  %v4557_v0 = vadd.f32 %v4493_v17, %v11708_v49  ;;  %v4494_v8 = vld [vmem:[#allocation10 + $0x1f0] sm:$0xff]  ;;  %v4495_v18 = vld [vmem:[#allocation10 + $0x1f8] sm:$0xff] }
 0x47e   :  { %4615 = vst [vmem:[#allocation10 + $0x1b8] sm:$0xff] %v4551_v45  ;;  %v4624_v23 = vld [vmem:[#allocation12] sm:$0xff]  ;;  %4616 = vst [vmem:[#allocation10 + $0x1c0] sm:$0xff] %v4552_v12  ;;  %v4558_v34 = vadd.f32 %v4494_v8, %v11719_v58  ;;  %v4559_v33 = vadd.f32 %v4495_v18, %v11724_v54  ;;  %v4625_v10 = vld [vmem:[#allocation12 + $0x8] sm:$0xff] }
 0x47f   :  { %4617 = vst [vmem:[#allocation10 + $0x1c8] sm:$0xff] %v4553_v11  ;;  %4618 = vst [vmem:[#allocation10 + $0x1d0] sm:$0xff] %v4554_v4  ;;  %v13194_v26 = vld [vmem:[#allocation17_spill] sm:$0xff]  ;;  %v4626_v46 = vld [vmem:[#allocation12 + $0x10] sm:$0xff] }
 0x480   :  { %v4688_v57 = vadd.f32 %v4624_v23, %v13194_v26  ;;  %v4627_v62 = vld [vmem:[#allocation12 + $0x18] sm:$0xff]  ;;  %4619 = vst [vmem:[#allocation10 + $0x1d8] sm:$0xff] %v4555_v1  ;;  %4620 = vst [vmem:[#allocation10 + $0x1e0] sm:$0xff] %v4556_v59  ;;  %v13195_v55 = vld [vmem:[#allocation18_spill] sm:$0xff] }
 0x481   :  { %4621 = vst [vmem:[#allocation10 + $0x1e8] sm:$0xff] %v4557_v0  ;;  %v4689_v45 = vadd.f32 %v4625_v10, %v13195_v55  ;;  %v13196_v43 = vld [vmem:[#allocation20_spill] sm:$0xff]  ;;  %v4628_v11 = vld [vmem:[#allocation12 + $0x20] sm:$0xff]  ;;  %v4629_v4 = vld [vmem:[#allocation12 + $0x28] sm:$0xff] }
 0x482   :  { %v4690_v50 = vadd.f32 %v4626_v46, %v13196_v43  ;;  %v13197_v24 = vld [vmem:[#allocation24_spill] sm:$0xff]  ;;  %v4630_v41 = vld [vmem:[#allocation12 + $0x30] sm:$0xff]  ;;  %4622 = vst [vmem:[#allocation10 + $0x1f0] sm:$0xff] %v4558_v34  ;;  %4623 = vst [vmem:[#allocation10 + $0x1f8] sm:$0xff] %v4559_v33 }
 0x483   :  { %v4691_v12 = vadd.f32 %v4627_v62, %v13197_v24  ;;  %4752 = vst [vmem:[#allocation12] sm:$0xff] %v4688_v57  ;;  %v13198_v29 = vld [vmem:[#allocation29_spill] sm:$0xff]  ;;  %v13199_v8 = vld [vmem:[#allocation36_spill] sm:$0xff]  ;;  %v4633_v26 = vld [vmem:[#allocation12 + $0x48] sm:$0xff] }
 0x484   :  { %v4692_v17 = vadd.f32 %v4628_v11, %v13198_v29  ;;  %v4693_v18 = vadd.f32 %v4629_v4, %v13199_v8  ;;  %v13200_v23 = vld [vmem:[#allocation44_spill] sm:$0xff]  ;;  %v4632_v0 = vld [vmem:[#allocation12 + $0x40] sm:$0xff]  ;;  %4753 = vst [vmem:[#allocation12 + $0x8] sm:$0xff] %v4689_v45  ;;  %4754 = vst [vmem:[#allocation12 + $0x10] sm:$0xff] %v4690_v50 }
 0x485   :  { %v4694_v1 = vadd.f32 %v4630_v41, %v13200_v23  ;;  %v4631_v59 = vld [vmem:[#allocation12 + $0x38] sm:$0xff]  ;;  %4755 = vst [vmem:[#allocation12 + $0x18] sm:$0xff] %v4691_v12  ;;  %v13201_v10 = vld [vmem:[#allocation47_spill] sm:$0xff]  ;;  %v13202_v62 = vld [vmem:[#allocation53_spill] sm:$0xff] }
 0x486   :  { %v4695_v46 = vadd.f32 %v4631_v59, %v13201_v10  ;;  %v4696_v55 = vadd.f32 %v4632_v0, %v13202_v62  ;;  %v13203_v43 = vld [vmem:[#allocation58_spill] sm:$0xff]  ;;  %v4634_v33 = vld [vmem:[#allocation12 + $0x50] sm:$0xff]  ;;  %v4635_v57 = vld [vmem:[#allocation12 + $0x58] sm:$0xff]  ;;  %4756 = vst [vmem:[#allocation12 + $0x20] sm:$0xff] %v4692_v17 }
 0x487   :  { %v4697_v34 = vadd.f32 %v4633_v26, %v13203_v43  ;;  %v4636_v24 = vld [vmem:[#allocation12 + $0x60] sm:$0xff]  ;;  %4757 = vst [vmem:[#allocation12 + $0x28] sm:$0xff] %v4693_v18  ;;  %4758 = vst [vmem:[#allocation12 + $0x30] sm:$0xff] %v4694_v1  ;;  %v13204_v11 = vld [vmem:[#allocation60_spill] sm:$0xff] }
 0x488   :  { %v4698_v4 = vadd.f32 %v4634_v33, %v13204_v11  ;;  %v13205_v41 = vld [vmem:[#allocation62_spill] sm:$0xff]  ;;  %v13206_v8 = vld [vmem:[#allocation65_spill] sm:$0xff]  ;;  %v4638_v12 = vld [vmem:[#allocation12 + $0x70] sm:$0xff]  ;;  %4759 = vst [vmem:[#allocation12 + $0x38] sm:$0xff] %v4695_v46 }
 0x489   :  { %v4699_v29 = vadd.f32 %v4635_v57, %v13205_v41  ;;  %v4700_v45 = vadd.f32 %v4636_v24, %v13206_v8  ;;  %v4637_v50 = vld [vmem:[#allocation12 + $0x68] sm:$0xff]  ;;  %v4639_v23 = vld [vmem:[#allocation12 + $0x78] sm:$0xff]  ;;  %4760 = vst [vmem:[#allocation12 + $0x40] sm:$0xff] %v4696_v55  ;;  %4761 = vst [vmem:[#allocation12 + $0x48] sm:$0xff] %v4697_v34 }
 0x48a   :  { %v13207_v59 = vld [vmem:[#allocation69_spill] sm:$0xff]  ;;  %v13208_v26 = vld [vmem:[#allocation71_spill] sm:$0xff]  ;;  %v13209_v62 = vld [vmem:[#allocation76_spill] sm:$0xff]  ;;  %4762 = vst [vmem:[#allocation12 + $0x50] sm:$0xff] %v4698_v4 }
 0x48b   :  { %v4701_v0 = vadd.f32 %v4637_v50, %v13207_v59  ;;  %v4702_v10 = vadd.f32 %v4638_v12, %v13208_v26  ;;  %v4703_v17 = vadd.f32 %v4639_v23, %v13209_v62  ;;  %v4640_v18 = vld [vmem:[#allocation12 + $0x80] sm:$0xff]  ;;  %v4641_v1 = vld [vmem:[#allocation12 + $0x88] sm:$0xff]  ;;  %v4642_v43 = vld [vmem:[#allocation12 + $0x90] sm:$0xff]  ;;  %4763 = vst [vmem:[#allocation12 + $0x58] sm:$0xff] %v4699_v29 }
 0x48c   :  { %4764 = vst [vmem:[#allocation12 + $0x60] sm:$0xff] %v4700_v45  ;;  %v13210_v33 = vld [vmem:[#allocation32_spill] sm:$0xff]  ;;  %v13211_v24 = vld [vmem:[#allocation83_spill] sm:$0xff]  ;;  %v13212_v41 = vld [vmem:[#allocation42_spill] sm:$0xff] }
 0x48d   :  { %v4704_v57 = vadd.f32 %v4640_v18, %v13210_v33  ;;  %v4705_v11 = vadd.f32 %v4641_v1, %v13211_v24  ;;  %v4706_v46 = vadd.f32 %v4642_v43, %v13212_v41  ;;  %v4643_v55 = vld [vmem:[#allocation12 + $0x98] sm:$0xff]  ;;  %v4644_v34 = vld [vmem:[#allocation12 + $0xa0] sm:$0xff]  ;;  %v4645_v8 = vld [vmem:[#allocation12 + $0xa8] sm:$0xff]  ;;  %4765 = vst [vmem:[#allocation12 + $0x68] sm:$0xff] %v4701_v0 }
 0x48e   :  { %4766 = vst [vmem:[#allocation12 + $0x70] sm:$0xff] %v4702_v10  ;;  %4767 = vst [vmem:[#allocation12 + $0x78] sm:$0xff] %v4703_v17  ;;  %v13213_v50 = vld [vmem:[#allocation86_spill] sm:$0xff]  ;;  %v13214_v23 = vld [vmem:[#allocation87_spill] sm:$0xff] }
 0x48f   :  { %v4707_v12 = vadd.f32 %v4643_v55, %v13213_v50  ;;  %v4708_v59 = vadd.f32 %v4644_v34, %v13214_v23  ;;  %v13215_v26 = vld [vmem:[#allocation89_spill] sm:$0xff]  ;;  %v4646_v29 = vld [vmem:[#allocation12 + $0xb0] sm:$0xff]  ;;  %v4647_v45 = vld [vmem:[#allocation12 + $0xb8] sm:$0xff]  ;;  %4768 = vst [vmem:[#allocation12 + $0x80] sm:$0xff] %v4704_v57 }
 0x490   :  { %v4709_v4 = vadd.f32 %v4645_v8, %v13215_v26  ;;  %v4648_v62 = vld [vmem:[#allocation12 + $0xc0] sm:$0xff]  ;;  %4769 = vst [vmem:[#allocation12 + $0x88] sm:$0xff] %v4705_v11  ;;  %4770 = vst [vmem:[#allocation12 + $0x90] sm:$0xff] %v4706_v46  ;;  %v13216_v18 = vld [vmem:[#allocation94_spill] sm:$0xff] }
 0x491   :  { %v4710_v1 = vadd.f32 %v4646_v29, %v13216_v18  ;;  %v13217_v43 = vld [vmem:[#allocation98_spill] sm:$0xff]  ;;  %v13218_v24 = vld [vmem:[#allocation101_spill] sm:$0xff]  ;;  %v4650_v17 = vld [vmem:[#allocation12 + $0xd0] sm:$0xff]  ;;  %4771 = vst [vmem:[#allocation12 + $0x98] sm:$0xff] %v4707_v12 }
 0x492   :  { %v4711_v33 = vadd.f32 %v4647_v45, %v13217_v43  ;;  %v4712_v0 = vadd.f32 %v4648_v62, %v13218_v24  ;;  %v4649_v10 = vld [vmem:[#allocation12 + $0xc8] sm:$0xff]  ;;  %v4651_v41 = vld [vmem:[#allocation12 + $0xd8] sm:$0xff]  ;;  %4772 = vst [vmem:[#allocation12 + $0xa0] sm:$0xff] %v4708_v59  ;;  %4773 = vst [vmem:[#allocation12 + $0xa8] sm:$0xff] %v4709_v4 }
 0x493   :  { %v13219_v55 = vld [vmem:[#allocation104_spill] sm:$0xff]  ;;  %v13220_v8 = vld [vmem:[#allocation106_spill] sm:$0xff]  ;;  %v4652_v11 = vld [vmem:[#allocation12 + $0xe0] sm:$0xff]  ;;  %4774 = vst [vmem:[#allocation12 + $0xb0] sm:$0xff] %v4710_v1 }
 0x494   :  { %v4713_v34 = vadd.f32 %v4649_v10, %v13219_v55  ;;  %v4714_v50 = vadd.f32 %v4650_v17, %v13220_v8  ;;  %v13221_v23 = vld [vmem:[#allocation110_spill] sm:$0xff]  ;;  %v4654_v26 = vld [vmem:[#allocation12 + $0xf0] sm:$0xff]  ;;  %4775 = vst [vmem:[#allocation12 + $0xb8] sm:$0xff] %v4711_v33  ;;  %4776 = vst [vmem:[#allocation12 + $0xc0] sm:$0xff] %v4712_v0 }
 0x495   :  { %v4715_v57 = vadd.f32 %v4651_v41, %v13221_v23  ;;  %v4653_v46 = vld [vmem:[#allocation12 + $0xe8] sm:$0xff]  ;;  %v13222_v29 = vld [vmem:[#allocation113_spill] sm:$0xff]  ;;  %v13223_v62 = vld [vmem:[#allocation116_spill] sm:$0xff] }
 0x496   :  { %v4716_v45 = vadd.f32 %v4652_v11, %v13222_v29  ;;  %v4717_v18 = vadd.f32 %v4653_v46, %v13223_v62  ;;  %v13224_v43 = vld [vmem:[#allocation40_spill] sm:$0xff]  ;;  %v4656_v4 = vld [vmem:[#allocation12 + $0x100] sm:$0xff]  ;;  %v4657_v24 = vld [vmem:[#allocation12 + $0x108] sm:$0xff]  ;;  %4777 = vst [vmem:[#allocation12 + $0xc8] sm:$0xff] %v4713_v34 }
 0x497   :  { %v4718_v12 = vadd.f32 %v4654_v26, %v13224_v43  ;;  %v4655_v59 = vld [vmem:[#allocation12 + $0xf8] sm:$0xff]  ;;  %4778 = vst [vmem:[#allocation12 + $0xd0] sm:$0xff] %v4714_v50  ;;  %4779 = vst [vmem:[#allocation12 + $0xd8] sm:$0xff] %v4715_v57  ;;  %v13225_v10 = vld [vmem:[#allocation41_spill] sm:$0xff] }
 0x498   :  { %v4719_v17 = vadd.f32 %v4655_v59, %v13225_v10  ;;  %v13226_v41 = vld [vmem:[#allocation123_spill] sm:$0xff]  ;;  %v13227_v8 = vld [vmem:[#allocation125_spill] sm:$0xff]  ;;  %v4659_v0 = vld [vmem:[#allocation12 + $0x118] sm:$0xff]  ;;  %4780 = vst [vmem:[#allocation12 + $0xe0] sm:$0xff] %v4716_v45 }
 0x499   :  { %v4720_v55 = vadd.f32 %v4656_v4, %v13226_v41  ;;  %v4721_v1 = vadd.f32 %v4657_v24, %v13227_v8  ;;  %v4658_v33 = vld [vmem:[#allocation12 + $0x110] sm:$0xff]  ;;  %v4660_v23 = vld [vmem:[#allocation12 + $0x120] sm:$0xff]  ;;  %4781 = vst [vmem:[#allocation12 + $0xe8] sm:$0xff] %v4717_v18  ;;  %4782 = vst [vmem:[#allocation12 + $0xf0] sm:$0xff] %v4718_v12 }
 0x49a   :  { %v13228_v11 = vld [vmem:[#allocation127_spill] sm:$0xff]  ;;  %v13229_v26 = vld [vmem:[#allocation130_spill] sm:$0xff]  ;;  %v4663_v43 = vld [vmem:[#allocation12 + $0x138] sm:$0xff]  ;;  %4783 = vst [vmem:[#allocation12 + $0xf8] sm:$0xff] %v4719_v17 }
 0x49b   :  { %v4722_v46 = vadd.f32 %v4658_v33, %v13228_v11  ;;  %v4723_v29 = vadd.f32 %v4659_v0, %v13229_v26  ;;  %v13230_v62 = vld [vmem:[#allocation135_spill] sm:$0xff]  ;;  %v4661_v50 = vld [vmem:[#allocation12 + $0x128] sm:$0xff]  ;;  %4784 = vst [vmem:[#allocation12 + $0x100] sm:$0xff] %v4720_v55  ;;  %4785 = vst [vmem:[#allocation12 + $0x108] sm:$0xff] %v4721_v1 }
 0x49c   :  { %v4724_v34 = vadd.f32 %v4660_v23, %v13230_v62  ;;  %v4662_v57 = vld [vmem:[#allocation12 + $0x130] sm:$0xff]  ;;  %v13231_v59 = vld [vmem:[#allocation137_spill] sm:$0xff]  ;;  %v13232_v24 = vld [vmem:[#allocation140_spill] sm:$0xff] }
 0x49d   :  { %v4725_v4 = vadd.f32 %v4661_v50, %v13231_v59  ;;  %v4726_v10 = vadd.f32 %v4662_v57, %v13232_v24  ;;  %v13233_v41 = vld [vmem:[#allocation145_spill] sm:$0xff]  ;;  %v4665_v12 = vld [vmem:[#allocation12 + $0x148] sm:$0xff]  ;;  %v4666_v8 = vld [vmem:[#allocation12 + $0x150] sm:$0xff]  ;;  %4786 = vst [vmem:[#allocation12 + $0x110] sm:$0xff] %v4722_v46 }
 0x49e   :  { %v4727_v45 = vadd.f32 %v4663_v43, %v13233_v41  ;;  %v4664_v18 = vld [vmem:[#allocation12 + $0x140] sm:$0xff]  ;;  %4787 = vst [vmem:[#allocation12 + $0x118] sm:$0xff] %v4723_v29  ;;  %4788 = vst [vmem:[#allocation12 + $0x120] sm:$0xff] %v4724_v34  ;;  %v13234_v33 = vld [vmem:[#allocation146_spill] sm:$0xff] }
 0x49f   :  { %v4728_v0 = vadd.f32 %v4664_v18, %v13234_v33  ;;  %v13235_v23 = vld [vmem:[#allocation148_spill] sm:$0xff]  ;;  %v13236_v26 = vld [vmem:[#allocation151_spill] sm:$0xff]  ;;  %v4668_v1 = vld [vmem:[#allocation12 + $0x160] sm:$0xff]  ;;  %4789 = vst [vmem:[#allocation12 + $0x128] sm:$0xff] %v4725_v4 }
 0x4a0   :  { %v4729_v11 = vadd.f32 %v4665_v12, %v13235_v23  ;;  %v4730_v17 = vadd.f32 %v4666_v8, %v13236_v26  ;;  %v4667_v55 = vld [vmem:[#allocation12 + $0x158] sm:$0xff]  ;;  %v4669_v62 = vld [vmem:[#allocation12 + $0x168] sm:$0xff]  ;;  %4790 = vst [vmem:[#allocation12 + $0x130] sm:$0xff] %v4726_v10  ;;  %4791 = vst [vmem:[#allocation12 + $0x138] sm:$0xff] %v4727_v45 }
 0x4a1   :  { %v13237_v50 = vld [vmem:[#allocation154_spill] sm:$0xff]  ;;  %v13239_v24 = vld [vmem:[#allocation161_spill] sm:$0xff]  ;;  %v4670_v29 = vld [vmem:[#allocation12 + $0x170] sm:$0xff]  ;;  %4792 = vst [vmem:[#allocation12 + $0x140] sm:$0xff] %v4728_v0 }
 0x4a2   :  { %v4731_v57 = vadd.f32 %v4667_v55, %v13237_v50  ;;  %v13238_v43 = vld [vmem:[#allocation158_spill] sm:$0xff]  ;;  %v4733_v46 = vadd.f32 %v4669_v62, %v13239_v24  ;;  %v4671_v34 = vld [vmem:[#allocation12 + $0x178] sm:$0xff]  ;;  %v4672_v41 = vld [vmem:[#allocation12 + $0x180] sm:$0xff]  ;;  %4793 = vst [vmem:[#allocation12 + $0x148] sm:$0xff] %v4729_v11 }
 0x4a3   :  { %v4732_v59 = vadd.f32 %v4668_v1, %v13238_v43  ;;  %4794 = vst [vmem:[#allocation12 + $0x150] sm:$0xff] %v4730_v17  ;;  %v13240_v18 = vld [vmem:[#allocation163_spill] sm:$0xff]  ;;  %v13242_v23 = vld [vmem:[#allocation132_spill] sm:$0xff]  ;;  %v4673_v10 = vld [vmem:[#allocation12 + $0x188] sm:$0xff] }
 0x4a4   :  { %v4734_v12 = vadd.f32 %v4670_v29, %v13240_v18  ;;  %v13241_v8 = vld [vmem:[#allocation167_spill] sm:$0xff]  ;;  %v4736_v4 = vadd.f32 %v4672_v41, %v13242_v23  ;;  %v4675_v26 = vld [vmem:[#allocation12 + $0x198] sm:$0xff]  ;;  %4795 = vst [vmem:[#allocation12 + $0x158] sm:$0xff] %v4731_v57  ;;  %4797 = vst [vmem:[#allocation12 + $0x168] sm:$0xff] %v4733_v46  ;;  %v4737_v55 = vadd.f32 %v4673_v10, %v10937_v51 }
 0x4a5   :  { %v4735_v33 = vadd.f32 %v4671_v34, %v13241_v8  ;;  %v4674_v45 = vld [vmem:[#allocation12 + $0x190] sm:$0xff]  ;;  %4796 = vst [vmem:[#allocation12 + $0x160] sm:$0xff] %v4732_v59  ;;  %v4739_v0 = vadd.f32 %v4675_v26, %v11064_v36  ;;  %v4676_v11 = vld [vmem:[#allocation12 + $0x1a0] sm:$0xff]  ;;  %v4677_v17 = vld [vmem:[#allocation12 + $0x1a8] sm:$0xff] }
 0x4a6   :  { %v4738_v1 = vadd.f32 %v4674_v45, %v11000_v6  ;;  %v4678_v62 = vld [vmem:[#allocation12 + $0x1b0] sm:$0xff]  ;;  %4798 = vst [vmem:[#allocation12 + $0x170] sm:$0xff] %v4734_v12  ;;  %4800 = vst [vmem:[#allocation12 + $0x180] sm:$0xff] %v4736_v4  ;;  %v4740_v50 = vadd.f32 %v4676_v11, %v11126_v40  ;;  %v4741_v43 = vadd.f32 %v4677_v17, %v11220_v44  ;;  %v4679_v59 = vld [vmem:[#allocation12 + $0x1b8] sm:$0xff] }
 0x4a7   :  { %4799 = vst [vmem:[#allocation12 + $0x178] sm:$0xff] %v4735_v33  ;;  %v4742_v57 = vadd.f32 %v4678_v62, %v11253_v21  ;;  %v4680_v24 = vld [vmem:[#allocation12 + $0x1c0] sm:$0xff]  ;;  %v4681_v46 = vld [vmem:[#allocation12 + $0x1c8] sm:$0xff]  ;;  %4801 = vst [vmem:[#allocation12 + $0x188] sm:$0xff] %v4737_v55  ;;  %v4743_v29 = vadd.f32 %v4679_v59, %v11342_v60 }
 0x4a8   :  { %4802 = vst [vmem:[#allocation12 + $0x190] sm:$0xff] %v4738_v1  ;;  %4803 = vst [vmem:[#allocation12 + $0x198] sm:$0xff] %v4739_v0  ;;  %v13243_v34 = vld [vmem:[#allocation118_spill] sm:$0xff]  ;;  %v13244_v18 = vld [vmem:[#allocation88_spill] sm:$0xff] }
 0x4a9   :  { %v4744_v41 = vadd.f32 %v4680_v24, %v13243_v34  ;;  %v4745_v12 = vadd.f32 %v4681_v46, %v13244_v18  ;;  %v4682_v8 = vld [vmem:[#allocation12 + $0x1d0] sm:$0xff]  ;;  %v4683_v33 = vld [vmem:[#allocation12 + $0x1d8] sm:$0xff]  ;;  %v4684_v23 = vld [vmem:[#allocation12 + $0x1e0] sm:$0xff]  ;;  %4804 = vst [vmem:[#allocation12 + $0x1a0] sm:$0xff] %v4740_v50 }
 0x4aa   :  { %4805 = vst [vmem:[#allocation12 + $0x1a8] sm:$0xff] %v4741_v43  ;;  %4806 = vst [vmem:[#allocation12 + $0x1b0] sm:$0xff] %v4742_v57  ;;  %v13245_v4 = vld [vmem:[#allocation180_spill] sm:$0xff]  ;;  %v13246_v45 = vld [vmem:[#allocation181_spill] sm:$0xff] }
 0x4ab   :  { %v4746_v10 = vadd.f32 %v4682_v8, %v13245_v4  ;;  %v4747_v26 = vadd.f32 %v4683_v33, %v13246_v45  ;;  %v13247_v11 = vld [vmem:[#allocation184_spill] sm:$0xff]  ;;  %v4685_v1 = vld [vmem:[#allocation12 + $0x1e8] sm:$0xff]  ;;  %v4686_v0 = vld [vmem:[#allocation12 + $0x1f0] sm:$0xff]  ;;  %4807 = vst [vmem:[#allocation12 + $0x1b8] sm:$0xff] %v4743_v29 }
 0x4ac   :  { %v4748_v55 = vadd.f32 %v4684_v23, %v13247_v11  ;;  %v4687_v17 = vld [vmem:[#allocation12 + $0x1f8] sm:$0xff]  ;;  %4808 = vst [vmem:[#allocation12 + $0x1c0] sm:$0xff] %v4744_v41  ;;  %4809 = vst [vmem:[#allocation12 + $0x1c8] sm:$0xff] %v4745_v12  ;;  %v13248_v62 = vld [vmem:[#allocation185_spill] sm:$0xff] }
 0x4ad   :  { %v4749_v59 = vadd.f32 %v4685_v1, %v13248_v62  ;;  %v13249_v24 = vld [vmem:[#allocation188_spill] sm:$0xff]  ;;  %v13250_v34 = vld [vmem:[#allocation189_spill] sm:$0xff]  ;;  %4810 = vst [vmem:[#allocation12 + $0x1d0] sm:$0xff] %v4746_v10  ;;  %4811 = vst [vmem:[#allocation12 + $0x1d8] sm:$0xff] %v4747_v26 }
 0x4ae   :  { %v4750_v46 = vadd.f32 %v4686_v0, %v13249_v24  ;;  %v4751_v50 = vadd.f32 %v4687_v17, %v13250_v34  ;;  %4812 = vst [vmem:[#allocation12 + $0x1e0] sm:$0xff] %v4748_v55 }
 0x4af   :  { %4813 = vst [vmem:[#allocation12 + $0x1e8] sm:$0xff] %v4749_v59 }
 0x4b0   :  { %4814 = vst [vmem:[#allocation12 + $0x1f0] sm:$0xff] %v4750_v46  ;;  %4815 = vst [vmem:[#allocation12 + $0x1f8] sm:$0xff] %v4751_v50 }
 0x4b1 PF:  { %p6046_p4 = scmp.ge.s32.totalorder %s12690_s0, 512 }
 0x4b3   :  { %4819 = sbr.rel (%p6046_p4) target bundleno = 1408 (0x580), region = 37 }
 0x4ba   :  { %v4820_v43 = vlaneseq  ;;  %v11930_v57 = vstv %s12690_s0  ;;  %v6870_v8 = vmov 0.0   ;;  %v5143_v23 = vld [vmem:[#allocation9] sm:$0xff]  ;;  %v5144_v1 = vld [vmem:[#allocation9 + $0x8] sm:$0xff]  ;;  %v5145_v17 = vld [vmem:[#allocation9 + $0x10] sm:$0xff] }
 0x4bb   :  { %v13252_v26 = vld [vmem:[#allocation21_spill] sm:$0xff]  ;;  %v5146_v59 = vld [vmem:[#allocation9 + $0x18] sm:$0xff]  ;;  %v13255_v46 = vld [vmem:[#allocation23_spill] sm:$0xff] }
 0x4bc   :  { %v11932_v29 = vshrl.u32 %v4820_v43, 7  ;;  %v13256_v50 = vld [vmem:[#allocation26_spill] sm:$0xff]  ;;  %v13258_v60 = vld [vmem:[#allocation37_spill] sm:$0xff]  ;;  %v5149_v40 = vld [vmem:[#allocation9 + $0x30] sm:$0xff] }
 0x4bd   :  { %v13262_v36 = vld [vmem:[#allocation57_spill] sm:$0xff]  ;;  %v13267_v58 = vld [vmem:[#allocation70_spill] sm:$0xff] }
 0x4be   :  { %vm4951_vm0 = vcmp.lt.s32.totalorder %v11932_v29, %v11930_v57  ;;  %v4822_v41 = vadd.s32 8, %v11932_v29  ;;  %v4823_v18 = vadd.s32 16, %v11932_v29  ;;  %v4824_v12 = vadd.s32 24, %v11932_v29  ;;  %v13271_v13 = vld [vmem:[#allocation38_spill] sm:$0xff]  ;;  %v13275_v9 = vld [vmem:[#allocation93_spill] sm:$0xff] }
 0x4bf   :  { %v11940_v33 = vsel %vm4951_vm0, 1.0, %v6870_v8  ;;  %v4825_v4 = vadd.s32 32, %v11932_v29  ;;  %v4826_v10 = vadd.s32 40, %v11932_v29  ;;  %v4827_v45 = vadd.s32 48, %v11932_v29  ;;  %v13283_v14 = vld [vmem:[#allocation105_spill] sm:$0xff] }
 0x4c0   :  { %13251 = vst [vmem:[#allocation192_spill] sm:$0xff] %v11940_v33  ;;  %v5207_v11 = vmul.f32 %v11940_v33, %v13252_v26  ;;  %vm4952_vm1 = vcmp.lt.s32.totalorder %v4822_v41, %v11930_v57  ;;  %vm4953_vm2 = vcmp.lt.s32.totalorder %v4823_v18, %v11930_v57  ;;  %vm4954_vm3 = vcmp.lt.s32.totalorder %v4824_v12, %v11930_v57  ;;  %v13257_v41 = vld [vmem:[#allocation28_spill] sm:$0xff]  ;;  %v5147_v26 = vld [vmem:[#allocation9 + $0x20] sm:$0xff] }
 0x4c1   :  { %v11951_v55 = vsel %vm4952_vm1, 1.0, %v6870_v8  ;;  %v11954_v0 = vsel %vm4953_vm2, 1.0, %v6870_v8  ;;  %v11957_v62 = vsel %vm4954_vm3, 1.0, %v6870_v8  ;;  %vm4955_vm4 = vcmp.lt.s32.totalorder %v4825_v4, %v11930_v57 }
 0x4c2   :  { %13253 = vst [vmem:[#allocation193_spill] sm:$0xff] %v11951_v55  ;;  %13254 = vst [vmem:[#allocation194_spill] sm:$0xff] %v11954_v0  ;;  %v5271_v24 = vadd.f32 %v5207_v11, %v5143_v23  ;;  %v5208_v34 = vmul.f32 %v11951_v55, %v13255_v46  ;;  %v5209_v43 = vmul.f32 %v11954_v0, %v13256_v50  ;;  %v11967_v12 = vsel %vm4955_vm4, 1.0, %v6870_v8 }
 0x4c3   :  { %v5210_v18 = vmul.f32 %v11957_v62, %v13257_v41  ;;  %vm4956_vm5 = vcmp.lt.s32.totalorder %v4826_v10, %v11930_v57  ;;  %vm4957_vm6 = vcmp.lt.s32.totalorder %v4827_v45, %v11930_v57  ;;  %v4828_v4 = vadd.s32 56, %v11932_v29  ;;  %v5148_v41 = vld [vmem:[#allocation9 + $0x28] sm:$0xff] }
 0x4c4   :  { %5335 = vst [vmem:[#allocation9] sm:$0xff] %v5271_v24  ;;  %v5272_v23 = vadd.f32 %v5208_v34, %v5144_v1  ;;  %v5273_v11 = vadd.f32 %v5209_v43, %v5145_v17  ;;  %v5211_v50 = vmul.f32 %v11967_v12, %v13258_v60  ;;  %v11975_v21 = vsel %vm4956_vm5, 1.0, %v6870_v8  ;;  %v13259_v1 = vld [vmem:[#allocation46_spill] sm:$0xff]  ;;  %v13260_v60 = vld [vmem:[#allocation51_spill] sm:$0xff]  ;;  %v5150_v34 = vld [vmem:[#allocation9 + $0x38] sm:$0xff] }
 0x4c5   :  { %v5274_v46 = vadd.f32 %v5210_v18, %v5146_v59  ;;  %v11978_v44 = vsel %vm4957_vm6, 1.0, %v6870_v8  ;;  %vm4958_vm7 = vcmp.lt.s32.totalorder %v4828_v4, %v11930_v57  ;;  %v4829_v10 = vadd.s32 64, %v11932_v29  ;;  %v13261_v43 = vld [vmem:[#allocation55_spill] sm:$0xff] }
 0x4c6   :  { %5336 = vst [vmem:[#allocation9 + $0x8] sm:$0xff] %v5272_v23  ;;  %5337 = vst [vmem:[#allocation9 + $0x10] sm:$0xff] %v5273_v11  ;;  %v5275_v45 = vadd.f32 %v5211_v50, %v5147_v26  ;;  %v5212_v17 = vmul.f32 %v11975_v21, %v13259_v1  ;;  %v5213_v59 = vmul.f32 %v11978_v44, %v13260_v60  ;;  %v11987_v24 = vsel %vm4958_vm7, 1.0, %v6870_v8  ;;  %v5151_v50 = vld [vmem:[#allocation9 + $0x40] sm:$0xff] }
 0x4c7   :  { %5338 = vst [vmem:[#allocation9 + $0x18] sm:$0xff] %v5274_v46  ;;  %v5214_v18 = vmul.f32 %v11987_v24, %v13261_v43  ;;  %vm4959_vm8 = vcmp.lt.s32.totalorder %v4829_v10, %v11930_v57  ;;  %v4830_v4 = vadd.s32 72, %v11932_v29  ;;  %v4831_v23 = vadd.s32 80, %v11932_v29  ;;  %v13265_v43 = vld [vmem:[#allocation64_spill] sm:$0xff] }
 0x4c8   :  { %5339 = vst [vmem:[#allocation9 + $0x20] sm:$0xff] %v5275_v45  ;;  %v5276_v26 = vadd.f32 %v5212_v17, %v5148_v41  ;;  %v5277_v11 = vadd.f32 %v5213_v59, %v5149_v40  ;;  %v11995_v46 = vsel %vm4959_vm8, 1.0, %v6870_v8  ;;  %v4832_v1 = vadd.s32 88, %v11932_v29  ;;  %v5152_v40 = vld [vmem:[#allocation9 + $0x48] sm:$0xff]  ;;  %v5153_v45 = vld [vmem:[#allocation9 + $0x50] sm:$0xff]  ;;  %v13264_v59 = vld [vmem:[#allocation61_spill] sm:$0xff] }
 0x4c9   :  { %v5278_v60 = vadd.f32 %v5214_v18, %v5150_v34  ;;  %v5215_v6 = vmul.f32 %v11995_v46, %v13262_v36  ;;  %vm4960_vm9 = vcmp.lt.s32.totalorder %v4830_v4, %v11930_v57  ;;  %vm4961_vm10 = vcmp.lt.s32.totalorder %v4831_v23, %v11930_v57  ;;  %v5154_v23 = vld [vmem:[#allocation9 + $0x58] sm:$0xff] }
 0x4ca   :  { %5340 = vst [vmem:[#allocation9 + $0x28] sm:$0xff] %v5276_v26  ;;  %5341 = vst [vmem:[#allocation9 + $0x30] sm:$0xff] %v5277_v11  ;;  %v12003_v10 = vsel %vm4960_vm9, 1.0, %v6870_v8  ;;  %v12006_v41 = vsel %vm4961_vm10, 1.0, %v6870_v8  ;;  %vm4962_vm11 = vcmp.lt.s32.totalorder %v4832_v1, %v11930_v57  ;;  %v4833_v17 = vadd.s32 96, %v11932_v29  ;;  %v13266_v26 = vld [vmem:[#allocation67_spill] sm:$0xff] }
 0x4cb   :  { %13263 = vst [vmem:[#allocation195_spill] sm:$0xff] %v12006_v41  ;;  %5342 = vst [vmem:[#allocation9 + $0x38] sm:$0xff] %v5278_v60  ;;  %v5279_v36 = vadd.f32 %v5215_v6, %v5151_v50  ;;  %v5216_v34 = vmul.f32 %v12003_v10, %v13264_v59  ;;  %v5217_v18 = vmul.f32 %v12006_v41, %v13265_v43  ;;  %v12015_v4 = vsel %vm4962_vm11, 1.0, %v6870_v8  ;;  %v5155_v43 = vld [vmem:[#allocation9 + $0x60] sm:$0xff] }
 0x4cc   :  { %v5218_v11 = vmul.f32 %v12015_v4, %v13266_v26  ;;  %vm4963_vm12 = vcmp.lt.s32.totalorder %v4833_v17, %v11930_v57  ;;  %v4834_v1 = vadd.s32 104, %v11932_v29  ;;  %v4835_v60 = vadd.s32 112, %v11932_v29  ;;  %v13269_v26 = vld [vmem:[#allocation31_spill] sm:$0xff] }
 0x4cd   :  { %5343 = vst [vmem:[#allocation9 + $0x40] sm:$0xff] %v5279_v36  ;;  %v5280_v6 = vadd.f32 %v5216_v34, %v5152_v40  ;;  %v5281_v50 = vadd.f32 %v5217_v18, %v5153_v45  ;;  %v12023_v59 = vsel %vm4963_vm12, 1.0, %v6870_v8  ;;  %v4836_v51 = vadd.s32 120, %v11932_v29  ;;  %v5156_v40 = vld [vmem:[#allocation9 + $0x68] sm:$0xff]  ;;  %v5157_v36 = vld [vmem:[#allocation9 + $0x70] sm:$0xff]  ;;  %v13268_v18 = vld [vmem:[#allocation73_spill] sm:$0xff] }
 0x4ce   :  { %v5282_v54 = vadd.f32 %v5218_v11, %v5154_v23  ;;  %v5219_v49 = vmul.f32 %v12023_v59, %v13267_v58  ;;  %vm4964_vm13 = vcmp.lt.s32.totalorder %v4834_v1, %v11930_v57  ;;  %vm4965_vm14 = vcmp.lt.s32.totalorder %v4835_v60, %v11930_v57  ;;  %v5158_v60 = vld [vmem:[#allocation9 + $0x78] sm:$0xff] }
 0x4cf   :  { %5344 = vst [vmem:[#allocation9 + $0x48] sm:$0xff] %v5280_v6  ;;  %5345 = vst [vmem:[#allocation9 + $0x50] sm:$0xff] %v5281_v50  ;;  %v12031_v17 = vsel %vm4964_vm13, 1.0, %v6870_v8  ;;  %v12034_v45 = vsel %vm4965_vm14, 1.0, %v6870_v8  ;;  %vm4966_vm15 = vcmp.lt.s32.totalorder %v4836_v51, %v11930_v57  ;;  %v4837_v34 = vadd.s32 128, %v11932_v29  ;;  %v13270_v6 = vld [vmem:[#allocation77_spill] sm:$0xff] }
 0x4d0   :  { %5346 = vst [vmem:[#allocation9 + $0x58] sm:$0xff] %v5282_v54  ;;  %v5283_v58 = vadd.f32 %v5219_v49, %v5155_v43  ;;  %v5220_v23 = vmul.f32 %v12031_v17, %v13268_v18  ;;  %v5221_v11 = vmul.f32 %v12034_v45, %v13269_v26  ;;  %v12043_v1 = vsel %vm4966_vm15, 1.0, %v6870_v8  ;;  %v5159_v26 = vld [vmem:[#allocation9 + $0x80] sm:$0xff] }
 0x4d1   :  { %v5222_v50 = vmul.f32 %v12043_v1, %v13270_v6  ;;  %vm4967_vm0 = vcmp.lt.s32.totalorder %v4837_v34, %v11930_v57  ;;  %v4838_v51 = vadd.s32 136, %v11932_v29  ;;  %v4839_v54 = vadd.s32 144, %v11932_v29  ;;  %v13273_v6 = vld [vmem:[#allocation49_spill] sm:$0xff] }
 0x4d2   :  { %5347 = vst [vmem:[#allocation9 + $0x60] sm:$0xff] %v5283_v58  ;;  %v5284_v49 = vadd.f32 %v5220_v23, %v5156_v40  ;;  %v5285_v43 = vadd.f32 %v5221_v11, %v5157_v36  ;;  %v12051_v18 = vsel %vm4967_vm0, 1.0, %v6870_v8  ;;  %v4840_v32 = vadd.s32 152, %v11932_v29  ;;  %v5160_v40 = vld [vmem:[#allocation9 + $0x88] sm:$0xff]  ;;  %v5161_v58 = vld [vmem:[#allocation9 + $0x90] sm:$0xff]  ;;  %v13272_v11 = vld [vmem:[#allocation84_spill] sm:$0xff] }
 0x4d3   :  { %v5286_v47 = vadd.f32 %v5222_v50, %v5158_v60  ;;  %v5223_v56 = vmul.f32 %v12051_v18, %v13271_v13  ;;  %vm4968_vm1 = vcmp.lt.s32.totalorder %v4838_v51, %v11930_v57  ;;  %vm4969_vm2 = vcmp.lt.s32.totalorder %v4839_v54, %v11930_v57  ;;  %v5162_v54 = vld [vmem:[#allocation9 + $0x98] sm:$0xff] }
 0x4d4   :  { %5348 = vst [vmem:[#allocation9 + $0x68] sm:$0xff] %v5284_v49  ;;  %5349 = vst [vmem:[#allocation9 + $0x70] sm:$0xff] %v5285_v43  ;;  %v12059_v34 = vsel %vm4968_vm1, 1.0, %v6870_v8  ;;  %v12062_v36 = vsel %vm4969_vm2, 1.0, %v6870_v8  ;;  %vm4970_vm3 = vcmp.lt.s32.totalorder %v4840_v32, %v11930_v57  ;;  %v4841_v23 = vadd.s32 160, %v11932_v29  ;;  %v13274_v49 = vld [vmem:[#allocation50_spill] sm:$0xff] }
 0x4d5   :  { %5350 = vst [vmem:[#allocation9 + $0x78] sm:$0xff] %v5286_v47  ;;  %v5287_v13 = vadd.f32 %v5223_v56, %v5159_v26  ;;  %v5224_v60 = vmul.f32 %v12059_v34, %v13272_v11  ;;  %v5225_v50 = vmul.f32 %v12062_v36, %v13273_v6  ;;  %v12071_v51 = vsel %vm4970_vm3, 1.0, %v6870_v8  ;;  %v5163_v6 = vld [vmem:[#allocation9 + $0xa0] sm:$0xff] }
 0x4d6   :  { %v5226_v43 = vmul.f32 %v12071_v51, %v13274_v49  ;;  %vm4971_vm4 = vcmp.lt.s32.totalorder %v4841_v23, %v11930_v57  ;;  %v4842_v32 = vadd.s32 168, %v11932_v29  ;;  %v4843_v47 = vadd.s32 176, %v11932_v29  ;;  %v13279_v49 = vld [vmem:[#allocation99_spill] sm:$0xff] }
 0x4d7   :  { %5351 = vst [vmem:[#allocation9 + $0x80] sm:$0xff] %v5287_v13  ;;  %v5288_v56 = vadd.f32 %v5224_v60, %v5160_v40  ;;  %v5289_v26 = vadd.f32 %v5225_v50, %v5161_v58  ;;  %v12079_v11 = vsel %vm4971_vm4, 1.0, %v6870_v8  ;;  %v4844_v52 = vadd.s32 184, %v11932_v29  ;;  %v5164_v40 = vld [vmem:[#allocation9 + $0xa8] sm:$0xff]  ;;  %v5165_v13 = vld [vmem:[#allocation9 + $0xb0] sm:$0xff]  ;;  %v13278_v50 = vld [vmem:[#allocation96_spill] sm:$0xff] }
 0x4d8   :  { %v5290_v53 = vadd.f32 %v5226_v43, %v5162_v54  ;;  %v5227_v25 = vmul.f32 %v12079_v11, %v13275_v9  ;;  %vm4972_vm5 = vcmp.lt.s32.totalorder %v4842_v32, %v11930_v57  ;;  %vm4973_vm6 = vcmp.lt.s32.totalorder %v4843_v47, %v11930_v57  ;;  %v5166_v47 = vld [vmem:[#allocation9 + $0xb8] sm:$0xff] }
 0x4d9   :  { %5352 = vst [vmem:[#allocation9 + $0x88] sm:$0xff] %v5288_v56  ;;  %5353 = vst [vmem:[#allocation9 + $0x90] sm:$0xff] %v5289_v26  ;;  %v12087_v23 = vsel %vm4972_vm5, 1.0, %v6870_v8  ;;  %v12090_v58 = vsel %vm4973_vm6, 1.0, %v6870_v8  ;;  %vm4974_vm7 = vcmp.lt.s32.totalorder %v4844_v52, %v11930_v57  ;;  %v4845_v60 = vadd.s32 192, %v11932_v29  ;;  %v13281_v56 = vld [vmem:[#allocation102_spill] sm:$0xff] }
 0x4da   :  { %13276 = vst [vmem:[#allocation196_spill] sm:$0xff] %v12087_v23  ;;  %13277 = vst [vmem:[#allocation197_spill] sm:$0xff] %v12090_v58  ;;  %v5291_v9 = vadd.f32 %v5227_v25, %v5163_v6  ;;  %v5228_v54 = vmul.f32 %v12087_v23, %v13278_v50  ;;  %v5229_v43 = vmul.f32 %v12090_v58, %v13279_v49  ;;  %v12099_v32 = vsel %vm4974_vm7, 1.0, %v6870_v8  ;;  %v5167_v49 = vld [vmem:[#allocation9 + $0xc0] sm:$0xff] }
 0x4db   :  { %5354 = vst [vmem:[#allocation9 + $0x98] sm:$0xff] %v5290_v53  ;;  %13280 = vst [vmem:[#allocation198_spill] sm:$0xff] %v12099_v32  ;;  %v5230_v26 = vmul.f32 %v12099_v32, %v13281_v56  ;;  %vm4975_vm8 = vcmp.lt.s32.totalorder %v4845_v60, %v11930_v57  ;;  %v4846_v52 = vadd.s32 200, %v11932_v29  ;;  %v4847_v53 = vadd.s32 208, %v11932_v29  ;;  %v13287_v56 = vld [vmem:[#allocation74_spill] sm:$0xff] }
 0x4dc   :  { %5355 = vst [vmem:[#allocation9 + $0xa0] sm:$0xff] %v5291_v9  ;;  %v5292_v25 = vadd.f32 %v5228_v54, %v5164_v40  ;;  %v5293_v6 = vadd.f32 %v5229_v43, %v5165_v13  ;;  %v12107_v50 = vsel %vm4975_vm8, 1.0, %v6870_v8  ;;  %v4848_v15 = vadd.s32 216, %v11932_v29  ;;  %v5168_v40 = vld [vmem:[#allocation9 + $0xc8] sm:$0xff]  ;;  %v5169_v9 = vld [vmem:[#allocation9 + $0xd0] sm:$0xff]  ;;  %v13286_v43 = vld [vmem:[#allocation108_spill] sm:$0xff] }
 0x4dd   :  { %13282 = vst [vmem:[#allocation199_spill] sm:$0xff] %v12107_v50  ;;  %v5294_v42 = vadd.f32 %v5230_v26, %v5166_v47  ;;  %v5231_v7 = vmul.f32 %v12107_v50, %v13283_v14  ;;  %vm4976_vm9 = vcmp.lt.s32.totalorder %v4846_v52, %v11930_v57  ;;  %vm4977_vm10 = vcmp.lt.s32.totalorder %v4847_v53, %v11930_v57  ;;  %v5170_v53 = vld [vmem:[#allocation9 + $0xd8] sm:$0xff] }
 0x4de   :  { %5356 = vst [vmem:[#allocation9 + $0xa8] sm:$0xff] %v5292_v25  ;;  %5357 = vst [vmem:[#allocation9 + $0xb0] sm:$0xff] %v5293_v6  ;;  %v12115_v60 = vsel %vm4976_vm9, 1.0, %v6870_v8  ;;  %v12118_v13 = vsel %vm4977_vm10, 1.0, %v6870_v8  ;;  %vm4978_vm11 = vcmp.lt.s32.totalorder %v4848_v15, %v11930_v57  ;;  %v4849_v54 = vadd.s32 224, %v11932_v29  ;;  %v13289_v25 = vld [vmem:[#allocation115_spill] sm:$0xff] }
 0x4df   :  { %13284 = vst [vmem:[#allocation200_spill] sm:$0xff] %v12115_v60  ;;  %13285 = vst [vmem:[#allocation201_spill] sm:$0xff] %v12118_v13  ;;  %v5295_v14 = vadd.f32 %v5231_v7, %v5167_v49  ;;  %v5232_v47 = vmul.f32 %v12115_v60, %v13286_v43  ;;  %v5233_v26 = vmul.f32 %v12118_v13, %v13287_v56  ;;  %v12127_v52 = vsel %vm4978_vm11, 1.0, %v6870_v8  ;;  %v5171_v56 = vld [vmem:[#allocation9 + $0xe0] sm:$0xff]  ;;  %v13291_v60 = vld [vmem:[#allocation79_spill] sm:$0xff] }
 0x4e0   :  { %5358 = vst [vmem:[#allocation9 + $0xb8] sm:$0xff] %v5294_v42  ;;  %13288 = vst [vmem:[#allocation202_spill] sm:$0xff] %v12127_v52  ;;  %v5234_v6 = vmul.f32 %v12127_v52, %v13289_v25  ;;  %vm4979_vm12 = vcmp.lt.s32.totalorder %v4849_v54, %v11930_v57  ;;  %v4850_v15 = vadd.s32 232, %v11932_v29  ;;  %v4851_v42 = vadd.s32 240, %v11932_v29  ;;  %v13295_v25 = vld [vmem:[#allocation120_spill] sm:$0xff] }
 0x4e1   :  { %5359 = vst [vmem:[#allocation9 + $0xc0] sm:$0xff] %v5295_v14  ;;  %v5296_v7 = vadd.f32 %v5232_v47, %v5168_v40  ;;  %v5297_v49 = vadd.f32 %v5233_v26, %v5169_v9  ;;  %v12135_v43 = vsel %vm4979_vm12, 1.0, %v6870_v8  ;;  %v4852_v20 = vadd.s32 248, %v11932_v29  ;;  %v5172_v40 = vld [vmem:[#allocation9 + $0xe8] sm:$0xff]  ;;  %v5173_v14 = vld [vmem:[#allocation9 + $0xf0] sm:$0xff]  ;;  %v13294_v26 = vld [vmem:[#allocation81_spill] sm:$0xff] }
 0x4e2   :  { %13290 = vst [vmem:[#allocation203_spill] sm:$0xff] %v12135_v43  ;;  %v5298_v13 = vadd.f32 %v5234_v6, %v5170_v53  ;;  %v5235_v50 = vmul.f32 %v12135_v43, %v13291_v60  ;;  %vm4980_vm13 = vcmp.lt.s32.totalorder %v4850_v15, %v11930_v57  ;;  %vm4981_vm14 = vcmp.lt.s32.totalorder %v4851_v42, %v11930_v57  ;;  %v5174_v42 = vld [vmem:[#allocation9 + $0xf8] sm:$0xff]  ;;  %v13299_v43 = vld [vmem:[#allocation91_spill] sm:$0xff] }
 0x4e3   :  { %5360 = vst [vmem:[#allocation9 + $0xc8] sm:$0xff] %v5296_v7  ;;  %5361 = vst [vmem:[#allocation9 + $0xd0] sm:$0xff] %v5297_v49  ;;  %v12143_v54 = vsel %vm4980_vm13, 1.0, %v6870_v8  ;;  %v12146_v9 = vsel %vm4981_vm14, 1.0, %v6870_v8  ;;  %vm4982_vm15 = vcmp.lt.s32.totalorder %v4852_v20, %v11930_v57  ;;  %v4853_v47 = vadd.s32 256, %v11932_v29  ;;  %v13297_v7 = vld [vmem:[#allocation124_spill] sm:$0xff] }
 0x4e4   :  { %13292 = vst [vmem:[#allocation204_spill] sm:$0xff] %v12143_v54  ;;  %13293 = vst [vmem:[#allocation205_spill] sm:$0xff] %v12146_v9  ;;  %v5299_v60 = vadd.f32 %v5235_v50, %v5171_v56  ;;  %v5236_v53 = vmul.f32 %v12143_v54, %v13294_v26  ;;  %v5237_v6 = vmul.f32 %v12146_v9, %v13295_v25  ;;  %v12155_v15 = vsel %vm4982_vm15, 1.0, %v6870_v8  ;;  %v5175_v25 = vld [vmem:[#allocation9 + $0x100] sm:$0xff] }
 0x4e5   :  { %5362 = vst [vmem:[#allocation9 + $0xd8] sm:$0xff] %v5298_v13  ;;  %13296 = vst [vmem:[#allocation206_spill] sm:$0xff] %v12155_v15  ;;  %v5238_v49 = vmul.f32 %v12155_v15, %v13297_v7  ;;  %vm4983_vm0 = vcmp.lt.s32.totalorder %v4853_v47, %v11930_v57  ;;  %v4854_v20 = vadd.s32 264, %v11932_v29  ;;  %v4855_v13 = vadd.s32 272, %v11932_v29  ;;  %v13303_v7 = vld [vmem:[#allocation131_spill] sm:$0xff] }
 0x4e6   :  { %5363 = vst [vmem:[#allocation9 + $0xe0] sm:$0xff] %v5299_v60  ;;  %v5300_v50 = vadd.f32 %v5236_v53, %v5172_v40  ;;  %v5301_v56 = vadd.f32 %v5237_v6, %v5173_v14  ;;  %v12163_v26 = vsel %vm4983_vm0, 1.0, %v6870_v8  ;;  %v4856_v9 = vadd.s32 280, %v11932_v29  ;;  %v5176_v40 = vld [vmem:[#allocation9 + $0x108] sm:$0xff]  ;;  %v5177_v60 = vld [vmem:[#allocation9 + $0x110] sm:$0xff]  ;;  %v13302_v6 = vld [vmem:[#allocation128_spill] sm:$0xff] }
 0x4e7   :  { %13298 = vst [vmem:[#allocation207_spill] sm:$0xff] %v12163_v26  ;;  %v5302_v54 = vadd.f32 %v5238_v49, %v5174_v42  ;;  %v5239_v52 = vmul.f32 %v12163_v26, %v13299_v43  ;;  %vm4984_vm1 = vcmp.lt.s32.totalorder %v4854_v20, %v11930_v57  ;;  %vm4985_vm2 = vcmp.lt.s32.totalorder %v4855_v13, %v11930_v57  ;;  %v5178_v13 = vld [vmem:[#allocation9 + $0x118] sm:$0xff]  ;;  %v13307_v26 = vld [vmem:[#allocation139_spill] sm:$0xff] }
 0x4e8   :  { %5364 = vst [vmem:[#allocation9 + $0xe8] sm:$0xff] %v5300_v50  ;;  %5365 = vst [vmem:[#allocation9 + $0xf0] sm:$0xff] %v5301_v56  ;;  %v12171_v47 = vsel %vm4984_vm1, 1.0, %v6870_v8  ;;  %v12174_v14 = vsel %vm4985_vm2, 1.0, %v6870_v8  ;;  %vm4986_vm3 = vcmp.lt.s32.totalorder %v4856_v9, %v11930_v57  ;;  %v4857_v53 = vadd.s32 288, %v11932_v29  ;;  %v13305_v50 = vld [vmem:[#allocation136_spill] sm:$0xff] }
 0x4e9   :  { %13300 = vst [vmem:[#allocation208_spill] sm:$0xff] %v12171_v47  ;;  %13301 = vst [vmem:[#allocation209_spill] sm:$0xff] %v12174_v14  ;;  %v5303_v43 = vadd.f32 %v5239_v52, %v5175_v25  ;;  %v5240_v42 = vmul.f32 %v12171_v47, %v13302_v6  ;;  %v5241_v49 = vmul.f32 %v12174_v14, %v13303_v7  ;;  %v12183_v20 = vsel %vm4986_vm3, 1.0, %v6870_v8  ;;  %v5179_v7 = vld [vmem:[#allocation9 + $0x120] sm:$0xff] }
 0x4ea   :  { %5366 = vst [vmem:[#allocation9 + $0xf8] sm:$0xff] %v5302_v54  ;;  %13304 = vst [vmem:[#allocation210_spill] sm:$0xff] %v12183_v20  ;;  %v5242_v56 = vmul.f32 %v12183_v20, %v13305_v50  ;;  %vm4987_vm4 = vcmp.lt.s32.totalorder %v4857_v53, %v11930_v57  ;;  %v4858_v9 = vadd.s32 296, %v11932_v29  ;;  %v4859_v54 = vadd.s32 304, %v11932_v29  ;;  %v13311_v50 = vld [vmem:[#allocation144_spill] sm:$0xff] }
 0x4eb   :  { %5367 = vst [vmem:[#allocation9 + $0x100] sm:$0xff] %v5303_v43  ;;  %v5304_v52 = vadd.f32 %v5240_v42, %v5176_v40  ;;  %v5305_v25 = vadd.f32 %v5241_v49, %v5177_v60  ;;  %v12191_v6 = vsel %vm4987_vm4, 1.0, %v6870_v8  ;;  %v4860_v14 = vadd.s32 312, %v11932_v29  ;;  %v5180_v40 = vld [vmem:[#allocation9 + $0x128] sm:$0xff]  ;;  %v5181_v43 = vld [vmem:[#allocation9 + $0x130] sm:$0xff] }
 0x4ec   :  { %13306 = vst [vmem:[#allocation211_spill] sm:$0xff] %v12191_v6  ;;  %v5306_v47 = vadd.f32 %v5242_v56, %v5178_v13  ;;  %v5243_v15 = vmul.f32 %v12191_v6, %v13307_v26  ;;  %vm4988_vm5 = vcmp.lt.s32.totalorder %v4858_v9, %v11930_v57  ;;  %vm4989_vm6 = vcmp.lt.s32.totalorder %v4859_v54, %v11930_v57  ;;  %v13310_v49 = vld [vmem:[#allocation142_spill] sm:$0xff]  ;;  %v5182_v54 = vld [vmem:[#allocation9 + $0x138] sm:$0xff] }
 0x4ed   :  { %5368 = vst [vmem:[#allocation9 + $0x108] sm:$0xff] %v5304_v52  ;;  %5369 = vst [vmem:[#allocation9 + $0x110] sm:$0xff] %v5305_v25  ;;  %v12199_v53 = vsel %vm4988_vm5, 1.0, %v6870_v8  ;;  %v12202_v60 = vsel %vm4989_vm6, 1.0, %v6870_v8  ;;  %vm4990_vm7 = vcmp.lt.s32.totalorder %v4860_v14, %v11930_v57  ;;  %v4861_v42 = vadd.s32 320, %v11932_v29  ;;  %v13313_v52 = vld [vmem:[#allocation147_spill] sm:$0xff] }
 0x4ee   :  { %13308 = vst [vmem:[#allocation212_spill] sm:$0xff] %v12199_v53  ;;  %13309 = vst [vmem:[#allocation213_spill] sm:$0xff] %v12202_v60  ;;  %v5307_v26 = vadd.f32 %v5243_v15, %v5179_v7  ;;  %v5244_v13 = vmul.f32 %v12199_v53, %v13310_v49  ;;  %v5245_v56 = vmul.f32 %v12202_v60, %v13311_v50  ;;  %v12211_v9 = vsel %vm4990_vm7, 1.0, %v6870_v8  ;;  %v5183_v50 = vld [vmem:[#allocation9 + $0x140] sm:$0xff]  ;;  %v13315_v6 = vld [vmem:[#allocation150_spill] sm:$0xff] }
 0x4ef   :  { %5370 = vst [vmem:[#allocation9 + $0x118] sm:$0xff] %v5306_v47  ;;  %13312 = vst [vmem:[#allocation214_spill] sm:$0xff] %v12211_v9  ;;  %v5246_v25 = vmul.f32 %v12211_v9, %v13313_v52  ;;  %vm4991_vm8 = vcmp.lt.s32.totalorder %v4861_v42, %v11930_v57  ;;  %v4862_v14 = vadd.s32 328, %v11932_v29  ;;  %v4863_v47 = vadd.s32 336, %v11932_v29  ;;  %v13319_v52 = vld [vmem:[#allocation155_spill] sm:$0xff] }
 0x4f0   :  { %5371 = vst [vmem:[#allocation9 + $0x120] sm:$0xff] %v5307_v26  ;;  %v5308_v15 = vadd.f32 %v5244_v13, %v5180_v40  ;;  %v5309_v7 = vadd.f32 %v5245_v56, %v5181_v43  ;;  %v12219_v49 = vsel %vm4991_vm8, 1.0, %v6870_v8  ;;  %v4864_v60 = vadd.s32 344, %v11932_v29  ;;  %v5184_v40 = vld [vmem:[#allocation9 + $0x148] sm:$0xff]  ;;  %v5185_v26 = vld [vmem:[#allocation9 + $0x150] sm:$0xff]  ;;  %v13318_v56 = vld [vmem:[#allocation153_spill] sm:$0xff] }
 0x4f1   :  { %13314 = vst [vmem:[#allocation215_spill] sm:$0xff] %v12219_v49  ;;  %v5310_v53 = vadd.f32 %v5246_v25, %v5182_v54  ;;  %v5247_v20 = vmul.f32 %v12219_v49, %v13315_v6  ;;  %vm4992_vm9 = vcmp.lt.s32.totalorder %v4862_v14, %v11930_v57  ;;  %vm4993_vm10 = vcmp.lt.s32.totalorder %v4863_v47, %v11930_v57  ;;  %v5186_v47 = vld [vmem:[#allocation9 + $0x158] sm:$0xff]  ;;  %v13321_v49 = vld [vmem:[#allocation162_spill] sm:$0xff] }
 0x4f2   :  { %5372 = vst [vmem:[#allocation9 + $0x128] sm:$0xff] %v5308_v15  ;;  %5373 = vst [vmem:[#allocation9 + $0x130] sm:$0xff] %v5309_v7  ;;  %v12227_v42 = vsel %vm4992_vm9, 1.0, %v6870_v8  ;;  %v12230_v43 = vsel %vm4993_vm10, 1.0, %v6870_v8  ;;  %vm4994_vm11 = vcmp.lt.s32.totalorder %v4864_v60, %v11930_v57  ;;  %v4865_v13 = vadd.s32 352, %v11932_v29  ;;  %v13320_v15 = vld [vmem:[#allocation157_spill] sm:$0xff] }
 0x4f3   :  { %13316 = vst [vmem:[#allocation216_spill] sm:$0xff] %v12227_v42  ;;  %13317 = vst [vmem:[#allocation217_spill] sm:$0xff] %v12230_v43  ;;  %v5311_v6 = vadd.f32 %v5247_v20, %v5183_v50  ;;  %v5248_v54 = vmul.f32 %v12227_v42, %v13318_v56  ;;  %v5249_v25 = vmul.f32 %v12230_v43, %v13319_v52  ;;  %v12239_v14 = vsel %vm4994_vm11, 1.0, %v6870_v8  ;;  %v5187_v52 = vld [vmem:[#allocation9 + $0x160] sm:$0xff] }
 0x4f4   :  { %5374 = vst [vmem:[#allocation9 + $0x138] sm:$0xff] %v5310_v53  ;;  %v5250_v7 = vmul.f32 %v12239_v14, %v13320_v15  ;;  %vm4995_vm12 = vcmp.lt.s32.totalorder %v4865_v13, %v11930_v57  ;;  %v4866_v60 = vadd.s32 360, %v11932_v29  ;;  %v4867_v53 = vadd.s32 368, %v11932_v29 }
 0x4f5   :  { %5375 = vst [vmem:[#allocation9 + $0x140] sm:$0xff] %v5311_v6  ;;  %v5312_v20 = vadd.f32 %v5248_v54, %v5184_v40  ;;  %v5313_v50 = vadd.f32 %v5249_v25, %v5185_v26  ;;  %v12247_v56 = vsel %vm4995_vm12, 1.0, %v6870_v8  ;;  %v4868_v43 = vadd.s32 376, %v11932_v29  ;;  %v5188_v40 = vld [vmem:[#allocation9 + $0x168] sm:$0xff]  ;;  %v5189_v6 = vld [vmem:[#allocation9 + $0x170] sm:$0xff] }
 0x4f6   :  { %v5314_v42 = vadd.f32 %v5250_v7, %v5186_v47  ;;  %v5251_v9 = vmul.f32 %v12247_v56, %v13321_v49  ;;  %vm4996_vm13 = vcmp.lt.s32.totalorder %v4866_v60, %v11930_v57  ;;  %vm4997_vm14 = vcmp.lt.s32.totalorder %v4867_v53, %v11930_v57  ;;  %v13324_v47 = vld [vmem:[#allocation168_spill] sm:$0xff]  ;;  %v13325_v53 = vld [vmem:[#allocation170_spill] sm:$0xff] }
 0x4f7   :  { %5376 = vst [vmem:[#allocation9 + $0x148] sm:$0xff] %v5312_v20  ;;  %5377 = vst [vmem:[#allocation9 + $0x150] sm:$0xff] %v5313_v50  ;;  %v12255_v13 = vsel %vm4996_vm13, 1.0, %v6870_v8  ;;  %v12258_v26 = vsel %vm4997_vm14, 1.0, %v6870_v8  ;;  %vm4998_vm15 = vcmp.lt.s32.totalorder %v4868_v43, %v11930_v57  ;;  %v4869_v54 = vadd.s32 384, %v11932_v29  ;;  %v5190_v60 = vld [vmem:[#allocation9 + $0x178] sm:$0xff] }
 0x4f8   :  { %13322 = vst [vmem:[#allocation218_spill] sm:$0xff] %v12255_v13  ;;  %13323 = vst [vmem:[#allocation219_spill] sm:$0xff] %v12258_v26  ;;  %v5315_v49 = vadd.f32 %v5251_v9, %v5187_v52  ;;  %v5252_v25 = vmul.f32 %v12255_v13, %v10757_v48  ;;  %v5253_v15 = vmul.f32 %v12258_v26, %v13324_v47  ;;  %v12267_v7 = vsel %vm4998_vm15, 1.0, %v6870_v8  ;;  %v5191_v52 = vld [vmem:[#allocation9 + $0x180] sm:$0xff] }
 0x4f9   :  { %5378 = vst [vmem:[#allocation9 + $0x158] sm:$0xff] %v5314_v42  ;;  %v5254_v20 = vmul.f32 %v12267_v7, %v13325_v53  ;;  %vm4999_vm0 = vcmp.lt.s32.totalorder %v4869_v54, %v11930_v57  ;;  %v4870_v43 = vadd.s32 392, %v11932_v29  ;;  %v4871_v42 = vadd.s32 400, %v11932_v29 }
 0x4fa   :  { %5379 = vst [vmem:[#allocation9 + $0x160] sm:$0xff] %v5315_v49  ;;  %v5316_v9 = vadd.f32 %v5252_v25, %v5188_v40  ;;  %v5317_v50 = vadd.f32 %v5253_v15, %v5189_v6  ;;  %v12275_v48 = vsel %vm4999_vm0, 1.0, %v6870_v8  ;;  %v4872_v47 = vadd.s32 408, %v11932_v29  ;;  %v5192_v40 = vld [vmem:[#allocation9 + $0x188] sm:$0xff]  ;;  %v5193_v49 = vld [vmem:[#allocation9 + $0x190] sm:$0xff] }
 0x4fb   :  { %v5318_v26 = vadd.f32 %v5254_v20, %v5190_v60  ;;  %v5255_v13 = vmul.f32 %v12275_v48, %v10959_v28  ;;  %vm5000_vm1 = vcmp.lt.s32.totalorder %v4870_v43, %v11930_v57  ;;  %vm5001_vm2 = vcmp.lt.s32.totalorder %v4871_v42, %v11930_v57  ;;  %v5194_v20 = vld [vmem:[#allocation9 + $0x198] sm:$0xff] }
 0x4fc   :  { %5380 = vst [vmem:[#allocation9 + $0x168] sm:$0xff] %v5316_v9  ;;  %5381 = vst [vmem:[#allocation9 + $0x170] sm:$0xff] %v5317_v50  ;;  %v12283_v54 = vsel %vm5000_vm1, 1.0, %v6870_v8  ;;  %v12286_v6 = vsel %vm5001_vm2, 1.0, %v6870_v8  ;;  %vm5002_vm3 = vcmp.lt.s32.totalorder %v4872_v47, %v11930_v57  ;;  %v4873_v25 = vadd.s32 416, %v11932_v29 }
 0x4fd   :  { %13326 = vst [vmem:[#allocation220_spill] sm:$0xff] %v12286_v6  ;;  %5382 = vst [vmem:[#allocation9 + $0x178] sm:$0xff] %v5318_v26  ;;  %v5319_v28 = vadd.f32 %v5255_v13, %v5191_v52  ;;  %v5256_v15 = vmul.f32 %v12283_v54, %v11025_v31  ;;  %v5257_v60 = vmul.f32 %v12286_v6, %v11089_v39  ;;  %v12295_v53 = vsel %vm5002_vm3, 1.0, %v6870_v8  ;;  %v5195_v39 = vld [vmem:[#allocation9 + $0x1a0] sm:$0xff] }
 0x4fe   :  { %v5258_v43 = vmul.f32 %v12295_v53, %v11151_v63  ;;  %vm5003_vm4 = vcmp.lt.s32.totalorder %v4873_v25, %v11930_v57  ;;  %v4874_v42 = vadd.s32 424, %v11932_v29  ;;  %v4875_v26 = vadd.s32 432, %v11932_v29  ;;  %v5197_v25 = vld [vmem:[#allocation9 + $0x1b0] sm:$0xff] }
 0x4ff   :  { %5383 = vst [vmem:[#allocation9 + $0x180] sm:$0xff] %v5319_v28  ;;  %v5320_v13 = vadd.f32 %v5256_v15, %v5192_v40  ;;  %v5321_v9 = vadd.f32 %v5257_v60, %v5193_v49  ;;  %v12303_v31 = vsel %vm5003_vm4, 1.0, %v6870_v8  ;;  %v4876_v50 = vadd.s32 440, %v11932_v29  ;;  %v5196_v40 = vld [vmem:[#allocation9 + $0x1a8] sm:$0xff] }
 0x500   :  { %v5322_v52 = vadd.f32 %v5258_v43, %v5194_v20  ;;  %v5259_v47 = vmul.f32 %v12303_v31, %v11218_v27  ;;  %vm5004_vm5 = vcmp.lt.s32.totalorder %v4874_v42, %v11930_v57  ;;  %vm5005_vm6 = vcmp.lt.s32.totalorder %v4875_v26, %v11930_v57  ;;  %v5198_v43 = vld [vmem:[#allocation9 + $0x1b8] sm:$0xff] }
 0x501   :  { %5384 = vst [vmem:[#allocation9 + $0x188] sm:$0xff] %v5320_v13  ;;  %5385 = vst [vmem:[#allocation9 + $0x190] sm:$0xff] %v5321_v9  ;;  %v12311_v63 = vsel %vm5004_vm5, 1.0, %v6870_v8  ;;  %v12314_v49 = vsel %vm5005_vm6, 1.0, %v6870_v8  ;;  %vm5006_vm7 = vcmp.lt.s32.totalorder %v4876_v50, %v11930_v57  ;;  %v4877_v28 = vadd.s32 448, %v11932_v29 }
 0x502   :  { %5386 = vst [vmem:[#allocation9 + $0x198] sm:$0xff] %v5322_v52  ;;  %v5323_v27 = vadd.f32 %v5259_v47, %v5195_v39  ;;  %v5260_v15 = vmul.f32 %v12311_v63, %v11300_v22  ;;  %v5261_v60 = vmul.f32 %v12314_v49, %v11340_v37  ;;  %v12323_v20 = vsel %vm5006_vm7, 1.0, %v6870_v8  ;;  %v5199_v37 = vld [vmem:[#allocation9 + $0x1c0] sm:$0xff] }
 0x503   :  { %v5262_v42 = vmul.f32 %v12323_v20, %v11422_v5  ;;  %vm5007_vm8 = vcmp.lt.s32.totalorder %v4877_v28, %v11930_v57  ;;  %v4878_v26 = vadd.s32 456, %v11932_v29  ;;  %v4879_v13 = vadd.s32 464, %v11932_v29  ;;  %v5201_v28 = vld [vmem:[#allocation9 + $0x1d0] sm:$0xff] }
 0x504   :  { %5387 = vst [vmem:[#allocation9 + $0x1a0] sm:$0xff] %v5323_v27  ;;  %v5324_v9 = vadd.f32 %v5260_v15, %v5196_v40  ;;  %v5325_v39 = vadd.f32 %v5261_v60, %v5197_v25  ;;  %v12331_v22 = vsel %vm5007_vm8, 1.0, %v6870_v8  ;;  %v4880_v50 = vadd.s32 472, %v11932_v29  ;;  %v5200_v40 = vld [vmem:[#allocation9 + $0x1c8] sm:$0xff] }
 0x505   :  { %13327 = vst [vmem:[#allocation221_spill] sm:$0xff] %v12331_v22  ;;  %v5326_v52 = vadd.f32 %v5262_v42, %v5198_v43  ;;  %v5263_v47 = vmul.f32 %v12331_v22, %v11475_v30  ;;  %vm5008_vm9 = vcmp.lt.s32.totalorder %v4878_v26, %v11930_v57  ;;  %vm5009_vm10 = vcmp.lt.s32.totalorder %v4879_v13, %v11930_v57  ;;  %v5202_v42 = vld [vmem:[#allocation9 + $0x1d8] sm:$0xff] }
 0x506   :  { %5388 = vst [vmem:[#allocation9 + $0x1a8] sm:$0xff] %v5324_v9  ;;  %5389 = vst [vmem:[#allocation9 + $0x1b0] sm:$0xff] %v5325_v39  ;;  %v12339_v5 = vsel %vm5008_vm9, 1.0, %v6870_v8  ;;  %v12342_v25 = vsel %vm5009_vm10, 1.0, %v6870_v8  ;;  %vm5010_vm11 = vcmp.lt.s32.totalorder %v4880_v50, %v11930_v57  ;;  %v4881_v27 = vadd.s32 480, %v11932_v29 }
 0x507   :  { %13328 = vst [vmem:[#allocation222_spill] sm:$0xff] %v12339_v5  ;;  %13329 = vst [vmem:[#allocation223_spill] sm:$0xff] %v12342_v25  ;;  %v5327_v30 = vadd.f32 %v5263_v47, %v5199_v37  ;;  %v5264_v15 = vmul.f32 %v12339_v5, %v11569_v16  ;;  %v5265_v60 = vmul.f32 %v12342_v25, %v11621_v35  ;;  %v12351_v43 = vsel %vm5010_vm11, 1.0, %v6870_v8  ;;  %v5203_v35 = vld [vmem:[#allocation9 + $0x1e0] sm:$0xff] }
 0x508   :  { %5390 = vst [vmem:[#allocation9 + $0x1b8] sm:$0xff] %v5326_v52  ;;  %13330 = vst [vmem:[#allocation224_spill] sm:$0xff] %v12351_v43  ;;  %v5266_v26 = vmul.f32 %v12351_v43, %v11655_v2  ;;  %vm5011_vm12 = vcmp.lt.s32.totalorder %v4881_v27, %v11930_v57  ;;  %v4882_v13 = vadd.s32 488, %v11932_v29  ;;  %v4883_v9 = vadd.s32 496, %v11932_v29  ;;  %v5399_v2 = vld [vmem:[#allocation10] sm:$0xff]  ;;  %v5404_v43 = vld [vmem:[#allocation10 + $0x28] sm:$0xff] }
 0x509   :  { %5391 = vst [vmem:[#allocation9 + $0x1c0] sm:$0xff] %v5327_v30  ;;  %v5328_v39 = vadd.f32 %v5264_v15, %v5200_v40  ;;  %v5329_v37 = vadd.f32 %v5265_v60, %v5201_v28  ;;  %v12359_v16 = vsel %vm5011_vm12, 1.0, %v6870_v8  ;;  %v4884_v50 = vadd.s32 504, %v11932_v29  ;;  %v5204_v28 = vld [vmem:[#allocation9 + $0x1e8] sm:$0xff]  ;;  %v5205_v30 = vld [vmem:[#allocation9 + $0x1f0] sm:$0xff] }
 0x50a   :  { %13331 = vst [vmem:[#allocation225_spill] sm:$0xff] %v12359_v16  ;;  %v5330_v52 = vadd.f32 %v5266_v26, %v5202_v42  ;;  %v5267_v47 = vmul.f32 %v12359_v16, %v11693_v3  ;;  %vm5012_vm13 = vcmp.lt.s32.totalorder %v4882_v13, %v11930_v57  ;;  %vm5013_vm14 = vcmp.lt.s32.totalorder %v4883_v9, %v11930_v57  ;;  %v13334_v29 = vld [vmem:[#allocation19_spill] sm:$0xff]  ;;  %v5206_v13 = vld [vmem:[#allocation9 + $0x1f8] sm:$0xff]  ;;  %v5400_v9 = vld [vmem:[#allocation10 + $0x8] sm:$0xff] }
 0x50b   :  { %5392 = vst [vmem:[#allocation9 + $0x1c8] sm:$0xff] %v5328_v39  ;;  %5393 = vst [vmem:[#allocation9 + $0x1d0] sm:$0xff] %v5329_v37  ;;  %v12367_v40 = vsel %vm5012_vm13, 1.0, %v6870_v8  ;;  %v12370_v27 = vsel %vm5013_vm14, 1.0, %v6870_v8  ;;  %vm5014_vm15 = vcmp.lt.s32.totalorder %v4884_v50, %v11930_v57  ;;  %v5463_v3 = vmul.f32 %v11940_v33, %v13334_v29  ;;  %v5401_v39 = vld [vmem:[#allocation10 + $0x10] sm:$0xff]  ;;  %v13336_v50 = vld [vmem:[#allocation22_spill] sm:$0xff] }
 0x50c   :  { %13332 = vst [vmem:[#allocation226_spill] sm:$0xff] %v12367_v40  ;;  %13333 = vst [vmem:[#allocation227_spill] sm:$0xff] %v12370_v27  ;;  %v5331_v15 = vadd.f32 %v5267_v47, %v5203_v35  ;;  %v5268_v60 = vmul.f32 %v12367_v40, %v11712_v19  ;;  %v5269_v42 = vmul.f32 %v12370_v27, %v11722_v61  ;;  %v12380_v26 = vsel %vm5014_vm15, 1.0, %v6870_v8  ;;  %v13337_v35 = vld [vmem:[#allocation25_spill] sm:$0xff]  ;;  %v5402_v19 = vld [vmem:[#allocation10 + $0x18] sm:$0xff] }
 0x50d   :  { %5394 = vst [vmem:[#allocation9 + $0x1d8] sm:$0xff] %v5330_v52  ;;  %13335 = vst [vmem:[#allocation228_spill] sm:$0xff] %v12380_v26  ;;  %v5270_v57 = vmul.f32 %v12380_v26, %v11727_v38  ;;  %v5527_v37 = vadd.f32 %v5463_v3, %v5399_v2  ;;  %v5464_v52 = vmul.f32 %v11951_v55, %v13336_v50  ;;  %v5403_v29 = vld [vmem:[#allocation10 + $0x20] sm:$0xff]  ;;  %v13338_v8 = vld [vmem:[#allocation27_spill] sm:$0xff] }
 0x50e   :  { %v5465_v47 = vmul.f32 %v11954_v0, %v13337_v35  ;;  %5395 = vst [vmem:[#allocation9 + $0x1e0] sm:$0xff] %v5331_v15  ;;  %v5332_v61 = vadd.f32 %v5268_v60, %v5204_v28  ;;  %v5333_v33 = vadd.f32 %v5269_v42, %v5205_v30  ;;  %v5466_v27 = vmul.f32 %v11957_v62, %v13338_v8  ;;  %v13339_v40 = vld [vmem:[#allocation34_spill] sm:$0xff]  ;;  %v13340_v50 = vld [vmem:[#allocation45_spill] sm:$0xff]  ;;  %v5405_v35 = vld [vmem:[#allocation10 + $0x30] sm:$0xff] }
 0x50f   :  { %v5467_v16 = vmul.f32 %v11967_v12, %v13339_v40  ;;  %v5334_v38 = vadd.f32 %v5270_v57, %v5206_v13  ;;  %5591 = vst [vmem:[#allocation10] sm:$0xff] %v5527_v37  ;;  %v5528_v2 = vadd.f32 %v5464_v52, %v5400_v9  ;;  %v5468_v55 = vmul.f32 %v11975_v21, %v13340_v50  ;;  %v5406_v0 = vld [vmem:[#allocation10 + $0x38] sm:$0xff]  ;;  %v13342_v42 = vld [vmem:[#allocation54_spill] sm:$0xff]  ;;  %v5407_v8 = vld [vmem:[#allocation10 + $0x40] sm:$0xff] }
 0x510   :  { %v5529_v3 = vadd.f32 %v5465_v47, %v5401_v39  ;;  %5396 = vst [vmem:[#allocation9 + $0x1e8] sm:$0xff] %v5332_v61  ;;  %5397 = vst [vmem:[#allocation9 + $0x1f0] sm:$0xff] %v5333_v33  ;;  %v5530_v28 = vadd.f32 %v5466_v27, %v5402_v19  ;;  %v13341_v15 = vld [vmem:[#allocation48_spill] sm:$0xff]  ;;  %v5470_v40 = vmul.f32 %v11987_v24, %v13342_v42  ;;  %v5408_v13 = vld [vmem:[#allocation10 + $0x48] sm:$0xff] }
 0x511   :  { %v5531_v30 = vadd.f32 %v5467_v16, %v5403_v29  ;;  %v5469_v60 = vmul.f32 %v11978_v44, %v13341_v15  ;;  %v5409_v57 = vld [vmem:[#allocation10 + $0x50] sm:$0xff]  ;;  %5398 = vst [vmem:[#allocation9 + $0x1f8] sm:$0xff] %v5334_v38  ;;  %5592 = vst [vmem:[#allocation10 + $0x8] sm:$0xff] %v5528_v2  ;;  %v5532_v9 = vadd.f32 %v5468_v55, %v5404_v43  ;;  %v13343_v39 = vld [vmem:[#allocation56_spill] sm:$0xff] }
 0x512   :  { %5593 = vst [vmem:[#allocation10 + $0x10] sm:$0xff] %v5529_v3  ;;  %v5471_v37 = vmul.f32 %v11995_v46, %v13343_v39  ;;  %v13344_v52 = vld [vmem:[#allocation59_spill] sm:$0xff]  ;;  %v5410_v47 = vld [vmem:[#allocation10 + $0x58] sm:$0xff]  ;;  %v5411_v19 = vld [vmem:[#allocation10 + $0x60] sm:$0xff]  ;;  %v5534_v61 = vadd.f32 %v5470_v40, %v5406_v0 }
 0x513   :  { %v5472_v33 = vmul.f32 %v12003_v10, %v13344_v52  ;;  %v13345_v16 = vld [vmem:[#allocation63_spill] sm:$0xff]  ;;  %5594 = vst [vmem:[#allocation10 + $0x18] sm:$0xff] %v5530_v28  ;;  %5595 = vst [vmem:[#allocation10 + $0x20] sm:$0xff] %v5531_v30  ;;  %v5533_v29 = vadd.f32 %v5469_v60, %v5405_v35  ;;  %v13346_v50 = vld [vmem:[#allocation66_spill] sm:$0xff] }
 0x514   :  { %v5473_v27 = vmul.f32 %v12006_v41, %v13345_v16  ;;  %v5474_v38 = vmul.f32 %v12015_v4, %v13346_v50  ;;  %v13347_v2 = vld [vmem:[#allocation68_spill] sm:$0xff]  ;;  %v5412_v43 = vld [vmem:[#allocation10 + $0x68] sm:$0xff]  ;;  %5596 = vst [vmem:[#allocation10 + $0x28] sm:$0xff] %v5532_v9  ;;  %v5535_v3 = vadd.f32 %v5471_v37, %v5407_v8  ;;  %v5413_v16 = vld [vmem:[#allocation10 + $0x70] sm:$0xff] }
 0x515   :  { %v5475_v55 = vmul.f32 %v12023_v59, %v13347_v2  ;;  %v5536_v15 = vadd.f32 %v5472_v33, %v5408_v13  ;;  %v13348_v39 = vld [vmem:[#allocation72_spill] sm:$0xff]  ;;  %5597 = vst [vmem:[#allocation10 + $0x30] sm:$0xff] %v5533_v29  ;;  %5598 = vst [vmem:[#allocation10 + $0x38] sm:$0xff] %v5534_v61  ;;  %v13349_v28 = vld [vmem:[#allocation30_spill] sm:$0xff] }
 0x516   :  { %v5537_v42 = vadd.f32 %v5473_v27, %v5409_v57  ;;  %v5476_v52 = vmul.f32 %v12031_v17, %v13348_v39  ;;  %v5414_v41 = vld [vmem:[#allocation10 + $0x78] sm:$0xff]  ;;  %v5538_v35 = vadd.f32 %v5474_v38, %v5410_v47  ;;  %v5477_v30 = vmul.f32 %v12034_v45, %v13349_v28  ;;  %v13350_v60 = vld [vmem:[#allocation35_spill] sm:$0xff]  ;;  %v5415_v50 = vld [vmem:[#allocation10 + $0x80] sm:$0xff]  ;;  %5599 = vst [vmem:[#allocation10 + $0x40] sm:$0xff] %v5535_v3 }
 0x517   :  { %v5539_v0 = vadd.f32 %v5475_v55, %v5411_v19  ;;  %v5478_v40 = vmul.f32 %v12043_v1, %v13350_v60  ;;  %v5416_v9 = vld [vmem:[#allocation10 + $0x88] sm:$0xff]  ;;  %v5417_v8 = vld [vmem:[#allocation10 + $0x90] sm:$0xff]  ;;  %5600 = vst [vmem:[#allocation10 + $0x48] sm:$0xff] %v5536_v15  ;;  %v13353_v47 = vld [vmem:[#allocation85_spill] sm:$0xff] }
 0x518   :  { %5601 = vst [vmem:[#allocation10 + $0x50] sm:$0xff] %v5537_v42  ;;  %v5540_v13 = vadd.f32 %v5476_v52, %v5412_v43  ;;  %v13351_v57 = vld [vmem:[#allocation82_spill] sm:$0xff]  ;;  %v13352_v33 = vld [vmem:[#allocation43_spill] sm:$0xff]  ;;  %v5481_v19 = vmul.f32 %v12062_v36, %v13353_v47  ;;  %v5418_v29 = vld [vmem:[#allocation10 + $0x98] sm:$0xff]  ;;  %v5541_v38 = vadd.f32 %v5477_v30, %v5413_v16 }
 0x519   :  { %v5479_v37 = vmul.f32 %v12051_v18, %v13351_v57  ;;  %v5480_v27 = vmul.f32 %v12059_v34, %v13352_v33  ;;  %v5419_v61 = vld [vmem:[#allocation10 + $0xa0] sm:$0xff]  ;;  %5602 = vst [vmem:[#allocation10 + $0x58] sm:$0xff] %v5538_v35  ;;  %5603 = vst [vmem:[#allocation10 + $0x60] sm:$0xff] %v5539_v0  ;;  %v5542_v2 = vadd.f32 %v5478_v40, %v5414_v41  ;;  %v13354_v55 = vld [vmem:[#allocation52_spill] sm:$0xff] }
 0x51a   :  { %v5482_v3 = vmul.f32 %v12071_v51, %v13354_v55  ;;  %v13355_v15 = vld [vmem:[#allocation92_spill] sm:$0xff]  ;;  %v5420_v42 = vld [vmem:[#allocation10 + $0xa8] sm:$0xff]  ;;  %5604 = vst [vmem:[#allocation10 + $0x68] sm:$0xff] %v5540_v13  ;;  %v5545_v28 = vadd.f32 %v5481_v19, %v5417_v8  ;;  %v13356_v60 = vld [vmem:[#allocation95_spill] sm:$0xff] }
 0x51b   :  { %v5483_v43 = vmul.f32 %v12079_v11, %v13355_v15  ;;  %v5543_v39 = vadd.f32 %v5479_v37, %v5415_v50  ;;  %v5544_v52 = vadd.f32 %v5480_v27, %v5416_v9  ;;  %v5484_v57 = vmul.f32 %v12087_v23, %v13356_v60  ;;  %v5421_v33 = vld [vmem:[#allocation10 + $0xb0] sm:$0xff]  ;;  %v5422_v47 = vld [vmem:[#allocation10 + $0xb8] sm:$0xff]  ;;  %5605 = vst [vmem:[#allocation10 + $0x70] sm:$0xff] %v5541_v38  ;;  %v13357_v35 = vld [vmem:[#allocation97_spill] sm:$0xff] }
 0x51c   :  { %5606 = vst [vmem:[#allocation10 + $0x78] sm:$0xff] %v5542_v2  ;;  %v5546_v16 = vadd.f32 %v5482_v3, %v5418_v29  ;;  %v5485_v0 = vmul.f32 %v12090_v58, %v13357_v35  ;;  %v13358_v30 = vld [vmem:[#allocation100_spill] sm:$0xff]  ;;  %v5423_v55 = vld [vmem:[#allocation10 + $0xc0] sm:$0xff]  ;;  %v5424_v13 = vld [vmem:[#allocation10 + $0xc8] sm:$0xff] }
 0x51d   :  { %v5547_v41 = vadd.f32 %v5483_v43, %v5419_v61  ;;  %v5486_v40 = vmul.f32 %v12099_v32, %v13358_v30  ;;  %v5425_v50 = vld [vmem:[#allocation10 + $0xd0] sm:$0xff]  ;;  %5607 = vst [vmem:[#allocation10 + $0x80] sm:$0xff] %v5543_v39  ;;  %5608 = vst [vmem:[#allocation10 + $0x88] sm:$0xff] %v5544_v52  ;;  %v5548_v9 = vadd.f32 %v5484_v57, %v5420_v42  ;;  %v13362_v38 = vld [vmem:[#allocation200_spill] sm:$0xff] }
 0x51e   :  { %5609 = vst [vmem:[#allocation10 + $0x90] sm:$0xff] %v5545_v28  ;;  %v13359_v8 = vld [vmem:[#allocation103_spill] sm:$0xff]  ;;  %v13363_v61 = vld [vmem:[#allocation109_spill] sm:$0xff]  ;;  %v5426_v15 = vld [vmem:[#allocation10 + $0xd8] sm:$0xff]  ;;  %v5549_v60 = vadd.f32 %v5485_v0, %v5421_v33 }
 0x51f   :  { %v13360_v37 = vld [vmem:[#allocation199_spill] sm:$0xff]  ;;  %v13364_v2 = vld [vmem:[#allocation201_spill] sm:$0xff]  ;;  %5610 = vst [vmem:[#allocation10 + $0x98] sm:$0xff] %v5546_v16  ;;  %5611 = vst [vmem:[#allocation10 + $0xa0] sm:$0xff] %v5547_v41  ;;  %v5550_v35 = vadd.f32 %v5486_v40, %v5422_v47 }
 0x520   :  { %v5487_v27 = vmul.f32 %v13360_v37, %v13359_v8  ;;  %v13361_v19 = vld [vmem:[#allocation107_spill] sm:$0xff]  ;;  %v5489_v3 = vmul.f32 %v13364_v2, %v13363_v61  ;;  %v5427_v43 = vld [vmem:[#allocation10 + $0xe0] sm:$0xff]  ;;  %v13365_v30 = vld [vmem:[#allocation114_spill] sm:$0xff]  ;;  %5612 = vst [vmem:[#allocation10 + $0xa8] sm:$0xff] %v5548_v9 }
 0x521   :  { %v5488_v29 = vmul.f32 %v13362_v38, %v13361_v19  ;;  %v13366_v39 = vld [vmem:[#allocation202_spill] sm:$0xff]  ;;  %v13368_v42 = vld [vmem:[#allocation203_spill] sm:$0xff]  ;;  %v13369_v38 = vld [vmem:[#allocation80_spill] sm:$0xff]  ;;  %5613 = vst [vmem:[#allocation10 + $0xb0] sm:$0xff] %v5549_v60 }
 0x522   :  { %v5490_v52 = vmul.f32 %v13366_v39, %v13365_v30  ;;  %v13367_v28 = vld [vmem:[#allocation78_spill] sm:$0xff]  ;;  %v5551_v8 = vadd.f32 %v5487_v27, %v5423_v55  ;;  %v5553_v19 = vadd.f32 %v5489_v3, %v5425_v50  ;;  %v13370_v58 = vld [vmem:[#allocation204_spill] sm:$0xff]  ;;  %v5429_v2 = vld [vmem:[#allocation10 + $0xf0] sm:$0xff]  ;;  %5614 = vst [vmem:[#allocation10 + $0xb8] sm:$0xff] %v5550_v35 }
 0x523   :  { %v5491_v57 = vmul.f32 %v13368_v42, %v13367_v28  ;;  %v5428_v32 = vld [vmem:[#allocation10 + $0xe8] sm:$0xff]  ;;  %v5552_v37 = vadd.f32 %v5488_v29, %v5424_v13  ;;  %v5492_v61 = vmul.f32 %v13370_v58, %v13369_v38  ;;  %v5430_v23 = vld [vmem:[#allocation10 + $0xf8] sm:$0xff]  ;;  %v13371_v16 = vld [vmem:[#allocation117_spill] sm:$0xff] }
 0x524   :  { %v5554_v33 = vadd.f32 %v5490_v52, %v5426_v15  ;;  %v13372_v41 = vld [vmem:[#allocation205_spill] sm:$0xff]  ;;  %v13373_v40 = vld [vmem:[#allocation122_spill] sm:$0xff]  ;;  %v5433_v55 = vld [vmem:[#allocation10 + $0x110] sm:$0xff]  ;;  %5615 = vst [vmem:[#allocation10 + $0xc0] sm:$0xff] %v5551_v8 }
 0x525   :  { %v5555_v47 = vadd.f32 %v5491_v57, %v5427_v43  ;;  %v5493_v0 = vmul.f32 %v13372_v41, %v13371_v16  ;;  %v13374_v30 = vld [vmem:[#allocation206_spill] sm:$0xff]  ;;  %v5431_v42 = vld [vmem:[#allocation10 + $0x100] sm:$0xff]  ;;  %5616 = vst [vmem:[#allocation10 + $0xc8] sm:$0xff] %v5552_v37  ;;  %5617 = vst [vmem:[#allocation10 + $0xd0] sm:$0xff] %v5553_v19  ;;  %v5556_v13 = vadd.f32 %v5492_v61, %v5428_v32 }
 0x526   :  { %v5494_v28 = vmul.f32 %v13374_v30, %v13373_v40  ;;  %v5432_v9 = vld [vmem:[#allocation10 + $0x108] sm:$0xff]  ;;  %v13376_v27 = vld [vmem:[#allocation207_spill] sm:$0xff]  ;;  %v13378_v3 = vld [vmem:[#allocation208_spill] sm:$0xff]  ;;  %5618 = vst [vmem:[#allocation10 + $0xd8] sm:$0xff] %v5554_v33 }
 0x527   :  { %v13375_v50 = vld [vmem:[#allocation90_spill] sm:$0xff]  ;;  %v13379_v43 = vld [vmem:[#allocation129_spill] sm:$0xff]  ;;  %v5434_v52 = vld [vmem:[#allocation10 + $0x118] sm:$0xff]  ;;  %5619 = vst [vmem:[#allocation10 + $0xe0] sm:$0xff] %v5555_v47  ;;  %v5557_v16 = vadd.f32 %v5493_v0, %v5429_v2 }
 0x528   :  { %v5495_v38 = vmul.f32 %v13376_v27, %v13375_v50  ;;  %v13377_v29 = vld [vmem:[#allocation126_spill] sm:$0xff]  ;;  %v13380_v60 = vld [vmem:[#allocation209_spill] sm:$0xff]  ;;  %v5558_v40 = vadd.f32 %v5494_v28, %v5430_v23  ;;  %v13384_v32 = vld [vmem:[#allocation211_spill] sm:$0xff]  ;;  %5620 = vst [vmem:[#allocation10 + $0xe8] sm:$0xff] %v5556_v13 }
 0x529   :  { %v5496_v15 = vmul.f32 %v13378_v3, %v13377_v29  ;;  %v5497_v35 = vmul.f32 %v13380_v60, %v13379_v43  ;;  %v5435_v57 = vld [vmem:[#allocation10 + $0x120] sm:$0xff]  ;;  %v13381_v30 = vld [vmem:[#allocation134_spill] sm:$0xff]  ;;  %v13386_v58 = vld [vmem:[#allocation212_spill] sm:$0xff]  ;;  %5621 = vst [vmem:[#allocation10 + $0xf0] sm:$0xff] %v5557_v16 }
 0x52a   :  { %v13382_v8 = vld [vmem:[#allocation210_spill] sm:$0xff]  ;;  %v5559_v50 = vadd.f32 %v5495_v38, %v5431_v42  ;;  %v13385_v3 = vld [vmem:[#allocation141_spill] sm:$0xff]  ;;  %v5437_v60 = vld [vmem:[#allocation10 + $0x130] sm:$0xff]  ;;  %5622 = vst [vmem:[#allocation10 + $0xf8] sm:$0xff] %v5558_v40 }
 0x52b   :  { %v5498_v37 = vmul.f32 %v13382_v8, %v13381_v30  ;;  %v13383_v19 = vld [vmem:[#allocation138_spill] sm:$0xff]  ;;  %v5560_v27 = vadd.f32 %v5496_v15, %v5432_v9  ;;  %v5561_v29 = vadd.f32 %v5497_v35, %v5433_v55  ;;  %v5500_v43 = vmul.f32 %v13386_v58, %v13385_v3  ;;  %v5438_v39 = vld [vmem:[#allocation10 + $0x138] sm:$0xff]  ;;  %v13387_v33 = vld [vmem:[#allocation143_spill] sm:$0xff] }
 0x52c   :  { %v5499_v61 = vmul.f32 %v13384_v32, %v13383_v19  ;;  %v5436_v41 = vld [vmem:[#allocation10 + $0x128] sm:$0xff]  ;;  %v13388_v47 = vld [vmem:[#allocation213_spill] sm:$0xff]  ;;  %v5441_v42 = vld [vmem:[#allocation10 + $0x150] sm:$0xff]  ;;  %5623 = vst [vmem:[#allocation10 + $0x100] sm:$0xff] %v5559_v50 }
 0x52d   :  { %v5562_v2 = vadd.f32 %v5498_v37, %v5434_v52  ;;  %v5501_v0 = vmul.f32 %v13388_v47, %v13387_v33  ;;  %v13389_v30 = vld [vmem:[#allocation33_spill] sm:$0xff]  ;;  %v13390_v28 = vld [vmem:[#allocation214_spill] sm:$0xff]  ;;  %5624 = vst [vmem:[#allocation10 + $0x108] sm:$0xff] %v5560_v27  ;;  %5625 = vst [vmem:[#allocation10 + $0x110] sm:$0xff] %v5561_v29  ;;  %v5564_v9 = vadd.f32 %v5500_v43, %v5436_v41 }
 0x52e   :  { %v5563_v23 = vadd.f32 %v5499_v61, %v5435_v57  ;;  %v5502_v19 = vmul.f32 %v13390_v28, %v13389_v30  ;;  %v5439_v32 = vld [vmem:[#allocation10 + $0x140] sm:$0xff]  ;;  %v5440_v13 = vld [vmem:[#allocation10 + $0x148] sm:$0xff]  ;;  %v13392_v38 = vld [vmem:[#allocation215_spill] sm:$0xff] }
 0x52f   :  { %v13391_v55 = vld [vmem:[#allocation149_spill] sm:$0xff]  ;;  %v13393_v15 = vld [vmem:[#allocation152_spill] sm:$0xff]  ;;  %v13395_v57 = vld [vmem:[#allocation39_spill] sm:$0xff]  ;;  %5626 = vst [vmem:[#allocation10 + $0x118] sm:$0xff] %v5562_v2  ;;  %v5565_v33 = vadd.f32 %v5501_v0, %v5437_v60 }
 0x530   :  { %v5503_v3 = vmul.f32 %v13392_v38, %v13391_v55  ;;  %v13394_v35 = vld [vmem:[#allocation216_spill] sm:$0xff]  ;;  %v13396_v16 = vld [vmem:[#allocation217_spill] sm:$0xff]  ;;  %5627 = vst [vmem:[#allocation10 + $0x120] sm:$0xff] %v5563_v23  ;;  %v5566_v30 = vadd.f32 %v5502_v19, %v5438_v39  ;;  %v13397_v28 = vld [vmem:[#allocation119_spill] sm:$0xff] }
 0x531   :  { %v5504_v52 = vmul.f32 %v13394_v35, %v13393_v15  ;;  %v5505_v40 = vmul.f32 %v13396_v16, %v13395_v57  ;;  %v5442_v37 = vld [vmem:[#allocation10 + $0x158] sm:$0xff]  ;;  %v5443_v61 = vld [vmem:[#allocation10 + $0x160] sm:$0xff]  ;;  %v5506_v27 = vmul.f32 %v12239_v14, %v13397_v28  ;;  %v5444_v29 = vld [vmem:[#allocation10 + $0x168] sm:$0xff]  ;;  %5628 = vst [vmem:[#allocation10 + $0x128] sm:$0xff] %v5564_v9 }
 0x532   :  { %v13398_v50 = vld [vmem:[#allocation160_spill] sm:$0xff]  ;;  %v5567_v43 = vadd.f32 %v5503_v3, %v5439_v32  ;;  %v13399_v35 = vld [vmem:[#allocation165_spill] sm:$0xff]  ;;  %v13400_v38 = vld [vmem:[#allocation218_spill] sm:$0xff]  ;;  %5629 = vst [vmem:[#allocation10 + $0x130] sm:$0xff] %v5565_v33 }
 0x533   :  { %v5507_v41 = vmul.f32 %v12247_v56, %v13398_v50  ;;  %v5568_v55 = vadd.f32 %v5504_v52, %v5440_v13  ;;  %v5569_v15 = vadd.f32 %v5505_v40, %v5441_v42  ;;  %v5508_v57 = vmul.f32 %v13400_v38, %v13399_v35  ;;  %v5445_v16 = vld [vmem:[#allocation10 + $0x170] sm:$0xff]  ;;  %v5446_v47 = vld [vmem:[#allocation10 + $0x178] sm:$0xff]  ;;  %5630 = vst [vmem:[#allocation10 + $0x138] sm:$0xff] %v5566_v30  ;;  %v13401_v2 = vld [vmem:[#allocation166_spill] sm:$0xff] }
 0x534   :  { %v5570_v60 = vadd.f32 %v5506_v27, %v5442_v37  ;;  %v13402_v23 = vld [vmem:[#allocation219_spill] sm:$0xff]  ;;  %v13403_v28 = vld [vmem:[#allocation169_spill] sm:$0xff]  ;;  %v5448_v9 = vld [vmem:[#allocation10 + $0x188] sm:$0xff]  ;;  %5631 = vst [vmem:[#allocation10 + $0x140] sm:$0xff] %v5567_v43 }
 0x535   :  { %v5571_v39 = vadd.f32 %v5507_v41, %v5443_v61  ;;  %v5509_v0 = vmul.f32 %v13402_v23, %v13401_v2  ;;  %v5510_v19 = vmul.f32 %v12267_v7, %v13403_v28  ;;  %v5447_v50 = vld [vmem:[#allocation10 + $0x180] sm:$0xff]  ;;  %v5449_v32 = vld [vmem:[#allocation10 + $0x190] sm:$0xff]  ;;  %5632 = vst [vmem:[#allocation10 + $0x148] sm:$0xff] %v5568_v55  ;;  %5633 = vst [vmem:[#allocation10 + $0x150] sm:$0xff] %v5569_v15 }
 0x536   :  { %v5572_v13 = vadd.f32 %v5508_v57, %v5444_v29  ;;  %v13404_v42 = vld [vmem:[#allocation171_spill] sm:$0xff]  ;;  %v13405_v35 = vld [vmem:[#allocation173_spill] sm:$0xff]  ;;  %v5450_v61 = vld [vmem:[#allocation10 + $0x198] sm:$0xff]  ;;  %5634 = vst [vmem:[#allocation10 + $0x158] sm:$0xff] %v5570_v60 }
 0x537   :  { %v5511_v3 = vmul.f32 %v12275_v48, %v13404_v42  ;;  %v5512_v52 = vmul.f32 %v12283_v54, %v13405_v35  ;;  %v13406_v40 = vld [vmem:[#allocation175_spill] sm:$0xff]  ;;  %v5451_v33 = vld [vmem:[#allocation10 + $0x1a0] sm:$0xff]  ;;  %5635 = vst [vmem:[#allocation10 + $0x160] sm:$0xff] %v5571_v39  ;;  %v5573_v30 = vadd.f32 %v5509_v0, %v5445_v16  ;;  %v5574_v27 = vadd.f32 %v5510_v19, %v5446_v47  ;;  %v5452_v15 = vld [vmem:[#allocation10 + $0x1a8] sm:$0xff] }
 0x538   :  { %v5513_v37 = vmul.f32 %v12286_v6, %v13406_v40  ;;  %v13407_v41 = vld [vmem:[#allocation177_spill] sm:$0xff]  ;;  %v13408_v55 = vld [vmem:[#allocation75_spill] sm:$0xff]  ;;  %5636 = vst [vmem:[#allocation10 + $0x168] sm:$0xff] %v5572_v13  ;;  %v13409_v42 = vld [vmem:[#allocation178_spill] sm:$0xff] }
 0x539   :  { %v5514_v43 = vmul.f32 %v12295_v53, %v13407_v41  ;;  %v5515_v29 = vmul.f32 %v12303_v31, %v13408_v55  ;;  %v5575_v57 = vadd.f32 %v5511_v3, %v5447_v50  ;;  %v5576_v2 = vadd.f32 %v5512_v52, %v5448_v9  ;;  %v5453_v40 = vld [vmem:[#allocation10 + $0x1b0] sm:$0xff]  ;;  %v5454_v6 = vld [vmem:[#allocation10 + $0x1b8] sm:$0xff]  ;;  %5637 = vst [vmem:[#allocation10 + $0x170] sm:$0xff] %v5573_v30  ;;  %v13411_v0 = vld [vmem:[#allocation121_spill] sm:$0xff] }
 0x53a   :  { %v5577_v28 = vadd.f32 %v5513_v37, %v5449_v32  ;;  %v5516_v35 = vmul.f32 %v12311_v63, %v13409_v42  ;;  %5638 = vst [vmem:[#allocation10 + $0x178] sm:$0xff] %v5574_v27  ;;  %v13410_v60 = vld [vmem:[#allocation179_spill] sm:$0xff]  ;;  %v5518_v19 = vmul.f32 %v12323_v20, %v13411_v0  ;;  %v5455_v41 = vld [vmem:[#allocation10 + $0x1c0] sm:$0xff]  ;;  %v5456_v13 = vld [vmem:[#allocation10 + $0x1c8] sm:$0xff] }
 0x53b   :  { %v5578_v16 = vadd.f32 %v5514_v43, %v5450_v61  ;;  %v5579_v47 = vadd.f32 %v5515_v29, %v5451_v33  ;;  %v5517_v39 = vmul.f32 %v12314_v49, %v13410_v60  ;;  %v5457_v50 = vld [vmem:[#allocation10 + $0x1d0] sm:$0xff]  ;;  %5639 = vst [vmem:[#allocation10 + $0x180] sm:$0xff] %v5575_v57  ;;  %5640 = vst [vmem:[#allocation10 + $0x188] sm:$0xff] %v5576_v2  ;;  %v13413_v52 = vld [vmem:[#allocation164_spill] sm:$0xff] }
 0x53c   :  { %5641 = vst [vmem:[#allocation10 + $0x190] sm:$0xff] %v5577_v28  ;;  %v5580_v9 = vadd.f32 %v5516_v35, %v5452_v15  ;;  %v13412_v32 = vld [vmem:[#allocation159_spill] sm:$0xff]  ;;  %v5520_v37 = vmul.f32 %v12339_v5, %v13413_v52  ;;  %v13414_v61 = vld [vmem:[#allocation182_spill] sm:$0xff]  ;;  %v5458_v30 = vld [vmem:[#allocation10 + $0x1d8] sm:$0xff]  ;;  %v5582_v55 = vadd.f32 %v5518_v19, %v5454_v6 }
 0x53d   :  { %v5519_v3 = vmul.f32 %v12331_v22, %v13412_v32  ;;  %v5521_v33 = vmul.f32 %v12342_v25, %v13414_v61  ;;  %v5459_v27 = vld [vmem:[#allocation10 + $0x1e0] sm:$0xff]  ;;  %5642 = vst [vmem:[#allocation10 + $0x198] sm:$0xff] %v5578_v16  ;;  %5643 = vst [vmem:[#allocation10 + $0x1a0] sm:$0xff] %v5579_v47  ;;  %v5581_v43 = vadd.f32 %v5517_v39, %v5453_v40  ;;  %v13415_v29 = vld [vmem:[#allocation183_spill] sm:$0xff] }
 0x53e   :  { %v13416_v57 = vld [vmem:[#allocation224_spill] sm:$0xff]  ;;  %v13417_v28 = vld [vmem:[#allocation186_spill] sm:$0xff]  ;;  %v13418_v15 = vld [vmem:[#allocation225_spill] sm:$0xff]  ;;  %5644 = vst [vmem:[#allocation10 + $0x1a8] sm:$0xff] %v5580_v9  ;;  %v5584_v0 = vadd.f32 %v5520_v37, %v5456_v13 }
 0x53f   :  { %v5522_v2 = vmul.f32 %v13416_v57, %v13415_v29  ;;  %v5523_v42 = vmul.f32 %v13418_v15, %v13417_v28  ;;  %v5460_v35 = vld [vmem:[#allocation10 + $0x1e8] sm:$0xff]  ;;  %v5583_v60 = vadd.f32 %v5519_v3, %v5455_v41  ;;  %v5585_v32 = vadd.f32 %v5521_v33, %v5457_v50  ;;  %v13419_v52 = vld [vmem:[#allocation187_spill] sm:$0xff]  ;;  %v5462_v22 = vld [vmem:[#allocation10 + $0x1f8] sm:$0xff]  ;;  %5645 = vst [vmem:[#allocation10 + $0x1b0] sm:$0xff] %v5581_v43 }
 0x540   :  { %v13420_v5 = vld [vmem:[#allocation226_spill] sm:$0xff]  ;;  %v5461_v25 = vld [vmem:[#allocation10 + $0x1f0] sm:$0xff]  ;;  %5646 = vst [vmem:[#allocation10 + $0x1b8] sm:$0xff] %v5582_v55  ;;  %v5655_v28 = vld [vmem:[#allocation12] sm:$0xff] }
 0x541   :  { %v5524_v61 = vmul.f32 %v13420_v5, %v13419_v52  ;;  %v5586_v40 = vadd.f32 %v5522_v2, %v5458_v30  ;;  %v5587_v6 = vadd.f32 %v5523_v42, %v5459_v27  ;;  %v13421_v16 = vld [vmem:[#allocation190_spill] sm:$0xff]  ;;  %v13422_v47 = vld [vmem:[#allocation227_spill] sm:$0xff]  ;;  %5647 = vst [vmem:[#allocation10 + $0x1c0] sm:$0xff] %v5583_v60  ;;  %5648 = vst [vmem:[#allocation10 + $0x1c8] sm:$0xff] %v5584_v0 }
 0x542   :  { %v5525_v39 = vmul.f32 %v13422_v47, %v13421_v16  ;;  %v13423_v19 = vld [vmem:[#allocation191_spill] sm:$0xff]  ;;  %v5656_v9 = vld [vmem:[#allocation12 + $0x8] sm:$0xff]  ;;  %5649 = vst [vmem:[#allocation10 + $0x1d0] sm:$0xff] %v5585_v32  ;;  %v13424_v50 = vld [vmem:[#allocation17_spill] sm:$0xff] }
 0x543   :  { %v5526_v29 = vmul.f32 %v12380_v26, %v13423_v19  ;;  %v5657_v41 = vld [vmem:[#allocation12 + $0x10] sm:$0xff]  ;;  %v5588_v13 = vadd.f32 %v5524_v61, %v5460_v35  ;;  %v13425_v3 = vld [vmem:[#allocation192_spill] sm:$0xff]  ;;  %v13426_v33 = vld [vmem:[#allocation18_spill] sm:$0xff]  ;;  %5650 = vst [vmem:[#allocation10 + $0x1d8] sm:$0xff] %v5586_v40 }
 0x544   :  { %v5719_v37 = vmul.f32 %v13425_v3, %v13424_v50  ;;  %v13427_v43 = vld [vmem:[#allocation193_spill] sm:$0xff]  ;;  %v13428_v27 = vld [vmem:[#allocation20_spill] sm:$0xff]  ;;  %v13429_v55 = vld [vmem:[#allocation194_spill] sm:$0xff]  ;;  %5651 = vst [vmem:[#allocation10 + $0x1e0] sm:$0xff] %v5587_v6  ;;  %v5589_v16 = vadd.f32 %v5525_v39, %v5461_v25 }
 0x545   :  { %v5720_v30 = vmul.f32 %v13427_v43, %v13426_v33  ;;  %v5721_v2 = vmul.f32 %v13429_v55, %v13428_v27  ;;  %v5658_v42 = vld [vmem:[#allocation12 + $0x18] sm:$0xff]  ;;  %v5659_v52 = vld [vmem:[#allocation12 + $0x20] sm:$0xff]  ;;  %v5590_v19 = vadd.f32 %v5526_v29, %v5462_v22  ;;  %v5660_v32 = vld [vmem:[#allocation12 + $0x28] sm:$0xff]  ;;  %5652 = vst [vmem:[#allocation10 + $0x1e8] sm:$0xff] %v5588_v13 }
 0x546   :  { %v13430_v26 = vld [vmem:[#allocation24_spill] sm:$0xff]  ;;  %v13431_v0 = vld [vmem:[#allocation29_spill] sm:$0xff]  ;;  %v5783_v61 = vadd.f32 %v5719_v37, %v5655_v28  ;;  %v5661_v27 = vld [vmem:[#allocation12 + $0x30] sm:$0xff]  ;;  %5653 = vst [vmem:[#allocation10 + $0x1f0] sm:$0xff] %v5589_v16 }
 0x547   :  { %v5722_v60 = vmul.f32 %v11957_v62, %v13430_v26  ;;  %v5723_v35 = vmul.f32 %v11967_v12, %v13431_v0  ;;  %v5784_v50 = vadd.f32 %v5720_v30, %v5656_v9  ;;  %v5785_v3 = vadd.f32 %v5721_v2, %v5657_v41  ;;  %v13432_v33 = vld [vmem:[#allocation36_spill] sm:$0xff]  ;;  %5654 = vst [vmem:[#allocation10 + $0x1f8] sm:$0xff] %v5590_v19  ;;  %v13434_v26 = vld [vmem:[#allocation47_spill] sm:$0xff]  ;;  %v5663_v6 = vld [vmem:[#allocation12 + $0x40] sm:$0xff] }
 0x548   :  { %v5724_v43 = vmul.f32 %v11975_v21, %v13432_v33  ;;  %v5662_v55 = vld [vmem:[#allocation12 + $0x38] sm:$0xff]  ;;  %v5726_v12 = vmul.f32 %v11987_v24, %v13434_v26  ;;  %v5664_v39 = vld [vmem:[#allocation12 + $0x48] sm:$0xff]  ;;  %v5665_v29 = vld [vmem:[#allocation12 + $0x50] sm:$0xff]  ;;  %5847 = vst [vmem:[#allocation12] sm:$0xff] %v5783_v61 }
 0x549   :  { %v5786_v25 = vadd.f32 %v5722_v60, %v5658_v42  ;;  %v5787_v22 = vadd.f32 %v5723_v35, %v5659_v52  ;;  %v13433_v40 = vld [vmem:[#allocation44_spill] sm:$0xff]  ;;  %5848 = vst [vmem:[#allocation12 + $0x8] sm:$0xff] %v5784_v50  ;;  %5849 = vst [vmem:[#allocation12 + $0x10] sm:$0xff] %v5785_v3  ;;  %v13435_v21 = vld [vmem:[#allocation53_spill] sm:$0xff] }
 0x54a   :  { %v5725_v62 = vmul.f32 %v11978_v44, %v13433_v40  ;;  %v5788_v28 = vadd.f32 %v5724_v43, %v5660_v32  ;;  %v5727_v9 = vmul.f32 %v11995_v46, %v13435_v21  ;;  %v13436_v41 = vld [vmem:[#allocation58_spill] sm:$0xff]  ;;  %v13437_v37 = vld [vmem:[#allocation60_spill] sm:$0xff]  ;;  %v13438_v30 = vld [vmem:[#allocation195_spill] sm:$0xff]  ;;  %v5790_v52 = vadd.f32 %v5726_v12, %v5662_v55 }
 0x54b   :  { %v5728_v13 = vmul.f32 %v12003_v10, %v13436_v41  ;;  %v5729_v2 = vmul.f32 %v13438_v30, %v13437_v37  ;;  %v5666_v44 = vld [vmem:[#allocation12 + $0x58] sm:$0xff]  ;;  %v5667_v42 = vld [vmem:[#allocation12 + $0x60] sm:$0xff]  ;;  %5850 = vst [vmem:[#allocation12 + $0x18] sm:$0xff] %v5786_v25  ;;  %5851 = vst [vmem:[#allocation12 + $0x20] sm:$0xff] %v5787_v22 }
 0x54c   :  { %v5789_v24 = vadd.f32 %v5725_v62, %v5661_v27  ;;  %v13439_v16 = vld [vmem:[#allocation62_spill] sm:$0xff]  ;;  %v13440_v60 = vld [vmem:[#allocation65_spill] sm:$0xff]  ;;  %5852 = vst [vmem:[#allocation12 + $0x28] sm:$0xff] %v5788_v28  ;;  %v5791_v46 = vadd.f32 %v5727_v9, %v5663_v6  ;;  %v5669_v3 = vld [vmem:[#allocation12 + $0x70] sm:$0xff] }
 0x54d   :  { %v5730_v19 = vmul.f32 %v12015_v4, %v13439_v16  ;;  %v5731_v0 = vmul.f32 %v12023_v59, %v13440_v60  ;;  %v5668_v35 = vld [vmem:[#allocation12 + $0x68] sm:$0xff]  ;;  %v5792_v32 = vadd.f32 %v5728_v13, %v5664_v39  ;;  %v5793_v10 = vadd.f32 %v5729_v2, %v5665_v29  ;;  %v13441_v61 = vld [vmem:[#allocation69_spill] sm:$0xff]  ;;  %v5670_v33 = vld [vmem:[#allocation12 + $0x78] sm:$0xff]  ;;  %5854 = vst [vmem:[#allocation12 + $0x38] sm:$0xff] %v5790_v52 }
 0x54e   :  { %v5732_v50 = vmul.f32 %v12031_v17, %v13441_v61  ;;  %5853 = vst [vmem:[#allocation12 + $0x30] sm:$0xff] %v5789_v24  ;;  %v13442_v55 = vld [vmem:[#allocation71_spill] sm:$0xff]  ;;  %v13443_v25 = vld [vmem:[#allocation76_spill] sm:$0xff]  ;;  %v5671_v22 = vld [vmem:[#allocation12 + $0x80] sm:$0xff] }
 0x54f   :  { %v5794_v43 = vadd.f32 %v5730_v19, %v5666_v44  ;;  %v5795_v27 = vadd.f32 %v5731_v0, %v5667_v42  ;;  %v5733_v4 = vmul.f32 %v12034_v45, %v13442_v55  ;;  %v5734_v59 = vmul.f32 %v12043_v1, %v13443_v25  ;;  %v5672_v40 = vld [vmem:[#allocation12 + $0x88] sm:$0xff]  ;;  %v5673_v62 = vld [vmem:[#allocation12 + $0x90] sm:$0xff]  ;;  %5855 = vst [vmem:[#allocation12 + $0x40] sm:$0xff] %v5791_v46  ;;  %v13444_v17 = vld [vmem:[#allocation32_spill] sm:$0xff] }
 0x550   :  { %5856 = vst [vmem:[#allocation12 + $0x48] sm:$0xff] %v5792_v32  ;;  %5857 = vst [vmem:[#allocation12 + $0x50] sm:$0xff] %v5793_v10  ;;  %v5796_v26 = vadd.f32 %v5732_v50, %v5668_v35  ;;  %v5735_v12 = vmul.f32 %v12051_v18, %v13444_v17  ;;  %v13445_v6 = vld [vmem:[#allocation83_spill] sm:$0xff]  ;;  %v13446_v29 = vld [vmem:[#allocation42_spill] sm:$0xff] }
 0x551   :  { %v5736_v39 = vmul.f32 %v12059_v34, %v13445_v6  ;;  %v5737_v28 = vmul.f32 %v12062_v36, %v13446_v29  ;;  %v5674_v45 = vld [vmem:[#allocation12 + $0x98] sm:$0xff]  ;;  %v5675_v21 = vld [vmem:[#allocation12 + $0xa0] sm:$0xff]  ;;  %5858 = vst [vmem:[#allocation12 + $0x58] sm:$0xff] %v5794_v43  ;;  %5859 = vst [vmem:[#allocation12 + $0x60] sm:$0xff] %v5795_v27  ;;  %v5797_v1 = vadd.f32 %v5733_v4, %v5669_v3 }
 0x552   :  { %v5798_v9 = vadd.f32 %v5734_v59, %v5670_v33  ;;  %v13447_v41 = vld [vmem:[#allocation86_spill] sm:$0xff]  ;;  %v13448_v37 = vld [vmem:[#allocation87_spill] sm:$0xff]  ;;  %5860 = vst [vmem:[#allocation12 + $0x68] sm:$0xff] %v5796_v26  ;;  %v5799_v18 = vadd.f32 %v5735_v12, %v5671_v22  ;;  %v13449_v42 = vld [vmem:[#allocation89_spill] sm:$0xff] }
 0x553   :  { %v5738_v13 = vmul.f32 %v12071_v51, %v13447_v41  ;;  %v5739_v30 = vmul.f32 %v12079_v11, %v13448_v37  ;;  %v5676_v2 = vld [vmem:[#allocation12 + $0xa8] sm:$0xff]  ;;  %v5800_v44 = vadd.f32 %v5736_v39, %v5672_v40  ;;  %v5801_v34 = vadd.f32 %v5737_v28, %v5673_v62  ;;  %v13450_v24 = vld [vmem:[#allocation196_spill] sm:$0xff]  ;;  %v5677_v52 = vld [vmem:[#allocation12 + $0xb0] sm:$0xff]  ;;  %5861 = vst [vmem:[#allocation12 + $0x70] sm:$0xff] %v5797_v1 }
 0x554   :  { %v5740_v36 = vmul.f32 %v13450_v24, %v13449_v42  ;;  %v5678_v16 = vld [vmem:[#allocation12 + $0xb8] sm:$0xff]  ;;  %5862 = vst [vmem:[#allocation12 + $0x78] sm:$0xff] %v5798_v9  ;;  %v13451_v0 = vld [vmem:[#allocation94_spill] sm:$0xff]  ;;  %v13452_v35 = vld [vmem:[#allocation197_spill] sm:$0xff] }
 0x555   :  { %v5802_v19 = vadd.f32 %v5738_v13, %v5674_v45  ;;  %v5803_v60 = vadd.f32 %v5739_v30, %v5675_v21  ;;  %v5741_v51 = vmul.f32 %v13452_v35, %v13451_v0  ;;  %v13453_v46 = vld [vmem:[#allocation98_spill] sm:$0xff]  ;;  %v5679_v10 = vld [vmem:[#allocation12 + $0xc0] sm:$0xff]  ;;  %v5681_v50 = vld [vmem:[#allocation12 + $0xd0] sm:$0xff]  ;;  %5863 = vst [vmem:[#allocation12 + $0x80] sm:$0xff] %v5799_v18 }
 0x556   :  { %v13454_v32 = vld [vmem:[#allocation198_spill] sm:$0xff]  ;;  %5864 = vst [vmem:[#allocation12 + $0x88] sm:$0xff] %v5800_v44  ;;  %5865 = vst [vmem:[#allocation12 + $0x90] sm:$0xff] %v5801_v34  ;;  %v5804_v3 = vadd.f32 %v5740_v36, %v5676_v2  ;;  %v13455_v33 = vld [vmem:[#allocation101_spill] sm:$0xff] }
 0x557   :  { %v5742_v11 = vmul.f32 %v13454_v32, %v13453_v46  ;;  %v5680_v61 = vld [vmem:[#allocation12 + $0xc8] sm:$0xff]  ;;  %v13456_v43 = vld [vmem:[#allocation199_spill] sm:$0xff]  ;;  %v13457_v55 = vld [vmem:[#allocation104_spill] sm:$0xff]  ;;  %5866 = vst [vmem:[#allocation12 + $0x98] sm:$0xff] %v5802_v19  ;;  %v5805_v17 = vadd.f32 %v5741_v51, %v5677_v52 }
 0x558   :  { %v5743_v27 = vmul.f32 %v13456_v43, %v13455_v33  ;;  %v13458_v4 = vld [vmem:[#allocation200_spill] sm:$0xff]  ;;  %v13459_v59 = vld [vmem:[#allocation106_spill] sm:$0xff]  ;;  %v13460_v22 = vld [vmem:[#allocation201_spill] sm:$0xff]  ;;  %5867 = vst [vmem:[#allocation12 + $0xa0] sm:$0xff] %v5803_v60 }
 0x559   :  { %v5744_v25 = vmul.f32 %v13458_v4, %v13457_v55  ;;  %v5745_v40 = vmul.f32 %v13460_v22, %v13459_v59  ;;  %v5682_v62 = vld [vmem:[#allocation12 + $0xd8] sm:$0xff]  ;;  %v5683_v26 = vld [vmem:[#allocation12 + $0xe0] sm:$0xff]  ;;  %v5806_v12 = vadd.f32 %v5742_v11, %v5678_v16  ;;  %v13461_v6 = vld [vmem:[#allocation110_spill] sm:$0xff]  ;;  %5868 = vst [vmem:[#allocation12 + $0xa8] sm:$0xff] %v5804_v3 }
 0x55a   :  { %v13462_v39 = vld [vmem:[#allocation202_spill] sm:$0xff]  ;;  %v13463_v28 = vld [vmem:[#allocation113_spill] sm:$0xff]  ;;  %v13464_v45 = vld [vmem:[#allocation203_spill] sm:$0xff]  ;;  %v5807_v9 = vadd.f32 %v5743_v27, %v5679_v10  ;;  %5869 = vst [vmem:[#allocation12 + $0xb0] sm:$0xff] %v5805_v17 }
 0x55b   :  { %v5746_v29 = vmul.f32 %v13462_v39, %v13461_v6  ;;  %v5747_v21 = vmul.f32 %v13464_v45, %v13463_v28  ;;  %v5684_v1 = vld [vmem:[#allocation12 + $0xe8] sm:$0xff]  ;;  %v5808_v41 = vadd.f32 %v5744_v25, %v5680_v61  ;;  %v5809_v13 = vadd.f32 %v5745_v40, %v5681_v50  ;;  %v13465_v37 = vld [vmem:[#allocation116_spill] sm:$0xff]  ;;  %v5685_v18 = vld [vmem:[#allocation12 + $0xf0] sm:$0xff]  ;;  %5870 = vst [vmem:[#allocation12 + $0xb8] sm:$0xff] %v5806_v12 }
 0x55c   :  { %v13466_v30 = vld [vmem:[#allocation204_spill] sm:$0xff]  ;;  %v13468_v36 = vld [vmem:[#allocation205_spill] sm:$0xff]  ;;  %v13470_v19 = vld [vmem:[#allocation206_spill] sm:$0xff]  ;;  %5871 = vst [vmem:[#allocation12 + $0xc0] sm:$0xff] %v5807_v9 }
 0x55d   :  { %v5748_v2 = vmul.f32 %v13466_v30, %v13465_v37  ;;  %v5686_v44 = vld [vmem:[#allocation12 + $0xf8] sm:$0xff]  ;;  %v5810_v34 = vadd.f32 %v5746_v29, %v5682_v62  ;;  %v5811_v42 = vadd.f32 %v5747_v21, %v5683_v26  ;;  %v13469_v16 = vld [vmem:[#allocation41_spill] sm:$0xff]  ;;  %v5688_v35 = vld [vmem:[#allocation12 + $0x108] sm:$0xff]  ;;  %5872 = vst [vmem:[#allocation12 + $0xc8] sm:$0xff] %v5808_v41 }
 0x55e   :  { %v13467_v24 = vld [vmem:[#allocation40_spill] sm:$0xff]  ;;  %v5750_v60 = vmul.f32 %v13470_v19, %v13469_v16  ;;  %v5687_v0 = vld [vmem:[#allocation12 + $0x100] sm:$0xff]  ;;  %v5689_v51 = vld [vmem:[#allocation12 + $0x110] sm:$0xff]  ;;  %5873 = vst [vmem:[#allocation12 + $0xd0] sm:$0xff] %v5809_v13 }
 0x55f   :  { %v5749_v52 = vmul.f32 %v13468_v36, %v13467_v24  ;;  %v5812_v46 = vadd.f32 %v5748_v2, %v5684_v1  ;;  %v13471_v32 = vld [vmem:[#allocation123_spill] sm:$0xff]  ;;  %v13473_v61 = vld [vmem:[#allocation125_spill] sm:$0xff]  ;;  %v13474_v50 = vld [vmem:[#allocation208_spill] sm:$0xff]  ;;  %5874 = vst [vmem:[#allocation12 + $0xd8] sm:$0xff] %v5810_v34 }
 0x560   :  { %v13472_v11 = vld [vmem:[#allocation207_spill] sm:$0xff]  ;;  %v5752_v3 = vmul.f32 %v13474_v50, %v13473_v61  ;;  %v13476_v43 = vld [vmem:[#allocation209_spill] sm:$0xff]  ;;  %v5690_v55 = vld [vmem:[#allocation12 + $0x118] sm:$0xff]  ;;  %5875 = vst [vmem:[#allocation12 + $0xe0] sm:$0xff] %v5811_v42  ;;  %v5814_v59 = vadd.f32 %v5750_v60, %v5686_v44 }
 0x561   :  { %v5751_v10 = vmul.f32 %v13472_v11, %v13471_v32  ;;  %v13475_v33 = vld [vmem:[#allocation127_spill] sm:$0xff]  ;;  %v5691_v4 = vld [vmem:[#allocation12 + $0x120] sm:$0xff]  ;;  %v5813_v25 = vadd.f32 %v5749_v52, %v5685_v18  ;;  %v13477_v22 = vld [vmem:[#allocation130_spill] sm:$0xff]  ;;  %5876 = vst [vmem:[#allocation12 + $0xe8] sm:$0xff] %v5812_v46 }
 0x562   :  { %v5753_v27 = vmul.f32 %v13476_v43, %v13475_v33  ;;  %v5754_v40 = vmul.f32 %v13382_v8, %v13477_v22  ;;  %v13478_v62 = vld [vmem:[#allocation135_spill] sm:$0xff]  ;;  %v5692_v12 = vld [vmem:[#allocation12 + $0x128] sm:$0xff]  ;;  %v5816_v39 = vadd.f32 %v5752_v3, %v5688_v35  ;;  %v13480_v28 = vld [vmem:[#allocation137_spill] sm:$0xff]  ;;  %5878 = vst [vmem:[#allocation12 + $0xf8] sm:$0xff] %v5814_v59 }
 0x563   :  { %v13479_v26 = vld [vmem:[#allocation211_spill] sm:$0xff]  ;;  %v5815_v6 = vadd.f32 %v5751_v10, %v5687_v0  ;;  %v5756_v45 = vmul.f32 %v13386_v58, %v13480_v28  ;;  %v5694_v1 = vld [vmem:[#allocation12 + $0x138] sm:$0xff]  ;;  %5877 = vst [vmem:[#allocation12 + $0xf0] sm:$0xff] %v5813_v25  ;;  %v13482_v37 = vld [vmem:[#allocation213_spill] sm:$0xff] }
 0x564   :  { %v5755_v17 = vmul.f32 %v13479_v26, %v13478_v62  ;;  %v5817_v29 = vadd.f32 %v5753_v27, %v5689_v51  ;;  %v5693_v21 = vld [vmem:[#allocation12 + $0x130] sm:$0xff]  ;;  %v5818_v9 = vadd.f32 %v5754_v40, %v5690_v55  ;;  %v13481_v13 = vld [vmem:[#allocation140_spill] sm:$0xff]  ;;  %v13483_v30 = vld [vmem:[#allocation145_spill] sm:$0xff]  ;;  %5880 = vst [vmem:[#allocation12 + $0x108] sm:$0xff] %v5816_v39 }
 0x565   :  { %v5757_v8 = vmul.f32 %v13482_v37, %v13481_v13  ;;  %v13484_v2 = vld [vmem:[#allocation214_spill] sm:$0xff]  ;;  %v5695_v44 = vld [vmem:[#allocation12 + $0x140] sm:$0xff]  ;;  %v5697_v42 = vld [vmem:[#allocation12 + $0x150] sm:$0xff]  ;;  %5879 = vst [vmem:[#allocation12 + $0x100] sm:$0xff] %v5815_v6  ;;  %v5820_v24 = vadd.f32 %v5756_v45, %v5692_v12 }
 0x566   :  { %v5819_v41 = vadd.f32 %v5755_v17, %v5691_v4  ;;  %v5758_v18 = vmul.f32 %v13484_v2, %v13483_v30  ;;  %v5696_v34 = vld [vmem:[#allocation12 + $0x148] sm:$0xff]  ;;  %5881 = vst [vmem:[#allocation12 + $0x110] sm:$0xff] %v5817_v29  ;;  %v13486_v36 = vld [vmem:[#allocation215_spill] sm:$0xff]  ;;  %v13487_v16 = vld [vmem:[#allocation148_spill] sm:$0xff] }
 0x567   :  { %v13485_v58 = vld [vmem:[#allocation146_spill] sm:$0xff]  ;;  %v13488_v19 = vld [vmem:[#allocation216_spill] sm:$0xff]  ;;  %v13489_v0 = vld [vmem:[#allocation151_spill] sm:$0xff]  ;;  %5882 = vst [vmem:[#allocation12 + $0x118] sm:$0xff] %v5818_v9  ;;  %v5821_v11 = vadd.f32 %v5757_v8, %v5693_v21 }
 0x568   :  { %v5759_v52 = vmul.f32 %v13486_v36, %v13485_v58  ;;  %v5760_v60 = vmul.f32 %v13488_v19, %v13487_v16  ;;  %v13490_v35 = vld [vmem:[#allocation217_spill] sm:$0xff]  ;;  %v5698_v46 = vld [vmem:[#allocation12 + $0x158] sm:$0xff]  ;;  %5883 = vst [vmem:[#allocation12 + $0x120] sm:$0xff] %v5819_v41  ;;  %v5822_v10 = vadd.f32 %v5758_v18, %v5694_v1  ;;  %v13491_v61 = vld [vmem:[#allocation154_spill] sm:$0xff] }
 0x569   :  { %v5761_v51 = vmul.f32 %v13490_v35, %v13489_v0  ;;  %v5699_v32 = vld [vmem:[#allocation12 + $0x160] sm:$0xff]  ;;  %v5762_v50 = vmul.f32 %v12239_v14, %v13491_v61  ;;  %v13492_v3 = vld [vmem:[#allocation158_spill] sm:$0xff]  ;;  %5884 = vst [vmem:[#allocation12 + $0x128] sm:$0xff] %v5820_v24  ;;  %v5701_v22 = vld [vmem:[#allocation12 + $0x170] sm:$0xff] }
 0x56a   :  { %v5763_v33 = vmul.f32 %v12247_v56, %v13492_v3  ;;  %v5700_v43 = vld [vmem:[#allocation12 + $0x168] sm:$0xff]  ;;  %v5823_v27 = vadd.f32 %v5759_v52, %v5695_v44  ;;  %v5824_v55 = vadd.f32 %v5760_v60, %v5696_v34  ;;  %v13493_v25 = vld [vmem:[#allocation161_spill] sm:$0xff]  ;;  %v5702_v40 = vld [vmem:[#allocation12 + $0x178] sm:$0xff]  ;;  %5885 = vst [vmem:[#allocation12 + $0x130] sm:$0xff] %v5821_v11 }
 0x56b   :  { %v5825_v4 = vadd.f32 %v5761_v51, %v5697_v42  ;;  %v5764_v59 = vmul.f32 %v13400_v38, %v13493_v25  ;;  %5886 = vst [vmem:[#allocation12 + $0x138] sm:$0xff] %v5822_v10  ;;  %v5826_v62 = vadd.f32 %v5762_v50, %v5698_v46  ;;  %v13494_v17 = vld [vmem:[#allocation163_spill] sm:$0xff]  ;;  %v5703_v6 = vld [vmem:[#allocation12 + $0x180] sm:$0xff]  ;;  %v5704_v39 = vld [vmem:[#allocation12 + $0x188] sm:$0xff] }
 0x56c   :  { %v5827_v26 = vadd.f32 %v5763_v33, %v5699_v32  ;;  %v5765_v14 = vmul.f32 %v13402_v23, %v13494_v17  ;;  %v13495_v12 = vld [vmem:[#allocation167_spill] sm:$0xff]  ;;  %5887 = vst [vmem:[#allocation12 + $0x140] sm:$0xff] %v5823_v27  ;;  %5888 = vst [vmem:[#allocation12 + $0x148] sm:$0xff] %v5824_v55  ;;  %v13496_v38 = vld [vmem:[#allocation132_spill] sm:$0xff] }
 0x56d   :  { %v5766_v56 = vmul.f32 %v12267_v7, %v13495_v12  ;;  %v5705_v29 = vld [vmem:[#allocation12 + $0x190] sm:$0xff]  ;;  %5889 = vst [vmem:[#allocation12 + $0x150] sm:$0xff] %v5825_v4  ;;  %v5828_v28 = vadd.f32 %v5764_v59, %v5700_v43  ;;  %v5767_v45 = vmul.f32 %v12275_v48, %v13496_v38  ;;  %v13497_v21 = vld [vmem:[#allocation133_spill] sm:$0xff]  ;;  %v13498_v9 = vld [vmem:[#allocation172_spill] sm:$0xff] }
 0x56e   :  { %v5768_v1 = vmul.f32 %v12283_v54, %v13497_v21  ;;  %v13499_v41 = vld [vmem:[#allocation220_spill] sm:$0xff]  ;;  %v5707_v37 = vld [vmem:[#allocation12 + $0x1a0] sm:$0xff]  ;;  %5890 = vst [vmem:[#allocation12 + $0x158] sm:$0xff] %v5826_v62  ;;  %5891 = vst [vmem:[#allocation12 + $0x160] sm:$0xff] %v5827_v26  ;;  %v5829_v7 = vadd.f32 %v5765_v14, %v5701_v22 }
 0x56f   :  { %v5769_v13 = vmul.f32 %v13499_v41, %v13498_v9  ;;  %v5706_v23 = vld [vmem:[#allocation12 + $0x198] sm:$0xff]  ;;  %v5830_v8 = vadd.f32 %v5766_v56, %v5702_v40  ;;  %v13500_v30 = vld [vmem:[#allocation174_spill] sm:$0xff]  ;;  %5892 = vst [vmem:[#allocation12 + $0x168] sm:$0xff] %v5828_v28  ;;  %v5831_v48 = vadd.f32 %v5767_v45, %v5703_v6  ;;  %v5709_v36 = vld [vmem:[#allocation12 + $0x1b0] sm:$0xff] }
 0x570   :  { %v5770_v2 = vmul.f32 %v12295_v53, %v13500_v30  ;;  %v13501_v18 = vld [vmem:[#allocation176_spill] sm:$0xff]  ;;  %v5708_v34 = vld [vmem:[#allocation12 + $0x1a8] sm:$0xff]  ;;  %v5832_v42 = vadd.f32 %v5768_v1, %v5704_v39  ;;  %5893 = vst [vmem:[#allocation12 + $0x170] sm:$0xff] %v5829_v7  ;;  %v13503_v60 = vld [vmem:[#allocation111_spill] sm:$0xff] }
 0x571   :  { %v5771_v44 = vmul.f32 %v12303_v31, %v13501_v18  ;;  %v5833_v54 = vadd.f32 %v5769_v13, %v5705_v29  ;;  %v13502_v24 = vld [vmem:[#allocation112_spill] sm:$0xff]  ;;  %5894 = vst [vmem:[#allocation12 + $0x178] sm:$0xff] %v5830_v8  ;;  %v5773_v53 = vmul.f32 %v12314_v49, %v13503_v60  ;;  %v5711_v35 = vld [vmem:[#allocation12 + $0x1c0] sm:$0xff]  ;;  %v5712_v51 = vld [vmem:[#allocation12 + $0x1c8] sm:$0xff] }
 0x572   :  { %v5772_v58 = vmul.f32 %v12311_v63, %v13502_v24  ;;  %v5710_v52 = vld [vmem:[#allocation12 + $0x1b8] sm:$0xff]  ;;  %v5834_v16 = vadd.f32 %v5770_v2, %v5706_v23  ;;  %v5713_v46 = vld [vmem:[#allocation12 + $0x1d0] sm:$0xff]  ;;  %5895 = vst [vmem:[#allocation12 + $0x180] sm:$0xff] %v5831_v48  ;;  %5896 = vst [vmem:[#allocation12 + $0x188] sm:$0xff] %v5832_v42 }
 0x573   :  { %v5835_v19 = vadd.f32 %v5771_v44, %v5707_v37  ;;  %v13504_v0 = vld [vmem:[#allocation156_spill] sm:$0xff]  ;;  %5897 = vst [vmem:[#allocation12 + $0x190] sm:$0xff] %v5833_v54  ;;  %v13505_v63 = vld [vmem:[#allocation118_spill] sm:$0xff]  ;;  %v13506_v11 = vld [vmem:[#allocation221_spill] sm:$0xff] }
 0x574   :  { %v5774_v31 = vmul.f32 %v12323_v20, %v13504_v0  ;;  %v5836_v32 = vadd.f32 %v5772_v58, %v5708_v34  ;;  %v5775_v10 = vmul.f32 %v13506_v11, %v13505_v63  ;;  %v13507_v61 = vld [vmem:[#allocation88_spill] sm:$0xff]  ;;  %v13508_v50 = vld [vmem:[#allocation222_spill] sm:$0xff]  ;;  %v13510_v43 = vld [vmem:[#allocation223_spill] sm:$0xff]  ;;  %5898 = vst [vmem:[#allocation12 + $0x198] sm:$0xff] %v5834_v16  ;;  %v5837_v20 = vadd.f32 %v5773_v53, %v5709_v36 }
 0x575   :  { %v5776_v3 = vmul.f32 %v13508_v50, %v13507_v61  ;;  %v13509_v33 = vld [vmem:[#allocation180_spill] sm:$0xff]  ;;  %v5715_v55 = vld [vmem:[#allocation12 + $0x1e0] sm:$0xff]  ;;  %5899 = vst [vmem:[#allocation12 + $0x1a0] sm:$0xff] %v5835_v19  ;;  %v5716_v62 = vld [vmem:[#allocation12 + $0x1e8] sm:$0xff] }
 0x576   :  { %v5777_v27 = vmul.f32 %v13510_v43, %v13509_v33  ;;  %v5714_v49 = vld [vmem:[#allocation12 + $0x1d8] sm:$0xff]  ;;  %v5838_v4 = vadd.f32 %v5774_v31, %v5710_v52  ;;  %v13511_v25 = vld [vmem:[#allocation181_spill] sm:$0xff]  ;;  %5900 = vst [vmem:[#allocation12 + $0x1a8] sm:$0xff] %v5836_v32  ;;  %v5839_v26 = vadd.f32 %v5775_v10, %v5711_v35  ;;  %v5717_v6 = vld [vmem:[#allocation12 + $0x1f0] sm:$0xff] }
 0x577   :  { %v5778_v59 = vmul.f32 %v13416_v57, %v13511_v25  ;;  %v13512_v22 = vld [vmem:[#allocation184_spill] sm:$0xff]  ;;  %v5840_v17 = vadd.f32 %v5776_v3, %v5712_v51  ;;  %v13513_v12 = vld [vmem:[#allocation185_spill] sm:$0xff]  ;;  %5901 = vst [vmem:[#allocation12 + $0x1b0] sm:$0xff] %v5837_v20 }
 0x578   :  { %v5779_v40 = vmul.f32 %v13418_v15, %v13512_v22  ;;  %v5841_v14 = vadd.f32 %v5777_v27, %v5713_v46  ;;  %v5780_v56 = vmul.f32 %v13420_v5, %v13513_v12  ;;  %v5718_v39 = vld [vmem:[#allocation12 + $0x1f8] sm:$0xff]  ;;  %5902 = vst [vmem:[#allocation12 + $0x1b8] sm:$0xff] %v5838_v4  ;;  %v13515_v45 = vld [vmem:[#allocation189_spill] sm:$0xff]  ;;  %5903 = vst [vmem:[#allocation12 + $0x1c0] sm:$0xff] %v5839_v26 }
 0x579   :  { %v5842_v29 = vadd.f32 %v5778_v59, %v5714_v49  ;;  %v13514_v38 = vld [vmem:[#allocation188_spill] sm:$0xff]  ;;  %5904 = vst [vmem:[#allocation12 + $0x1c8] sm:$0xff] %v5840_v17 }
 0x57a   :  { %v5843_v28 = vadd.f32 %v5779_v40, %v5715_v55  ;;  %v5781_v57 = vmul.f32 %v13422_v47, %v13514_v38  ;;  %v13516_v21 = vld [vmem:[#allocation228_spill] sm:$0xff]  ;;  %5905 = vst [vmem:[#allocation12 + $0x1d0] sm:$0xff] %v5841_v14  ;;  %v5844_v1 = vadd.f32 %v5780_v56, %v5716_v62 }
 0x57b   :  { %v5782_v15 = vmul.f32 %v13516_v21, %v13515_v45  ;;  %5906 = vst [vmem:[#allocation12 + $0x1d8] sm:$0xff] %v5842_v29 }
 0x57c   :  { %5907 = vst [vmem:[#allocation12 + $0x1e0] sm:$0xff] %v5843_v28  ;;  %v5845_v9 = vadd.f32 %v5781_v57, %v5717_v6  ;;  %5908 = vst [vmem:[#allocation12 + $0x1e8] sm:$0xff] %v5844_v1 }
 0x57d   :  { %v5846_v5 = vadd.f32 %v5782_v15, %v5718_v39 }
 0x57e   :  { %5909 = vst [vmem:[#allocation12 + $0x1f0] sm:$0xff] %v5845_v9 }
 0x57f   :  { %5910 = vst [vmem:[#allocation12 + $0x1f8] sm:$0xff] %v5846_v5 }
 0x580 PF:  { %s6871_s0 = smov [#allocation10]   ;;  %s6872_s19 = smov [#allocation9]  }
 0x581   :  { %s5928_s18 = sshll.u32 %s6871_s0, 4  ;;  %s5916_s20 = sshll.u32 %s6872_s19, 4  ;;  %s5929_s18 = int_to_ptr.vmem [resolvable:$true] %s5928_s18  ;;  %s12638_s20 = int_to_ptr.vmem [resolvable:$true] %s5916_s20 }
 0x582   :  { %s6788_s22 = scalar_lea.vmem %s5929_s18, 8192  ;;  %p6793_p6 = scmp.lt.s32.totalorder %s5929_s18, %s5929_s18 }
 0x583   :  { %p6789_p5 = scmp.ne.s32.totalorder %s5929_s18, %s6788_s22  ;;  %p6794_p7 = scmp.lt.s32.totalorder %s6788_s22, %s6788_s22 }
 0x585   :  { %p6795_p8 = por %p6794_p7, %p6793_p6 }
 0x587   :  { %p6796_p9 = pnand %p6795_p8, %p6789_p5 }
 0x589   :  { %6799 = shalt.err (!%p6796_p9)
}
 0x58a   :  { %s6800_s24 = scalar_lea.hbm %s12695_s5, 8192 }
 0x58b   :  { %p6801_p10 = scmp.ne.s32.totalorder %s12695_s5, %s6800_s24  ;;  %p6804_p11 = scmp.lt.u32.totalorder %s6800_s24, %s12695_s5 }
 0x58d   :  { %p6806_p12 = pnand %p6804_p11, %p6801_p10 }
 0x58f   :  { %6809 = shalt.err (!%p6806_p12)
}
 0x590   :  { %5934 = dma.vmem_to_hbm [thread:$0]  %s5929_s18, 8192, %s12695_s5, [#allocation11], %s6866_s1, %s6866_s1, %s6867_s21  }
 0x591   :  { %s6810_s7 = scalar_lea.vmem %s12638_s20, 8192  ;;  %p6815_p0 = scmp.lt.s32.totalorder %s12638_s20, %s12638_s20 }
 0x592   :  { %p6811_p13 = scmp.ne.s32.totalorder %s12638_s20, %s6810_s7  ;;  %p6816_p1 = scmp.lt.s32.totalorder %s6810_s7, %s6810_s7 }
 0x594   :  { %p6817_p2 = por %p6816_p1, %p6815_p0 }
 0x596   :  { %p6818_p3 = pnand %p6817_p2, %p6811_p13 }
 0x598   :  { %6821 = shalt.err (!%p6818_p3)
}
 0x599   :  { %s6822_s10 = scalar_lea.hbm %s12694_s4, 8192 }
 0x59a   :  { %p6823_p4 = scmp.ne.s32.totalorder %s12694_s4, %s6822_s10  ;;  %p6826_p5 = scmp.lt.u32.totalorder %s6822_s10, %s12694_s4 }
 0x59c   :  { %p6828_p6 = pnand %p6826_p5, %p6823_p4 }
 0x59e   :  { %6831 = shalt.err (!%p6828_p6)
}
 0x59f   :  { %5922 = dma.vmem_to_hbm [thread:$0]  %s12638_s20, 8192, %s12694_s4, [#allocation6], %s6866_s1, %s6866_s1, %s6867_s21  }
 0x5a0   :  { %s6873_s15 = smov [#allocation12]  }
 0x5a1   :  { %s5940_s16 = sshll.u32 %s6873_s15, 4  ;;  %s5941_s16 = int_to_ptr.vmem [resolvable:$true] %s5940_s16 }
 0x5a2   :  { %s6832_s17 = scalar_lea.vmem %s5941_s16, 8192  ;;  %p6837_p8 = scmp.lt.s32.totalorder %s5941_s16, %s5941_s16 }
 0x5a3   :  { %p6833_p7 = scmp.ne.s32.totalorder %s5941_s16, %s6832_s17  ;;  %p6838_p9 = scmp.lt.s32.totalorder %s6832_s17, %s6832_s17 }
 0x5a5   :  { %p6839_p10 = por %p6838_p9, %p6837_p8 }
 0x5a7   :  { %p6840_p11 = pnand %p6839_p10, %p6833_p7 }
 0x5a9   :  { %6843 = shalt.err (!%p6840_p11)
}
 0x5aa   :  { %s6844_s19 = scalar_lea.hbm %s12696_s6, 8192 }
 0x5ab   :  { %p6845_p12 = scmp.ne.s32.totalorder %s12696_s6, %s6844_s19  ;;  %p6848_p13 = scmp.lt.u32.totalorder %s6844_s19, %s12696_s6 }
 0x5ad   :  { %p6850_p0 = pnand %p6848_p13, %p6845_p12 }
 0x5af   :  { %6853 = shalt.err (!%p6850_p0)
}
 0x5b0   :  { %5946 = dma.vmem_to_hbm [thread:$0]  %s5941_s16, 8192, %s12696_s6, [#allocation11], %s6866_s1, %s6866_s1, %s6867_s21  }
 0x5b1   :  { %6858 = dma.done.wait [#allocation6], 8192  }
 0x5b2   :  { %6859 = vsyncadd [#allocation6], 4294959104 }
 0x5b3   :  { %6860 = dma.done.wait [#allocation11], 16384  }
 0x5b4   :  { %6861 = vsyncadd [#allocation11], 4294950912 }
 0x5b5   :  { %5956 = vsyncpa [#allocation5], 1 }
 0x5b6   :  { %5957 = vsyncpa [#allocation8], 1 }
 0x5b7   :  { %5958 = vsyncpa [#allocation6], 1 }
 0x5b8   :  { %5959 = vsyncpa [#allocation11], 1 }

</bundles_post_ra>
